<compile_context>
chip_gen: v7x
topology: tpu7x:2x2x1
jax: 0.10.0
libtpu: 0.0.40
codegen_flags: <defaults>
</compile_context>

<pallas_src>
import jax
import jax.numpy as jnp
import numpy as np
from jax import lax
from jax.experimental import pallas as pl
from jax.experimental.pallas import tpu as pltpu

EPS = 1e-5
LANE = 128


# ------------------------------ small helpers ------------------------------
def _ceil_to(n, m=LANE):
    return ((n + m - 1) // m) * m


def _pad_last(x, target):
    pad = target - x.shape[-1]
    if pad == 0:
        return x
    return jnp.pad(x, [(0, 0)] * (x.ndim - 1) + [(0, pad)])


def _pad_2d(w, rows, cols):
    return jnp.pad(w, ((0, rows - w.shape[0]), (0, cols - w.shape[1])))


def _pad_vec(v, cols):
    return jnp.pad(v, (0, cols - v.shape[0]))


def _extract_patches(x_nhwc, k, stride, pad):
    """im2col in XLA: (N,H,W,C) -> ((N*Ho*Wo, k*k*C), (Ho, Wo))."""
    # TODO(synk): pull this strided patch extraction into the Pallas kernels
    # (halo BlockSpec / manual DMA); at real ResNet sizes the k*k expansion is
    # the largest HBM traffic term.  At these toy sizes it is negligible.
    n, h, w, c = x_nhwc.shape
    ho = (h + 2 * pad - k) // stride + 1
    wo = (w + 2 * pad - k) // stride + 1
    xp = jnp.pad(x_nhwc, ((0, 0), (pad, pad), (pad, pad), (0, 0)))
    cols = []
    for dy in range(k):
        for dx in range(k):
            cols.append(xp[:, dy:dy + stride * ho:stride,
                           dx:dx + stride * wo:stride, :])
    patches = jnp.concatenate(cols, axis=-1)
    return patches.reshape(n * ho * wo, k * k * c), (ho, wo)


def _bn_affine(y, gamma, beta):
    """PyTorch training-mode BatchNorm on a (M, C) value, stats over axis 0.

    Two-pass mean / E[(x-mean)^2] (no catastrophic cancellation).  gamma/beta
    are (1, C).  Zero-padded channels have var == 0 -> scale == 0 -> stay 0.
    """
    mean = jnp.mean(y, axis=0, keepdims=True)
    d = y - mean
    var = jnp.mean(d * d, axis=0, keepdims=True)
    scale = gamma * lax.rsqrt(var + EPS)
    shift = beta - mean * scale
    return y * scale + shift


# ---------------- kernel 1: fused stem (matmul + BN + ReLU) ----------------
def _stem_kernel(p_ref, w_ref, g_ref, b_ref, o_ref):
    y = jnp.dot(p_ref[...], w_ref[...], preferred_element_type=jnp.float32)
    o_ref[...] = jnp.maximum(_bn_affine(y, g_ref[...], b_ref[...]), 0.0)


def _stem_call(p, w, g, b):
    m, k = p.shape
    c = w.shape[1]
    return pl.pallas_call(
        _stem_kernel,
        grid=(1,),
        in_specs=[pl.BlockSpec((m, k), lambda i: (0, 0)),
                  pl.BlockSpec((k, c), lambda i: (0, 0)),
                  pl.BlockSpec((1, c), lambda i: (0, 0)),
                  pl.BlockSpec((1, c), lambda i: (0, 0))],
        out_specs=pl.BlockSpec((m, c), lambda i: (0, 0)),
        out_shape=jax.ShapeDtypeStruct((m, c), jnp.float32),
        compiler_params=pltpu.CompilerParams(
            dimension_semantics=("arbitrary",)),
        cost_estimate=pl.CostEstimate(
            flops=int(2 * m * k * c), transcendentals=0,
            bytes_accessed=int(4 * (m * k + k * c + m * c))),
    )(p, w, g, b)


# ------- kernel 2: fused down-sample conv + all 3 bottleneck blocks --------
def _make_res2_kernel(n, h, w, cp, n_blocks):
    m = n * h * w

    def kernel(p_ref, dsw_ref, wcat_ref, w2_ref, w3_ref, gb_ref,
               out_ref, pad_ref):
        # ---- down_sample 3x3/s2 conv (im2col'd outside); no BN / ReLU ----
        hcur = jnp.dot(p_ref[...], dsw_ref[...],
                       preferred_element_type=jnp.float32)          # (m, cp)

        # zero the halo scratch once; interiors are rewritten per block,
        # the 1-pixel border stays zero (== conv zero padding)
        pad_ref[...] = jnp.zeros(pad_ref.shape, jnp.float32)

        for b in range(n_blocks):                                   # static
            gb = gb_ref[b]                                           # (8, cp)

            # conv1 (1x1) and shortcut (1x1) fused: one wide MXU matmul
            y = jnp.dot(hcur, wcat_ref[b],
                        preferred_element_type=jnp.float32)          # (m, 2cp)
            y1, res = y[:, :cp], y[:, cp:]

            # BN1 (exact full-batch stats, in-kernel) + ReLU
            a1 = jnp.maximum(_bn_affine(y1, gb[0:1], gb[1:2]), 0.0)

            # 3x3 / s1 / p1 conv: one lane-dense interior store into the halo
            # scratch, then 9 tap matmuls accumulated in a LOCAL f32 value
            # (no per-tap prod materialization, no ref read-modify-writes).
            pad_ref[:, 1:h + 1, 1:w + 1, :] = a1.reshape(n, h, w, cp)
            acc = None
            for t in range(9):                                       # static
                dy, dx = t // 3, t % 3
                win = pad_ref[:, dy:dy + h, dx:dx + w, :].reshape(m, cp)
                part = jnp.dot(win, w2_ref[b, t],
                               preferred_element_type=jnp.float32)
                acc = part if acc is None else acc + part

            # BN2 + ReLU
            a2 = jnp.maximum(_bn_affine(acc, gb[2:3], gb[3:4]), 0.0)

            # conv3 (1x1)
            y3 = jnp.dot(a2, w3_ref[b], preferred_element_type=jnp.float32)

            # BN3 + residual add + ReLU
            hcur = jnp.maximum(_bn_affine(y3, gb[4:5], gb[5:6]) + res, 0.0)

        out_ref[...] = hcur                                          # (m, cp)

    return kernel


def _res2_call(p2, ds_w, wcat_all, w2_all, w3_all, gb_all, n, h, w):
    m, kp = p2.shape
    cp = ds_w.shape[1]
    nb = wcat_all.shape[0]
    assert m == n * h * w
    return pl.pallas_call(
        _make_res2_kernel(n, h, w, cp, nb),
        grid=(1,),
        in_specs=[pl.BlockSpec((m, kp), lambda i: (0, 0)),
                  pl.BlockSpec((kp, cp), lambda i: (0, 0)),
                  pl.BlockSpec((nb, cp, 2 * cp), lambda i: (0, 0, 0)),
                  pl.BlockSpec((nb, 9, cp, cp), lambda i: (0, 0, 0, 0)),
                  pl.BlockSpec((nb, cp, cp), lambda i: (0, 0, 0)),
                  pl.BlockSpec((nb, 8, cp), lambda i: (0, 0, 0))],
        out_specs=pl.BlockSpec((m, cp), lambda i: (0, 0)),
        out_shape=jax.ShapeDtypeStruct((m, cp), jnp.float32),
        scratch_shapes=[pltpu.VMEM((n, h + 2, w + 2, cp), jnp.float32)],
        compiler_params=pltpu.CompilerParams(
            dimension_semantics=("arbitrary",)),
        cost_estimate=pl.CostEstimate(
            flops=int(2 * m * kp * cp + 2 * m * cp * cp * 12 * nb),
            transcendentals=0,
            bytes_accessed=int(4 * (m * kp + kp * cp + 2 * m * cp
                                    + nb * cp * cp * 12))),
    )(p2, ds_w, wcat_all, w2_all, w3_all, gb_all)


# ------------------------------ DownNet forward -----------------------------
@jax.jit
def downnet_forward(x_nchw, params):
    n, cin, _, _ = x_nchw.shape
    blocks = params["blocks"]
    mid = params["stem_w"].shape[0]
    out_c = blocks[-1]["w_sc"].shape[0]

    # one shared padded channel width keeps every matmul / store lane-dense
    # and lets per-block weights be stacked into single arrays
    all_ch = [mid, out_c] + [bp["w1"].shape[1] for bp in blocks] \
        + [bp["w1"].shape[0] for bp in blocks]
    cp = max(_ceil_to(c) for c in all_ch)

    x = jnp.transpose(x_nchw, (0, 2, 3, 1)).astype(jnp.float32)     # NHWC

    # ---- stem: 7x7 / s2 / p3 conv + BN + ReLU, one fused pallas_call ----
    p1, (h1, w1) = _extract_patches(x, 7, 2, 3)
    kp1 = _ceil_to(p1.shape[1])
    p1 = _pad_last(p1, kp1)
    w_stem = jnp.transpose(params["stem_w"], (2, 3, 1, 0)).reshape(49 * cin, mid)
    w_stem = _pad_2d(w_stem, kp1, cp)
    g_s = _pad_vec(params["stem_g"], cp).reshape(1, cp)
    b_s = _pad_vec(params["stem_b"], cp).reshape(1, cp)
    a = _stem_call(p1, w_stem, g_s, b_s)                            # (n*h1*w1, cp)

    # ---- down_sample im2col (stride 2) on the real channels only ----
    a_img = a.reshape(n, h1, w1, cp)[..., :mid]
    p2, (h2, w2) = _extract_patches(a_img, 3, 2, 1)
    kp2 = _ceil_to(p2.shape[1])
    p2 = _pad_last(p2, kp2)
    w_ds = jnp.transpose(params["ds_w"], (2, 3, 1, 0)).reshape(9 * mid, mid)
    w_ds = _pad_2d(w_ds, kp2, cp)

    # ---- stack the three bottleneck blocks' padded weights ----
    wcat_l, w2_l, w3_l, gb_l = [], [], [], []
    for bp in blocks:
        w1m = _pad_2d(bp["w1"][:, :, 0, 0].T, cp, cp)               # conv1
        wscm = _pad_2d(bp["w_sc"][:, :, 0, 0].T, cp, cp)            # shortcut
        wcat_l.append(jnp.concatenate([w1m, wscm], axis=1))         # (cp, 2cp)
        w2_l.append(jnp.stack([_pad_2d(bp["w2"][:, :, dy, dx].T, cp, cp)
                               for dy in range(3) for dx in range(3)]))
        w3_l.append(_pad_2d(bp["w3"][:, :, 0, 0].T, cp, cp))
        zero = jnp.zeros((cp,), jnp.float32)
        gb_l.append(jnp.stack([_pad_vec(bp["g1"], cp), _pad_vec(bp["b1"], cp),
                               _pad_vec(bp["g2"], cp), _pad_vec(bp["b2"], cp),
                               _pad_vec(bp["g3"], cp), _pad_vec(bp["b3"], cp),
                               zero, zero]))                         # (8, cp)
    wcat_all = jnp.stack(wcat_l)                                     # (3, cp, 2cp)
    w2_all = jnp.stack(w2_l)                                         # (3, 9, cp, cp)
    w3_all = jnp.stack(w3_l)                                         # (3, cp, cp)
    gb_all = jnp.stack(gb_l)                                         # (3, 8, cp)

    out_flat = _res2_call(p2, w_ds, wcat_all, w2_all, w3_all, gb_all,
                          n, h2, w2)
    out = out_flat.reshape(n, h2, w2, cp)[..., :out_c]
    return jnp.transpose(out, (0, 3, 1, 2))                         # NCHW


# ----------------------------- pure-JAX reference ----------------------------
def _bn_ref(x, g, b):
    mean = jnp.mean(x, axis=(0, 2, 3), keepdims=True)
    var = jnp.mean((x - mean) ** 2, axis=(0, 2, 3), keepdims=True)
    return (x - mean) * lax.rsqrt(var + EPS) * g.reshape(1, -1, 1, 1) \
        + b.reshape(1, -1, 1, 1)


def _conv_ref(x, w, stride, pad):
    return lax.conv_general_dilated(
        x, w, window_strides=(stride, stride),
        padding=[(pad, pad), (pad, pad)],
        dimension_numbers=("NCHW", "OIHW", "NCHW"),
        precision=lax.Precision.HIGHEST)


def _bottleneck_ref(x, p):
    residual = _conv_ref(x, p["w_sc"], 1, 0)
    out = _conv_ref(x, p["w1"], 1, 0)
    out = jnp.maximum(_bn_ref(out, p["g1"], p["b1"]), 0.0)
    out = _conv_ref(out, p["w2"], 1, 1)
    out = jnp.maximum(_bn_ref(out, p["g2"], p["b2"]), 0.0)
    out = _conv_ref(out, p["w3"], 1, 0)
    out = _bn_ref(out, p["g3"], p["b3"])
    return jnp.maximum(out + residual, 0.0)


def downnet_ref(x, params):
    h = _conv_ref(x, params["stem_w"], 2, 3)
    h = jnp.maximum(_bn_ref(h, params["stem_g"], params["stem_b"]), 0.0)
    h = _conv_ref(h, params["ds_w"], 2, 1)
    for bp in params["blocks"]:
        h = _bottleneck_ref(h, bp)
    return h


# ------------------------------------ main -----------------------------------
if __name__ == "__main__":
    in_channel, mid_channel, out_channel = 3, 8, 16
    n, h, w = 2, 32, 32

    key = jax.random.PRNGKey(0)
    keys = iter(jax.random.split(key, 64))

    def conv_w(shape):
        return 0.1 * jax.random.normal(next(keys), shape, jnp.float32)

    def gamma(c):
        return 1.0 + 0.1 * jax.random.normal(next(keys), (c,), jnp.float32)

    def beta(c):
        return 0.1 * jax.random.normal(next(keys), (c,), jnp.float32)

    blocks = []
    for bi in range(3):
        ic = mid_channel if bi == 0 else out_channel
        blocks.append(dict(
            w_sc=conv_w((out_channel, ic, 1, 1)),
            w1=conv_w((mid_channel, ic, 1, 1)),
            w2=conv_w((mid_channel, mid_channel, 3, 3)),
            w3=conv_w((out_channel, mid_channel, 1, 1)),
            g1=gamma(mid_channel), b1=beta(mid_channel),
            g2=gamma(mid_channel), b2=beta(mid_channel),
            g3=gamma(out_channel), b3=beta(out_channel),
        ))
    params = dict(
        stem_w=conv_w((mid_channel, in_channel, 7, 7)),
        stem_g=gamma(mid_channel), stem_b=beta(mid_channel),
        ds_w=conv_w((mid_channel, mid_channel, 3, 3)),
        blocks=blocks,
    )

    x = jax.random.normal(next(keys), (n, in_channel, h, w), jnp.float32)

    out = jax.block_until_ready(downnet_forward(x, params))
    ref = jax.block_until_ready(downnet_ref(x, params))

    # f32 operands + f32 accumulation everywhere (the bf16 operand casts that
    # caused the previous mismatch are gone); tolerance only has to absorb
    # MXU f32 pass decomposition vs the HIGHEST-precision XLA conv reference.
    np.testing.assert_allclose(np.asarray(out), np.asarray(ref),
                               atol=2e-2, rtol=2e-2)
    print("KERNEL_OK")
</pallas_src>

<mosaic_0001>
module attributes {stable_mosaic.version = 11 : i64} {
  func.func @_stem_kernel(%arg0: i32, %arg1: memref<512x256xf32, #tpu.memory_space<vmem>>, %arg2: memref<256x128xf32, #tpu.memory_space<vmem>>, %arg3: memref<1x128xf32, #tpu.memory_space<vmem>>, %arg4: memref<1x128xf32, #tpu.memory_space<vmem>>, %arg5: memref<512x128xf32, #tpu.memory_space<vmem>>) attributes {dimension_semantics = [#tpu.dimension_semantics<arbitrary>], iteration_bounds = array<i64: 1>, scalar_prefetch = 0 : i64, scratch_operands = 0 : i64, tpu.core_type = #tpu.core_type<tc>, window_params = [{pipeline_mode = #tpu.pipeline_mode<synchronous>, transform_indices = @transform_0, window_bounds = array<i64: 512, 256>}, {pipeline_mode = #tpu.pipeline_mode<synchronous>, transform_indices = @transform_1, window_bounds = array<i64: 256, 128>}, {pipeline_mode = #tpu.pipeline_mode<synchronous>, transform_indices = @transform_2, window_bounds = array<i64: 1, 128>}, {pipeline_mode = #tpu.pipeline_mode<synchronous>, transform_indices = @transform_3, window_bounds = array<i64: 1, 128>}, {pipeline_mode = #tpu.pipeline_mode<synchronous>, transform_indices = @transform_4, window_bounds = array<i64: 512, 128>}]} {
    %c0 = arith.constant 0 : index
    %c0_0 = arith.constant 0 : index
    %0 = vector.load %arg1[%c0, %c0_0] : memref<512x256xf32, #tpu.memory_space<vmem>>, vector<512x256xf32>
    %c0_1 = arith.constant 0 : index
    %c0_2 = arith.constant 0 : index
    %1 = vector.load %arg2[%c0_1, %c0_2] : memref<256x128xf32, #tpu.memory_space<vmem>>, vector<256x128xf32>
    %cst = arith.constant dense<0.000000e+00> : vector<512x128xf32>
    %2 = tpu.matmul %0, %1, %cst {dimension_numbers = #tpu.dot_dimension_numbers<[1], [0], [0], [1], [0, 0, 1, 1], [], []>} : vector<512x256xf32>, vector<256x128xf32>, vector<512x128xf32> -> vector<512x128xf32>
    %c0_3 = arith.constant 0 : index
    %c0_4 = arith.constant 0 : index
    %3 = vector.load %arg3[%c0_3, %c0_4] : memref<1x128xf32, #tpu.memory_space<vmem>>, vector<1x128xf32>
    %c0_5 = arith.constant 0 : index
    %c0_6 = arith.constant 0 : index
    %4 = vector.load %arg4[%c0_5, %c0_6] : memref<1x128xf32, #tpu.memory_space<vmem>>, vector<1x128xf32>
    %cst_7 = arith.constant dense<0.000000e+00> : vector<128xf32>
    %5 = vector.multi_reduction <add>, %2, %cst_7 [0] : vector<512x128xf32> to vector<128xf32>
    %6 = vector.shape_cast %5 : vector<128xf32> to vector<1x128xf32>
    %cst_8 = arith.constant 5.120000e+02 : f32
    %7 = vector.broadcast %cst_8 : f32 to vector<1x128xf32>
    %8 = arith.divf %6, %7 : vector<1x128xf32>
    %9 = vector.broadcast %8 : vector<1x128xf32> to vector<512x128xf32>
    %10 = arith.subf %2, %9 : vector<512x128xf32>
    %11 = arith.mulf %10, %10 : vector<512x128xf32>
    %cst_9 = arith.constant dense<0.000000e+00> : vector<128xf32>
    %12 = vector.multi_reduction <add>, %11, %cst_9 [0] : vector<512x128xf32> to vector<128xf32>
    %13 = vector.shape_cast %12 : vector<128xf32> to vector<1x128xf32>
    %cst_10 = arith.constant 5.120000e+02 : f32
    %14 = vector.broadcast %cst_10 : f32 to vector<1x128xf32>
    %15 = arith.divf %13, %14 : vector<1x128xf32>
    %cst_11 = arith.constant 9.99999974E-6 : f32
    %16 = vector.broadcast %cst_11 : f32 to vector<1x128xf32>
    %17 = arith.addf %15, %16 : vector<1x128xf32>
    %18 = math.rsqrt %17 : vector<1x128xf32>
    %19 = arith.mulf %3, %18 : vector<1x128xf32>
    %20 = arith.mulf %8, %19 : vector<1x128xf32>
    %21 = arith.subf %4, %20 : vector<1x128xf32>
    %22 = vector.broadcast %19 : vector<1x128xf32> to vector<512x128xf32>
    %23 = arith.mulf %2, %22 : vector<512x128xf32>
    %24 = vector.broadcast %21 : vector<1x128xf32> to vector<512x128xf32>
    %25 = arith.addf %23, %24 : vector<512x128xf32>
    %cst_12 = arith.constant 0.000000e+00 : f32
    %26 = vector.broadcast %cst_12 : f32 to vector<512x128xf32>
    %27 = arith.maximumf %25, %26 : vector<512x128xf32>
    %c0_13 = arith.constant 0 : index
    %c0_14 = arith.constant 0 : index
    %28 = vector.load %arg5[%c0_13, %c0_14] : memref<512x128xf32, #tpu.memory_space<vmem>>, vector<512x128xf32>
    tpu.vector_store %arg5[%c0_13, %c0_14], %27 {strides = array<i32>} : memref<512x128xf32, #tpu.memory_space<vmem>>, vector<512x128xf32>,
    return
  }
  func.func @transform_0(%arg0: i32) -> (i32, i32) {
    %c0_i32 = arith.constant 0 : i32
    %c0_i32_0 = arith.constant 0 : i32
    %c0_i32_1 = arith.constant 0 : i32
    return %c0_i32, %c0_i32_0 : i32, i32
  }
  func.func @transform_1(%arg0: i32) -> (i32, i32) {
    %c0_i32 = arith.constant 0 : i32
    %c0_i32_0 = arith.constant 0 : i32
    %c0_i32_1 = arith.constant 0 : i32
    return %c0_i32, %c0_i32_0 : i32, i32
  }
  func.func @transform_2(%arg0: i32) -> (i32, i32) {
    %c0_i32 = arith.constant 0 : i32
    %c0_i32_0 = arith.constant 0 : i32
    %c0_i32_1 = arith.constant 0 : i32
    return %c0_i32, %c0_i32_0 : i32, i32
  }
  func.func @transform_3(%arg0: i32) -> (i32, i32) {
    %c0_i32 = arith.constant 0 : i32
    %c0_i32_0 = arith.constant 0 : i32
    %c0_i32_1 = arith.constant 0 : i32
    return %c0_i32, %c0_i32_0 : i32, i32
  }
  func.func @transform_4(%arg0: i32) -> (i32, i32) {
    %c0_i32 = arith.constant 0 : i32
    %c0_i32_0 = arith.constant 0 : i32
    %c0_i32_1 = arith.constant 0 : i32
    return %c0_i32, %c0_i32_0 : i32, i32
  }
}

module attributes {stable_mosaic.version = 11 : i64} {
  func.func @kernel(%arg0: i32, %arg1: memref<128x128xf32, #tpu.memory_space<vmem>>, %arg2: memref<128x128xf32, #tpu.memory_space<vmem>>, %arg3: memref<3x128x256xf32, #tpu.memory_space<vmem>>, %arg4: memref<3x9x128x128xf32, #tpu.memory_space<vmem>>, %arg5: memref<3x128x128xf32, #tpu.memory_space<vmem>>, %arg6: memref<3x8x128xf32, #tpu.memory_space<vmem>>, %arg7: memref<128x128xf32, #tpu.memory_space<vmem>>, %arg8: memref<2x10x10x128xf32, #tpu.memory_space<vmem>>) attributes {dimension_semantics = [#tpu.dimension_semantics<arbitrary>], iteration_bounds = array<i64: 1>, scalar_prefetch = 0 : i64, scratch_operands = 1 : i64, tpu.core_type = #tpu.core_type<tc>, window_params = [{pipeline_mode = #tpu.pipeline_mode<synchronous>, transform_indices = @transform_0, window_bounds = array<i64: 128, 128>}, {pipeline_mode = #tpu.pipeline_mode<synchronous>, transform_indices = @transform_1, window_bounds = array<i64: 128, 128>}, {pipeline_mode = #tpu.pipeline_mode<synchronous>, transform_indices = @transform_2, window_bounds = array<i64: 3, 128, 256>}, {pipeline_mode = #tpu.pipeline_mode<synchronous>, transform_indices = @transform_3, window_bounds = array<i64: 3, 9, 128, 128>}, {pipeline_mode = #tpu.pipeline_mode<synchronous>, transform_indices = @transform_4, window_bounds = array<i64: 3, 128, 128>}, {pipeline_mode = #tpu.pipeline_mode<synchronous>, transform_indices = @transform_5, window_bounds = array<i64: 3, 8, 128>}, {pipeline_mode = #tpu.pipeline_mode<synchronous>, transform_indices = @transform_6, window_bounds = array<i64: 128, 128>}]} {
    %c0 = arith.constant 0 : index
    %c0_0 = arith.constant 0 : index
    %0 = vector.load %arg1[%c0, %c0_0] : memref<128x128xf32, #tpu.memory_space<vmem>>, vector<128x128xf32>
    %c0_1 = arith.constant 0 : index
    %c0_2 = arith.constant 0 : index
    %1 = vector.load %arg2[%c0_1, %c0_2] : memref<128x128xf32, #tpu.memory_space<vmem>>, vector<128x128xf32>
    %cst = arith.constant dense<0.000000e+00> : vector<128x128xf32>
    %2 = tpu.matmul %0, %1, %cst {dimension_numbers = #tpu.dot_dimension_numbers<[1], [0], [0], [1], [0, 0, 1, 1], [], []>} : vector<128x128xf32>, vector<128x128xf32>, vector<128x128xf32> -> vector<128x128xf32>
    %cst_3 = arith.constant 0.000000e+00 : f32
    %3 = vector.broadcast %cst_3 : f32 to vector<2x10x10x128xf32>
    %c0_4 = arith.constant 0 : index
    %c0_5 = arith.constant 0 : index
    %c0_6 = arith.constant 0 : index
    %c0_7 = arith.constant 0 : index
    %4 = vector.load %arg8[%c0_4, %c0_5, %c0_6, %c0_7] : memref<2x10x10x128xf32, #tpu.memory_space<vmem>>, vector<2x10x10x128xf32>
    tpu.vector_store %arg8[%c0_4, %c0_5, %c0_6, %c0_7], %3 {strides = array<i32>} : memref<2x10x10x128xf32, #tpu.memory_space<vmem>>, vector<2x10x10x128xf32>,
    %c0_8 = arith.constant 0 : index
    %c0_9 = arith.constant 0 : index
    %c0_10 = arith.constant 0 : index
    %5 = vector.load %arg6[%c0_8, %c0_9, %c0_10] : memref<3x8x128xf32, #tpu.memory_space<vmem>>, vector<1x8x128xf32>
    %6 = vector.shape_cast %5 : vector<1x8x128xf32> to vector<8x128xf32>
    %c0_11 = arith.constant 0 : index
    %c0_12 = arith.constant 0 : index
    %c0_13 = arith.constant 0 : index
    %7 = vector.load %arg3[%c0_11, %c0_12, %c0_13] : memref<3x128x256xf32, #tpu.memory_space<vmem>>, vector<1x128x256xf32>
    %8 = vector.shape_cast %7 : vector<1x128x256xf32> to vector<128x256xf32>
    %cst_14 = arith.constant dense<0.000000e+00> : vector<128x256xf32>
    %9 = tpu.matmul %2, %8, %cst_14 {dimension_numbers = #tpu.dot_dimension_numbers<[1], [0], [0], [1], [0, 0, 1, 1], [], []>} : vector<128x128xf32>, vector<128x256xf32>, vector<128x256xf32> -> vector<128x256xf32>
    %10 = vector.extract_strided_slice %9 {offsets = [0, 0], sizes = [128, 128], strides = [1, 1]} : vector<128x256xf32> to vector<128x128xf32>
    %11 = vector.extract_strided_slice %9 {offsets = [0, 128], sizes = [128, 128], strides = [1, 1]} : vector<128x256xf32> to vector<128x128xf32>
    %12 = vector.extract_strided_slice %6 {offsets = [0, 0], sizes = [1, 128], strides = [1, 1]} : vector<8x128xf32> to vector<1x128xf32>
    %13 = vector.extract_strided_slice %6 {offsets = [1, 0], sizes = [1, 128], strides = [1, 1]} : vector<8x128xf32> to vector<1x128xf32>
    %cst_15 = arith.constant dense<0.000000e+00> : vector<128xf32>
    %14 = vector.multi_reduction <add>, %10, %cst_15 [0] : vector<128x128xf32> to vector<128xf32>
    %15 = vector.shape_cast %14 : vector<128xf32> to vector<1x128xf32>
    %cst_16 = arith.constant 1.280000e+02 : f32
    %16 = vector.broadcast %cst_16 : f32 to vector<1x128xf32>
    %17 = arith.divf %15, %16 : vector<1x128xf32>
    %18 = vector.broadcast %17 : vector<1x128xf32> to vector<128x128xf32>
    %19 = arith.subf %10, %18 : vector<128x128xf32>
    %20 = arith.mulf %19, %19 : vector<128x128xf32>
    %cst_17 = arith.constant dense<0.000000e+00> : vector<128xf32>
    %21 = vector.multi_reduction <add>, %20, %cst_17 [0] : vector<128x128xf32> to vector<128xf32>
    %22 = vector.shape_cast %21 : vector<128xf32> to vector<1x128xf32>
    %cst_18 = arith.constant 1.280000e+02 : f32
    %23 = vector.broadcast %cst_18 : f32 to vector<1x128xf32>
    %24 = arith.divf %22, %23 : vector<1x128xf32>
    %cst_19 = arith.constant 9.99999974E-6 : f32
    %25 = vector.broadcast %cst_19 : f32 to vector<1x128xf32>
    %26 = arith.addf %24, %25 : vector<1x128xf32>
    %27 = math.rsqrt %26 : vector<1x128xf32>
    %28 = arith.mulf %12, %27 : vector<1x128xf32>
    %29 = arith.mulf %17, %28 : vector<1x128xf32>
    %30 = arith.subf %13, %29 : vector<1x128xf32>
    %31 = vector.broadcast %28 : vector<1x128xf32> to vector<128x128xf32>
    %32 = arith.mulf %10, %31 : vector<128x128xf32>
    %33 = vector.broadcast %30 : vector<1x128xf32> to vector<128x128xf32>
    %34 = arith.addf %32, %33 : vector<128x128xf32>
    %cst_20 = arith.constant 0.000000e+00 : f32
    %35 = vector.broadcast %cst_20 : f32 to vector<128x128xf32>
    %36 = arith.maximumf %34, %35 : vector<128x128xf32>
    %37 = vector.shape_cast %36 : vector<128x128xf32> to vector<2x8x8x128xf32>
    %c0_21 = arith.constant 0 : index
    %c1 = arith.constant 1 : index
    %c1_22 = arith.constant 1 : index
    %c0_23 = arith.constant 0 : index
    %38 = vector.load %arg8[%c0_21, %c1, %c1_22, %c0_23] : memref<2x10x10x128xf32, #tpu.memory_space<vmem>>, vector<2x8x8x128xf32>
    tpu.vector_store %arg8[%c0_21, %c1, %c1_22, %c0_23], %37 {strides = array<i32>} : memref<2x10x10x128xf32, #tpu.memory_space<vmem>>, vector<2x8x8x128xf32>,
    %c0_24 = arith.constant 0 : index
    %c0_25 = arith.constant 0 : index
    %c0_26 = arith.constant 0 : index
    %c0_27 = arith.constant 0 : index
    %39 = vector.load %arg8[%c0_24, %c0_25, %c0_26, %c0_27] : memref<2x10x10x128xf32, #tpu.memory_space<vmem>>, vector<2x8x8x128xf32>
    %40 = vector.shape_cast %39 : vector<2x8x8x128xf32> to vector<128x128xf32>
    %c0_28 = arith.constant 0 : index
    %c0_29 = arith.constant 0 : index
    %c0_30 = arith.constant 0 : index
    %c0_31 = arith.constant 0 : index
    %41 = vector.load %arg4[%c0_28, %c0_29, %c0_30, %c0_31] : memref<3x9x128x128xf32, #tpu.memory_space<vmem>>, vector<1x1x128x128xf32>
    %42 = vector.shape_cast %41 : vector<1x1x128x128xf32> to vector<128x128xf32>
    %cst_32 = arith.constant dense<0.000000e+00> : vector<128x128xf32>
    %43 = tpu.matmul %40, %42, %cst_32 {dimension_numbers = #tpu.dot_dimension_numbers<[1], [0], [0], [1], [0, 0, 1, 1], [], []>} : vector<128x128xf32>, vector<128x128xf32>, vector<128x128xf32> -> vector<128x128xf32>
    %c0_33 = arith.constant 0 : index
    %c0_34 = arith.constant 0 : index
    %c1_35 = arith.constant 1 : index
    %c0_36 = arith.constant 0 : index
    %44 = vector.load %arg8[%c0_33, %c0_34, %c1_35, %c0_36] : memref<2x10x10x128xf32, #tpu.memory_space<vmem>>, vector<2x8x8x128xf32>
    %45 = vector.shape_cast %44 : vector<2x8x8x128xf32> to vector<128x128xf32>
    %c0_37 = arith.constant 0 : index
    %c1_38 = arith.constant 1 : index
    %c0_39 = arith.constant 0 : index
    %c0_40 = arith.constant 0 : index
    %46 = vector.load %arg4[%c0_37, %c1_38, %c0_39, %c0_40] : memref<3x9x128x128xf32, #tpu.memory_space<vmem>>, vector<1x1x128x128xf32>
    %47 = vector.shape_cast %46 : vector<1x1x128x128xf32> to vector<128x128xf32>
    %cst_41 = arith.constant dense<0.000000e+00> : vector<128x128xf32>
    %48 = tpu.matmul %45, %47, %cst_41 {dimension_numbers = #tpu.dot_dimension_numbers<[1], [0], [0], [1], [0, 0, 1, 1], [], []>} : vector<128x128xf32>, vector<128x128xf32>, vector<128x128xf32> -> vector<128x128xf32>
    %49 = arith.addf %43, %48 : vector<128x128xf32>
    %c0_42 = arith.constant 0 : index
    %c0_43 = arith.constant 0 : index
    %c2 = arith.constant 2 : index
    %c0_44 = arith.constant 0 : index
    %50 = vector.load %arg8[%c0_42, %c0_43, %c2, %c0_44] : memref<2x10x10x128xf32, #tpu.memory_space<vmem>>, vector<2x8x8x128xf32>
    %51 = vector.shape_cast %50 : vector<2x8x8x128xf32> to vector<128x128xf32>
    %c0_45 = arith.constant 0 : index
    %c2_46 = arith.constant 2 : index
    %c0_47 = arith.constant 0 : index
    %c0_48 = arith.constant 0 : index
    %52 = vector.load %arg4[%c0_45, %c2_46, %c0_47, %c0_48] : memref<3x9x128x128xf32, #tpu.memory_space<vmem>>, vector<1x1x128x128xf32>
    %53 = vector.shape_cast %52 : vector<1x1x128x128xf32> to vector<128x128xf32>
    %cst_49 = arith.constant dense<0.000000e+00> : vector<128x128xf32>
    %54 = tpu.matmul %51, %53, %cst_49 {dimension_numbers = #tpu.dot_dimension_numbers<[1], [0], [0], [1], [0, 0, 1, 1], [], []>} : vector<128x128xf32>, vector<128x128xf32>, vector<128x128xf32> -> vector<128x128xf32>
    %55 = arith.addf %49, %54 : vector<128x128xf32>
    %c0_50 = arith.constant 0 : index
    %c1_51 = arith.constant 1 : index
    %c0_52 = arith.constant 0 : index
    %c0_53 = arith.constant 0 : index
    %56 = vector.load %arg8[%c0_50, %c1_51, %c0_52, %c0_53] : memref<2x10x10x128xf32, #tpu.memory_space<vmem>>, vector<2x8x8x128xf32>
    %57 = vector.shape_cast %56 : vector<2x8x8x128xf32> to vector<128x128xf32>
    %c0_54 = arith.constant 0 : index
    %c3 = arith.constant 3 : index
    %c0_55 = arith.constant 0 : index
    %c0_56 = arith.constant 0 : index
    %58 = vector.load %arg4[%c0_54, %c3, %c0_55, %c0_56] : memref<3x9x128x128xf32, #tpu.memory_space<vmem>>, vector<1x1x128x128xf32>
    %59 = vector.shape_cast %58 : vector<1x1x128x128xf32> to vector<128x128xf32>
    %cst_57 = arith.constant dense<0.000000e+00> : vector<128x128xf32>
    %60 = tpu.matmul %57, %59, %cst_57 {dimension_numbers = #tpu.dot_dimension_numbers<[1], [0], [0], [1], [0, 0, 1, 1], [], []>} : vector<128x128xf32>, vector<128x128xf32>, vector<128x128xf32> -> vector<128x128xf32>
    %61 = arith.addf %55, %60 : vector<128x128xf32>
    %c0_58 = arith.constant 0 : index
    %c1_59 = arith.constant 1 : index
    %c1_60 = arith.constant 1 : index
    %c0_61 = arith.constant 0 : index
    %62 = vector.load %arg8[%c0_58, %c1_59, %c1_60, %c0_61] : memref<2x10x10x128xf32, #tpu.memory_space<vmem>>, vector<2x8x8x128xf32>
    %63 = vector.shape_cast %62 : vector<2x8x8x128xf32> to vector<128x128xf32>
    %c0_62 = arith.constant 0 : index
    %c4 = arith.constant 4 : index
    %c0_63 = arith.constant 0 : index
    %c0_64 = arith.constant 0 : index
    %64 = vector.load %arg4[%c0_62, %c4, %c0_63, %c0_64] : memref<3x9x128x128xf32, #tpu.memory_space<vmem>>, vector<1x1x128x128xf32>
    %65 = vector.shape_cast %64 : vector<1x1x128x128xf32> to vector<128x128xf32>
    %cst_65 = arith.constant dense<0.000000e+00> : vector<128x128xf32>
    %66 = tpu.matmul %63, %65, %cst_65 {dimension_numbers = #tpu.dot_dimension_numbers<[1], [0], [0], [1], [0, 0, 1, 1], [], []>} : vector<128x128xf32>, vector<128x128xf32>, vector<128x128xf32> -> vector<128x128xf32>
    %67 = arith.addf %61, %66 : vector<128x128xf32>
    %c0_66 = arith.constant 0 : index
    %c1_67 = arith.constant 1 : index
    %c2_68 = arith.constant 2 : index
    %c0_69 = arith.constant 0 : index
    %68 = vector.load %arg8[%c0_66, %c1_67, %c2_68, %c0_69] : memref<2x10x10x128xf32, #tpu.memory_space<vmem>>, vector<2x8x8x128xf32>
    %69 = vector.shape_cast %68 : vector<2x8x8x128xf32> to vector<128x128xf32>
    %c0_70 = arith.constant 0 : index
    %c5 = arith.constant 5 : index
    %c0_71 = arith.constant 0 : index
    %c0_72 = arith.constant 0 : index
    %70 = vector.load %arg4[%c0_70, %c5, %c0_71, %c0_72] : memref<3x9x128x128xf32, #tpu.memory_space<vmem>>, vector<1x1x128x128xf32>
    %71 = vector.shape_cast %70 : vector<1x1x128x128xf32> to vector<128x128xf32>
    %cst_73 = arith.constant dense<0.000000e+00> : vector<128x128xf32>
    %72 = tpu.matmul %69, %71, %cst_73 {dimension_numbers = #tpu.dot_dimension_numbers<[1], [0], [0], [1], [0, 0, 1, 1], [], []>} : vector<128x128xf32>, vector<128x128xf32>, vector<128x128xf32> -> vector<128x128xf32>
    %73 = arith.addf %67, %72 : vector<128x128xf32>
    %c0_74 = arith.constant 0 : index
    %c2_75 = arith.constant 2 : index
    %c0_76 = arith.constant 0 : index
    %c0_77 = arith.constant 0 : index
    %74 = vector.load %arg8[%c0_74, %c2_75, %c0_76, %c0_77] : memref<2x10x10x128xf32, #tpu.memory_space<vmem>>, vector<2x8x8x128xf32>
    %75 = vector.shape_cast %74 : vector<2x8x8x128xf32> to vector<128x128xf32>
    %c0_78 = arith.constant 0 : index
    %c6 = arith.constant 6 : index
    %c0_79 = arith.constant 0 : index
    %c0_80 = arith.constant 0 : index
    %76 = vector.load %arg4[%c0_78, %c6, %c0_79, %c0_80] : memref<3x9x128x128xf32, #tpu.memory_space<vmem>>, vector<1x1x128x128xf32>
    %77 = vector.shape_cast %76 : vector<1x1x128x128xf32> to vector<128x128xf32>
    %cst_81 = arith.constant dense<0.000000e+00> : vector<128x128xf32>
    %78 = tpu.matmul %75, %77, %cst_81 {dimension_numbers = #tpu.dot_dimension_numbers<[1], [0], [0], [1], [0, 0, 1, 1], [], []>} : vector<128x128xf32>, vector<128x128xf32>, vector<128x128xf32> -> vector<128x128xf32>
    %79 = arith.addf %73, %78 : vector<128x128xf32>
    %c0_82 = arith.constant 0 : index
    %c2_83 = arith.constant 2 : index
    %c1_84 = arith.constant 1 : index
    %c0_85 = arith.constant 0 : index
    %80 = vector.load %arg8[%c0_82, %c2_83, %c1_84, %c0_85] : memref<2x10x10x128xf32, #tpu.memory_space<vmem>>, vector<2x8x8x128xf32>
    %81 = vector.shape_cast %80 : vector<2x8x8x128xf32> to vector<128x128xf32>
    %c0_86 = arith.constant 0 : index
    %c7 = arith.constant 7 : index
    %c0_87 = arith.constant 0 : index
    %c0_88 = arith.constant 0 : index
    %82 = vector.load %arg4[%c0_86, %c7, %c0_87, %c0_88] : memref<3x9x128x128xf32, #tpu.memory_space<vmem>>, vector<1x1x128x128xf32>
    %83 = vector.shape_cast %82 : vector<1x1x128x128xf32> to vector<128x128xf32>
    %cst_89 = arith.constant dense<0.000000e+00> : vector<128x128xf32>
    %84 = tpu.matmul %81, %83, %cst_89 {dimension_numbers = #tpu.dot_dimension_numbers<[1], [0], [0], [1], [0, 0, 1, 1], [], []>} : vector<128x128xf32>, vector<128x128xf32>, vector<128x128xf32> -> vector<128x128xf32>
    %85 = arith.addf %79, %84 : vector<128x128xf32>
    %c0_90 = arith.constant 0 : index
    %c2_91 = arith.constant 2 : index
    %c2_92 = arith.constant 2 : index
    %c0_93 = arith.constant 0 : index
    %86 = vector.load %arg8[%c0_90, %c2_91, %c2_92, %c0_93] : memref<2x10x10x128xf32, #tpu.memory_space<vmem>>, vector<2x8x8x128xf32>
    %87 = vector.shape_cast %86 : vector<2x8x8x128xf32> to vector<128x128xf32>
    %c0_94 = arith.constant 0 : index
    %c8 = arith.constant 8 : index
    %c0_95 = arith.constant 0 : index
    %c0_96 = arith.constant 0 : index
    %88 = vector.load %arg4[%c0_94, %c8, %c0_95, %c0_96] : memref<3x9x128x128xf32, #tpu.memory_space<vmem>>, vector<1x1x128x128xf32>
    %89 = vector.shape_cast %88 : vector<1x1x128x128xf32> to vector<128x128xf32>
    %cst_97 = arith.constant dense<0.000000e+00> : vector<128x128xf32>
    %90 = tpu.matmul %87, %89, %cst_97 {dimension_numbers = #tpu.dot_dimension_numbers<[1], [0], [0], [1], [0, 0, 1, 1], [], []>} : vector<128x128xf32>, vector<128x128xf32>, vector<128x128xf32> -> vector<128x128xf32>
    %91 = arith.addf %85, %90 : vector<128x128xf32>
    %92 = vector.extract_strided_slice %6 {offsets = [2, 0], sizes = [1, 128], strides = [1, 1]} : vector<8x128xf32> to vector<1x128xf32>
    %93 = vector.extract_strided_slice %6 {offsets = [3, 0], sizes = [1, 128], strides = [1, 1]} : vector<8x128xf32> to vector<1x128xf32>
    %cst_98 = arith.constant dense<0.000000e+00> : vector<128xf32>
    %94 = vector.multi_reduction <add>, %91, %cst_98 [0] : vector<128x128xf32> to vector<128xf32>
    %95 = vector.shape_cast %94 : vector<128xf32> to vector<1x128xf32>
    %cst_99 = arith.constant 1.280000e+02 : f32
    %96 = vector.broadcast %cst_99 : f32 to vector<1x128xf32>
    %97 = arith.divf %95, %96 : vector<1x128xf32>
    %98 = vector.broadcast %97 : vector<1x128xf32> to vector<128x128xf32>
    %99 = arith.subf %91, %98 : vector<128x128xf32>
    %100 = arith.mulf %99, %99 : vector<128x128xf32>
    %cst_100 = arith.constant dense<0.000000e+00> : vector<128xf32>
    %101 = vector.multi_reduction <add>, %100, %cst_100 [0] : vector<128x128xf32> to vector<128xf32>
    %102 = vector.shape_cast %101 : vector<128xf32> to vector<1x128xf32>
    %cst_101 = arith.constant 1.280000e+02 : f32
    %103 = vector.broadcast %cst_101 : f32 to vector<1x128xf32>
    %104 = arith.divf %102, %103 : vector<1x128xf32>
    %cst_102 = arith.constant 9.99999974E-6 : f32
    %105 = vector.broadcast %cst_102 : f32 to vector<1x128xf32>
    %106 = arith.addf %104, %105 : vector<1x128xf32>
    %107 = math.rsqrt %106 : vector<1x128xf32>
    %108 = arith.mulf %92, %107 : vector<1x128xf32>
    %109 = arith.mulf %97, %108 : vector<1x128xf32>
    %110 = arith.subf %93, %109 : vector<1x128xf32>
    %111 = vector.broadcast %108 : vector<1x128xf32> to vector<128x128xf32>
    %112 = arith.mulf %91, %111 : vector<128x128xf32>
    %113 = vector.broadcast %110 : vector<1x128xf32> to vector<128x128xf32>
    %114 = arith.addf %112, %113 : vector<128x128xf32>
    %cst_103 = arith.constant 0.000000e+00 : f32
    %115 = vector.broadcast %cst_103 : f32 to vector<128x128xf32>
    %116 = arith.maximumf %114, %115 : vector<128x128xf32>
    %c0_104 = arith.constant 0 : index
    %c0_105 = arith.constant 0 : index
    %c0_106 = arith.constant 0 : index
    %117 = vector.load %arg5[%c0_104, %c0_105, %c0_106] : memref<3x128x128xf32, #tpu.memory_space<vmem>>, vector<1x128x128xf32>
    %118 = vector.shape_cast %117 : vector<1x128x128xf32> to vector<128x128xf32>
    %cst_107 = arith.constant dense<0.000000e+00> : vector<128x128xf32>
    %119 = tpu.matmul %116, %118, %cst_107 {dimension_numbers = #tpu.dot_dimension_numbers<[1], [0], [0], [1], [0, 0, 1, 1], [], []>} : vector<128x128xf32>, vector<128x128xf32>, vector<128x128xf32> -> vector<128x128xf32>
    %120 = vector.extract_strided_slice %6 {offsets = [4, 0], sizes = [1, 128], strides = [1, 1]} : vector<8x128xf32> to vector<1x128xf32>
    %121 = vector.extract_strided_slice %6 {offsets = [5, 0], sizes = [1, 128], strides = [1, 1]} : vector<8x128xf32> to vector<1x128xf32>
    %cst_108 = arith.constant dense<0.000000e+00> : vector<128xf32>
    %122 = vector.multi_reduction <add>, %119, %cst_108 [0] : vector<128x128xf32> to vector<128xf32>
    %123 = vector.shape_cast %122 : vector<128xf32> to vector<1x128xf32>
    %cst_109 = arith.constant 1.280000e+02 : f32
    %124 = vector.broadcast %cst_109 : f32 to vector<1x128xf32>
    %125 = arith.divf %123, %124 : vector<1x128xf32>
    %126 = vector.broadcast %125 : vector<1x128xf32> to vector<128x128xf32>
    %127 = arith.subf %119, %126 : vector<128x128xf32>
    %128 = arith.mulf %127, %127 : vector<128x128xf32>
    %cst_110 = arith.constant dense<0.000000e+00> : vector<128xf32>
    %129 = vector.multi_reduction <add>, %128, %cst_110 [0] : vector<128x128xf32> to vector<128xf32>
    %130 = vector.shape_cast %129 : vector<128xf32> to vector<1x128xf32>
    %cst_111 = arith.constant 1.280000e+02 : f32
    %131 = vector.broadcast %cst_111 : f32 to vector<1x128xf32>
    %132 = arith.divf %130, %131 : vector<1x128xf32>
    %cst_112 = arith.constant 9.99999974E-6 : f32
    %133 = vector.broadcast %cst_112 : f32 to vector<1x128xf32>
    %134 = arith.addf %132, %133 : vector<1x128xf32>
    %135 = math.rsqrt %134 : vector<1x128xf32>
    %136 = arith.mulf %120, %135 : vector<1x128xf32>
    %137 = arith.mulf %125, %136 : vector<1x128xf32>
    %138 = arith.subf %121, %137 : vector<1x128xf32>
    %139 = vector.broadcast %136 : vector<1x128xf32> to vector<128x128xf32>
    %140 = arith.mulf %119, %139 : vector<128x128xf32>
    %141 = vector.broadcast %138 : vector<1x128xf32> to vector<128x128xf32>
    %142 = arith.addf %140, %141 : vector<128x128xf32>
    %143 = arith.addf %142, %11 : vector<128x128xf32>
    %cst_113 = arith.constant 0.000000e+00 : f32
    %144 = vector.broadcast %cst_113 : f32 to vector<128x128xf32>
    %145 = arith.maximumf %143, %144 : vector<128x128xf32>
    %c1_114 = arith.constant 1 : index
    %c0_115 = arith.constant 0 : index
    %c0_116 = arith.constant 0 : index
    %146 = vector.load %arg6[%c1_114, %c0_115, %c0_116] : memref<3x8x128xf32, #tpu.memory_space<vmem>>, vector<1x8x128xf32>
    %147 = vector.shape_cast %146 : vector<1x8x128xf32> to vector<8x128xf32>
    %c1_117 = arith.constant 1 : index
    %c0_118 = arith.constant 0 : index
    %c0_119 = arith.constant 0 : index
    %148 = vector.load %arg3[%c1_117, %c0_118, %c0_119] : memref<3x128x256xf32, #tpu.memory_space<vmem>>, vector<1x128x256xf32>
    %149 = vector.shape_cast %148 : vector<1x128x256xf32> to vector<128x256xf32>
    %cst_120 = arith.constant dense<0.000000e+00> : vector<128x256xf32>
    %150 = tpu.matmul %145, %149, %cst_120 {dimension_numbers = #tpu.dot_dimension_numbers<[1], [0], [0], [1], [0, 0, 1, 1], [], []>} : vector<128x128xf32>, vector<128x256xf32>, vector<128x256xf32> -> vector<128x256xf32>
    %151 = vector.extract_strided_slice %150 {offsets = [0, 0], sizes = [128, 128], strides = [1, 1]} : vector<128x256xf32> to vector<128x128xf32>
    %152 = vector.extract_strided_slice %150 {offsets = [0, 128], sizes = [128, 128], strides = [1, 1]} : vector<128x256xf32> to vector<128x128xf32>
    %153 = vector.extract_strided_slice %147 {offsets = [0, 0], sizes = [1, 128], strides = [1, 1]} : vector<8x128xf32> to vector<1x128xf32>
    %154 = vector.extract_strided_slice %147 {offsets = [1, 0], sizes = [1, 128], strides = [1, 1]} : vector<8x128xf32> to vector<1x128xf32>
    %cst_121 = arith.constant dense<0.000000e+00> : vector<128xf32>
    %155 = vector.multi_reduction <add>, %151, %cst_121 [0] : vector<128x128xf32> to vector<128xf32>
    %156 = vector.shape_cast %155 : vector<128xf32> to vector<1x128xf32>
    %cst_122 = arith.constant 1.280000e+02 : f32
    %157 = vector.broadcast %cst_122 : f32 to vector<1x128xf32>
    %158 = arith.divf %156, %157 : vector<1x128xf32>
    %159 = vector.broadcast %158 : vector<1x128xf32> to vector<128x128xf32>
    %160 = arith.subf %151, %159 : vector<128x128xf32>
    %161 = arith.mulf %160, %160 : vector<128x128xf32>
    %cst_123 = arith.constant dense<0.000000e+00> : vector<128xf32>
    %162 = vector.multi_reduction <add>, %161, %cst_123 [0] : vector<128x128xf32> to vector<128xf32>
    %163 = vector.shape_cast %162 : vector<128xf32> to vector<1x128xf32>
    %cst_124 = arith.constant 1.280000e+02 : f32
    %164 = vector.broadcast %cst_124 : f32 to vector<1x128xf32>
    %165 = arith.divf %163, %164 : vector<1x128xf32>
    %cst_125 = arith.constant 9.99999974E-6 : f32
    %166 = vector.broadcast %cst_125 : f32 to vector<1x128xf32>
    %167 = arith.addf %165, %166 : vector<1x128xf32>
    %168 = math.rsqrt %167 : vector<1x128xf32>
    %169 = arith.mulf %153, %168 : vector<1x128xf32>
    %170 = arith.mulf %158, %169 : vector<1x128xf32>
    %171 = arith.subf %154, %170 : vector<1x128xf32>
    %172 = vector.broadcast %169 : vector<1x128xf32> to vector<128x128xf32>
    %173 = arith.mulf %151, %172 : vector<128x128xf32>
    %174 = vector.broadcast %171 : vector<1x128xf32> to vector<128x128xf32>
    %175 = arith.addf %173, %174 : vector<128x128xf32>
    %cst_126 = arith.constant 0.000000e+00 : f32
    %176 = vector.broadcast %cst_126 : f32 to vector<128x128xf32>
    %177 = arith.maximumf %175, %176 : vector<128x128xf32>
    %178 = vector.shape_cast %177 : vector<128x128xf32> to vector<2x8x8x128xf32>
    %c0_127 = arith.constant 0 : index
    %c1_128 = arith.constant 1 : index
    %c1_129 = arith.constant 1 : index
    %c0_130 = arith.constant 0 : index
    %179 = vector.load %arg8[%c0_127, %c1_128, %c1_129, %c0_130] : memref<2x10x10x128xf32, #tpu.memory_space<vmem>>, vector<2x8x8x128xf32>
    tpu.vector_store %arg8[%c0_127, %c1_128, %c1_129, %c0_130], %178 {strides = array<i32>} : memref<2x10x10x128xf32, #tpu.memory_space<vmem>>, vector<2x8x8x128xf32>,
    %c0_131 = arith.constant 0 : index
    %c0_132 = arith.constant 0 : index
    %c0_133 = arith.constant 0 : index
    %c0_134 = arith.constant 0 : index
    %180 = vector.load %arg8[%c0_131, %c0_132, %c0_133, %c0_134] : memref<2x10x10x128xf32, #tpu.memory_space<vmem>>, vector<2x8x8x128xf32>
    %181 = vector.shape_cast %180 : vector<2x8x8x128xf32> to vector<128x128xf32>
    %c1_135 = arith.constant 1 : index
    %c0_136 = arith.constant 0 : index
    %c0_137 = arith.constant 0 : index
    %c0_138 = arith.constant 0 : index
    %182 = vector.load %arg4[%c1_135, %c0_136, %c0_137, %c0_138] : memref<3x9x128x128xf32, #tpu.memory_space<vmem>>, vector<1x1x128x128xf32>
    %183 = vector.shape_cast %182 : vector<1x1x128x128xf32> to vector<128x128xf32>
    %cst_139 = arith.constant dense<0.000000e+00> : vector<128x128xf32>
    %184 = tpu.matmul %181, %183, %cst_139 {dimension_numbers = #tpu.dot_dimension_numbers<[1], [0], [0], [1], [0, 0, 1, 1], [], []>} : vector<128x128xf32>, vector<128x128xf32>, vector<128x128xf32> -> vector<128x128xf32>
    %c0_140 = arith.constant 0 : index
    %c0_141 = arith.constant 0 : index
    %c1_142 = arith.constant 1 : index
    %c0_143 = arith.constant 0 : index
    %185 = vector.load %arg8[%c0_140, %c0_141, %c1_142, %c0_143] : memref<2x10x10x128xf32, #tpu.memory_space<vmem>>, vector<2x8x8x128xf32>
    %186 = vector.shape_cast %185 : vector<2x8x8x128xf32> to vector<128x128xf32>
    %c1_144 = arith.constant 1 : index
    %c1_145 = arith.constant 1 : index
    %c0_146 = arith.constant 0 : index
    %c0_147 = arith.constant 0 : index
    %187 = vector.load %arg4[%c1_144, %c1_145, %c0_146, %c0_147] : memref<3x9x128x128xf32, #tpu.memory_space<vmem>>, vector<1x1x128x128xf32>
    %188 = vector.shape_cast %187 : vector<1x1x128x128xf32> to vector<128x128xf32>
    %cst_148 = arith.constant dense<0.000000e+00> : vector<128x128xf32>
    %189 = tpu.matmul %186, %188, %cst_148 {dimension_numbers = #tpu.dot_dimension_numbers<[1], [0], [0], [1], [0, 0, 1, 1], [], []>} : vector<128x128xf32>, vector<128x128xf32>, vector<128x128xf32> -> vector<128x128xf32>
    %190 = arith.addf %184, %189 : vector<128x128xf32>
    %c0_149 = arith.constant 0 : index
    %c0_150 = arith.constant 0 : index
    %c2_151 = arith.constant 2 : index
    %c0_152 = arith.constant 0 : index
    %191 = vector.load %arg8[%c0_149, %c0_150, %c2_151, %c0_152] : memref<2x10x10x128xf32, #tpu.memory_space<vmem>>, vector<2x8x8x128xf32>
    %192 = vector.shape_cast %191 : vector<2x8x8x128xf32> to vector<128x128xf32>
    %c1_153 = arith.constant 1 : index
    %c2_154 = arith.constant 2 : index
    %c0_155 = arith.constant 0 : index
    %c0_156 = arith.constant 0 : index
    %193 = vector.load %arg4[%c1_153, %c2_154, %c0_155, %c0_156] : memref<3x9x128x128xf32, #tpu.memory_space<vmem>>, vector<1x1x128x128xf32>
    %194 = vector.shape_cast %193 : vector<1x1x128x128xf32> to vector<128x128xf32>
    %cst_157 = arith.constant dense<0.000000e+00> : vector<128x128xf32>
    %195 = tpu.matmul %192, %194, %cst_157 {dimension_numbers = #tpu.dot_dimension_numbers<[1], [0], [0], [1], [0, 0, 1, 1], [], []>} : vector<128x128xf32>, vector<128x128xf32>, vector<128x128xf32> -> vector<128x128xf32>
    %196 = arith.addf %190, %195 : vector<128x128xf32>
    %c0_158 = arith.constant 0 : index
    %c1_159 = arith.constant 1 : index
    %c0_160 = arith.constant 0 : index
    %c0_161 = arith.constant 0 : index
    %197 = vector.load %arg8[%c0_158, %c1_159, %c0_160, %c0_161] : memref<2x10x10x128xf32, #tpu.memory_space<vmem>>, vector<2x8x8x128xf32>
    %198 = vector.shape_cast %197 : vector<2x8x8x128xf32> to vector<128x128xf32>
    %c1_162 = arith.constant 1 : index
    %c3_163 = arith.constant 3 : index
    %c0_164 = arith.constant 0 : index
    %c0_165 = arith.constant 0 : index
    %199 = vector.load %arg4[%c1_162, %c3_163, %c0_164, %c0_165] : memref<3x9x128x128xf32, #tpu.memory_space<vmem>>, vector<1x1x128x128xf32>
    %200 = vector.shape_cast %199 : vector<1x1x128x128xf32> to vector<128x128xf32>
    %cst_166 = arith.constant dense<0.000000e+00> : vector<128x128xf32>
    %201 = tpu.matmul %198, %200, %cst_166 {dimension_numbers = #tpu.dot_dimension_numbers<[1], [0], [0], [1], [0, 0, 1, 1], [], []>} : vector<128x128xf32>, vector<128x128xf32>, vector<128x128xf32> -> vector<128x128xf32>
    %202 = arith.addf %196, %201 : vector<128x128xf32>
    %c0_167 = arith.constant 0 : index
    %c1_168 = arith.constant 1 : index
    %c1_169 = arith.constant 1 : index
    %c0_170 = arith.constant 0 : index
    %203 = vector.load %arg8[%c0_167, %c1_168, %c1_169, %c0_170] : memref<2x10x10x128xf32, #tpu.memory_space<vmem>>, vector<2x8x8x128xf32>
    %204 = vector.shape_cast %203 : vector<2x8x8x128xf32> to vector<128x128xf32>
    %c1_171 = arith.constant 1 : index
    %c4_172 = arith.constant 4 : index
    %c0_173 = arith.constant 0 : index
    %c0_174 = arith.constant 0 : index
    %205 = vector.load %arg4[%c1_171, %c4_172, %c0_173, %c0_174] : memref<3x9x128x128xf32, #tpu.memory_space<vmem>>, vector<1x1x128x128xf32>
    %206 = vector.shape_cast %205 : vector<1x1x128x128xf32> to vector<128x128xf32>
    %cst_175 = arith.constant dense<0.000000e+00> : vector<128x128xf32>
    %207 = tpu.matmul %204, %206, %cst_175 {dimension_numbers = #tpu.dot_dimension_numbers<[1], [0], [0], [1], [0, 0, 1, 1], [], []>} : vector<128x128xf32>, vector<128x128xf32>, vector<128x128xf32> -> vector<128x128xf32>
    %208 = arith.addf %202, %207 : vector<128x128xf32>
    %c0_176 = arith.constant 0 : index
    %c1_177 = arith.constant 1 : index
    %c2_178 = arith.constant 2 : index
    %c0_179 = arith.constant 0 : index
    %209 = vector.load %arg8[%c0_176, %c1_177, %c2_178, %c0_179] : memref<2x10x10x128xf32, #tpu.memory_space<vmem>>, vector<2x8x8x128xf32>
    %210 = vector.shape_cast %209 : vector<2x8x8x128xf32> to vector<128x128xf32>
    %c1_180 = arith.constant 1 : index
    %c5_181 = arith.constant 5 : index
    %c0_182 = arith.constant 0 : index
    %c0_183 = arith.constant 0 : index
    %211 = vector.load %arg4[%c1_180, %c5_181, %c0_182, %c0_183] : memref<3x9x128x128xf32, #tpu.memory_space<vmem>>, vector<1x1x128x128xf32>
    %212 = vector.shape_cast %211 : vector<1x1x128x128xf32> to vector<128x128xf32>
    %cst_184 = arith.constant dense<0.000000e+00> : vector<128x128xf32>
    %213 = tpu.matmul %210, %212, %cst_184 {dimension_numbers = #tpu.dot_dimension_numbers<[1], [0], [0], [1], [0, 0, 1, 1], [], []>} : vector<128x128xf32>, vector<128x128xf32>, vector<128x128xf32> -> vector<128x128xf32>
    %214 = arith.addf %208, %213 : vector<128x128xf32>
    %c0_185 = arith.constant 0 : index
    %c2_186 = arith.constant 2 : index
    %c0_187 = arith.constant 0 : index
    %c0_188 = arith.constant 0 : index
    %215 = vector.load %arg8[%c0_185, %c2_186, %c0_187, %c0_188] : memref<2x10x10x128xf32, #tpu.memory_space<vmem>>, vector<2x8x8x128xf32>
    %216 = vector.shape_cast %215 : vector<2x8x8x128xf32> to vector<128x128xf32>
    %c1_189 = arith.constant 1 : index
    %c6_190 = arith.constant 6 : index
    %c0_191 = arith.constant 0 : index
    %c0_192 = arith.constant 0 : index
    %217 = vector.load %arg4[%c1_189, %c6_190, %c0_191, %c0_192] : memref<3x9x128x128xf32, #tpu.memory_space<vmem>>, vector<1x1x128x128xf32>
    %218 = vector.shape_cast %217 : vector<1x1x128x128xf32> to vector<128x128xf32>
    %cst_193 = arith.constant dense<0.000000e+00> : vector<128x128xf32>
    %219 = tpu.matmul %216, %218, %cst_193 {dimension_numbers = #tpu.dot_dimension_numbers<[1], [0], [0], [1], [0, 0, 1, 1], [], []>} : vector<128x128xf32>, vector<128x128xf32>, vector<128x128xf32> -> vector<128x128xf32>
    %220 = arith.addf %214, %219 : vector<128x128xf32>
    %c0_194 = arith.constant 0 : index
    %c2_195 = arith.constant 2 : index
    %c1_196 = arith.constant 1 : index
    %c0_197 = arith.constant 0 : index
    %221 = vector.load %arg8[%c0_194, %c2_195, %c1_196, %c0_197] : memref<2x10x10x128xf32, #tpu.memory_space<vmem>>, vector<2x8x8x128xf32>
    %222 = vector.shape_cast %221 : vector<2x8x8x128xf32> to vector<128x128xf32>
    %c1_198 = arith.constant 1 : index
    %c7_199 = arith.constant 7 : index
    %c0_200 = arith.constant 0 : index
    %c0_201 = arith.constant 0 : index
    %223 = vector.load %arg4[%c1_198, %c7_199, %c0_200, %c0_201] : memref<3x9x128x128xf32, #tpu.memory_space<vmem>>, vector<1x1x128x128xf32>
    %224 = vector.shape_cast %223 : vector<1x1x128x128xf32> to vector<128x128xf32>
    %cst_202 = arith.constant dense<0.000000e+00> : vector<128x128xf32>
    %225 = tpu.matmul %222, %224, %cst_202 {dimension_numbers = #tpu.dot_dimension_numbers<[1], [0], [0], [1], [0, 0, 1, 1], [], []>} : vector<128x128xf32>, vector<128x128xf32>, vector<128x128xf32> -> vector<128x128xf32>
    %226 = arith.addf %220, %225 : vector<128x128xf32>
    %c0_203 = arith.constant 0 : index
    %c2_204 = arith.constant 2 : index
    %c2_205 = arith.constant 2 : index
    %c0_206 = arith.constant 0 : index
    %227 = vector.load %arg8[%c0_203, %c2_204, %c2_205, %c0_206] : memref<2x10x10x128xf32, #tpu.memory_space<vmem>>, vector<2x8x8x128xf32>
    %228 = vector.shape_cast %227 : vector<2x8x8x128xf32> to vector<128x128xf32>
    %c1_207 = arith.constant 1 : index
    %c8_208 = arith.constant 8 : index
    %c0_209 = arith.constant 0 : index
    %c0_210 = arith.constant 0 : index
    %229 = vector.load %arg4[%c1_207, %c8_208, %c0_209, %c0_210] : memref<3x9x128x128xf32, #tpu.memory_space<vmem>>, vector<1x1x128x128xf32>
    %230 = vector.shape_cast %229 : vector<1x1x128x128xf32> to vector<128x128xf32>
    %cst_211 = arith.constant dense<0.000000e+00> : vector<128x128xf32>
    %231 = tpu.matmul %228, %230, %cst_211 {dimension_numbers = #tpu.dot_dimension_numbers<[1], [0], [0], [1], [0, 0, 1, 1], [], []>} : vector<128x128xf32>, vector<128x128xf32>, vector<128x128xf32> -> vector<128x128xf32>
    %232 = arith.addf %226, %231 : vector<128x128xf32>
    %233 = vector.extract_strided_slice %147 {offsets = [2, 0], sizes = [1, 128], strides = [1, 1]} : vector<8x128xf32> to vector<1x128xf32>
    %234 = vector.extract_strided_slice %147 {offsets = [3, 0], sizes = [1, 128], strides = [1, 1]} : vector<8x128xf32> to vector<1x128xf32>
    %cst_212 = arith.constant dense<0.000000e+00> : vector<128xf32>
    %235 = vector.multi_reduction <add>, %232, %cst_212 [0] : vector<128x128xf32> to vector<128xf32>
    %236 = vector.shape_cast %235 : vector<128xf32> to vector<1x128xf32>
    %cst_213 = arith.constant 1.280000e+02 : f32
    %237 = vector.broadcast %cst_213 : f32 to vector<1x128xf32>
    %238 = arith.divf %236, %237 : vector<1x128xf32>
    %239 = vector.broadcast %238 : vector<1x128xf32> to vector<128x128xf32>
    %240 = arith.subf %232, %239 : vector<128x128xf32>
    %241 = arith.mulf %240, %240 : vector<128x128xf32>
    %cst_214 = arith.constant dense<0.000000e+00> : vector<128xf32>
    %242 = vector.multi_reduction <add>, %241, %cst_214 [0] : vector<128x128xf32> to vector<128xf32>
    %243 = vector.shape_cast %242 : vector<128xf32> to vector<1x128xf32>
    %cst_215 = arith.constant 1.280000e+02 : f32
    %244 = vector.broadcast %cst_215 : f32 to vector<1x128xf32>
    %245 = arith.divf %243, %244 : vector<1x128xf32>
    %cst_216 = arith.constant 9.99999974E-6 : f32
    %246 = vector.broadcast %cst_216 : f32 to vector<1x128xf32>
    %247 = arith.addf %245, %246 : vector<1x128xf32>
    %248 = math.rsqrt %247 : vector<1x128xf32>
    %249 = arith.mulf %233, %248 : vector<1x128xf32>
    %250 = arith.mulf %238, %249 : vector<1x128xf32>
    %251 = arith.subf %234, %250 : vector<1x128xf32>
    %252 = vector.broadcast %249 : vector<1x128xf32> to vector<128x128xf32>
    %253 = arith.mulf %232, %252 : vector<128x128xf32>
    %254 = vector.broadcast %251 : vector<1x128xf32> to vector<128x128xf32>
    %255 = arith.addf %253, %254 : vector<128x128xf32>
    %cst_217 = arith.constant 0.000000e+00 : f32
    %256 = vector.broadcast %cst_217 : f32 to vector<128x128xf32>
    %257 = arith.maximumf %255, %256 : vector<128x128xf32>
    %c1_218 = arith.constant 1 : index
    %c0_219 = arith.constant 0 : index
    %c0_220 = arith.constant 0 : index
    %258 = vector.load %arg5[%c1_218, %c0_219, %c0_220] : memref<3x128x128xf32, #tpu.memory_space<vmem>>, vector<1x128x128xf32>
    %259 = vector.shape_cast %258 : vector<1x128x128xf32> to vector<128x128xf32>
    %cst_221 = arith.constant dense<0.000000e+00> : vector<128x128xf32>
    %260 = tpu.matmul %257, %259, %cst_221 {dimension_numbers = #tpu.dot_dimension_numbers<[1], [0], [0], [1], [0, 0, 1, 1], [], []>} : vector<128x128xf32>, vector<128x128xf32>, vector<128x128xf32> -> vector<128x128xf32>
    %261 = vector.extract_strided_slice %147 {offsets = [4, 0], sizes = [1, 128], strides = [1, 1]} : vector<8x128xf32> to vector<1x128xf32>
    %262 = vector.extract_strided_slice %147 {offsets = [5, 0], sizes = [1, 128], strides = [1, 1]} : vector<8x128xf32> to vector<1x128xf32>
    %cst_222 = arith.constant dense<0.000000e+00> : vector<128xf32>
    %263 = vector.multi_reduction <add>, %260, %cst_222 [0] : vector<128x128xf32> to vector<128xf32>
    %264 = vector.shape_cast %263 : vector<128xf32> to vector<1x128xf32>
    %cst_223 = arith.constant 1.280000e+02 : f32
    %265 = vector.broadcast %cst_223 : f32 to vector<1x128xf32>
    %266 = arith.divf %264, %265 : vector<1x128xf32>
    %267 = vector.broadcast %266 : vector<1x128xf32> to vector<128x128xf32>
    %268 = arith.subf %260, %267 : vector<128x128xf32>
    %269 = arith.mulf %268, %268 : vector<128x128xf32>
    %cst_224 = arith.constant dense<0.000000e+00> : vector<128xf32>
    %270 = vector.multi_reduction <add>, %269, %cst_224 [0] : vector<128x128xf32> to vector<128xf32>
    %271 = vector.shape_cast %270 : vector<128xf32> to vector<1x128xf32>
    %cst_225 = arith.constant 1.280000e+02 : f32
    %272 = vector.broadcast %cst_225 : f32 to vector<1x128xf32>
    %273 = arith.divf %271, %272 : vector<1x128xf32>
    %cst_226 = arith.constant 9.99999974E-6 : f32
    %274 = vector.broadcast %cst_226 : f32 to vector<1x128xf32>
    %275 = arith.addf %273, %274 : vector<1x128xf32>
    %276 = math.rsqrt %275 : vector<1x128xf32>
    %277 = arith.mulf %261, %276 : vector<1x128xf32>
    %278 = arith.mulf %266, %277 : vector<1x128xf32>
    %279 = arith.subf %262, %278 : vector<1x128xf32>
    %280 = vector.broadcast %277 : vector<1x128xf32> to vector<128x128xf32>
    %281 = arith.mulf %260, %280 : vector<128x128xf32>
    %282 = vector.broadcast %279 : vector<1x128xf32> to vector<128x128xf32>
    %283 = arith.addf %281, %282 : vector<128x128xf32>
    %284 = arith.addf %283, %152 : vector<128x128xf32>
    %cst_227 = arith.constant 0.000000e+00 : f32
    %285 = vector.broadcast %cst_227 : f32 to vector<128x128xf32>
    %286 = arith.maximumf %284, %285 : vector<128x128xf32>
    %c2_228 = arith.constant 2 : index
    %c0_229 = arith.constant 0 : index
    %c0_230 = arith.constant 0 : index
    %287 = vector.load %arg6[%c2_228, %c0_229, %c0_230] : memref<3x8x128xf32, #tpu.memory_space<vmem>>, vector<1x8x128xf32>
    %288 = vector.shape_cast %287 : vector<1x8x128xf32> to vector<8x128xf32>
    %c2_231 = arith.constant 2 : index
    %c0_232 = arith.constant 0 : index
    %c0_233 = arith.constant 0 : index
    %289 = vector.load %arg3[%c2_231, %c0_232, %c0_233] : memref<3x128x256xf32, #tpu.memory_space<vmem>>, vector<1x128x256xf32>
    %290 = vector.shape_cast %289 : vector<1x128x256xf32> to vector<128x256xf32>
    %cst_234 = arith.constant dense<0.000000e+00> : vector<128x256xf32>
    %291 = tpu.matmul %286, %290, %cst_234 {dimension_numbers = #tpu.dot_dimension_numbers<[1], [0], [0], [1], [0, 0, 1, 1], [], []>} : vector<128x128xf32>, vector<128x256xf32>, vector<128x256xf32> -> vector<128x256xf32>
    %292 = vector.extract_strided_slice %291 {offsets = [0, 0], sizes = [128, 128], strides = [1, 1]} : vector<128x256xf32> to vector<128x128xf32>
    %293 = vector.extract_strided_slice %291 {offsets = [0, 128], sizes = [128, 128], strides = [1, 1]} : vector<128x256xf32> to vector<128x128xf32>
    %294 = vector.extract_strided_slice %288 {offsets = [0, 0], sizes = [1, 128], strides = [1, 1]} : vector<8x128xf32> to vector<1x128xf32>
    %295 = vector.extract_strided_slice %288 {offsets = [1, 0], sizes = [1, 128], strides = [1, 1]} : vector<8x128xf32> to vector<1x128xf32>
    %cst_235 = arith.constant dense<0.000000e+00> : vector<128xf32>
    %296 = vector.multi_reduction <add>, %292, %cst_235 [0] : vector<128x128xf32> to vector<128xf32>
    %297 = vector.shape_cast %296 : vector<128xf32> to vector<1x128xf32>
    %cst_236 = arith.constant 1.280000e+02 : f32
    %298 = vector.broadcast %cst_236 : f32 to vector<1x128xf32>
    %299 = arith.divf %297, %298 : vector<1x128xf32>
    %300 = vector.broadcast %299 : vector<1x128xf32> to vector<128x128xf32>
    %301 = arith.subf %292, %300 : vector<128x128xf32>
    %302 = arith.mulf %301, %301 : vector<128x128xf32>
    %cst_237 = arith.constant dense<0.000000e+00> : vector<128xf32>
    %303 = vector.multi_reduction <add>, %302, %cst_237 [0] : vector<128x128xf32> to vector<128xf32>
    %304 = vector.shape_cast %303 : vector<128xf32> to vector<1x128xf32>
    %cst_238 = arith.constant 1.280000e+02 : f32
    %305 = vector.broadcast %cst_238 : f32 to vector<1x128xf32>
    %306 = arith.divf %304, %305 : vector<1x128xf32>
    %cst_239 = arith.constant 9.99999974E-6 : f32
    %307 = vector.broadcast %cst_239 : f32 to vector<1x128xf32>
    %308 = arith.addf %306, %307 : vector<1x128xf32>
    %309 = math.rsqrt %308 : vector<1x128xf32>
    %310 = arith.mulf %294, %309 : vector<1x128xf32>
    %311 = arith.mulf %299, %310 : vector<1x128xf32>
    %312 = arith.subf %295, %311 : vector<1x128xf32>
    %313 = vector.broadcast %310 : vector<1x128xf32> to vector<128x128xf32>
    %314 = arith.mulf %292, %313 : vector<128x128xf32>
    %315 = vector.broadcast %312 : vector<1x128xf32> to vector<128x128xf32>
    %316 = arith.addf %314, %315 : vector<128x128xf32>
    %cst_240 = arith.constant 0.000000e+00 : f32
    %317 = vector.broadcast %cst_240 : f32 to vector<128x128xf32>
    %318 = arith.maximumf %316, %317 : vector<128x128xf32>
    %319 = vector.shape_cast %318 : vector<128x128xf32> to vector<2x8x8x128xf32>
    %c0_241 = arith.constant 0 : index
    %c1_242 = arith.constant 1 : index
    %c1_243 = arith.constant 1 : index
    %c0_244 = arith.constant 0 : index
    %320 = vector.load %arg8[%c0_241, %c1_242, %c1_243, %c0_244] : memref<2x10x10x128xf32, #tpu.memory_space<vmem>>, vector<2x8x8x128xf32>
    tpu.vector_store %arg8[%c0_241, %c1_242, %c1_243, %c0_244], %319 {strides = array<i32>} : memref<2x10x10x128xf32, #tpu.memory_space<vmem>>, vector<2x8x8x128xf32>,
    %c0_245 = arith.constant 0 : index
    %c0_246 = arith.constant 0 : index
    %c0_247 = arith.constant 0 : index
    %c0_248 = arith.constant 0 : index
    %321 = vector.load %arg8[%c0_245, %c0_246, %c0_247, %c0_248] : memref<2x10x10x128xf32, #tpu.memory_space<vmem>>, vector<2x8x8x128xf32>
    %322 = vector.shape_cast %321 : vector<2x8x8x128xf32> to vector<128x128xf32>
    %c2_249 = arith.constant 2 : index
    %c0_250 = arith.constant 0 : index
    %c0_251 = arith.constant 0 : index
    %c0_252 = arith.constant 0 : index
    %323 = vector.load %arg4[%c2_249, %c0_250, %c0_251, %c0_252] : memref<3x9x128x128xf32, #tpu.memory_space<vmem>>, vector<1x1x128x128xf32>
    %324 = vector.shape_cast %323 : vector<1x1x128x128xf32> to vector<128x128xf32>
    %cst_253 = arith.constant dense<0.000000e+00> : vector<128x128xf32>
    %325 = tpu.matmul %322, %324, %cst_253 {dimension_numbers = #tpu.dot_dimension_numbers<[1], [0], [0], [1], [0, 0, 1, 1], [], []>} : vector<128x128xf32>, vector<128x128xf32>, vector<128x128xf32> -> vector<128x128xf32>
    %c0_254 = arith.constant 0 : index
    %c0_255 = arith.constant 0 : index
    %c1_256 = arith.constant 1 : index
    %c0_257 = arith.constant 0 : index
    %326 = vector.load %arg8[%c0_254, %c0_255, %c1_256, %c0_257] : memref<2x10x10x128xf32, #tpu.memory_space<vmem>>, vector<2x8x8x128xf32>
    %327 = vector.shape_cast %326 : vector<2x8x8x128xf32> to vector<128x128xf32>
    %c2_258 = arith.constant 2 : index
    %c1_259 = arith.constant 1 : index
    %c0_260 = arith.constant 0 : index
    %c0_261 = arith.constant 0 : index
    %328 = vector.load %arg4[%c2_258, %c1_259, %c0_260, %c0_261] : memref<3x9x128x128xf32, #tpu.memory_space<vmem>>, vector<1x1x128x128xf32>
    %329 = vector.shape_cast %328 : vector<1x1x128x128xf32> to vector<128x128xf32>
    %cst_262 = arith.constant dense<0.000000e+00> : vector<128x128xf32>
    %330 = tpu.matmul %327, %329, %cst_262 {dimension_numbers = #tpu.dot_dimension_numbers<[1], [0], [0], [1], [0, 0, 1, 1], [], []>} : vector<128x128xf32>, vector<128x128xf32>, vector<128x128xf32> -> vector<128x128xf32>
    %331 = arith.addf %325, %330 : vector<128x128xf32>
    %c0_263 = arith.constant 0 : index
    %c0_264 = arith.constant 0 : index
    %c2_265 = arith.constant 2 : index
    %c0_266 = arith.constant 0 : index
    %332 = vector.load %arg8[%c0_263, %c0_264, %c2_265, %c0_266] : memref<2x10x10x128xf32, #tpu.memory_space<vmem>>, vector<2x8x8x128xf32>
    %333 = vector.shape_cast %332 : vector<2x8x8x128xf32> to vector<128x128xf32>
    %c2_267 = arith.constant 2 : index
    %c2_268 = arith.constant 2 : index
    %c0_269 = arith.constant 0 : index
    %c0_270 = arith.constant 0 : index
    %334 = vector.load %arg4[%c2_267, %c2_268, %c0_269, %c0_270] : memref<3x9x128x128xf32, #tpu.memory_space<vmem>>, vector<1x1x128x128xf32>
    %335 = vector.shape_cast %334 : vector<1x1x128x128xf32> to vector<128x128xf32>
    %cst_271 = arith.constant dense<0.000000e+00> : vector<128x128xf32>
    %336 = tpu.matmul %333, %335, %cst_271 {dimension_numbers = #tpu.dot_dimension_numbers<[1], [0], [0], [1], [0, 0, 1, 1], [], []>} : vector<128x128xf32>, vector<128x128xf32>, vector<128x128xf32> -> vector<128x128xf32>
    %337 = arith.addf %331, %336 : vector<128x128xf32>
    %c0_272 = arith.constant 0 : index
    %c1_273 = arith.constant 1 : index
    %c0_274 = arith.constant 0 : index
    %c0_275 = arith.constant 0 : index
    %338 = vector.load %arg8[%c0_272, %c1_273, %c0_274, %c0_275] : memref<2x10x10x128xf32, #tpu.memory_space<vmem>>, vector<2x8x8x128xf32>
    %339 = vector.shape_cast %338 : vector<2x8x8x128xf32> to vector<128x128xf32>
    %c2_276 = arith.constant 2 : index
    %c3_277 = arith.constant 3 : index
    %c0_278 = arith.constant 0 : index
    %c0_279 = arith.constant 0 : index
    %340 = vector.load %arg4[%c2_276, %c3_277, %c0_278, %c0_279] : memref<3x9x128x128xf32, #tpu.memory_space<vmem>>, vector<1x1x128x128xf32>
    %341 = vector.shape_cast %340 : vector<1x1x128x128xf32> to vector<128x128xf32>
    %cst_280 = arith.constant dense<0.000000e+00> : vector<128x128xf32>
    %342 = tpu.matmul %339, %341, %cst_280 {dimension_numbers = #tpu.dot_dimension_numbers<[1], [0], [0], [1], [0, 0, 1, 1], [], []>} : vector<128x128xf32>, vector<128x128xf32>, vector<128x128xf32> -> vector<128x128xf32>
    %343 = arith.addf %337, %342 : vector<128x128xf32>
    %c0_281 = arith.constant 0 : index
    %c1_282 = arith.constant 1 : index
    %c1_283 = arith.constant 1 : index
    %c0_284 = arith.constant 0 : index
    %344 = vector.load %arg8[%c0_281, %c1_282, %c1_283, %c0_284] : memref<2x10x10x128xf32, #tpu.memory_space<vmem>>, vector<2x8x8x128xf32>
    %345 = vector.shape_cast %344 : vector<2x8x8x128xf32> to vector<128x128xf32>
    %c2_285 = arith.constant 2 : index
    %c4_286 = arith.constant 4 : index
    %c0_287 = arith.constant 0 : index
    %c0_288 = arith.constant 0 : index
    %346 = vector.load %arg4[%c2_285, %c4_286, %c0_287, %c0_288] : memref<3x9x128x128xf32, #tpu.memory_space<vmem>>, vector<1x1x128x128xf32>
    %347 = vector.shape_cast %346 : vector<1x1x128x128xf32> to vector<128x128xf32>
    %cst_289 = arith.constant dense<0.000000e+00> : vector<128x128xf32>
    %348 = tpu.matmul %345, %347, %cst_289 {dimension_numbers = #tpu.dot_dimension_numbers<[1], [0], [0], [1], [0, 0, 1, 1], [], []>} : vector<128x128xf32>, vector<128x128xf32>, vector<128x128xf32> -> vector<128x128xf32>
    %349 = arith.addf %343, %348 : vector<128x128xf32>
    %c0_290 = arith.constant 0 : index
    %c1_291 = arith.constant 1 : index
    %c2_292 = arith.constant 2 : index
    %c0_293 = arith.constant 0 : index
    %350 = vector.load %arg8[%c0_290, %c1_291, %c2_292, %c0_293] : memref<2x10x10x128xf32, #tpu.memory_space<vmem>>, vector<2x8x8x128xf32>
    %351 = vector.shape_cast %350 : vector<2x8x8x128xf32> to vector<128x128xf32>
    %c2_294 = arith.constant 2 : index
    %c5_295 = arith.constant 5 : index
    %c0_296 = arith.constant 0 : index
    %c0_297 = arith.constant 0 : index
    %352 = vector.load %arg4[%c2_294, %c5_295, %c0_296, %c0_297] : memref<3x9x128x128xf32, #tpu.memory_space<vmem>>, vector<1x1x128x128xf32>
    %353 = vector.shape_cast %352 : vector<1x1x128x128xf32> to vector<128x128xf32>
    %cst_298 = arith.constant dense<0.000000e+00> : vector<128x128xf32>
    %354 = tpu.matmul %351, %353, %cst_298 {dimension_numbers = #tpu.dot_dimension_numbers<[1], [0], [0], [1], [0, 0, 1, 1], [], []>} : vector<128x128xf32>, vector<128x128xf32>, vector<128x128xf32> -> vector<128x128xf32>
    %355 = arith.addf %349, %354 : vector<128x128xf32>
    %c0_299 = arith.constant 0 : index
    %c2_300 = arith.constant 2 : index
    %c0_301 = arith.constant 0 : index
    %c0_302 = arith.constant 0 : index
    %356 = vector.load %arg8[%c0_299, %c2_300, %c0_301, %c0_302] : memref<2x10x10x128xf32, #tpu.memory_space<vmem>>, vector<2x8x8x128xf32>
    %357 = vector.shape_cast %356 : vector<2x8x8x128xf32> to vector<128x128xf32>
    %c2_303 = arith.constant 2 : index
    %c6_304 = arith.constant 6 : index
    %c0_305 = arith.constant 0 : index
    %c0_306 = arith.constant 0 : index
    %358 = vector.load %arg4[%c2_303, %c6_304, %c0_305, %c0_306] : memref<3x9x128x128xf32, #tpu.memory_space<vmem>>, vector<1x1x128x128xf32>
    %359 = vector.shape_cast %358 : vector<1x1x128x128xf32> to vector<128x128xf32>
    %cst_307 = arith.constant dense<0.000000e+00> : vector<128x128xf32>
    %360 = tpu.matmul %357, %359, %cst_307 {dimension_numbers = #tpu.dot_dimension_numbers<[1], [0], [0], [1], [0, 0, 1, 1], [], []>} : vector<128x128xf32>, vector<128x128xf32>, vector<128x128xf32> -> vector<128x128xf32>
    %361 = arith.addf %355, %360 : vector<128x128xf32>
    %c0_308 = arith.constant 0 : index
    %c2_309 = arith.constant 2 : index
    %c1_310 = arith.constant 1 : index
    %c0_311 = arith.constant 0 : index
    %362 = vector.load %arg8[%c0_308, %c2_309, %c1_310, %c0_311] : memref<2x10x10x128xf32, #tpu.memory_space<vmem>>, vector<2x8x8x128xf32>
    %363 = vector.shape_cast %362 : vector<2x8x8x128xf32> to vector<128x128xf32>
    %c2_312 = arith.constant 2 : index
    %c7_313 = arith.constant 7 : index
    %c0_314 = arith.constant 0 : index
    %c0_315 = arith.constant 0 : index
    %364 = vector.load %arg4[%c2_312, %c7_313, %c0_314, %c0_315] : memref<3x9x128x128xf32, #tpu.memory_space<vmem>>, vector<1x1x128x128xf32>
    %365 = vector.shape_cast %364 : vector<1x1x128x128xf32> to vector<128x128xf32>
    %cst_316 = arith.constant dense<0.000000e+00> : vector<128x128xf32>
    %366 = tpu.matmul %363, %365, %cst_316 {dimension_numbers = #tpu.dot_dimension_numbers<[1], [0], [0], [1], [0, 0, 1, 1], [], []>} : vector<128x128xf32>, vector<128x128xf32>, vector<128x128xf32> -> vector<128x128xf32>
    %367 = arith.addf %361, %366 : vector<128x128xf32>
    %c0_317 = arith.constant 0 : index
    %c2_318 = arith.constant 2 : index
    %c2_319 = arith.constant 2 : index
    %c0_320 = arith.constant 0 : index
    %368 = vector.load %arg8[%c0_317, %c2_318, %c2_319, %c0_320] : memref<2x10x10x128xf32, #tpu.memory_space<vmem>>, vector<2x8x8x128xf32>
    %369 = vector.shape_cast %368 : vector<2x8x8x128xf32> to vector<128x128xf32>
    %c2_321 = arith.constant 2 : index
    %c8_322 = arith.constant 8 : index
    %c0_323 = arith.constant 0 : index
    %c0_324 = arith.constant 0 : index
    %370 = vector.load %arg4[%c2_321, %c8_322, %c0_323, %c0_324] : memref<3x9x128x128xf32, #tpu.memory_space<vmem>>, vector<1x1x128x128xf32>
    %371 = vector.shape_cast %370 : vector<1x1x128x128xf32> to vector<128x128xf32>
    %cst_325 = arith.constant dense<0.000000e+00> : vector<128x128xf32>
    %372 = tpu.matmul %369, %371, %cst_325 {dimension_numbers = #tpu.dot_dimension_numbers<[1], [0], [0], [1], [0, 0, 1, 1], [], []>} : vector<128x128xf32>, vector<128x128xf32>, vector<128x128xf32> -> vector<128x128xf32>
    %373 = arith.addf %367, %372 : vector<128x128xf32>
    %374 = vector.extract_strided_slice %288 {offsets = [2, 0], sizes = [1, 128], strides = [1, 1]} : vector<8x128xf32> to vector<1x128xf32>
    %375 = vector.extract_strided_slice %288 {offsets = [3, 0], sizes = [1, 128], strides = [1, 1]} : vector<8x128xf32> to vector<1x128xf32>
    %cst_326 = arith.constant dense<0.000000e+00> : vector<128xf32>
    %376 = vector.multi_reduction <add>, %373, %cst_326 [0] : vector<128x128xf32> to vector<128xf32>
    %377 = vector.shape_cast %376 : vector<128xf32> to vector<1x128xf32>
    %cst_327 = arith.constant 1.280000e+02 : f32
    %378 = vector.broadcast %cst_327 : f32 to vector<1x128xf32>
    %379 = arith.divf %377, %378 : vector<1x128xf32>
    %380 = vector.broadcast %379 : vector<1x128xf32> to vector<128x128xf32>
    %381 = arith.subf %373, %380 : vector<128x128xf32>
    %382 = arith.mulf %381, %381 : vector<128x128xf32>
    %cst_328 = arith.constant dense<0.000000e+00> : vector<128xf32>
    %383 = vector.multi_reduction <add>, %382, %cst_328 [0] : vector<128x128xf32> to vector<128xf32>
    %384 = vector.shape_cast %383 : vector<128xf32> to vector<1x128xf32>
    %cst_329 = arith.constant 1.280000e+02 : f32
    %385 = vector.broadcast %cst_329 : f32 to vector<1x128xf32>
    %386 = arith.divf %384, %385 : vector<1x128xf32>
    %cst_330 = arith.constant 9.99999974E-6 : f32
    %387 = vector.broadcast %cst_330 : f32 to vector<1x128xf32>
    %388 = arith.addf %386, %387 : vector<1x128xf32>
    %389 = math.rsqrt %388 : vector<1x128xf32>
    %390 = arith.mulf %374, %389 : vector<1x128xf32>
    %391 = arith.mulf %379, %390 : vector<1x128xf32>
    %392 = arith.subf %375, %391 : vector<1x128xf32>
    %393 = vector.broadcast %390 : vector<1x128xf32> to vector<128x128xf32>
    %394 = arith.mulf %373, %393 : vector<128x128xf32>
    %395 = vector.broadcast %392 : vector<1x128xf32> to vector<128x128xf32>
    %396 = arith.addf %394, %395 : vector<128x128xf32>
    %cst_331 = arith.constant 0.000000e+00 : f32
    %397 = vector.broadcast %cst_331 : f32 to vector<128x128xf32>
    %398 = arith.maximumf %396, %397 : vector<128x128xf32>
    %c2_332 = arith.constant 2 : index
    %c0_333 = arith.constant 0 : index
    %c0_334 = arith.constant 0 : index
    %399 = vector.load %arg5[%c2_332, %c0_333, %c0_334] : memref<3x128x128xf32, #tpu.memory_space<vmem>>, vector<1x128x128xf32>
    %400 = vector.shape_cast %399 : vector<1x128x128xf32> to vector<128x128xf32>
    %cst_335 = arith.constant dense<0.000000e+00> : vector<128x128xf32>
    %401 = tpu.matmul %398, %400, %cst_335 {dimension_numbers = #tpu.dot_dimension_numbers<[1], [0], [0], [1], [0, 0, 1, 1], [], []>} : vector<128x128xf32>, vector<128x128xf32>, vector<128x128xf32> -> vector<128x128xf32>
    %402 = vector.extract_strided_slice %288 {offsets = [4, 0], sizes = [1, 128], strides = [1, 1]} : vector<8x128xf32> to vector<1x128xf32>
    %403 = vector.extract_strided_slice %288 {offsets = [5, 0], sizes = [1, 128], strides = [1, 1]} : vector<8x128xf32> to vector<1x128xf32>
    %cst_336 = arith.constant dense<0.000000e+00> : vector<128xf32>
    %404 = vector.multi_reduction <add>, %401, %cst_336 [0] : vector<128x128xf32> to vector<128xf32>
    %405 = vector.shape_cast %404 : vector<128xf32> to vector<1x128xf32>
    %cst_337 = arith.constant 1.280000e+02 : f32
    %406 = vector.broadcast %cst_337 : f32 to vector<1x128xf32>
    %407 = arith.divf %405, %406 : vector<1x128xf32>
    %408 = vector.broadcast %407 : vector<1x128xf32> to vector<128x128xf32>
    %409 = arith.subf %401, %408 : vector<128x128xf32>
    %410 = arith.mulf %409, %409 : vector<128x128xf32>
    %cst_338 = arith.constant dense<0.000000e+00> : vector<128xf32>
    %411 = vector.multi_reduction <add>, %410, %cst_338 [0] : vector<128x128xf32> to vector<128xf32>
    %412 = vector.shape_cast %411 : vector<128xf32> to vector<1x128xf32>
    %cst_339 = arith.constant 1.280000e+02 : f32
    %413 = vector.broadcast %cst_339 : f32 to vector<1x128xf32>
    %414 = arith.divf %412, %413 : vector<1x128xf32>
    %cst_340 = arith.constant 9.99999974E-6 : f32
    %415 = vector.broadcast %cst_340 : f32 to vector<1x128xf32>
    %416 = arith.addf %414, %415 : vector<1x128xf32>
    %417 = math.rsqrt %416 : vector<1x128xf32>
    %418 = arith.mulf %402, %417 : vector<1x128xf32>
    %419 = arith.mulf %407, %418 : vector<1x128xf32>
    %420 = arith.subf %403, %419 : vector<1x128xf32>
    %421 = vector.broadcast %418 : vector<1x128xf32> to vector<128x128xf32>
    %422 = arith.mulf %401, %421 : vector<128x128xf32>
    %423 = vector.broadcast %420 : vector<1x128xf32> to vector<128x128xf32>
    %424 = arith.addf %422, %423 : vector<128x128xf32>
    %425 = arith.addf %424, %293 : vector<128x128xf32>
    %cst_341 = arith.constant 0.000000e+00 : f32
    %426 = vector.broadcast %cst_341 : f32 to vector<128x128xf32>
    %427 = arith.maximumf %425, %426 : vector<128x128xf32>
    %c0_342 = arith.constant 0 : index
    %c0_343 = arith.constant 0 : index
    %428 = vector.load %arg7[%c0_342, %c0_343] : memref<128x128xf32, #tpu.memory_space<vmem>>, vector<128x128xf32>
    tpu.vector_store %arg7[%c0_342, %c0_343], %427 {strides = array<i32>} : memref<128x128xf32, #tpu.memory_space<vmem>>, vector<128x128xf32>,
    return
  }
  func.func @transform_0(%arg0: i32) -> (i32, i32) {
    %c0_i32 = arith.constant 0 : i32
    %c0_i32_0 = arith.constant 0 : i32
    %c0_i32_1 = arith.constant 0 : i32
    return %c0_i32, %c0_i32_0 : i32, i32
  }
  func.func @transform_1(%arg0: i32) -> (i32, i32) {
    %c0_i32 = arith.constant 0 : i32
    %c0_i32_0 = arith.constant 0 : i32
    %c0_i32_1 = arith.constant 0 : i32
    return %c0_i32, %c0_i32_0 : i32, i32
  }
  func.func @transform_2(%arg0: i32) -> (i32, i32, i32) {
    %c0_i32 = arith.constant 0 : i32
    %c0_i32_0 = arith.constant 0 : i32
    %c0_i32_1 = arith.constant 0 : i32
    %c0_i32_2 = arith.constant 0 : i32
    return %c0_i32, %c0_i32_0, %c0_i32_1 : i32, i32, i32
  }
  func.func @transform_3(%arg0: i32) -> (i32, i32, i32, i32) {
    %c0_i32 = arith.constant 0 : i32
    %c0_i32_0 = arith.constant 0 : i32
    %c0_i32_1 = arith.constant 0 : i32
    %c0_i32_2 = arith.constant 0 : i32
    %c0_i32_3 = arith.constant 0 : i32
    return %c0_i32, %c0_i32_0, %c0_i32_1, %c0_i32_2 : i32, i32, i32, i32
  }
  func.func @transform_4(%arg0: i32) -> (i32, i32, i32) {
    %c0_i32 = arith.constant 0 : i32
    %c0_i32_0 = arith.constant 0 : i32
    %c0_i32_1 = arith.constant 0 : i32
    %c0_i32_2 = arith.constant 0 : i32
    return %c0_i32, %c0_i32_0, %c0_i32_1 : i32, i32, i32
  }
  func.func @transform_5(%arg0: i32) -> (i32, i32, i32) {
    %c0_i32 = arith.constant 0 : i32
    %c0_i32_0 = arith.constant 0 : i32
    %c0_i32_1 = arith.constant 0 : i32
    %c0_i32_2 = arith.constant 0 : i32
    return %c0_i32, %c0_i32_0, %c0_i32_1 : i32, i32, i32
  }
  func.func @transform_6(%arg0: i32) -> (i32, i32) {
    %c0_i32 = arith.constant 0 : i32
    %c0_i32_0 = arith.constant 0 : i32
    %c0_i32_1 = arith.constant 0 : i32
    return %c0_i32, %c0_i32_0 : i32, i32
  }
}

</mosaic_0001>

<bundles_post_ra>
// kernel: downnet_forward.2
= control target key start
LH: loop header
LB: loop body
LE: loop exit
PB: predicated region body
PF: predicated region fallthrough
CT: control target
= control target key end

     0   :  { %v1193_v0 = vmov 0.0|0.0   ;;  %s2848_s1 = inlined_call_operand.vmem [shape: f32[256,128], index: 1, kind: input, shape index: {}]   ;;  %s2849_s0 = inlined_call_operand.vmem [shape: f32[512,256], index: 0, kind: input, shape index: {}]   ;;  %s2850_s2 = inlined_call_operand.vmem [shape: f32[1,128], index: 2, kind: input, shape index: {}]   ;;  %s2851_s3 = inlined_call_operand.vmem [shape: f32[1,128], index: 3, kind: input, shape index: {}]   ;;  %s2852_s4 = inlined_call_operand.vmem [shape: f32[512,128], index: 4, kind: output, shape index: {}]  }
   0x1   :  { %1110 = vmatprep.subr.bf16.mxu0 %v1193_v0  ;;  %v145_v1 = vld [vmem:[%s2848_s1] sm:$0xff]  ;;  %v146_v2 = vld [vmem:[%s2848_s1 + $0x8] sm:$0xff]  ;;  %v147_v3 = vld [vmem:[%s2848_s1 + $0x10] sm:$0xff]  ;;  %1158 = vmatprep.subr.bf16.mxu1 %v1193_v0 }
   0x2   :  { %v1111_v4 = vpack.c.bf16 %v146_v2, %v145_v1  ;;  %v148_v5 = vld [vmem:[%s2848_s1 + $0x18] sm:$0xff]  ;;  %v149_v7 = vld [vmem:[%s2848_s1 + $0x20] sm:$0xff]  ;;  %v150_v8 = vld [vmem:[%s2848_s1 + $0x28] sm:$0xff] }
   0x3   :  { %v1114_v6 = vpack.c.bf16 %v148_v5, %v147_v3  ;;  %v1117_v9 = vpack.c.bf16 %v150_v8, %v149_v7  ;;  %v151_v10 = vld [vmem:[%s2848_s1 + $0x30] sm:$0xff]  ;;  %v152_v11 = vld [vmem:[%s2848_s1 + $0x38] sm:$0xff]  ;;  %v18_v12 = vld [vmem:[%s2849_s0 + $0x8] sm:$0xff] }
   0x4   :  { %1112 = vmatpush1.bf16.msra.mxu0 %v1111_v4  ;;  %1174 = vmatpush1.bf16.msra.mxu1 %v1111_v4  ;;  %v1120_v13 = vpack.c.bf16 %v152_v11, %v151_v10  ;;  %v153_v14 = vld [vmem:[%s2848_s1 + $0x40] sm:$0xff]  ;;  %v154_v15 = vld [vmem:[%s2848_s1 + $0x48] sm:$0xff]  ;;  %v155_v17 = vld [vmem:[%s2848_s1 + $0x50] sm:$0xff] }
   0x5   :  { %1113 = vmatprep.subr.bf16.mxu0 %v1193_v0  ;;  %1159 = vmatprep.subr.bf16.mxu1 %v1193_v0  ;;  %v1123_v16 = vpack.c.bf16 %v154_v15, %v153_v14  ;;  %v156_v18 = vld [vmem:[%s2848_s1 + $0x58] sm:$0xff]  ;;  %v157_v20 = vld [vmem:[%s2848_s1 + $0x60] sm:$0xff]  ;;  %v158_v21 = vld [vmem:[%s2848_s1 + $0x68] sm:$0xff] }
   0x6   :  { %241 = vmatprep.mubr.f32.mxu0 %v18_v12  ;;  %v1126_v19 = vpack.c.bf16 %v156_v18, %v155_v17  ;;  %v82_v22 = vld [vmem:[%s2849_s0 + $0x208] sm:$0xff]  ;;  %v1129_v23 = vpack.c.bf16 %v158_v21, %v157_v20  ;;  %v159_v24 = vld [vmem:[%s2848_s1 + $0x70] sm:$0xff]  ;;  %v160_v25 = vld [vmem:[%s2848_s1 + $0x78] sm:$0xff] }
   0x7   :  { %401 = vmatprep.mubr.f32.mxu1 %v82_v22  ;;  %v1132_v26 = vpack.c.bf16 %v160_v25, %v159_v24  ;;  %v161_v27 = vld [vmem:[%s2848_s1 + $0x80] sm:$0xff]  ;;  %v162_v28 = vld [vmem:[%s2848_s1 + $0x88] sm:$0xff]  ;;  %v163_v30 = vld [vmem:[%s2848_s1 + $0x90] sm:$0xff] }
   0x8   :  { %1115 = vmatpush1.bf16.msra.mxu0 %v1114_v6  ;;  %1175 = vmatpush1.bf16.msra.mxu1 %v1114_v6  ;;  %v1135_v29 = vpack.c.bf16 %v162_v28, %v161_v27  ;;  %v164_v31 = vld [vmem:[%s2848_s1 + $0x98] sm:$0xff]  ;;  %v165_v33 = vld [vmem:[%s2848_s1 + $0xa0] sm:$0xff]  ;;  %v166_v34 = vld [vmem:[%s2848_s1 + $0xa8] sm:$0xff] }
   0x9   :  { %1116 = vmatprep.subr.bf16.mxu0 %v1193_v0  ;;  %1160 = vmatprep.subr.bf16.mxu1 %v1193_v0  ;;  %v1138_v32 = vpack.c.bf16 %v164_v31, %v163_v30  ;;  %v1141_v35 = vpack.c.bf16 %v166_v34, %v165_v33  ;;  %v167_v36 = vld [vmem:[%s2848_s1 + $0xb0] sm:$0xff]  ;;  %v168_v37 = vld [vmem:[%s2848_s1 + $0xb8] sm:$0xff]  ;;  %v169_v39 = vld [vmem:[%s2848_s1 + $0xc0] sm:$0xff] }
   0xa   :  { %v1144_v38 = vpack.c.bf16 %v168_v37, %v167_v36  ;;  %v170_v40 = vld [vmem:[%s2848_s1 + $0xc8] sm:$0xff]  ;;  %v171_v42 = vld [vmem:[%s2848_s1 + $0xd0] sm:$0xff]  ;;  %v172_v43 = vld [vmem:[%s2848_s1 + $0xd8] sm:$0xff] }
   0xb   :  { %v1147_v41 = vpack.c.bf16 %v170_v40, %v169_v39  ;;  %v1150_v44 = vpack.c.bf16 %v172_v43, %v171_v42  ;;  %v173_v45 = vld [vmem:[%s2848_s1 + $0xe0] sm:$0xff]  ;;  %v174_v46 = vld [vmem:[%s2848_s1 + $0xe8] sm:$0xff]  ;;  %v175_v48 = vld [vmem:[%s2848_s1 + $0xf0] sm:$0xff] }
   0xc   :  { %1118 = vmatpush1.bf16.msra.mxu0 %v1117_v9  ;;  %1176 = vmatpush1.bf16.msra.mxu1 %v1117_v9  ;;  %v1153_v47 = vpack.c.bf16 %v174_v46, %v173_v45  ;;  %v176_v49 = vld [vmem:[%s2848_s1 + $0xf8] sm:$0xff]  ;;  %v17_v51 = vld [vmem:[%s2849_s0] sm:$0xff]  ;;  %v19_v55 = vld [vmem:[%s2849_s0 + $0x10] sm:$0xff] }
   0xd   :  { %1119 = vmatprep.subr.bf16.mxu0 %v1193_v0  ;;  %1161 = vmatprep.subr.bf16.mxu1 %v1193_v0  ;;  %v1156_v50 = vpack.c.bf16 %v176_v49, %v175_v48  ;;  %v20_v52 = vld [vmem:[%s2849_s0 + $0x18] sm:$0xff]  ;;  %v81_v53 = vld [vmem:[%s2849_s0 + $0x200] sm:$0xff]  ;;  %v22_v56 = vld [vmem:[%s2849_s0 + $0x28] sm:$0xff] }
   0xe   :  { %v84_v54 = vld [vmem:[%s2849_s0 + $0x218] sm:$0xff]  ;;  %v83_v57 = vld [vmem:[%s2849_s0 + $0x210] sm:$0xff]  ;;  %v86_v58 = vld [vmem:[%s2849_s0 + $0x228] sm:$0xff] }
   0xf   :  { %v21_v59 = vld [vmem:[%s2849_s0 + $0x20] sm:$0xff]  ;;  %v24_v60 = vld [vmem:[%s2849_s0 + $0x38] sm:$0xff]  ;;  %v23_v63 = vld [vmem:[%s2849_s0 + $0x30] sm:$0xff] }
  0x10   :  { %1121 = vmatpush1.bf16.msra.mxu0 %v1120_v13  ;;  %1177 = vmatpush1.bf16.msra.mxu1 %v1120_v13  ;;  %v85_v61 = vld [vmem:[%s2849_s0 + $0x220] sm:$0xff]  ;;  %v88_v62 = vld [vmem:[%s2849_s0 + $0x238] sm:$0xff]  ;;  %v87_v1 = vld [vmem:[%s2849_s0 + $0x230] sm:$0xff] }
  0x11   :  { %1122 = vmatprep.subr.bf16.mxu0 %v1193_v0  ;;  %1162 = vmatprep.subr.bf16.mxu1 %v1193_v0  ;;  %v90_v2 = vld [vmem:[%s2849_s0 + $0x248] sm:$0xff]  ;;  %v25_v3 = vld [vmem:[%s2849_s0 + $0x40] sm:$0xff]  ;;  %v28_v4 = vld [vmem:[%s2849_s0 + $0x58] sm:$0xff] }
  0x12   :  { %v89_v5 = vld [vmem:[%s2849_s0 + $0x240] sm:$0xff]  ;;  %v92_v6 = vld [vmem:[%s2849_s0 + $0x258] sm:$0xff]  ;;  %v27_v7 = vld [vmem:[%s2849_s0 + $0x50] sm:$0xff] }
  0x13   :  { %v30_v8 = vld [vmem:[%s2849_s0 + $0x68] sm:$0xff]  ;;  %v91_v9 = vld [vmem:[%s2849_s0 + $0x250] sm:$0xff]  ;;  %v29_v11 = vld [vmem:[%s2849_s0 + $0x60] sm:$0xff] }
  0x14   :  { %1124 = vmatpush1.bf16.msra.mxu0 %v1123_v16  ;;  %1178 = vmatpush1.bf16.msra.mxu1 %v1123_v16  ;;  %v94_v10 = vld [vmem:[%s2849_s0 + $0x268] sm:$0xff]  ;;  %v32_v12 = vld [vmem:[%s2849_s0 + $0x78] sm:$0xff]  ;;  %v93_v13 = vld [vmem:[%s2849_s0 + $0x260] sm:$0xff] }
  0x15   :  { %1125 = vmatprep.subr.bf16.mxu0 %v1193_v0  ;;  %1163 = vmatprep.subr.bf16.mxu1 %v1193_v0  ;;  %v96_v14 = vld [vmem:[%s2849_s0 + $0x278] sm:$0xff]  ;;  %v31_v15 = vld [vmem:[%s2849_s0 + $0x70] sm:$0xff]  ;;  %v34_v16 = vld [vmem:[%s2849_s0 + $0x88] sm:$0xff] }
  0x16   :  { %v95_v17 = vld [vmem:[%s2849_s0 + $0x270] sm:$0xff]  ;;  %v98_v18 = vld [vmem:[%s2849_s0 + $0x288] sm:$0xff]  ;;  %v36_v20 = vld [vmem:[%s2849_s0 + $0x98] sm:$0xff] }
  0x17   :  { %v97_v21 = vld [vmem:[%s2849_s0 + $0x280] sm:$0xff]  ;;  %v100_v22 = vld [vmem:[%s2849_s0 + $0x298] sm:$0xff]  ;;  %v38_v24 = vld [vmem:[%s2849_s0 + $0xa8] sm:$0xff] }
  0x18   :  { %1127 = vmatpush1.bf16.msra.mxu0 %v1126_v19  ;;  %1179 = vmatpush1.bf16.msra.mxu1 %v1126_v19  ;;  %v33_v19 = vld [vmem:[%s2849_s0 + $0x80] sm:$0xff]  ;;  %v99_v25 = vld [vmem:[%s2849_s0 + $0x290] sm:$0xff]  ;;  %v40_v28 = vld [vmem:[%s2849_s0 + $0xb8] sm:$0xff] }
  0x19   :  { %1128 = vmatprep.subr.bf16.mxu0 %v1193_v0  ;;  %1164 = vmatprep.subr.bf16.mxu1 %v1193_v0  ;;  %v37_v27 = vld [vmem:[%s2849_s0 + $0xa0] sm:$0xff]  ;;  %v104_v30 = vld [vmem:[%s2849_s0 + $0x2b8] sm:$0xff]  ;;  %v39_v31 = vld [vmem:[%s2849_s0 + $0xb0] sm:$0xff] }
  0x1a   :  { %v103_v33 = vld [vmem:[%s2849_s0 + $0x2b0] sm:$0xff]  ;;  %v106_v34 = vld [vmem:[%s2849_s0 + $0x2c8] sm:$0xff]  ;;  %v44_v36 = vld [vmem:[%s2849_s0 + $0xd8] sm:$0xff] }
  0x1b   :  { %v105_v37 = vld [vmem:[%s2849_s0 + $0x2c0] sm:$0xff]  ;;  %v43_v39 = vld [vmem:[%s2849_s0 + $0xd0] sm:$0xff]  ;;  %v46_v40 = vld [vmem:[%s2849_s0 + $0xe8] sm:$0xff] }
  0x1c   :  { %1130 = vmatpush1.bf16.msra.mxu0 %v1129_v23  ;;  %1180 = vmatpush1.bf16.msra.mxu1 %v1129_v23  ;;  %v35_v23 = vld [vmem:[%s2849_s0 + $0x90] sm:$0xff]  ;;  %v110_v42 = vld [vmem:[%s2849_s0 + $0x2e8] sm:$0xff]  ;;  %v45_v43 = vld [vmem:[%s2849_s0 + $0xe0] sm:$0xff] }
  0x1d   :  { %1131 = vmatprep.subr.bf16.mxu0 %v1193_v0  ;;  %1165 = vmatprep.subr.bf16.mxu1 %v1193_v0  ;;  %v109_v45 = vld [vmem:[%s2849_s0 + $0x2e0] sm:$0xff]  ;;  %v112_v46 = vld [vmem:[%s2849_s0 + $0x2f8] sm:$0xff]  ;;  %v50_v48 = vld [vmem:[%s2849_s0 + $0x108] sm:$0xff] }
  0x1e   :  { %v111_v49 = vld [vmem:[%s2849_s0 + $0x2f0] sm:$0xff] }
  0x20   :  { %1133 = vmatpush1.bf16.msra.mxu0 %v1132_v26  ;;  %1181 = vmatpush1.bf16.msra.mxu1 %v1132_v26  ;;  %v102_v26 = vld [vmem:[%s2849_s0 + $0x2a8] sm:$0xff] }
  0x21   :  { %1134 = vmatprep.subr.bf16.mxu0 %v1193_v0  ;;  %1166 = vmatprep.subr.bf16.mxu1 %v1193_v0 }
  0x24   :  { %1136 = vmatpush1.bf16.msra.mxu0 %v1135_v29  ;;  %1182 = vmatpush1.bf16.msra.mxu1 %v1135_v29  ;;  %v101_v29 = vld [vmem:[%s2849_s0 + $0x2a0] sm:$0xff] }
  0x25   :  { %1137 = vmatprep.subr.bf16.mxu0 %v1193_v0  ;;  %1167 = vmatprep.subr.bf16.mxu1 %v1193_v0 }
  0x28   :  { %1139 = vmatpush1.bf16.msra.mxu0 %v1138_v32  ;;  %1183 = vmatpush1.bf16.msra.mxu1 %v1138_v32  ;;  %v42_v32 = vld [vmem:[%s2849_s0 + $0xc8] sm:$0xff] }
  0x29   :  { %1140 = vmatprep.subr.bf16.mxu0 %v1193_v0  ;;  %1168 = vmatprep.subr.bf16.mxu1 %v1193_v0 }
  0x2c   :  { %1142 = vmatpush1.bf16.msra.mxu0 %v1141_v35  ;;  %1184 = vmatpush1.bf16.msra.mxu1 %v1141_v35  ;;  %v41_v35 = vld [vmem:[%s2849_s0 + $0xc0] sm:$0xff] }
  0x2d   :  { %1143 = vmatprep.subr.bf16.mxu0 %v1193_v0  ;;  %1169 = vmatprep.subr.bf16.mxu1 %v1193_v0 }
  0x30   :  { %1145 = vmatpush1.bf16.msra.mxu0 %v1144_v38  ;;  %1185 = vmatpush1.bf16.msra.mxu1 %v1144_v38  ;;  %v108_v38 = vld [vmem:[%s2849_s0 + $0x2d8] sm:$0xff] }
  0x31   :  { %1146 = vmatprep.subr.bf16.mxu0 %v1193_v0  ;;  %1170 = vmatprep.subr.bf16.mxu1 %v1193_v0 }
  0x34   :  { %1148 = vmatpush1.bf16.msra.mxu0 %v1147_v41  ;;  %1186 = vmatpush1.bf16.msra.mxu1 %v1147_v41  ;;  %v107_v41 = vld [vmem:[%s2849_s0 + $0x2d0] sm:$0xff] }
  0x35   :  { %1149 = vmatprep.subr.bf16.mxu0 %v1193_v0  ;;  %1171 = vmatprep.subr.bf16.mxu1 %v1193_v0 }
  0x38   :  { %1151 = vmatpush1.bf16.msra.mxu0 %v1150_v44  ;;  %1187 = vmatpush1.bf16.msra.mxu1 %v1150_v44  ;;  %v48_v44 = vld [vmem:[%s2849_s0 + $0xf8] sm:$0xff] }
  0x39   :  { %1152 = vmatprep.subr.bf16.mxu0 %v1193_v0  ;;  %1172 = vmatprep.subr.bf16.mxu1 %v1193_v0 }
  0x3c   :  { %1154 = vmatpush1.bf16.msra.mxu0 %v1153_v47  ;;  %1188 = vmatpush1.bf16.msra.mxu1 %v1153_v47  ;;  %v47_v47 = vld [vmem:[%s2849_s0 + $0xf0] sm:$0xff] }
  0x3d   :  { %1155 = vmatprep.subr.bf16.mxu0 %v1193_v0  ;;  %1173 = vmatprep.subr.bf16.mxu1 %v1193_v0  ;;  %v26_v0 = vld [vmem:[%s2849_s0 + $0x48] sm:$0xff] }
  0x40   :  { %1157 = vmatpush1.bf16.msra.mxu0 %v1156_v50  ;;  %1189 = vmatpush1.bf16.msra.mxu1 %v1156_v50  ;;  %v114_v50 = vld [vmem:[%s2849_s0 + $0x308] sm:$0xff] }
  0x43   :  { %242 = vmatmul.mubr.f32.vlgmr.msra.gmra.mrb[0].mxu0 %v17_v51  ;;  %402 = vmatmul.mubr.f32.vlgmr.msra.gmra.mrb[0].mxu1 %v81_v53  ;;  %v49_v51 = vld [vmem:[%s2849_s0 + $0x100] sm:$0xff] }
  0x44   :  { %246 = vmatprep.mubr.f32.mxu0 %v20_v52  ;;  %406 = vmatprep.mubr.f32.mxu1 %v84_v54  ;;  %v52_v52 = vld [vmem:[%s2849_s0 + $0x118] sm:$0xff]  ;;  %v113_v53 = vld [vmem:[%s2849_s0 + $0x300] sm:$0xff] }
  0x45   :  { %v116_v54 = vld [vmem:[%s2849_s0 + $0x318] sm:$0xff] }
  0x47   :  { %247 = vmatmul.mubr.f32.gmra.mrb[2].mxu0 %v19_v55  ;;  %407 = vmatmul.mubr.f32.gmra.mrb[2].mxu1 %v83_v57  ;;  %v51_v55 = vld [vmem:[%s2849_s0 + $0x110] sm:$0xff] }
  0x48   :  { %251 = vmatprep.mubr.f32.mxu0 %v22_v56  ;;  %411 = vmatprep.mubr.f32.mxu1 %v86_v58  ;;  %v54_v56 = vld [vmem:[%s2849_s0 + $0x128] sm:$0xff]  ;;  %v115_v57 = vld [vmem:[%s2849_s0 + $0x310] sm:$0xff] }
  0x49   :  { %v118_v58 = vld [vmem:[%s2849_s0 + $0x328] sm:$0xff] }
  0x4b   :  { %252 = vmatmul.mubr.f32.gmra.mrb[4].mxu0 %v21_v59  ;;  %412 = vmatmul.mubr.f32.gmra.mrb[4].mxu1 %v85_v61  ;;  %v53_v59 = vld [vmem:[%s2849_s0 + $0x120] sm:$0xff] }
  0x4c   :  { %256 = vmatprep.mubr.f32.mxu0 %v24_v60  ;;  %416 = vmatprep.mubr.f32.mxu1 %v88_v62  ;;  %v56_v60 = vld [vmem:[%s2849_s0 + $0x138] sm:$0xff]  ;;  %v117_v61 = vld [vmem:[%s2849_s0 + $0x320] sm:$0xff] }
  0x4d   :  { %v120_v62 = vld [vmem:[%s2849_s0 + $0x338] sm:$0xff] }
  0x4f   :  { %257 = vmatmul.mubr.f32.gmra.mrb[6].mxu0 %v23_v63  ;;  %417 = vmatmul.mubr.f32.gmra.mrb[6].mxu1 %v87_v1  ;;  %v55_v63 = vld [vmem:[%s2849_s0 + $0x130] sm:$0xff] }
  0x50   :  { %261 = vmatprep.mubr.f32.mxu0 %v26_v0  ;;  %421 = vmatprep.mubr.f32.mxu1 %v90_v2  ;;  %v58_v0 = vld [vmem:[%s2849_s0 + $0x148] sm:$0xff]  ;;  %v119_v1 = vld [vmem:[%s2849_s0 + $0x330] sm:$0xff] }
  0x51   :  { %v122_v2 = vld [vmem:[%s2849_s0 + $0x348] sm:$0xff] }
  0x53   :  { %262 = vmatmul.mubr.f32.gmra.mrb[8].mxu0 %v25_v3  ;;  %422 = vmatmul.mubr.f32.gmra.mrb[8].mxu1 %v89_v5  ;;  %v57_v3 = vld [vmem:[%s2849_s0 + $0x140] sm:$0xff] }
  0x54   :  { %266 = vmatprep.mubr.f32.mxu0 %v28_v4  ;;  %426 = vmatprep.mubr.f32.mxu1 %v92_v6  ;;  %v60_v4 = vld [vmem:[%s2849_s0 + $0x158] sm:$0xff]  ;;  %v121_v5 = vld [vmem:[%s2849_s0 + $0x340] sm:$0xff] }
  0x55   :  { %v124_v6 = vld [vmem:[%s2849_s0 + $0x358] sm:$0xff] }
  0x57   :  { %267 = vmatmul.mubr.f32.gmra.mrb[10].mxu0 %v27_v7  ;;  %427 = vmatmul.mubr.f32.gmra.mrb[10].mxu1 %v91_v9  ;;  %v59_v7 = vld [vmem:[%s2849_s0 + $0x150] sm:$0xff] }
  0x58   :  { %271 = vmatprep.mubr.f32.mxu0 %v30_v8  ;;  %431 = vmatprep.mubr.f32.mxu1 %v94_v10  ;;  %v62_v8 = vld [vmem:[%s2849_s0 + $0x168] sm:$0xff]  ;;  %v123_v9 = vld [vmem:[%s2849_s0 + $0x350] sm:$0xff] }
  0x59   :  { %v126_v10 = vld [vmem:[%s2849_s0 + $0x368] sm:$0xff] }
  0x5b   :  { %272 = vmatmul.mubr.f32.gmra.mrb[12].mxu0 %v29_v11  ;;  %432 = vmatmul.mubr.f32.gmra.mrb[12].mxu1 %v93_v13  ;;  %v61_v11 = vld [vmem:[%s2849_s0 + $0x160] sm:$0xff] }
  0x5c   :  { %276 = vmatprep.mubr.f32.mxu0 %v32_v12  ;;  %436 = vmatprep.mubr.f32.mxu1 %v96_v14  ;;  %v64_v12 = vld [vmem:[%s2849_s0 + $0x178] sm:$0xff]  ;;  %v125_v13 = vld [vmem:[%s2849_s0 + $0x360] sm:$0xff] }
  0x5d   :  { %v128_v14 = vld [vmem:[%s2849_s0 + $0x378] sm:$0xff] }
  0x5f   :  { %277 = vmatmul.mubr.f32.gmra.mrb[14].mxu0 %v31_v15  ;;  %437 = vmatmul.mubr.f32.gmra.mrb[14].mxu1 %v95_v17  ;;  %v63_v15 = vld [vmem:[%s2849_s0 + $0x170] sm:$0xff] }
  0x60   :  { %281 = vmatprep.mubr.f32.mxu0 %v34_v16  ;;  %441 = vmatprep.mubr.f32.mxu1 %v98_v18  ;;  %v66_v16 = vld [vmem:[%s2849_s0 + $0x188] sm:$0xff]  ;;  %v127_v17 = vld [vmem:[%s2849_s0 + $0x370] sm:$0xff] }
  0x61   :  { %v130_v18 = vld [vmem:[%s2849_s0 + $0x388] sm:$0xff] }
  0x63   :  { %282 = vmatmul.mubr.f32.gmra.mrb[16].mxu0 %v33_v19  ;;  %442 = vmatmul.mubr.f32.gmra.mrb[16].mxu1 %v97_v21  ;;  %v65_v19 = vld [vmem:[%s2849_s0 + $0x180] sm:$0xff] }
  0x64   :  { %286 = vmatprep.mubr.f32.mxu0 %v36_v20  ;;  %446 = vmatprep.mubr.f32.mxu1 %v100_v22  ;;  %v68_v20 = vld [vmem:[%s2849_s0 + $0x198] sm:$0xff]  ;;  %v129_v21 = vld [vmem:[%s2849_s0 + $0x380] sm:$0xff] }
  0x65   :  { %v132_v22 = vld [vmem:[%s2849_s0 + $0x398] sm:$0xff] }
  0x67   :  { %287 = vmatmul.mubr.f32.gmra.mrb[18].mxu0 %v35_v23  ;;  %447 = vmatmul.mubr.f32.gmra.mrb[18].mxu1 %v99_v25  ;;  %v67_v23 = vld [vmem:[%s2849_s0 + $0x190] sm:$0xff] }
  0x68   :  { %291 = vmatprep.mubr.f32.mxu0 %v38_v24  ;;  %451 = vmatprep.mubr.f32.mxu1 %v102_v26  ;;  %v70_v24 = vld [vmem:[%s2849_s0 + $0x1a8] sm:$0xff]  ;;  %v131_v25 = vld [vmem:[%s2849_s0 + $0x390] sm:$0xff] }
  0x69   :  { %v134_v26 = vld [vmem:[%s2849_s0 + $0x3a8] sm:$0xff] }
  0x6b   :  { %292 = vmatmul.mubr.f32.gmra.mrb[20].mxu0 %v37_v27  ;;  %452 = vmatmul.mubr.f32.gmra.mrb[20].mxu1 %v101_v29  ;;  %v69_v27 = vld [vmem:[%s2849_s0 + $0x1a0] sm:$0xff] }
  0x6c   :  { %296 = vmatprep.mubr.f32.mxu0 %v40_v28  ;;  %456 = vmatprep.mubr.f32.mxu1 %v104_v30  ;;  %v72_v28 = vld [vmem:[%s2849_s0 + $0x1b8] sm:$0xff]  ;;  %v133_v29 = vld [vmem:[%s2849_s0 + $0x3a0] sm:$0xff] }
  0x6d   :  { %v136_v30 = vld [vmem:[%s2849_s0 + $0x3b8] sm:$0xff] }
  0x6f   :  { %297 = vmatmul.mubr.f32.gmra.mrb[22].mxu0 %v39_v31  ;;  %457 = vmatmul.mubr.f32.gmra.mrb[22].mxu1 %v103_v33  ;;  %v71_v31 = vld [vmem:[%s2849_s0 + $0x1b0] sm:$0xff] }
  0x70   :  { %301 = vmatprep.mubr.f32.mxu0 %v42_v32  ;;  %461 = vmatprep.mubr.f32.mxu1 %v106_v34  ;;  %v74_v32 = vld [vmem:[%s2849_s0 + $0x1c8] sm:$0xff]  ;;  %v135_v33 = vld [vmem:[%s2849_s0 + $0x3b0] sm:$0xff] }
  0x71   :  { %v138_v34 = vld [vmem:[%s2849_s0 + $0x3c8] sm:$0xff] }
  0x73   :  { %302 = vmatmul.mubr.f32.gmra.mrb[24].mxu0 %v41_v35  ;;  %462 = vmatmul.mubr.f32.gmra.mrb[24].mxu1 %v105_v37  ;;  %v73_v35 = vld [vmem:[%s2849_s0 + $0x1c0] sm:$0xff] }
  0x74   :  { %306 = vmatprep.mubr.f32.mxu0 %v44_v36  ;;  %466 = vmatprep.mubr.f32.mxu1 %v108_v38  ;;  %v76_v36 = vld [vmem:[%s2849_s0 + $0x1d8] sm:$0xff]  ;;  %v137_v37 = vld [vmem:[%s2849_s0 + $0x3c0] sm:$0xff] }
  0x75   :  { %v140_v38 = vld [vmem:[%s2849_s0 + $0x3d8] sm:$0xff] }
  0x77   :  { %307 = vmatmul.mubr.f32.gmra.mrb[26].mxu0 %v43_v39  ;;  %467 = vmatmul.mubr.f32.gmra.mrb[26].mxu1 %v107_v41  ;;  %v75_v39 = vld [vmem:[%s2849_s0 + $0x1d0] sm:$0xff] }
  0x78   :  { %311 = vmatprep.mubr.f32.mxu0 %v46_v40  ;;  %471 = vmatprep.mubr.f32.mxu1 %v110_v42  ;;  %v78_v40 = vld [vmem:[%s2849_s0 + $0x1e8] sm:$0xff]  ;;  %v139_v41 = vld [vmem:[%s2849_s0 + $0x3d0] sm:$0xff] }
  0x79   :  { %v142_v42 = vld [vmem:[%s2849_s0 + $0x3e8] sm:$0xff] }
  0x7b   :  { %312 = vmatmul.mubr.f32.gmra.mrb[28].mxu0 %v45_v43  ;;  %472 = vmatmul.mubr.f32.gmra.mrb[28].mxu1 %v109_v45  ;;  %v77_v43 = vld [vmem:[%s2849_s0 + $0x1e0] sm:$0xff] }
  0x7c   :  { %316 = vmatprep.mubr.f32.mxu0 %v48_v44  ;;  %476 = vmatprep.mubr.f32.mxu1 %v112_v46  ;;  %v80_v44 = vld [vmem:[%s2849_s0 + $0x1f8] sm:$0xff]  ;;  %v141_v45 = vld [vmem:[%s2849_s0 + $0x3e0] sm:$0xff] }
  0x7d   :  { %v144_v46 = vld [vmem:[%s2849_s0 + $0x3f8] sm:$0xff] }
  0x7f   :  { %317 = vmatmul.mubr.f32.gmra.mrb[30].mxu0 %v47_v47  ;;  %477 = vmatmul.mubr.f32.gmra.mrb[30].mxu1 %v111_v49  ;;  %v79_v47 = vld [vmem:[%s2849_s0 + $0x1f0] sm:$0xff] }
  0x80   :  { %321 = vmatprep.mubr.f32.mxu0 %v50_v48  ;;  %481 = vmatprep.mubr.f32.mxu1 %v114_v50  ;;  %v143_v48 = vld [vmem:[%s2849_s0 + $0x3f0] sm:$0xff] }
  0x83   :  { %322 = vmatmul.mubr.f32.gmra.mrb[32].mxu0 %v49_v51  ;;  %482 = vmatmul.mubr.f32.gmra.mrb[32].mxu1 %v113_v53 }
  0x84   :  { %326 = vmatprep.mubr.f32.mxu0 %v52_v52  ;;  %486 = vmatprep.mubr.f32.mxu1 %v116_v54 }
  0x87   :  { %327 = vmatmul.mubr.f32.gmra.mrb[34].mxu0 %v51_v55  ;;  %487 = vmatmul.mubr.f32.gmra.mrb[34].mxu1 %v115_v57 }
  0x88   :  { %331 = vmatprep.mubr.f32.mxu0 %v54_v56  ;;  %491 = vmatprep.mubr.f32.mxu1 %v118_v58 }
  0x8b   :  { %332 = vmatmul.mubr.f32.gmra.mrb[36].mxu0 %v53_v59  ;;  %492 = vmatmul.mubr.f32.gmra.mrb[36].mxu1 %v117_v61 }
  0x8c   :  { %336 = vmatprep.mubr.f32.mxu0 %v56_v60  ;;  %496 = vmatprep.mubr.f32.mxu1 %v120_v62 }
  0x8f   :  { %337 = vmatmul.mubr.f32.gmra.mrb[38].mxu0 %v55_v63  ;;  %497 = vmatmul.mubr.f32.gmra.mrb[38].mxu1 %v119_v1 }
  0x90   :  { %341 = vmatprep.mubr.f32.mxu0 %v58_v0  ;;  %501 = vmatprep.mubr.f32.mxu1 %v122_v2 }
  0x93   :  { %342 = vmatmul.mubr.f32.gmra.mrb[40].mxu0 %v57_v3  ;;  %502 = vmatmul.mubr.f32.gmra.mrb[40].mxu1 %v121_v5 }
  0x94   :  { %346 = vmatprep.mubr.f32.mxu0 %v60_v4  ;;  %506 = vmatprep.mubr.f32.mxu1 %v124_v6 }
  0x97   :  { %347 = vmatmul.mubr.f32.gmra.mrb[42].mxu0 %v59_v7  ;;  %507 = vmatmul.mubr.f32.gmra.mrb[42].mxu1 %v123_v9 }
  0x98   :  { %351 = vmatprep.mubr.f32.mxu0 %v62_v8  ;;  %511 = vmatprep.mubr.f32.mxu1 %v126_v10 }
  0x9b   :  { %352 = vmatmul.mubr.f32.gmra.mrb[44].mxu0 %v61_v11  ;;  %512 = vmatmul.mubr.f32.gmra.mrb[44].mxu1 %v125_v13 }
  0x9c   :  { %356 = vmatprep.mubr.f32.mxu0 %v64_v12  ;;  %516 = vmatprep.mubr.f32.mxu1 %v128_v14 }
  0x9f   :  { %357 = vmatmul.mubr.f32.gmra.mrb[46].mxu0 %v63_v15  ;;  %517 = vmatmul.mubr.f32.gmra.mrb[46].mxu1 %v127_v17 }
  0xa0   :  { %361 = vmatprep.mubr.f32.mxu0 %v66_v16  ;;  %521 = vmatprep.mubr.f32.mxu1 %v130_v18 }
  0xa3   :  { %362 = vmatmul.mubr.f32.gmra.mrb[48].mxu0 %v65_v19  ;;  %522 = vmatmul.mubr.f32.gmra.mrb[48].mxu1 %v129_v21 }
  0xa4   :  { %366 = vmatprep.mubr.f32.mxu0 %v68_v20  ;;  %526 = vmatprep.mubr.f32.mxu1 %v132_v22 }
  0xa7   :  { %367 = vmatmul.mubr.f32.gmra.mrb[50].mxu0 %v67_v23  ;;  %527 = vmatmul.mubr.f32.gmra.mrb[50].mxu1 %v131_v25 }
  0xa8   :  { %371 = vmatprep.mubr.f32.mxu0 %v70_v24  ;;  %531 = vmatprep.mubr.f32.mxu1 %v134_v26 }
  0xab   :  { %372 = vmatmul.mubr.f32.gmra.mrb[52].mxu0 %v69_v27  ;;  %532 = vmatmul.mubr.f32.gmra.mrb[52].mxu1 %v133_v29 }
  0xac   :  { %376 = vmatprep.mubr.f32.mxu0 %v72_v28  ;;  %536 = vmatprep.mubr.f32.mxu1 %v136_v30 }
  0xaf   :  { %377 = vmatmul.mubr.f32.gmra.mrb[54].mxu0 %v71_v31  ;;  %537 = vmatmul.mubr.f32.gmra.mrb[54].mxu1 %v135_v33 }
  0xb0   :  { %381 = vmatprep.mubr.f32.mxu0 %v74_v32  ;;  %541 = vmatprep.mubr.f32.mxu1 %v138_v34 }
  0xb3   :  { %382 = vmatmul.mubr.f32.gmra.mrb[56].mxu0 %v73_v35  ;;  %542 = vmatmul.mubr.f32.gmra.mrb[56].mxu1 %v137_v37 }
  0xb4   :  { %386 = vmatprep.mubr.f32.mxu0 %v76_v36  ;;  %546 = vmatprep.mubr.f32.mxu1 %v140_v38 }
  0xb7   :  { %387 = vmatmul.mubr.f32.gmra.mrb[58].mxu0 %v75_v39  ;;  %547 = vmatmul.mubr.f32.gmra.mrb[58].mxu1 %v139_v41 }
  0xb8   :  { %391 = vmatprep.mubr.f32.mxu0 %v78_v40  ;;  %551 = vmatprep.mubr.f32.mxu1 %v142_v42 }
  0xbb   :  { %392 = vmatmul.mubr.f32.gmra.mrb[60].mxu0 %v77_v43  ;;  %552 = vmatmul.mubr.f32.gmra.mrb[60].mxu1 %v141_v45 }
  0xbc   :  { %396 = vmatprep.mubr.f32.mxu0 %v80_v44  ;;  %556 = vmatprep.mubr.f32.mxu1 %v144_v46 }
  0xbf   :  { %397 = vmatmul.mubr.f32.gmra.mrb[62].mxu0 %v79_v47  ;;  %557 = vmatmul.mubr.f32.gmra.mrb[62].mxu1 %v143_v48 }
 0x116   :  { %v1731_v49 = vpop.f32.mrb[0].mxu0  ;;  %v1733_v51 = vpop.f32.mrb[0].mxu1 }
 0x117   :  { %v245_v50 = vpop.f32.mrb[1].mxu0  ;;  %v405_v52 = vpop.f32.mrb[1].mxu1 }
 0x11a   :  { %v1735_v53 = vpop.f32.mrb[2].mxu0  ;;  %v1739_v56 = vpop.f32.mrb[2].mxu1 }
 0x11b   :  { %v564_v54 = vadd.f32 %v1735_v53, %v1731_v49  ;;  %v250_v55 = vpop.f32.mrb[3].mxu0  ;;  %v410_v57 = vpop.f32.mrb[3].mxu1 }
 0x11e   :  { %v1741_v58 = vpop.f32.mrb[4].mxu0  ;;  %v1744_v61 = vpop.f32.mrb[4].mxu1 }
 0x11f   :  { %2901 = vst [vmem:[#allocation2_spill] sm:$0xff] %v1741_v58  ;;  %v565_v59 = vadd.f32 %v564_v54, %v1741_v58  ;;  %v255_v60 = vpop.f32.mrb[5].mxu0  ;;  %v415_v62 = vpop.f32.mrb[5].mxu1 }
 0x122   :  { %v1746_v63 = vpop.f32.mrb[6].mxu0  ;;  %v1749_v2 = vpop.f32.mrb[6].mxu1 }
 0x123   :  { %2902 = vst [vmem:[#allocation3_spill] sm:$0xff] %v1746_v63  ;;  %v566_v0 = vadd.f32 %v565_v59, %v1746_v63  ;;  %v260_v1 = vpop.f32.mrb[7].mxu0  ;;  %v420_v3 = vpop.f32.mrb[7].mxu1 }
 0x126   :  { %v1751_v4 = vpop.f32.mrb[8].mxu0  ;;  %v1754_v7 = vpop.f32.mrb[8].mxu1 }
 0x127   :  { %2903 = vst [vmem:[#allocation4_spill] sm:$0xff] %v1751_v4  ;;  %v567_v5 = vadd.f32 %v566_v0, %v1751_v4  ;;  %v265_v6 = vpop.f32.mrb[9].mxu0  ;;  %v425_v8 = vpop.f32.mrb[9].mxu1 }
 0x12a   :  { %v1756_v9 = vpop.f32.mrb[10].mxu0  ;;  %v1759_v12 = vpop.f32.mrb[10].mxu1 }
 0x12b   :  { %v568_v10 = vadd.f32 %v567_v5, %v1756_v9  ;;  %v270_v11 = vpop.f32.mrb[11].mxu0  ;;  %v430_v13 = vpop.f32.mrb[11].mxu1 }
 0x12e   :  { %v1761_v14 = vpop.f32.mrb[12].mxu0  ;;  %v1764_v17 = vpop.f32.mrb[12].mxu1 }
 0x12f   :  { %v569_v15 = vadd.f32 %v568_v10, %v1761_v14  ;;  %v275_v16 = vpop.f32.mrb[13].mxu0  ;;  %v435_v18 = vpop.f32.mrb[13].mxu1 }
 0x132   :  { %v1766_v19 = vpop.f32.mrb[14].mxu0  ;;  %v1769_v22 = vpop.f32.mrb[14].mxu1 }
 0x133   :  { %v570_v20 = vadd.f32 %v569_v15, %v1766_v19  ;;  %v280_v21 = vpop.f32.mrb[15].mxu0  ;;  %v440_v23 = vpop.f32.mrb[15].mxu1 }
 0x136   :  { %v1771_v24 = vpop.f32.mrb[16].mxu0  ;;  %v1774_v27 = vpop.f32.mrb[16].mxu1 }
 0x137   :  { %v571_v25 = vadd.f32 %v570_v20, %v1771_v24  ;;  %v285_v26 = vpop.f32.mrb[17].mxu0  ;;  %v445_v28 = vpop.f32.mrb[17].mxu1 }
 0x13a   :  { %v1776_v29 = vpop.f32.mrb[18].mxu0  ;;  %v1779_v32 = vpop.f32.mrb[18].mxu1 }
 0x13b   :  { %v572_v30 = vadd.f32 %v571_v25, %v1776_v29  ;;  %v290_v31 = vpop.f32.mrb[19].mxu0  ;;  %v450_v33 = vpop.f32.mrb[19].mxu1 }
 0x13e   :  { %v1781_v34 = vpop.f32.mrb[20].mxu0  ;;  %v1784_v37 = vpop.f32.mrb[20].mxu1 }
 0x13f   :  { %v573_v35 = vadd.f32 %v572_v30, %v1781_v34  ;;  %v295_v36 = vpop.f32.mrb[21].mxu0  ;;  %v455_v38 = vpop.f32.mrb[21].mxu1 }
 0x142   :  { %v1786_v39 = vpop.f32.mrb[22].mxu0  ;;  %v1789_v42 = vpop.f32.mrb[22].mxu1 }
 0x143   :  { %v574_v40 = vadd.f32 %v573_v35, %v1786_v39  ;;  %v300_v41 = vpop.f32.mrb[23].mxu0  ;;  %v460_v43 = vpop.f32.mrb[23].mxu1 }
 0x146   :  { %v1791_v44 = vpop.f32.mrb[24].mxu0  ;;  %v1794_v47 = vpop.f32.mrb[24].mxu1 }
 0x147   :  { %v575_v45 = vadd.f32 %v574_v40, %v1791_v44  ;;  %v305_v46 = vpop.f32.mrb[25].mxu0  ;;  %v465_v48 = vpop.f32.mrb[25].mxu1 }
 0x14a   :  { %v1796_v50 = vpop.f32.mrb[26].mxu0  ;;  %v1799_v55 = vpop.f32.mrb[26].mxu1 }
 0x14b   :  { %v576_v52 = vadd.f32 %v575_v45, %v1796_v50  ;;  %v310_v54 = vpop.f32.mrb[27].mxu0  ;;  %v470_v57 = vpop.f32.mrb[27].mxu1 }
 0x14e   :  { %v1801_v59 = vpop.f32.mrb[28].mxu0  ;;  %v1804_v0 = vpop.f32.mrb[28].mxu1 }
 0x14f   :  { %v577_v60 = vadd.f32 %v576_v52, %v1801_v59  ;;  %v315_v62 = vpop.f32.mrb[29].mxu0  ;;  %v475_v1 = vpop.f32.mrb[29].mxu1 }
 0x152   :  { %v1806_v3 = vpop.f32.mrb[30].mxu0  ;;  %v1809_v8 = vpop.f32.mrb[30].mxu1 }
 0x153   :  { %v578_v5 = vadd.f32 %v577_v60, %v1806_v3  ;;  %v320_v6 = vpop.f32.mrb[31].mxu0  ;;  %v480_v10 = vpop.f32.mrb[31].mxu1 }
 0x156   :  { %v1811_v11 = vpop.f32.mrb[32].mxu0  ;;  %v1814_v16 = vpop.f32.mrb[32].mxu1 }
 0x157   :  { %2904 = vst [vmem:[#allocation5_spill] sm:$0xff] %v1811_v11  ;;  %v579_v13 = vadd.f32 %v578_v5, %v1811_v11  ;;  %v325_v15 = vpop.f32.mrb[33].mxu0  ;;  %v485_v18 = vpop.f32.mrb[33].mxu1 }
 0x15a   :  { %v1816_v20 = vpop.f32.mrb[34].mxu0  ;;  %v1819_v25 = vpop.f32.mrb[34].mxu1 }
 0x15b   :  { %2905 = vst [vmem:[#allocation6_spill] sm:$0xff] %v1816_v20  ;;  %v580_v21 = vadd.f32 %v579_v13, %v1816_v20  ;;  %v330_v23 = vpop.f32.mrb[35].mxu0  ;;  %2906 = vst [vmem:[#allocation7_spill] sm:$0xff] %v1819_v25  ;;  %v490_v26 = vpop.f32.mrb[35].mxu1 }
 0x15e   :  { %v1821_v28 = vpop.f32.mrb[36].mxu0  ;;  %v1824_v33 = vpop.f32.mrb[36].mxu1 }
 0x15f   :  { %2907 = vst [vmem:[#allocation8_spill] sm:$0xff] %v1821_v28  ;;  %v581_v30 = vadd.f32 %v580_v21, %v1821_v28  ;;  %v335_v31 = vpop.f32.mrb[37].mxu0  ;;  %2908 = vst [vmem:[#allocation9_spill] sm:$0xff] %v1824_v33  ;;  %v495_v35 = vpop.f32.mrb[37].mxu1 }
 0x162   :  { %v1826_v36 = vpop.f32.mrb[38].mxu0  ;;  %v1829_v41 = vpop.f32.mrb[38].mxu1 }
 0x163   :  { %2909 = vst [vmem:[#allocation10_spill] sm:$0xff] %v1826_v36  ;;  %v582_v38 = vadd.f32 %v581_v30, %v1826_v36  ;;  %v340_v40 = vpop.f32.mrb[39].mxu0  ;;  %2910 = vst [vmem:[#allocation11_spill] sm:$0xff] %v1829_v41  ;;  %v500_v43 = vpop.f32.mrb[39].mxu1 }
 0x166   :  { %v1831_v45 = vpop.f32.mrb[40].mxu0  ;;  %v1834_v52 = vpop.f32.mrb[40].mxu1 }
 0x167   :  { %2911 = vst [vmem:[#allocation12_spill] sm:$0xff] %v1831_v45  ;;  %v583_v46 = vadd.f32 %v582_v38, %v1831_v45  ;;  %v345_v48 = vpop.f32.mrb[41].mxu0  ;;  %2912 = vst [vmem:[#allocation13_spill] sm:$0xff] %v1834_v52  ;;  %v505_v54 = vpop.f32.mrb[41].mxu1 }
 0x16a   :  { %v1836_v57 = vpop.f32.mrb[42].mxu0  ;;  %v1839_v1 = vpop.f32.mrb[42].mxu1 }
 0x16b   :  { %2913 = vst [vmem:[#allocation14_spill] sm:$0xff] %v1836_v57  ;;  %v584_v60 = vadd.f32 %v583_v46, %v1836_v57  ;;  %v350_v62 = vpop.f32.mrb[43].mxu0  ;;  %2914 = vst [vmem:[#allocation15_spill] sm:$0xff] %v1839_v1  ;;  %v510_v5 = vpop.f32.mrb[43].mxu1 }
 0x16e   :  { %v1841_v6 = vpop.f32.mrb[44].mxu0  ;;  %v1844_v15 = vpop.f32.mrb[44].mxu1 }
 0x16f   :  { %2915 = vst [vmem:[#allocation16_spill] sm:$0xff] %v1841_v6  ;;  %v585_v10 = vadd.f32 %v584_v60, %v1841_v6  ;;  %v355_v13 = vpop.f32.mrb[45].mxu0  ;;  %2916 = vst [vmem:[#allocation17_spill] sm:$0xff] %v1844_v15  ;;  %v515_v18 = vpop.f32.mrb[45].mxu1 }
 0x172   :  { %v1846_v21 = vpop.f32.mrb[46].mxu0  ;;  %v1849_v30 = vpop.f32.mrb[46].mxu1 }
 0x173   :  { %2917 = vst [vmem:[#allocation18_spill] sm:$0xff] %v1846_v21  ;;  %v586_v23 = vadd.f32 %v585_v10, %v1846_v21  ;;  %v360_v26 = vpop.f32.mrb[47].mxu0  ;;  %2918 = vst [vmem:[#allocation19_spill] sm:$0xff] %v1849_v30  ;;  %v520_v31 = vpop.f32.mrb[47].mxu1 }
 0x176   :  { %v1851_v35 = vpop.f32.mrb[48].mxu0  ;;  %v1854_v43 = vpop.f32.mrb[48].mxu1 }
 0x177   :  { %2919 = vst [vmem:[#allocation20_spill] sm:$0xff] %v1851_v35  ;;  %v587_v38 = vadd.f32 %v586_v23, %v1851_v35  ;;  %v365_v40 = vpop.f32.mrb[49].mxu0  ;;  %2920 = vst [vmem:[#allocation21_spill] sm:$0xff] %v1854_v43  ;;  %v525_v46 = vpop.f32.mrb[49].mxu1 }
 0x17a   :  { %v1856_v48 = vpop.f32.mrb[50].mxu0  ;;  %v1859_v62 = vpop.f32.mrb[50].mxu1 }
 0x17b   :  { %2921 = vst [vmem:[#allocation22_spill] sm:$0xff] %v1856_v48  ;;  %v588_v54 = vadd.f32 %v587_v38, %v1856_v48  ;;  %v370_v60 = vpop.f32.mrb[51].mxu0  ;;  %2922 = vst [vmem:[#allocation23_spill] sm:$0xff] %v1859_v62  ;;  %v530_v5 = vpop.f32.mrb[51].mxu1 }
 0x17e   :  { %v1861_v10 = vpop.f32.mrb[52].mxu0  ;;  %v1864_v26 = vpop.f32.mrb[52].mxu1 }
 0x17f   :  { %2923 = vst [vmem:[#allocation24_spill] sm:$0xff] %v1861_v10  ;;  %v589_v13 = vadd.f32 %v588_v54, %v1861_v10  ;;  %v375_v18 = vpop.f32.mrb[53].mxu0  ;;  %2924 = vst [vmem:[#allocation25_spill] sm:$0xff] %v1864_v26  ;;  %v535_v23 = vpop.f32.mrb[53].mxu1 }
 0x182   :  { %v1866_v31 = vpop.f32.mrb[54].mxu0  ;;  %v1869_v35 = vpop.f32.mrb[54].mxu1 }
 0x183   :  { %2925 = vst [vmem:[#allocation26_spill] sm:$0xff] %v1866_v31  ;;  %v590_v40 = vadd.f32 %v589_v13, %v1866_v31  ;;  %v380_v46 = vpop.f32.mrb[55].mxu0  ;;  %2926 = vst [vmem:[#allocation27_spill] sm:$0xff] %v1869_v35  ;;  %v540_v38 = vpop.f32.mrb[55].mxu1 }
 0x186   :  { %v1871_v60 = vpop.f32.mrb[56].mxu0  ;;  %v1874_v21 = vpop.f32.mrb[56].mxu1 }
 0x187   :  { %2927 = vst [vmem:[#allocation28_spill] sm:$0xff] %v1871_v60  ;;  %v591_v5 = vadd.f32 %v590_v40, %v1871_v60  ;;  %v385_v48 = vpop.f32.mrb[57].mxu0  ;;  %2928 = vst [vmem:[#allocation29_spill] sm:$0xff] %v1874_v21  ;;  %v545_v54 = vpop.f32.mrb[57].mxu1 }
 0x18a   :  { %v1876_v18 = vpop.f32.mrb[58].mxu0  ;;  %v1879_v6 = vpop.f32.mrb[58].mxu1 }
 0x18b   :  { %2929 = vst [vmem:[#allocation30_spill] sm:$0xff] %v1876_v18  ;;  %v592_v23 = vadd.f32 %v591_v5, %v1876_v18  ;;  %v390_v10 = vpop.f32.mrb[59].mxu0  ;;  %2930 = vst [vmem:[#allocation31_spill] sm:$0xff] %v1879_v6  ;;  %v550_v13 = vpop.f32.mrb[59].mxu1 }
 0x18e   :  { %v1881_v46 = vpop.f32.mrb[60].mxu0  ;;  %v1884_v57 = vpop.f32.mrb[60].mxu1 }
 0x18f   :  { %2931 = vst [vmem:[#allocation32_spill] sm:$0xff] %v1881_v46  ;;  %v593_v38 = vadd.f32 %v592_v23, %v1881_v46  ;;  %v395_v31 = vpop.f32.mrb[61].mxu0  ;;  %2932 = vst [vmem:[#allocation33_spill] sm:$0xff] %v1884_v57  ;;  %v555_v40 = vpop.f32.mrb[61].mxu1 }
 0x192   :  { %v1886_v48 = vpop.f32.mrb[62].mxu0  ;;  %v1889_v45 = vpop.f32.mrb[62].mxu1 }
 0x193   :  { %v594_v54 = vadd.f32 %v593_v38, %v1886_v48  ;;  %v400_v60 = vpop.f32.mrb[63].mxu0  ;;  %v560_v5 = vpop.f32.mrb[63].mxu1 }
 0x195   :  { %v595_v10 = vadd.f32 %v594_v54, %v1733_v51 }
 0x197   :  { %v596_v13 = vadd.f32 %v595_v10, %v1739_v56 }
 0x199   :  { %v597_v18 = vadd.f32 %v596_v13, %v1744_v61 }
 0x19b   :  { %v598_v23 = vadd.f32 %v597_v18, %v1749_v2 }
 0x19d   :  { %v599_v31 = vadd.f32 %v598_v23, %v1754_v7 }
 0x19f   :  { %v600_v40 = vadd.f32 %v599_v31, %v1759_v12 }
 0x1a1   :  { %v601_v46 = vadd.f32 %v600_v40, %v1764_v17 }
 0x1a3   :  { %v602_v38 = vadd.f32 %v601_v46, %v1769_v22 }
 0x1a5   :  { %v603_v60 = vadd.f32 %v602_v38, %v1774_v27 }
 0x1a7   :  { %v604_v5 = vadd.f32 %v603_v60, %v1779_v32 }
 0x1a9   :  { %v605_v54 = vadd.f32 %v604_v5, %v1784_v37 }
 0x1ab   :  { %v606_v10 = vadd.f32 %v605_v54, %v1789_v42 }
 0x1ad   :  { %v607_v13 = vadd.f32 %v606_v10, %v1794_v47 }
 0x1af   :  { %v608_v18 = vadd.f32 %v607_v13, %v1799_v55 }
 0x1b1   :  { %v609_v23 = vadd.f32 %v608_v18, %v1804_v0 }
 0x1b3   :  { %v610_v31 = vadd.f32 %v609_v23, %v1809_v8 }
 0x1b5   :  { %v611_v40 = vadd.f32 %v610_v31, %v1814_v16 }
 0x1b7   :  { %v612_v46 = vadd.f32 %v611_v40, %v1819_v25 }
 0x1b9   :  { %v613_v38 = vadd.f32 %v612_v46, %v1824_v33 }
 0x1bb   :  { %v614_v60 = vadd.f32 %v613_v38, %v1829_v41 }
 0x1bd   :  { %v615_v5 = vadd.f32 %v614_v60, %v1834_v52 }
 0x1bf   :  { %v616_v54 = vadd.f32 %v615_v5, %v1839_v1 }
 0x1c1   :  { %v617_v10 = vadd.f32 %v616_v54, %v1844_v15 }
 0x1c3   :  { %v618_v13 = vadd.f32 %v617_v10, %v1849_v30 }
 0x1c5   :  { %v619_v18 = vadd.f32 %v618_v13, %v1854_v43 }
 0x1c7   :  { %v620_v23 = vadd.f32 %v619_v18, %v1859_v62 }
 0x1c9   :  { %v621_v31 = vadd.f32 %v620_v23, %v1864_v26 }
 0x1cb   :  { %v622_v40 = vadd.f32 %v621_v31, %v1869_v35 }
 0x1cd   :  { %v623_v46 = vadd.f32 %v622_v40, %v1874_v21 }
 0x1cf   :  { %v624_v38 = vadd.f32 %v623_v46, %v1879_v6 }
 0x1d1   :  { %v625_v60 = vadd.f32 %v624_v38, %v1884_v57 }
 0x1d3   :  { %v626_v5 = vadd.f32 %v625_v60, %v1889_v45 }
 0x1d5   :  { %v627_v1 = vrot.slane %v626_v5, 4 }
 0x1d7   :  { %v628_v54 = vadd.f32 %v627_v1, %v626_v5 }
 0x1d9   :  { %v629_v15 = vrot.slane %v628_v54, 2 }
 0x1db   :  { %v630_v10 = vadd.f32 %v629_v15, %v628_v54 }
 0x1dd   :  { %v631_v30 = vrot.slane %v630_v10, 1 }
 0x1df   :  { %v632_v13 = vadd.f32 %v631_v30, %v630_v10 }
 0x1e1   :  { %v1923_v43 = vmul.f32 0.001953125, %v632_v13 }
 0x1e3   :  { %v635_v18 = vsub.f32 %v1731_v49, %v1923_v43  ;;  %v636_v23 = vsub.f32 %v1735_v53, %v1923_v43  ;;  %v637_v31 = vsub.f32 %v1741_v58, %v1923_v43  ;;  %v638_v1 = vsub.f32 %v1746_v63, %v1923_v43 }
 0x1e4   :  { %v639_v15 = vsub.f32 %v1751_v4, %v1923_v43  ;;  %v640_v60 = vsub.f32 %v1756_v9, %v1923_v43  ;;  %v641_v10 = vsub.f32 %v1761_v14, %v1923_v43  ;;  %v643_v4 = vsub.f32 %v1771_v24, %v1923_v43 }
 0x1e5   :  { %v699_v40 = vmul.f32 %v635_v18, %v635_v18  ;;  %v700_v46 = vmul.f32 %v636_v23, %v636_v23  ;;  %v701_v30 = vmul.f32 %v637_v31, %v637_v31  ;;  %v702_v5 = vmul.f32 %v638_v1, %v638_v1 }
 0x1e6   :  { %v703_v13 = vmul.f32 %v639_v15, %v639_v15  ;;  %v642_v18 = vsub.f32 %v1766_v19, %v1923_v43  ;;  %v704_v23 = vmul.f32 %v640_v60, %v640_v60  ;;  %v705_v31 = vmul.f32 %v641_v10, %v641_v10 }
 0x1e7   :  { %v763_v38 = vadd.f32 %v700_v46, %v699_v40  ;;  %v644_v46 = vsub.f32 %v1776_v29, %v1923_v43  ;;  %v707_v15 = vmul.f32 %v643_v4, %v643_v4 }
 0x1e8   :  { %v706_v1 = vmul.f32 %v642_v18, %v642_v18 }
 0x1e9   :  { %v764_v54 = vadd.f32 %v763_v38, %v701_v30  ;;  %v645_v38 = vsub.f32 %v1781_v34, %v1923_v43  ;;  %v708_v60 = vmul.f32 %v644_v46, %v644_v46 }
 0x1eb   :  { %v765_v58 = vadd.f32 %v764_v54, %v702_v5  ;;  %v646_v54 = vsub.f32 %v1786_v39, %v1923_v43  ;;  %v709_v10 = vmul.f32 %v645_v38, %v645_v38 }
 0x1ed   :  { %v766_v63 = vadd.f32 %v765_v58, %v703_v13  ;;  %v647_v13 = vsub.f32 %v1791_v44, %v1923_v43  ;;  %v710_v18 = vmul.f32 %v646_v54, %v646_v54 }
 0x1ef   :  { %v767_v40 = vadd.f32 %v766_v63, %v704_v23  ;;  %v648_v23 = vsub.f32 %v1796_v50, %v1923_v43  ;;  %v711_v4 = vmul.f32 %v647_v13, %v647_v13 }
 0x1f1   :  { %v768_v30 = vadd.f32 %v767_v40, %v705_v31  ;;  %v649_v40 = vsub.f32 %v1801_v59, %v1923_v43  ;;  %v712_v46 = vmul.f32 %v648_v23, %v648_v23 }
 0x1f3   :  { %v769_v5 = vadd.f32 %v768_v30, %v706_v1  ;;  %v650_v30 = vsub.f32 %v1806_v3, %v1923_v43  ;;  %v713_v38 = vmul.f32 %v649_v40, %v649_v40 }
 0x1f5   :  { %v770_v58 = vadd.f32 %v769_v5, %v707_v15  ;;  %v651_v5 = vsub.f32 %v1811_v11, %v1923_v43  ;;  %v714_v54 = vmul.f32 %v650_v30, %v650_v30 }
 0x1f7   :  { %v771_v63 = vadd.f32 %v770_v58, %v708_v60  ;;  %v652_v58 = vsub.f32 %v1816_v20, %v1923_v43  ;;  %v715_v13 = vmul.f32 %v651_v5, %v651_v5 }
 0x1f9   :  { %v772_v31 = vadd.f32 %v771_v63, %v709_v10  ;;  %v653_v63 = vsub.f32 %v1821_v28, %v1923_v43  ;;  %v716_v23 = vmul.f32 %v652_v58, %v652_v58 }
 0x1fb   :  { %v773_v1 = vadd.f32 %v772_v31, %v710_v18  ;;  %v654_v31 = vsub.f32 %v1826_v36, %v1923_v43  ;;  %v717_v40 = vmul.f32 %v653_v63, %v653_v63 }
 0x1fd   :  { %v774_v15 = vadd.f32 %v773_v1, %v711_v4  ;;  %v2933_v1 = vld [vmem:[#allocation12_spill] sm:$0xff]  ;;  %v718_v30 = vmul.f32 %v654_v31, %v654_v31 }
 0x1fe   :  { %v655_v11 = vsub.f32 %v2933_v1, %v1923_v43 }
 0x1ff   :  { %v775_v60 = vadd.f32 %v774_v15, %v712_v46  ;;  %v2934_v15 = vld [vmem:[#allocation14_spill] sm:$0xff] }
 0x200   :  { %v656_v20 = vsub.f32 %v2934_v15, %v1923_v43  ;;  %v719_v5 = vmul.f32 %v655_v11, %v655_v11 }
 0x201   :  { %v776_v10 = vadd.f32 %v775_v60, %v713_v38  ;;  %v2935_v60 = vld [vmem:[#allocation16_spill] sm:$0xff] }
 0x202   :  { %v657_v28 = vsub.f32 %v2935_v60, %v1923_v43  ;;  %v720_v58 = vmul.f32 %v656_v20, %v656_v20 }
 0x203   :  { %v777_v18 = vadd.f32 %v776_v10, %v714_v54  ;;  %v2936_v10 = vld [vmem:[#allocation18_spill] sm:$0xff] }
 0x204   :  { %v658_v36 = vsub.f32 %v2936_v10, %v1923_v43  ;;  %v721_v63 = vmul.f32 %v657_v28, %v657_v28 }
 0x205   :  { %v778_v4 = vadd.f32 %v777_v18, %v715_v13  ;;  %v2937_v18 = vld [vmem:[#allocation20_spill] sm:$0xff] }
 0x206   :  { %v659_v1 = vsub.f32 %v2937_v18, %v1923_v43  ;;  %v722_v31 = vmul.f32 %v658_v36, %v658_v36 }
 0x207   :  { %v779_v46 = vadd.f32 %v778_v4, %v716_v23  ;;  %v2938_v4 = vld [vmem:[#allocation22_spill] sm:$0xff] }
 0x208   :  { %v660_v15 = vsub.f32 %v2938_v4, %v1923_v43  ;;  %v723_v11 = vmul.f32 %v659_v1, %v659_v1 }
 0x209   :  { %v780_v38 = vadd.f32 %v779_v46, %v717_v40  ;;  %v2939_v46 = vld [vmem:[#allocation24_spill] sm:$0xff] }
 0x20a   :  { %v661_v60 = vsub.f32 %v2939_v46, %v1923_v43  ;;  %v724_v20 = vmul.f32 %v660_v15, %v660_v15 }
 0x20b   :  { %v781_v54 = vadd.f32 %v780_v38, %v718_v30  ;;  %v2940_v38 = vld [vmem:[#allocation26_spill] sm:$0xff] }
 0x20c   :  { %v662_v10 = vsub.f32 %v2940_v38, %v1923_v43  ;;  %v725_v28 = vmul.f32 %v661_v60, %v661_v60 }
 0x20d   :  { %v782_v13 = vadd.f32 %v781_v54, %v719_v5  ;;  %v2941_v54 = vld [vmem:[#allocation28_spill] sm:$0xff] }
 0x20e   :  { %v663_v18 = vsub.f32 %v2941_v54, %v1923_v43  ;;  %v726_v36 = vmul.f32 %v662_v10, %v662_v10 }
 0x20f   :  { %v783_v23 = vadd.f32 %v782_v13, %v720_v58  ;;  %v2942_v13 = vld [vmem:[#allocation30_spill] sm:$0xff] }
 0x210   :  { %v664_v4 = vsub.f32 %v2942_v13, %v1923_v43  ;;  %v727_v1 = vmul.f32 %v663_v18, %v663_v18 }
 0x211   :  { %v784_v40 = vadd.f32 %v783_v23, %v721_v63  ;;  %v2943_v23 = vld [vmem:[#allocation32_spill] sm:$0xff] }
 0x212   :  { %v665_v46 = vsub.f32 %v2943_v23, %v1923_v43  ;;  %v728_v15 = vmul.f32 %v664_v4, %v664_v4 }
 0x213   :  { %v785_v30 = vadd.f32 %v784_v40, %v722_v31  ;;  %v666_v40 = vsub.f32 %v1886_v48, %v1923_v43 }
 0x214   :  { %v729_v60 = vmul.f32 %v665_v46, %v665_v46 }
 0x215   :  { %v786_v5 = vadd.f32 %v785_v30, %v723_v11  ;;  %v667_v30 = vsub.f32 %v1733_v51, %v1923_v43  ;;  %v730_v10 = vmul.f32 %v666_v40, %v666_v40 }
 0x217   :  { %v787_v58 = vadd.f32 %v786_v5, %v724_v20  ;;  %v668_v5 = vsub.f32 %v1739_v56, %v1923_v43  ;;  %v731_v18 = vmul.f32 %v667_v30, %v667_v30 }
 0x219   :  { %v788_v63 = vadd.f32 %v787_v58, %v725_v28  ;;  %v669_v58 = vsub.f32 %v1744_v61, %v1923_v43  ;;  %v732_v4 = vmul.f32 %v668_v5, %v668_v5 }
 0x21b   :  { %v789_v31 = vadd.f32 %v788_v63, %v726_v36  ;;  %v670_v63 = vsub.f32 %v1749_v2, %v1923_v43  ;;  %v733_v46 = vmul.f32 %v669_v58, %v669_v58 }
 0x21d   :  { %v790_v11 = vadd.f32 %v789_v31, %v727_v1  ;;  %v671_v31 = vsub.f32 %v1754_v7, %v1923_v43  ;;  %v734_v40 = vmul.f32 %v670_v63, %v670_v63 }
 0x21f   :  { %v791_v20 = vadd.f32 %v790_v11, %v728_v15  ;;  %v672_v11 = vsub.f32 %v1759_v12, %v1923_v43  ;;  %v735_v30 = vmul.f32 %v671_v31, %v671_v31 }
 0x221   :  { %v792_v28 = vadd.f32 %v791_v20, %v729_v60  ;;  %v673_v20 = vsub.f32 %v1764_v17, %v1923_v43  ;;  %v736_v5 = vmul.f32 %v672_v11, %v672_v11 }
 0x223   :  { %v793_v36 = vadd.f32 %v792_v28, %v730_v10  ;;  %v674_v28 = vsub.f32 %v1769_v22, %v1923_v43  ;;  %v737_v58 = vmul.f32 %v673_v20, %v673_v20 }
 0x225   :  { %v794_v1 = vadd.f32 %v793_v36, %v731_v18  ;;  %v675_v36 = vsub.f32 %v1774_v27, %v1923_v43  ;;  %v738_v63 = vmul.f32 %v674_v28, %v674_v28 }
 0x227   :  { %v795_v15 = vadd.f32 %v794_v1, %v732_v4  ;;  %v676_v1 = vsub.f32 %v1779_v32, %v1923_v43  ;;  %v739_v31 = vmul.f32 %v675_v36, %v675_v36 }
 0x229   :  { %v796_v60 = vadd.f32 %v795_v15, %v733_v46  ;;  %v677_v15 = vsub.f32 %v1784_v37, %v1923_v43  ;;  %v740_v11 = vmul.f32 %v676_v1, %v676_v1 }
 0x22b   :  { %v797_v10 = vadd.f32 %v796_v60, %v734_v40  ;;  %v678_v60 = vsub.f32 %v1789_v42, %v1923_v43  ;;  %v741_v20 = vmul.f32 %v677_v15, %v677_v15 }
 0x22d   :  { %v798_v18 = vadd.f32 %v797_v10, %v735_v30  ;;  %v679_v10 = vsub.f32 %v1794_v47, %v1923_v43  ;;  %v742_v28 = vmul.f32 %v678_v60, %v678_v60 }
 0x22f   :  { %v799_v4 = vadd.f32 %v798_v18, %v736_v5  ;;  %v680_v18 = vsub.f32 %v1799_v55, %v1923_v43  ;;  %v743_v36 = vmul.f32 %v679_v10, %v679_v10 }
 0x231   :  { %v800_v46 = vadd.f32 %v799_v4, %v737_v58  ;;  %v681_v4 = vsub.f32 %v1804_v0, %v1923_v43  ;;  %v744_v1 = vmul.f32 %v680_v18, %v680_v18 }
 0x233   :  { %v801_v40 = vadd.f32 %v800_v46, %v738_v63  ;;  %v682_v46 = vsub.f32 %v1809_v8, %v1923_v43  ;;  %v745_v15 = vmul.f32 %v681_v4, %v681_v4 }
 0x235   :  { %v802_v30 = vadd.f32 %v801_v40, %v739_v31  ;;  %v683_v40 = vsub.f32 %v1814_v16, %v1923_v43  ;;  %v746_v60 = vmul.f32 %v682_v46, %v682_v46 }
 0x237   :  { %v803_v5 = vadd.f32 %v802_v30, %v740_v11  ;;  %v684_v30 = vsub.f32 %v1819_v25, %v1923_v43  ;;  %v747_v10 = vmul.f32 %v683_v40, %v683_v40 }
 0x239   :  { %v804_v58 = vadd.f32 %v803_v5, %v741_v20  ;;  %v685_v5 = vsub.f32 %v1824_v33, %v1923_v43  ;;  %v748_v18 = vmul.f32 %v684_v30, %v684_v30 }
 0x23b   :  { %v805_v63 = vadd.f32 %v804_v58, %v742_v28  ;;  %v686_v58 = vsub.f32 %v1829_v41, %v1923_v43  ;;  %v749_v4 = vmul.f32 %v685_v5, %v685_v5 }
 0x23d   :  { %v806_v31 = vadd.f32 %v805_v63, %v743_v36  ;;  %v687_v63 = vsub.f32 %v1834_v52, %v1923_v43  ;;  %v750_v46 = vmul.f32 %v686_v58, %v686_v58 }
 0x23f   :  { %v807_v11 = vadd.f32 %v806_v31, %v744_v1  ;;  %v2944_v31 = vld [vmem:[#allocation15_spill] sm:$0xff]  ;;  %v751_v40 = vmul.f32 %v687_v63, %v687_v63 }
 0x240   :  { %v688_v25 = vsub.f32 %v2944_v31, %v1923_v43 }
 0x241   :  { %v808_v20 = vadd.f32 %v807_v11, %v745_v15  ;;  %v2945_v11 = vld [vmem:[#allocation17_spill] sm:$0xff] }
 0x242   :  { %v689_v33 = vsub.f32 %v2945_v11, %v1923_v43  ;;  %v752_v30 = vmul.f32 %v688_v25, %v688_v25 }
 0x243   :  { %v809_v28 = vadd.f32 %v808_v20, %v746_v60  ;;  %v2946_v20 = vld [vmem:[#allocation19_spill] sm:$0xff] }
 0x244   :  { %v690_v41 = vsub.f32 %v2946_v20, %v1923_v43  ;;  %v753_v5 = vmul.f32 %v689_v33, %v689_v33 }
 0x245   :  { %v810_v36 = vadd.f32 %v809_v28, %v747_v10  ;;  %v2947_v28 = vld [vmem:[#allocation21_spill] sm:$0xff] }
 0x246   :  { %v691_v52 = vsub.f32 %v2947_v28, %v1923_v43  ;;  %v754_v58 = vmul.f32 %v690_v41, %v690_v41 }
 0x247   :  { %v811_v1 = vadd.f32 %v810_v36, %v748_v18  ;;  %v692_v36 = vsub.f32 %v1859_v62, %v1923_v43 }
 0x248   :  { %v755_v63 = vmul.f32 %v691_v52, %v691_v52 }
 0x249   :  { %v812_v15 = vadd.f32 %v811_v1, %v749_v4  ;;  %v693_v1 = vsub.f32 %v1864_v26, %v1923_v43  ;;  %v756_v25 = vmul.f32 %v692_v36, %v692_v36 }
 0x24b   :  { %v813_v60 = vadd.f32 %v812_v15, %v750_v46  ;;  %v694_v15 = vsub.f32 %v1869_v35, %v1923_v43  ;;  %v757_v33 = vmul.f32 %v693_v1, %v693_v1 }
 0x24d   :  { %v814_v10 = vadd.f32 %v813_v60, %v751_v40  ;;  %v695_v60 = vsub.f32 %v1874_v21, %v1923_v43  ;;  %v758_v41 = vmul.f32 %v694_v15, %v694_v15 }
 0x24f   :  { %v815_v18 = vadd.f32 %v814_v10, %v752_v30  ;;  %v696_v10 = vsub.f32 %v1879_v6, %v1923_v43  ;;  %v759_v52 = vmul.f32 %v695_v60, %v695_v60  ;;  %v839_v60 = vlaneseq }
 0x251   :  { %v816_v4 = vadd.f32 %v815_v18, %v753_v5  ;;  %v697_v18 = vsub.f32 %v1884_v57, %v1923_v43  ;;  %v760_v36 = vmul.f32 %v696_v10, %v696_v10  ;;  %v562_v10 = vld [vmem:[%s2850_s2] sm:$0x1] }
 0x253   :  { %v817_v46 = vadd.f32 %v816_v4, %v754_v58  ;;  %v698_v4 = vsub.f32 %v1889_v45, %v1923_v43 }
 0x255   :  { %v818_v40 = vadd.f32 %v817_v46, %v755_v63  ;;  %v761_v46 = vmul.f32 %v697_v18, %v697_v18  ;;  %v762_v21 = vmul.f32 %v698_v4, %v698_v4 }
 0x257   :  { %v819_v30 = vadd.f32 %v818_v40, %v756_v25 }
 0x259   :  { %v820_v5 = vadd.f32 %v819_v30, %v757_v33 }
 0x25b   :  { %v821_v58 = vadd.f32 %v820_v5, %v758_v41  ;;  %v2053_v41 = vshrl.u32 %v839_v60, 7  ;;  %v2954_v60 = vld [vmem:[#allocation10_spill] sm:$0xff] }
 0x25d   :  { %v822_v63 = vadd.f32 %v821_v58, %v759_v52  ;;  %v2900_v5 = vsub.s32 0, %v2053_v41  ;;  %v2948_v58 = vld [vmem:[#allocation2_spill] sm:$0xff] }
 0x25f   :  { %v823_v35 = vadd.f32 %v822_v63, %v760_v36  ;;  %v2950_v63 = vld [vmem:[#allocation4_spill] sm:$0xff] }
 0x261   :  { %v824_v1 = vadd.f32 %v823_v35, %v761_v46 }
 0x263   :  { %v825_v25 = vadd.f32 %v824_v1, %v762_v21 }
 0x265   :  { %v826_v40 = vrot.slane %v825_v25, 4 }
 0x267   :  { %v827_v26 = vadd.f32 %v826_v40, %v825_v25 }
 0x269   :  { %v828_v6 = vrot.slane %v827_v26, 2 }
 0x26b   :  { %v829_v15 = vadd.f32 %v828_v6, %v827_v26  ;;  %v2062_v6 = vld [vmem:[%s2851_s3] sm:$0x1] }
 0x26d   :  { %v830_v33 = vrot.slane %v829_v15, 1 }
 0x26f   :  { %v831_v30 = vadd.f32 %v830_v33, %v829_v15  ;;  %v2951_v15 = vld [vmem:[#allocation5_spill] sm:$0xff]  ;;  %v2952_v33 = vld [vmem:[#allocation6_spill] sm:$0xff] }
 0x271   :  { %v832_v62 = vmul.f32 0.001953125, %v831_v30  ;;  %v2953_v30 = vld [vmem:[#allocation8_spill] sm:$0xff] }
 0x273   :  { %v833_v57 = vadd.f32 1e-05, %v832_v62  ;;  %v2961_v62 = vld [vmem:[#allocation24_spill] sm:$0xff] }
 0x275   :  { %1191 = vrsqrt.f32 %v833_v57 }
 0x27f   :  { %v1192_v35 = vpop.eup %1191 }
 0x280   :  { %v835_v21 = vmul.f32 %v1192_v35, %v562_v10  ;;  %v2955_v10 = vld [vmem:[#allocation12_spill] sm:$0xff]  ;;  %v2956_v35 = vld [vmem:[#allocation14_spill] sm:$0xff] }
 0x282   :  { %v2065_v26 = vmul.f32 %v835_v21, %v1923_v43  ;;  %v2069_v57 = vrot.slane %v835_v21, %v2900_v5  ;;  %v2949_v43 = vld [vmem:[#allocation3_spill] sm:$0xff] }
 0x283   :  { %v2965_v5 = vld [vmem:[#allocation7_spill] sm:$0xff] }
 0x284   :  { %v2075_v18 = vmul.f32 %v2069_v57, %v1731_v49  ;;  %v2079_v52 = vmul.f32 %v2069_v57, %v1735_v53  ;;  %v2083_v4 = vmul.f32 %v2069_v57, %v2948_v58  ;;  %v2087_v36 = vmul.f32 %v2069_v57, %v2949_v43  ;;  %v2957_v58 = vld [vmem:[#allocation16_spill] sm:$0xff] }
 0x285   :  { %v2091_v46 = vmul.f32 %v2069_v57, %v2950_v63  ;;  %v2095_v49 = vmul.f32 %v2069_v57, %v1756_v9  ;;  %v2099_v53 = vmul.f32 %v2069_v57, %v1761_v14  ;;  %v2103_v1 = vmul.f32 %v2069_v57, %v1766_v19  ;;  %v2958_v63 = vld [vmem:[#allocation18_spill] sm:$0xff] }
 0x286   :  { %v2107_v25 = vmul.f32 %v2069_v57, %v1771_v24  ;;  %v2111_v40 = vmul.f32 %v2069_v57, %v1776_v29  ;;  %v2115_v9 = vmul.f32 %v2069_v57, %v1781_v34  ;;  %v2119_v14 = vmul.f32 %v2069_v57, %v1786_v39 }
 0x287   :  { %v2123_v19 = vmul.f32 %v2069_v57, %v1791_v44  ;;  %v2127_v24 = vmul.f32 %v2069_v57, %v1796_v50  ;;  %v2131_v29 = vmul.f32 %v2069_v57, %v1801_v59  ;;  %v2135_v34 = vmul.f32 %v2069_v57, %v1806_v3 }
 0x288   :  { %v2139_v39 = vmul.f32 %v2069_v57, %v2951_v15  ;;  %v2143_v44 = vmul.f32 %v2069_v57, %v2952_v33  ;;  %v2147_v50 = vmul.f32 %v2069_v57, %v2953_v30  ;;  %v2151_v59 = vmul.f32 %v2069_v57, %v2954_v60  ;;  %v2959_v33 = vld [vmem:[#allocation20_spill] sm:$0xff]  ;;  %v2960_v60 = vld [vmem:[#allocation22_spill] sm:$0xff] }
 0x289   :  { %v2155_v3 = vmul.f32 %v2069_v57, %v2955_v10  ;;  %v2159_v21 = vmul.f32 %v2069_v57, %v2956_v35  ;;  %v2163_v43 = vmul.f32 %v2069_v57, %v2957_v58  ;;  %v2167_v15 = vmul.f32 %v2069_v57, %v2958_v63 }
 0x28a   :  { %v2171_v30 = vmul.f32 %v2069_v57, %v2959_v33  ;;  %v2175_v10 = vmul.f32 %v2069_v57, %v2960_v60  ;;  %v2179_v35 = vmul.f32 %v2069_v57, %v2961_v62  ;;  %v2183_v58 = vmul.f32 %v2069_v57, %v2940_v38 }
 0x28b   :  { %v2187_v63 = vmul.f32 %v2069_v57, %v2941_v54  ;;  %v2191_v33 = vmul.f32 %v2069_v57, %v2942_v13  ;;  %v2195_v60 = vmul.f32 %v2069_v57, %v2943_v23  ;;  %v2199_v62 = vmul.f32 %v2069_v57, %v1886_v48 }
 0x28c   :  { %v2203_v38 = vmul.f32 %v2069_v57, %v1733_v51  ;;  %v2207_v54 = vmul.f32 %v2069_v57, %v1739_v56  ;;  %v2211_v13 = vmul.f32 %v2069_v57, %v1744_v61  ;;  %v2215_v23 = vmul.f32 %v2069_v57, %v1749_v2 }
 0x28d   :  { %v2219_v48 = vmul.f32 %v2069_v57, %v1754_v7  ;;  %v2223_v51 = vmul.f32 %v2069_v57, %v1759_v12  ;;  %v2227_v56 = vmul.f32 %v2069_v57, %v1764_v17  ;;  %v2231_v61 = vmul.f32 %v2069_v57, %v1769_v22 }
 0x28e   :  { %v2235_v2 = vmul.f32 %v2069_v57, %v1774_v27  ;;  %v2239_v7 = vmul.f32 %v2069_v57, %v1779_v32  ;;  %v2243_v12 = vmul.f32 %v2069_v57, %v1784_v37  ;;  %v2247_v17 = vmul.f32 %v2069_v57, %v1789_v42 }
 0x28f   :  { %v2251_v22 = vmul.f32 %v2069_v57, %v1794_v47  ;;  %v2255_v27 = vmul.f32 %v2069_v57, %v1799_v55  ;;  %v2259_v32 = vmul.f32 %v2069_v57, %v1804_v0  ;;  %v2263_v37 = vmul.f32 %v2069_v57, %v1809_v8 }
 0x290   :  { %v2267_v42 = vmul.f32 %v2069_v57, %v1814_v16  ;;  %v2271_v47 = vmul.f32 %v2069_v57, %v2965_v5  ;;  %v2287_v16 = vmul.f32 %v2069_v57, %v2944_v31  ;;  %v2291_v5 = vmul.f32 %v2069_v57, %v2945_v11 }
 0x291   :  { %2962 = vst [vmem:[#allocation26_spill] sm:$0xff] %v2251_v22  ;;  %2963 = vst [vmem:[#allocation28_spill] sm:$0xff] %v2255_v27  ;;  %v2966_v22 = vld [vmem:[#allocation9_spill] sm:$0xff]  ;;  %v2967_v27 = vld [vmem:[#allocation11_spill] sm:$0xff] }
 0x292   :  { %2964 = vst [vmem:[#allocation30_spill] sm:$0xff] %v2259_v32  ;;  %v2275_v55 = vmul.f32 %v2069_v57, %v2966_v22  ;;  %v2279_v0 = vmul.f32 %v2069_v57, %v2967_v27  ;;  %v2969_v32 = vld [vmem:[#allocation13_spill] sm:$0xff]  ;;  %2971 = vst [vmem:[#allocation17_spill] sm:$0xff] %v2287_v16  ;;  %v2295_v22 = vmul.f32 %v2069_v57, %v2946_v20  ;;  %v2978_v16 = vld [vmem:[#allocation27_spill] sm:$0xff] }
 0x293   :  { %v2283_v8 = vmul.f32 %v2069_v57, %v2969_v32  ;;  %2972 = vst [vmem:[#allocation19_spill] sm:$0xff] %v2291_v5  ;;  %v2299_v27 = vmul.f32 %v2069_v57, %v2947_v28  ;;  %v2311_v11 = vmul.f32 %v2069_v57, %v2978_v16  ;;  %v2980_v5 = vld [vmem:[#allocation29_spill] sm:$0xff]  ;;  %v2984_v16 = vsub.f32 %v2062_v6, %v2065_v26 }
 0x294   :  { %2968 = vst [vmem:[#allocation32_spill] sm:$0xff] %v2279_v0  ;;  %2973 = vst [vmem:[#allocation21_spill] sm:$0xff] %v2295_v22  ;;  %v2975_v0 = vld [vmem:[#allocation23_spill] sm:$0xff]  ;;  %v2315_v20 = vmul.f32 %v2069_v57, %v2980_v5 }
 0x295   :  { %2970 = vst [vmem:[#allocation15_spill] sm:$0xff] %v2283_v8  ;;  %2974 = vst [vmem:[#allocation2_spill] sm:$0xff] %v2299_v27  ;;  %v2303_v32 = vmul.f32 %v2069_v57, %v2975_v0  ;;  %v2976_v8 = vld [vmem:[#allocation25_spill] sm:$0xff]  ;;  %v2981_v22 = vld [vmem:[#allocation31_spill] sm:$0xff] }
 0x296   :  { %v2307_v31 = vmul.f32 %v2069_v57, %v2976_v8  ;;  %2979 = vst [vmem:[#allocation4_spill] sm:$0xff] %v2311_v11  ;;  %v2319_v28 = vmul.f32 %v2069_v57, %v2981_v22  ;;  %v2982_v27 = vld [vmem:[#allocation33_spill] sm:$0xff]  ;;  %v2327_v8 = vmul.f32 %v2069_v57, %v1889_v45 }
 0x297   :  { %v2323_v0 = vmul.f32 %v2069_v57, %v2982_v27 }
 0x298   :  { %2977 = vst [vmem:[#allocation3_spill] sm:$0xff] %v2307_v31  ;;  %v2983_v31 = vsub.s32 0, %v2053_v41 }
 0x29a   :  { %v2334_v11 = vrot.slane %v2984_v16, %v2983_v31 }
 0x29c   :  { %v2338_v5 = vadd.f32 %v2334_v11, %v2075_v18  ;;  %v2342_v22 = vadd.f32 %v2334_v11, %v2079_v52  ;;  %v2346_v27 = vadd.f32 %v2334_v11, %v2083_v4  ;;  %v2350_v45 = vadd.f32 %v2334_v11, %v2087_v36 }
 0x29d   :  { %v2354_v41 = vadd.f32 %v2334_v11, %v2091_v46  ;;  %v2358_v6 = vadd.f32 %v2334_v11, %v2095_v49  ;;  %v2362_v26 = vadd.f32 %v2334_v11, %v2099_v53  ;;  %v2366_v57 = vadd.f32 %v2334_v11, %v2103_v1 }
 0x29e   :  { %v2370_v18 = vadd.f32 %v2334_v11, %v2107_v25  ;;  %v2374_v52 = vadd.f32 %v2334_v11, %v2111_v40  ;;  %v2378_v4 = vadd.f32 %v2334_v11, %v2115_v9  ;;  %v2382_v36 = vadd.f32 %v2334_v11, %v2119_v14 }
 0x29f   :  { %v2386_v46 = vadd.f32 %v2334_v11, %v2123_v19  ;;  %v2390_v49 = vadd.f32 %v2334_v11, %v2127_v24  ;;  %v2394_v53 = vadd.f32 %v2334_v11, %v2131_v29  ;;  %v2398_v1 = vadd.f32 %v2334_v11, %v2135_v34 }
 0x2a0   :  { %v2402_v25 = vadd.f32 %v2334_v11, %v2139_v39  ;;  %v2406_v40 = vadd.f32 %v2334_v11, %v2143_v44  ;;  %v2410_v9 = vadd.f32 %v2334_v11, %v2147_v50  ;;  %v2414_v14 = vadd.f32 %v2334_v11, %v2151_v59 }
 0x2a1   :  { %v2418_v19 = vadd.f32 %v2334_v11, %v2155_v3  ;;  %v2422_v24 = vadd.f32 %v2334_v11, %v2159_v21  ;;  %v2426_v29 = vadd.f32 %v2334_v11, %v2163_v43  ;;  %v2430_v34 = vadd.f32 %v2334_v11, %v2167_v15 }
 0x2a2   :  { %v2434_v39 = vadd.f32 %v2334_v11, %v2171_v30  ;;  %v2438_v44 = vadd.f32 %v2334_v11, %v2175_v10  ;;  %v2442_v50 = vadd.f32 %v2334_v11, %v2179_v35  ;;  %v2446_v59 = vadd.f32 %v2334_v11, %v2183_v58 }
 0x2a3   :  { %v2450_v3 = vadd.f32 %v2334_v11, %v2187_v63  ;;  %v2454_v21 = vadd.f32 %v2334_v11, %v2191_v33  ;;  %v2458_v43 = vadd.f32 %v2334_v11, %v2195_v60  ;;  %v2462_v15 = vadd.f32 %v2334_v11, %v2199_v62 }
 0x2a4   :  { %v2466_v30 = vadd.f32 %v2334_v11, %v2203_v38  ;;  %v2470_v10 = vadd.f32 %v2334_v11, %v2207_v54  ;;  %v2474_v35 = vadd.f32 %v2334_v11, %v2211_v13  ;;  %v2478_v58 = vadd.f32 %v2334_v11, %v2215_v23 }
 0x2a5   :  { %v2482_v63 = vadd.f32 %v2334_v11, %v2219_v48  ;;  %v2486_v33 = vadd.f32 %v2334_v11, %v2223_v51  ;;  %v2490_v60 = vadd.f32 %v2334_v11, %v2227_v56  ;;  %v2494_v62 = vadd.f32 %v2334_v11, %v2231_v61  ;;  %v2985_v48 = vld [vmem:[#allocation26_spill] sm:$0xff]  ;;  %v2986_v56 = vld [vmem:[#allocation28_spill] sm:$0xff] }
 0x2a6   :  { %v2498_v38 = vadd.f32 %v2334_v11, %v2235_v2  ;;  %v2502_v54 = vadd.f32 %v2334_v11, %v2239_v7  ;;  %v2506_v13 = vadd.f32 %v2334_v11, %v2243_v12  ;;  %v2510_v23 = vadd.f32 %v2334_v11, %v2247_v17  ;;  %v2987_v2 = vld [vmem:[#allocation30_spill] sm:$0xff] }
 0x2a7   :  { %v2514_v51 = vadd.f32 %v2334_v11, %v2985_v48  ;;  %v2518_v61 = vadd.f32 %v2334_v11, %v2986_v56  ;;  %v2522_v7 = vadd.f32 %v2334_v11, %v2987_v2  ;;  %v2526_v12 = vadd.f32 %v2334_v11, %v2263_v37  ;;  %v2992_v48 = vld [vmem:[#allocation32_spill] sm:$0xff]  ;;  %v2993_v2 = vld [vmem:[#allocation15_spill] sm:$0xff] }
 0x2a8   :  { %v2530_v17 = vadd.f32 %v2334_v11, %v2267_v42  ;;  %v2534_v31 = vadd.f32 %v2334_v11, %v2271_v47  ;;  %v2538_v16 = vadd.f32 %v2334_v11, %v2275_v55  ;;  %v2542_v56 = vadd.f32 %v2334_v11, %v2992_v48 }
 0x2a9   :  { %2988 = vst [vmem:[#allocation5_spill] sm:$0xff] %v2526_v12  ;;  %v2546_v37 = vadd.f32 %v2334_v11, %v2993_v2  ;;  %v2995_v12 = vld [vmem:[#allocation17_spill] sm:$0xff]  ;;  %v2566_v2 = vadd.f32 %v2334_v11, %v2303_v32  ;;  %v2586_v32 = vadd.f32 %v2334_v11, %v2323_v0  ;;  %v985_v0 = vmax.f32 %v2366_v57, 0.0 }
 0x2aa   :  { %2989 = vst [vmem:[#allocation6_spill] sm:$0xff] %v2530_v17  ;;  %2990 = vst [vmem:[#allocation8_spill] sm:$0xff] %v2534_v31  ;;  %v2550_v42 = vadd.f32 %v2334_v11, %v2995_v12  ;;  %v2997_v17 = vld [vmem:[#allocation19_spill] sm:$0xff]  ;;  %v2998_v31 = vld [vmem:[#allocation21_spill] sm:$0xff]  ;;  %v996_v57 = vmax.f32 %v2410_v9, 0.0  ;;  %v1007_v9 = vmax.f32 %v2454_v21, 0.0 }
 0x2ab   :  { %2991 = vst [vmem:[#allocation10_spill] sm:$0xff] %v2538_v16  ;;  %2994 = vst [vmem:[#allocation12_spill] sm:$0xff] %v2546_v37  ;;  %v2554_v47 = vadd.f32 %v2334_v11, %v2997_v17  ;;  %v2558_v55 = vadd.f32 %v2334_v11, %v2998_v31  ;;  %v2999_v16 = vld [vmem:[#allocation2_spill] sm:$0xff]  ;;  %v3000_v37 = vld [vmem:[#allocation3_spill] sm:$0xff]  ;;  %v2578_v31 = vadd.f32 %v2334_v11, %v2315_v20  ;;  %v981_v20 = vmax.f32 %v2350_v45, 0.0 }
 0x2ac   :  { %2996 = vst [vmem:[#allocation14_spill] sm:$0xff] %v2550_v42  ;;  %v2562_v48 = vadd.f32 %v2334_v11, %v2999_v16  ;;  %v2570_v12 = vadd.f32 %v2334_v11, %v3000_v37  ;;  %v3002_v42 = vld [vmem:[#allocation4_spill] sm:$0xff]  ;;  %v2582_v16 = vadd.f32 %v2334_v11, %v2319_v28  ;;  %3006 = vst [vmem:[#allocation24_spill] sm:$0xff] %v2586_v32  ;;  %v983_v28 = vmax.f32 %v2358_v6, 0.0 }
 0x2ad   :  { %v2574_v17 = vadd.f32 %v2334_v11, %v3002_v42  ;;  %3004 = vst [vmem:[#allocation20_spill] sm:$0xff] %v2578_v31  ;;  %v2590_v37 = vadd.f32 %v2334_v11, %v2327_v8  ;;  %v979_v42 = vmax.f32 %v2342_v22, 0.0  ;;  %v982_v31 = vmax.f32 %v2354_v41, 0.0  ;;  %1045 = vst [vmem:[%s2852_s4 + $0x18] sm:$0xff] %v981_v20 }
 0x2ae   :  { %3001 = vst [vmem:[#allocation16_spill] sm:$0xff] %v2570_v12  ;;  %3005 = vst [vmem:[#allocation22_spill] sm:$0xff] %v2582_v16  ;;  %v978_v12 = vmax.f32 %v2338_v5, 0.0  ;;  %v984_v16 = vmax.f32 %v2362_v26, 0.0  ;;  %v986_v32 = vmax.f32 %v2370_v18, 0.0  ;;  %v987_v11 = vmax.f32 %v2374_v52, 0.0 }
 0x2af   :  { %3003 = vst [vmem:[#allocation18_spill] sm:$0xff] %v2574_v17  ;;  %v980_v17 = vmax.f32 %v2346_v27, 0.0  ;;  %v988_v8 = vmax.f32 %v2378_v4, 0.0  ;;  %v989_v5 = vmax.f32 %v2382_v36, 0.0  ;;  %1043 = vst [vmem:[%s2852_s4 + $0x8] sm:$0xff] %v979_v42  ;;  %v990_v22 = vmax.f32 %v2386_v46, 0.0 }
 0x2b0   :  { %1042 = vst [vmem:[%s2852_s4] sm:$0xff] %v978_v12  ;;  %v991_v27 = vmax.f32 %v2390_v49, 0.0  ;;  %v992_v45 = vmax.f32 %v2394_v53, 0.0  ;;  %v993_v41 = vmax.f32 %v2398_v1, 0.0  ;;  %1046 = vst [vmem:[%s2852_s4 + $0x20] sm:$0xff] %v982_v31  ;;  %v994_v6 = vmax.f32 %v2402_v25, 0.0 }
 0x2b1   :  { %1044 = vst [vmem:[%s2852_s4 + $0x10] sm:$0xff] %v980_v17  ;;  %1047 = vst [vmem:[%s2852_s4 + $0x28] sm:$0xff] %v983_v28  ;;  %v995_v26 = vmax.f32 %v2406_v40, 0.0  ;;  %v997_v18 = vmax.f32 %v2414_v14, 0.0  ;;  %v998_v52 = vmax.f32 %v2418_v19, 0.0  ;;  %v999_v4 = vmax.f32 %v2422_v24, 0.0 }
 0x2b2   :  { %1048 = vst [vmem:[%s2852_s4 + $0x30] sm:$0xff] %v984_v16  ;;  %1049 = vst [vmem:[%s2852_s4 + $0x38] sm:$0xff] %v985_v0  ;;  %v1000_v36 = vmax.f32 %v2426_v29, 0.0  ;;  %v1001_v46 = vmax.f32 %v2430_v34, 0.0  ;;  %v1002_v49 = vmax.f32 %v2434_v39, 0.0  ;;  %v1003_v53 = vmax.f32 %v2438_v44, 0.0 }
 0x2b3   :  { %1050 = vst [vmem:[%s2852_s4 + $0x40] sm:$0xff] %v986_v32  ;;  %1051 = vst [vmem:[%s2852_s4 + $0x48] sm:$0xff] %v987_v11  ;;  %v1004_v1 = vmax.f32 %v2442_v50, 0.0  ;;  %v1005_v25 = vmax.f32 %v2446_v59, 0.0  ;;  %v1006_v40 = vmax.f32 %v2450_v3, 0.0  ;;  %v1008_v14 = vmax.f32 %v2458_v43, 0.0 }
 0x2b4   :  { %1052 = vst [vmem:[%s2852_s4 + $0x50] sm:$0xff] %v988_v8  ;;  %1053 = vst [vmem:[%s2852_s4 + $0x58] sm:$0xff] %v989_v5  ;;  %v1009_v19 = vmax.f32 %v2462_v15, 0.0  ;;  %v1010_v24 = vmax.f32 %v2466_v30, 0.0  ;;  %v1011_v29 = vmax.f32 %v2470_v10, 0.0  ;;  %v1012_v34 = vmax.f32 %v2474_v35, 0.0 }
 0x2b5   :  { %1054 = vst [vmem:[%s2852_s4 + $0x60] sm:$0xff] %v990_v22  ;;  %1055 = vst [vmem:[%s2852_s4 + $0x68] sm:$0xff] %v991_v27  ;;  %v1013_v39 = vmax.f32 %v2478_v58, 0.0  ;;  %v1014_v44 = vmax.f32 %v2482_v63, 0.0  ;;  %v1015_v50 = vmax.f32 %v2486_v33, 0.0  ;;  %v1016_v59 = vmax.f32 %v2490_v60, 0.0 }
 0x2b6   :  { %1056 = vst [vmem:[%s2852_s4 + $0x70] sm:$0xff] %v992_v45  ;;  %1057 = vst [vmem:[%s2852_s4 + $0x78] sm:$0xff] %v993_v41  ;;  %v1017_v3 = vmax.f32 %v2494_v62, 0.0  ;;  %v1018_v21 = vmax.f32 %v2498_v38, 0.0  ;;  %v1019_v43 = vmax.f32 %v2502_v54, 0.0  ;;  %v1020_v15 = vmax.f32 %v2506_v13, 0.0 }
 0x2b7   :  { %1058 = vst [vmem:[%s2852_s4 + $0x80] sm:$0xff] %v994_v6  ;;  %1059 = vst [vmem:[%s2852_s4 + $0x88] sm:$0xff] %v995_v26  ;;  %v1021_v30 = vmax.f32 %v2510_v23, 0.0  ;;  %v1022_v10 = vmax.f32 %v2514_v51, 0.0  ;;  %v1023_v35 = vmax.f32 %v2518_v61, 0.0  ;;  %v1024_v58 = vmax.f32 %v2522_v7, 0.0 }
 0x2b8   :  { %1060 = vst [vmem:[%s2852_s4 + $0x90] sm:$0xff] %v996_v57  ;;  %1061 = vst [vmem:[%s2852_s4 + $0x98] sm:$0xff] %v997_v18  ;;  %v3007_v63 = vld [vmem:[#allocation5_spill] sm:$0xff]  ;;  %v3008_v60 = vld [vmem:[#allocation6_spill] sm:$0xff]  ;;  %v1029_v51 = vmax.f32 %v2542_v56, 0.0  ;;  %v1032_v17 = vmax.f32 %v2554_v47, 0.0 }
 0x2b9   :  { %1062 = vst [vmem:[%s2852_s4 + $0xa0] sm:$0xff] %v998_v52  ;;  %1063 = vst [vmem:[%s2852_s4 + $0xa8] sm:$0xff] %v999_v4  ;;  %v1025_v33 = vmax.f32 %v3007_v63, 0.0  ;;  %v1026_v62 = vmax.f32 %v3008_v60, 0.0  ;;  %v3009_v38 = vld [vmem:[#allocation8_spill] sm:$0xff]  ;;  %v3010_v13 = vld [vmem:[#allocation10_spill] sm:$0xff] }
 0x2ba   :  { %1064 = vst [vmem:[%s2852_s4 + $0xb0] sm:$0xff] %v1000_v36  ;;  %1065 = vst [vmem:[%s2852_s4 + $0xb8] sm:$0xff] %v1001_v46  ;;  %v1027_v54 = vmax.f32 %v3009_v38, 0.0  ;;  %v1028_v23 = vmax.f32 %v3010_v13, 0.0  ;;  %v3011_v61 = vld [vmem:[#allocation12_spill] sm:$0xff]  ;;  %v3012_v12 = vld [vmem:[#allocation14_spill] sm:$0xff] }
 0x2bb   :  { %1066 = vst [vmem:[%s2852_s4 + $0xc0] sm:$0xff] %v1002_v49  ;;  %1067 = vst [vmem:[%s2852_s4 + $0xc8] sm:$0xff] %v1003_v53  ;;  %v1030_v7 = vmax.f32 %v3011_v61, 0.0  ;;  %v1031_v56 = vmax.f32 %v3012_v12, 0.0  ;;  %v1033_v31 = vmax.f32 %v2558_v55, 0.0  ;;  %v1034_v47 = vmax.f32 %v2562_v48, 0.0 }
 0x2bc   :  { %1068 = vst [vmem:[%s2852_s4 + $0xd0] sm:$0xff] %v1004_v1  ;;  %1069 = vst [vmem:[%s2852_s4 + $0xd8] sm:$0xff] %v1005_v25  ;;  %v1035_v55 = vmax.f32 %v2566_v2, 0.0  ;;  %v3013_v16 = vld [vmem:[#allocation16_spill] sm:$0xff]  ;;  %v3014_v42 = vld [vmem:[#allocation18_spill] sm:$0xff]  ;;  %v1041_v5 = vmax.f32 %v2590_v37, 0.0 }
 0x2bd   :  { %1070 = vst [vmem:[%s2852_s4 + $0xe0] sm:$0xff] %v1006_v40  ;;  %1071 = vst [vmem:[%s2852_s4 + $0xe8] sm:$0xff] %v1007_v9  ;;  %v1036_v32 = vmax.f32 %v3013_v16, 0.0  ;;  %v1037_v20 = vmax.f32 %v3014_v42, 0.0  ;;  %v3015_v48 = vld [vmem:[#allocation20_spill] sm:$0xff]  ;;  %v3016_v28 = vld [vmem:[#allocation22_spill] sm:$0xff] }
 0x2be   :  { %1072 = vst [vmem:[%s2852_s4 + $0xf0] sm:$0xff] %v1008_v14  ;;  %1073 = vst [vmem:[%s2852_s4 + $0xf8] sm:$0xff] %v1009_v19  ;;  %v1038_v2 = vmax.f32 %v3015_v48, 0.0  ;;  %v1039_v0 = vmax.f32 %v3016_v28, 0.0  ;;  %v3017_v11 = vld [vmem:[#allocation24_spill] sm:$0xff] }
 0x2bf   :  { %1074 = vst [vmem:[%s2852_s4 + $0x100] sm:$0xff] %v1010_v24  ;;  %1075 = vst [vmem:[%s2852_s4 + $0x108] sm:$0xff] %v1011_v29  ;;  %v1040_v8 = vmax.f32 %v3017_v11, 0.0 }
 0x2c0   :  { %1076 = vst [vmem:[%s2852_s4 + $0x110] sm:$0xff] %v1012_v34  ;;  %1077 = vst [vmem:[%s2852_s4 + $0x118] sm:$0xff] %v1013_v39 }
 0x2c1   :  { %1078 = vst [vmem:[%s2852_s4 + $0x120] sm:$0xff] %v1014_v44  ;;  %1079 = vst [vmem:[%s2852_s4 + $0x128] sm:$0xff] %v1015_v50 }
 0x2c2   :  { %1080 = vst [vmem:[%s2852_s4 + $0x130] sm:$0xff] %v1016_v59  ;;  %1081 = vst [vmem:[%s2852_s4 + $0x138] sm:$0xff] %v1017_v3 }
 0x2c3   :  { %1082 = vst [vmem:[%s2852_s4 + $0x140] sm:$0xff] %v1018_v21  ;;  %1083 = vst [vmem:[%s2852_s4 + $0x148] sm:$0xff] %v1019_v43 }
 0x2c4   :  { %1084 = vst [vmem:[%s2852_s4 + $0x150] sm:$0xff] %v1020_v15  ;;  %1085 = vst [vmem:[%s2852_s4 + $0x158] sm:$0xff] %v1021_v30 }
 0x2c5   :  { %1086 = vst [vmem:[%s2852_s4 + $0x160] sm:$0xff] %v1022_v10  ;;  %1087 = vst [vmem:[%s2852_s4 + $0x168] sm:$0xff] %v1023_v35 }
 0x2c6   :  { %1088 = vst [vmem:[%s2852_s4 + $0x170] sm:$0xff] %v1024_v58  ;;  %1089 = vst [vmem:[%s2852_s4 + $0x178] sm:$0xff] %v1025_v33 }
 0x2c7   :  { %1090 = vst [vmem:[%s2852_s4 + $0x180] sm:$0xff] %v1026_v62  ;;  %1091 = vst [vmem:[%s2852_s4 + $0x188] sm:$0xff] %v1027_v54 }
 0x2c8   :  { %1092 = vst [vmem:[%s2852_s4 + $0x190] sm:$0xff] %v1028_v23  ;;  %1093 = vst [vmem:[%s2852_s4 + $0x198] sm:$0xff] %v1029_v51 }
 0x2c9   :  { %1094 = vst [vmem:[%s2852_s4 + $0x1a0] sm:$0xff] %v1030_v7  ;;  %1095 = vst [vmem:[%s2852_s4 + $0x1a8] sm:$0xff] %v1031_v56 }
 0x2ca   :  { %1096 = vst [vmem:[%s2852_s4 + $0x1b0] sm:$0xff] %v1032_v17  ;;  %1097 = vst [vmem:[%s2852_s4 + $0x1b8] sm:$0xff] %v1033_v31 }
 0x2cb   :  { %1098 = vst [vmem:[%s2852_s4 + $0x1c0] sm:$0xff] %v1034_v47  ;;  %1099 = vst [vmem:[%s2852_s4 + $0x1c8] sm:$0xff] %v1035_v55 }
 0x2cc   :  { %1100 = vst [vmem:[%s2852_s4 + $0x1d0] sm:$0xff] %v1036_v32  ;;  %1101 = vst [vmem:[%s2852_s4 + $0x1d8] sm:$0xff] %v1037_v20 }
 0x2cd   :  { %1102 = vst [vmem:[%s2852_s4 + $0x1e0] sm:$0xff] %v1038_v2  ;;  %1103 = vst [vmem:[%s2852_s4 + $0x1e8] sm:$0xff] %v1039_v0 }
 0x2ce   :  { %1104 = vst [vmem:[%s2852_s4 + $0x1f0] sm:$0xff] %v1040_v8  ;;  %1105 = vst [vmem:[%s2852_s4 + $0x1f8] sm:$0xff] %v1041_v5 }

// kernel: downnet_forward.3
= control target key start
LH: loop header
LB: loop body
LE: loop exit
PB: predicated region body
PF: predicated region fallthrough
CT: control target
= control target key end

     0   :  { %s16265_s1 = inlined_call_operand.vmem [shape: f32[128,128], index: 1, kind: input, shape index: {}]   ;;  %s16266_s0 = inlined_call_operand.vmem [shape: f32[128,128], index: 0, kind: input, shape index: {}]   ;;  %s16267_s2 = inlined_call_operand.vmem [shape: f32[3,128,256], index: 2, kind: input, shape index: {}]   ;;  %s16268_s3 = inlined_call_operand.vmem [shape: f32[3,9,128,128], index: 3, kind: input, shape index: {}]   ;;  %s16269_s5 = inlined_call_operand.vmem [shape: f32[3,8,128], index: 5, kind: input, shape index: {}]   ;;  %s16270_s4 = inlined_call_operand.vmem [shape: f32[3,128,128], index: 4, kind: input, shape index: {}]   ;;  %s16271_s6 = inlined_call_operand.vmem [shape: f32[128,128], index: 6, kind: output, shape index: {}]  }
   0x1   :  { %v39_v0 = vld [vmem:[%s16265_s1] sm:$0xff]  ;;  %v40_v1 = vld [vmem:[%s16265_s1 + $0x8] sm:$0xff]  ;;  %v41_v2 = vld [vmem:[%s16265_s1 + $0x10] sm:$0xff] }
   0x2   :  { %v11073_v3 = vpack.c.bf16 %v40_v1, %v39_v0  ;;  %v42_v4 = vld [vmem:[%s16265_s1 + $0x18] sm:$0xff]  ;;  %v43_v6 = vld [vmem:[%s16265_s1 + $0x20] sm:$0xff]  ;;  %v44_v7 = vld [vmem:[%s16265_s1 + $0x28] sm:$0xff] }
   0x3   :  { %v11077_v5 = vpack.c.bf16 %v42_v4, %v41_v2  ;;  %v11081_v8 = vpack.c.bf16 %v44_v7, %v43_v6  ;;  %v23_v9 = vld [vmem:[%s16266_s0] sm:$0xff]  ;;  %v45_v10 = vld [vmem:[%s16265_s1 + $0x30] sm:$0xff]  ;;  %v46_v11 = vld [vmem:[%s16265_s1 + $0x38] sm:$0xff] }
   0x4   :  { %11074 = vmatprep.subr.bf16.mxu1 %v11073_v3  ;;  %9369 = vmatprep.mubr.f32.mxu1 %v23_v9  ;;  %v11085_v12 = vpack.c.bf16 %v46_v11, %v45_v10  ;;  %v47_v13 = vld [vmem:[%s16265_s1 + $0x40] sm:$0xff]  ;;  %v48_v14 = vld [vmem:[%s16265_s1 + $0x48] sm:$0xff]  ;;  %v49_v16 = vld [vmem:[%s16265_s1 + $0x50] sm:$0xff] }
   0x5   :  { %11076 = vmatpush3.bf16.msra.mxu1 %v11073_v3  ;;  %v11089_v15 = vpack.c.bf16 %v48_v14, %v47_v13  ;;  %v50_v17 = vld [vmem:[%s16265_s1 + $0x58] sm:$0xff]  ;;  %v51_v19 = vld [vmem:[%s16265_s1 + $0x60] sm:$0xff]  ;;  %v52_v20 = vld [vmem:[%s16265_s1 + $0x68] sm:$0xff] }
   0x6   :  { %11078 = vmatprep.subr.bf16.mxu1 %v11077_v5  ;;  %v11093_v18 = vpack.c.bf16 %v50_v17, %v49_v16  ;;  %v11097_v21 = vpack.c.bf16 %v52_v20, %v51_v19  ;;  %v53_v22 = vld [vmem:[%s16265_s1 + $0x70] sm:$0xff]  ;;  %v54_v23 = vld [vmem:[%s16265_s1 + $0x78] sm:$0xff]  ;;  %v242_v25 = vld [vmem:[%s16267_s2 + $0x8] sm:$0xff] }
   0x7   :  { %v11101_v24 = vpack.c.bf16 %v54_v23, %v53_v22  ;;  %v244_v26 = vld [vmem:[%s16267_s2 + $0x18] sm:$0xff]  ;;  %v241_v28 = vld [vmem:[%s16267_s2] sm:$0xff]  ;;  %v243_v29 = vld [vmem:[%s16267_s2 + $0x10] sm:$0xff] }
   0x8   :  { %v11105_v27 = vpack.c.bf16 %v244_v26, %v242_v25  ;;  %v246_v30 = vld [vmem:[%s16267_s2 + $0x28] sm:$0xff]  ;;  %v248_v31 = vld [vmem:[%s16267_s2 + $0x38] sm:$0xff]  ;;  %v11107_v33 = vpack.c.bf16 %v243_v29, %v241_v28  ;;  %v25_v34 = vld [vmem:[%s16266_s0 + $0x10] sm:$0xff] }
   0x9   :  { %11080 = vmatpush3.bf16.msra.mxu1 %v11077_v5  ;;  %v24_v32 = vld [vmem:[%s16266_s0 + $0x8] sm:$0xff]  ;;  %v11109_v35 = vpack.c.bf16 %v248_v31, %v246_v30  ;;  %v245_v36 = vld [vmem:[%s16267_s2 + $0x20] sm:$0xff]  ;;  %v247_v37 = vld [vmem:[%s16267_s2 + $0x30] sm:$0xff] }
   0xa   :  { %11082 = vmatprep.subr.bf16.mxu1 %v11081_v8  ;;  %v250_v38 = vld [vmem:[%s16267_s2 + $0x48] sm:$0xff]  ;;  %v252_v39 = vld [vmem:[%s16267_s2 + $0x58] sm:$0xff]  ;;  %v11111_v41 = vpack.c.bf16 %v247_v37, %v245_v36  ;;  %v27_v42 = vld [vmem:[%s16266_s0 + $0x20] sm:$0xff] }
   0xb   :  { %v26_v40 = vld [vmem:[%s16266_s0 + $0x18] sm:$0xff]  ;;  %v11113_v43 = vpack.c.bf16 %v252_v39, %v250_v38  ;;  %v249_v44 = vld [vmem:[%s16267_s2 + $0x40] sm:$0xff]  ;;  %v251_v45 = vld [vmem:[%s16267_s2 + $0x50] sm:$0xff] }
   0xc   :  { %v254_v46 = vld [vmem:[%s16267_s2 + $0x68] sm:$0xff]  ;;  %v256_v47 = vld [vmem:[%s16267_s2 + $0x78] sm:$0xff]  ;;  %v11115_v49 = vpack.c.bf16 %v251_v45, %v249_v44  ;;  %v29_v50 = vld [vmem:[%s16266_s0 + $0x30] sm:$0xff] }
   0xd   :  { %11084 = vmatpush3.bf16.msra.mxu1 %v11081_v8  ;;  %v28_v48 = vld [vmem:[%s16266_s0 + $0x28] sm:$0xff]  ;;  %v11117_v51 = vpack.c.bf16 %v256_v47, %v254_v46  ;;  %v253_v52 = vld [vmem:[%s16267_s2 + $0x60] sm:$0xff]  ;;  %v255_v53 = vld [vmem:[%s16267_s2 + $0x70] sm:$0xff] }
   0xe   :  { %11086 = vmatprep.subr.bf16.mxu1 %v11085_v12  ;;  %v258_v54 = vld [vmem:[%s16267_s2 + $0x88] sm:$0xff]  ;;  %v260_v55 = vld [vmem:[%s16267_s2 + $0x98] sm:$0xff]  ;;  %v11119_v57 = vpack.c.bf16 %v255_v53, %v253_v52  ;;  %v31_v58 = vld [vmem:[%s16266_s0 + $0x40] sm:$0xff] }
   0xf   :  { %v30_v56 = vld [vmem:[%s16266_s0 + $0x38] sm:$0xff]  ;;  %v11121_v59 = vpack.c.bf16 %v260_v55, %v258_v54  ;;  %v257_v60 = vld [vmem:[%s16267_s2 + $0x80] sm:$0xff]  ;;  %v259_v61 = vld [vmem:[%s16267_s2 + $0x90] sm:$0xff] }
  0x10   :  { %v262_v62 = vld [vmem:[%s16267_s2 + $0xa8] sm:$0xff]  ;;  %v264_v63 = vld [vmem:[%s16267_s2 + $0xb8] sm:$0xff]  ;;  %v11123_v1 = vpack.c.bf16 %v259_v61, %v257_v60  ;;  %v33_v2 = vld [vmem:[%s16266_s0 + $0x50] sm:$0xff] }
  0x11   :  { %11088 = vmatpush3.bf16.msra.mxu1 %v11085_v12  ;;  %v32_v0 = vld [vmem:[%s16266_s0 + $0x48] sm:$0xff]  ;;  %v11125_v3 = vpack.c.bf16 %v264_v63, %v262_v62  ;;  %v261_v4 = vld [vmem:[%s16267_s2 + $0xa0] sm:$0xff]  ;;  %v263_v5 = vld [vmem:[%s16267_s2 + $0xb0] sm:$0xff] }
  0x12   :  { %11090 = vmatprep.subr.bf16.mxu1 %v11089_v15  ;;  %v266_v6 = vld [vmem:[%s16267_s2 + $0xc8] sm:$0xff]  ;;  %v268_v7 = vld [vmem:[%s16267_s2 + $0xd8] sm:$0xff]  ;;  %v11127_v9 = vpack.c.bf16 %v263_v5, %v261_v4  ;;  %v35_v10 = vld [vmem:[%s16266_s0 + $0x60] sm:$0xff] }
  0x13   :  { %v34_v8 = vld [vmem:[%s16266_s0 + $0x58] sm:$0xff]  ;;  %v11129_v11 = vpack.c.bf16 %v268_v7, %v266_v6  ;;  %v265_v12 = vld [vmem:[%s16267_s2 + $0xc0] sm:$0xff]  ;;  %v267_v13 = vld [vmem:[%s16267_s2 + $0xd0] sm:$0xff] }
  0x14   :  { %v270_v14 = vld [vmem:[%s16267_s2 + $0xe8] sm:$0xff]  ;;  %v11131_v17 = vpack.c.bf16 %v267_v13, %v265_v12  ;;  %v269_v20 = vld [vmem:[%s16267_s2 + $0xe0] sm:$0xff]  ;;  %v38_v22 = vld [vmem:[%s16266_s0 + $0x78] sm:$0xff] }
  0x15   :  { %11092 = vmatpush3.bf16.msra.mxu1 %v11089_v15  ;;  %v272_v15 = vld [vmem:[%s16267_s2 + $0xf8] sm:$0xff]  ;;  %v36_v16 = vld [vmem:[%s16266_s0 + $0x68] sm:$0xff]  ;;  %v7833_v44 = vld [vmem:[%s16268_s3 + $0x90] sm:$0xff] }
  0x16   :  { %11094 = vmatprep.subr.bf16.mxu1 %v11093_v18  ;;  %v11133_v19 = vpack.c.bf16 %v272_v15, %v270_v14  ;;  %v7834_v45 = vld [vmem:[%s16268_s3 + $0x98] sm:$0xff]  ;;  %v7837_v55 = vld [vmem:[%s16268_s3 + $0xb0] sm:$0xff]  ;;  %v7839_v61 = vld [vmem:[%s16268_s3 + $0xc0] sm:$0xff] }
  0x17   :  { %v11141_v46 = vpack.c.bf16 %v7834_v45, %v7833_v44  ;;  %v7840_v62 = vld [vmem:[%s16268_s3 + $0xc8] sm:$0xff]  ;;  %v7842_v4 = vld [vmem:[%s16268_s3 + $0xd8] sm:$0xff]  ;;  %v7845_v15 = vld [vmem:[%s16268_s3 + $0xf0] sm:$0xff] }
  0x18   :  { %v11153_v63 = vpack.c.bf16 %v7840_v62, %v7839_v61 }
  0x19   :  { %11096 = vmatpush3.bf16.msra.mxu1 %v11093_v18  ;;  %v37_v18 = vld [vmem:[%s16266_s0 + $0x70] sm:$0xff] }
  0x1a   :  { %11098 = vmatprep.subr.bf16.mxu1 %v11097_v21 }
  0x1d   :  { %11100 = vmatpush3.bf16.msra.mxu1 %v11097_v21  ;;  %v271_v21 = vld [vmem:[%s16267_s2 + $0xf0] sm:$0xff] }
  0x1e   :  { %11102 = vmatprep.subr.bf16.mxu1 %v11101_v24  ;;  %v11135_v23 = vpack.c.bf16 %v271_v21, %v269_v20  ;;  %v608_v21 = vld [vmem:[%s16268_s3] sm:$0xff] }
  0x21   :  { %11104 = vmatpush3.bf16.msra.mxu1 %v11101_v24  ;;  %v16272_v24 = vmov 0.0  }
  0x22   :  { %11106 = vmatprep.subr.bf16.mxu1 %v11105_v27  ;;  %200 = vst [vmem:[#allocation2] sm:$0xff] %v16272_v24  ;;  %201 = vst [vmem:[#allocation2 + $0x8] sm:$0x3] %v16272_v24 }
  0x23   :  { %202 = vst [vmem:[#allocation2 + $0x10] sm:$0xff] %v16272_v24  ;;  %203 = vst [vmem:[#allocation2 + $0x18] sm:$0x3] %v16272_v24 }
  0x24   :  { %9370 = vmatmul.mubr.f32.vlgmr.msra.gmra.mrb[0].mxu1 %v24_v32  ;;  %204 = vst [vmem:[#allocation2 + $0x20] sm:$0xff] %v16272_v24  ;;  %205 = vst [vmem:[#allocation2 + $0x28] sm:$0x3] %v16272_v24 }
  0x25   :  { %9372 = vmatprep.mubr.f32.mxu1 %v25_v34  ;;  %11108 = vmatpush1.bf16.msra.mxu1 %v11107_v33  ;;  %206 = vst [vmem:[#allocation2 + $0x30] sm:$0xff] %v16272_v24  ;;  %207 = vst [vmem:[#allocation2 + $0x38] sm:$0x3] %v16272_v24 }
  0x26   :  { %11110 = vmatprep.subr.bf16.mxu1 %v11109_v35  ;;  %208 = vst [vmem:[#allocation2 + $0x40] sm:$0xff] %v16272_v24  ;;  %209 = vst [vmem:[#allocation2 + $0x48] sm:$0x3] %v16272_v24 }
  0x27   :  { %210 = vst [vmem:[#allocation2 + $0x50] sm:$0xff] %v16272_v24  ;;  %211 = vst [vmem:[#allocation2 + $0x58] sm:$0x3] %v16272_v24 }
  0x28   :  { %9373 = vmatmul.mubr.f32.gmra.mrb[2].mxu1 %v26_v40  ;;  %212 = vst [vmem:[#allocation2 + $0x60] sm:$0xff] %v16272_v24  ;;  %213 = vst [vmem:[#allocation2 + $0x68] sm:$0x3] %v16272_v24 }
  0x29   :  { %9375 = vmatprep.mubr.f32.mxu1 %v27_v42  ;;  %11112 = vmatpush1.bf16.msra.mxu1 %v11111_v41  ;;  %214 = vst [vmem:[#allocation2 + $0x70] sm:$0xff] %v16272_v24  ;;  %215 = vst [vmem:[#allocation2 + $0x78] sm:$0x3] %v16272_v24  ;;  %v7831_v41 = vld [vmem:[%s16268_s3 + $0x80] sm:$0xff]  ;;  %v7832_v42 = vld [vmem:[%s16268_s3 + $0x88] sm:$0xff] }
  0x2a   :  { %11114 = vmatprep.subr.bf16.mxu1 %v11113_v43  ;;  %216 = vst [vmem:[#allocation2 + $0x80] sm:$0xff] %v16272_v24  ;;  %217 = vst [vmem:[#allocation2 + $0x88] sm:$0x3] %v16272_v24  ;;  %v11137_v43 = vpack.c.bf16 %v7832_v42, %v7831_v41 }
  0x2b   :  { %218 = vst [vmem:[#allocation2 + $0x90] sm:$0xff] %v16272_v24  ;;  %219 = vst [vmem:[#allocation2 + $0x98] sm:$0x3] %v16272_v24 }
  0x2c   :  { %9376 = vmatmul.mubr.f32.gmra.mrb[4].mxu1 %v28_v48  ;;  %220 = vst [vmem:[#allocation2 + $0xa0] sm:$0xff] %v16272_v24  ;;  %221 = vst [vmem:[#allocation2 + $0xa8] sm:$0x3] %v16272_v24  ;;  %11138 = vmatprep.subr.bf16.mxu0 %v11137_v43 }
  0x2d   :  { %9378 = vmatprep.mubr.f32.mxu1 %v29_v50  ;;  %11116 = vmatpush1.bf16.msra.mxu1 %v11115_v49  ;;  %222 = vst [vmem:[#allocation2 + $0xb0] sm:$0xff] %v16272_v24  ;;  %223 = vst [vmem:[#allocation2 + $0xb8] sm:$0x3] %v16272_v24  ;;  %v7835_v49 = vld [vmem:[%s16268_s3 + $0xa0] sm:$0xff]  ;;  %v7836_v50 = vld [vmem:[%s16268_s3 + $0xa8] sm:$0xff] }
  0x2e   :  { %11118 = vmatprep.subr.bf16.mxu1 %v11117_v51  ;;  %224 = vst [vmem:[#allocation2 + $0xc0] sm:$0xff] %v16272_v24  ;;  %225 = vst [vmem:[#allocation2 + $0xc8] sm:$0x3] %v16272_v24  ;;  %11140 = vmatpush3.bf16.msra.mxu0 %v11137_v43  ;;  %v11145_v51 = vpack.c.bf16 %v7836_v50, %v7835_v49 }
  0x2f   :  { %226 = vst [vmem:[#allocation2 + $0xd0] sm:$0xff] %v16272_v24  ;;  %227 = vst [vmem:[#allocation2 + $0xd8] sm:$0x3] %v16272_v24  ;;  %11142 = vmatprep.subr.bf16.mxu0 %v11141_v46 }
  0x30   :  { %9379 = vmatmul.mubr.f32.gmra.mrb[6].mxu1 %v30_v56  ;;  %228 = vst [vmem:[#allocation2 + $0xe0] sm:$0xff] %v16272_v24  ;;  %229 = vst [vmem:[#allocation2 + $0xe8] sm:$0x3] %v16272_v24  ;;  %v7838_v56 = vld [vmem:[%s16268_s3 + $0xb8] sm:$0xff] }
  0x31   :  { %9381 = vmatprep.mubr.f32.mxu1 %v31_v58  ;;  %11120 = vmatpush1.bf16.msra.mxu1 %v11119_v57  ;;  %230 = vst [vmem:[#allocation2 + $0xf0] sm:$0xff] %v16272_v24  ;;  %231 = vst [vmem:[#allocation2 + $0xf8] sm:$0x3] %v16272_v24  ;;  %v11149_v57 = vpack.c.bf16 %v7838_v56, %v7837_v55 }
  0x32   :  { %11122 = vmatprep.subr.bf16.mxu1 %v11121_v59  ;;  %232 = vst [vmem:[#allocation2 + $0x100] sm:$0xff] %v16272_v24  ;;  %233 = vst [vmem:[#allocation2 + $0x108] sm:$0x3] %v16272_v24  ;;  %11144 = vmatpush3.bf16.msra.mxu0 %v11141_v46 }
  0x33   :  { %234 = vst [vmem:[#allocation2 + $0x110] sm:$0xff] %v16272_v24  ;;  %235 = vst [vmem:[#allocation2 + $0x118] sm:$0x3] %v16272_v24  ;;  %11146 = vmatprep.subr.bf16.mxu0 %v11145_v51 }
  0x34   :  { %9382 = vmatmul.mubr.f32.gmra.mrb[8].mxu1 %v32_v0  ;;  %236 = vst [vmem:[#allocation2 + $0x120] sm:$0xff] %v16272_v24  ;;  %237 = vst [vmem:[#allocation2 + $0x128] sm:$0x3] %v16272_v24 }
  0x35   :  { %9384 = vmatprep.mubr.f32.mxu1 %v33_v2  ;;  %11124 = vmatpush1.bf16.msra.mxu1 %v11123_v1  ;;  %238 = vst [vmem:[#allocation2 + $0x130] sm:$0xff] %v16272_v24  ;;  %239 = vst [vmem:[#allocation2 + $0x138] sm:$0x3] %v16272_v24 }
  0x36   :  { %11126 = vmatprep.subr.bf16.mxu1 %v11125_v3  ;;  %11148 = vmatpush3.bf16.msra.mxu0 %v11145_v51  ;;  %v7841_v3 = vld [vmem:[%s16268_s3 + $0xd0] sm:$0xff] }
  0x37   :  { %11150 = vmatprep.subr.bf16.mxu0 %v11149_v57  ;;  %v11157_v5 = vpack.c.bf16 %v7842_v4, %v7841_v3 }
  0x38   :  { %9385 = vmatmul.mubr.f32.gmra.mrb[10].mxu1 %v34_v8 }
  0x39   :  { %9387 = vmatprep.mubr.f32.mxu1 %v35_v10  ;;  %11128 = vmatpush1.bf16.msra.mxu1 %v11127_v9  ;;  %v7843_v9 = vld [vmem:[%s16268_s3 + $0xe0] sm:$0xff]  ;;  %v7844_v10 = vld [vmem:[%s16268_s3 + $0xe8] sm:$0xff] }
  0x3a   :  { %11130 = vmatprep.subr.bf16.mxu1 %v11129_v11  ;;  %11152 = vmatpush3.bf16.msra.mxu0 %v11149_v57  ;;  %v11161_v11 = vpack.c.bf16 %v7844_v10, %v7843_v9 }
  0x3b   :  { %11154 = vmatprep.subr.bf16.mxu0 %v11153_v63 }
  0x3c   :  { %9388 = vmatmul.mubr.f32.gmra.mrb[12].mxu1 %v36_v16  ;;  %v7846_v16 = vld [vmem:[%s16268_s3 + $0xf8] sm:$0xff] }
  0x3d   :  { %9390 = vmatprep.mubr.f32.mxu1 %v37_v18  ;;  %11132 = vmatpush1.bf16.msra.mxu1 %v11131_v17  ;;  %v11165_v17 = vpack.c.bf16 %v7846_v16, %v7845_v15 }
  0x3e   :  { %11134 = vmatprep.subr.bf16.mxu1 %v11133_v19  ;;  %11156 = vmatpush3.bf16.msra.mxu0 %v11153_v63 }
  0x3f   :  { %11158 = vmatprep.subr.bf16.mxu0 %v11157_v5 }
  0x40   :  { %9391 = vmatmul.mubr.f32.gmra.mrb[14].mxu1 %v38_v22  ;;  %v609_v22 = vld [vmem:[%s16268_s3 + $0x8] sm:$0xff] }
  0x41   :  { %11136 = vmatpush1.bf16.msra.mxu1 %v11135_v23  ;;  %337 = vmatprep.mubr.f32.mxu1 %v16272_v24  ;;  %v624_v23 = vld [vmem:[#allocation2 + $0x1] sm:$0xff] }
  0x42   :  { %11160 = vmatpush3.bf16.msra.mxu0 %v11157_v5  ;;  %9425 = vmatprep.mubr.f32.mxu0 %v624_v23 }
  0x43   :  { %11162 = vmatprep.subr.bf16.mxu0 %v11161_v11 }
  0x46   :  { %11164 = vmatpush3.bf16.msra.mxu0 %v11161_v11 }
  0x47   :  { %11166 = vmatprep.subr.bf16.mxu0 %v11165_v17 }
  0x4a   :  { %11168 = vmatpush3.bf16.msra.mxu0 %v11165_v17 }
  0xf7   :  { %v9371_v25 = vpop.f32.mrb[0].mxu1 }
  0xf8   :  { %v121_v26 = vpop.f32.mrb[1].mxu1 }
  0xf9   :  { %338 = vmatmul.mubr.f32.vlgmr.msra.gmra.mrb[16].mxu1 %v121_v26 }
  0xfa   :  { %343 = vmatprep.mubr.f32.mxu1 %v16272_v24 }
  0xfb   :  { %v9374_v27 = vpop.f32.mrb[2].mxu1 }
  0xfc   :  { %v131_v28 = vpop.f32.mrb[3].mxu1 }
  0xfd   :  { %344 = vmatmul.mubr.f32.gmra.mrb[18].mxu1 %v9371_v25  ;;  %v12945_v25 = vpack.c.bf16 %v609_v22, %v608_v21 }
  0xfe   :  { %349 = vmatprep.mubr.f32.mxu1 %v16272_v24 }
  0xff   :  { %v9377_v29 = vpop.f32.mrb[4].mxu1  ;;  %11170 = vmatprep.subr.bf16.mxu0 %v12945_v25 }
 0x100   :  { %v141_v30 = vpop.f32.mrb[5].mxu1 }
 0x101   :  { %350 = vmatmul.mubr.f32.gmra.mrb[20].mxu1 %v131_v28 }
 0x102   :  { %355 = vmatprep.mubr.f32.mxu1 %v16272_v24 }
 0x103   :  { %v9380_v31 = vpop.f32.mrb[6].mxu1 }
 0x104   :  { %v151_v32 = vpop.f32.mrb[7].mxu1 }
 0x105   :  { %356 = vmatmul.mubr.f32.gmra.mrb[22].mxu1 %v9374_v27 }
 0x106   :  { %361 = vmatprep.mubr.f32.mxu1 %v16272_v24 }
 0x107   :  { %v9383_v33 = vpop.f32.mrb[8].mxu1 }
 0x108   :  { %v161_v34 = vpop.f32.mrb[9].mxu1 }
 0x109   :  { %362 = vmatmul.mubr.f32.gmra.mrb[24].mxu1 %v141_v30 }
 0x10a   :  { %367 = vmatprep.mubr.f32.mxu1 %v16272_v24 }
 0x10b   :  { %v9386_v35 = vpop.f32.mrb[10].mxu1 }
 0x10c   :  { %v171_v36 = vpop.f32.mrb[11].mxu1 }
 0x10d   :  { %368 = vmatmul.mubr.f32.gmra.mrb[26].mxu1 %v9377_v29 }
 0x10e   :  { %373 = vmatprep.mubr.f32.mxu1 %v16272_v24 }
 0x10f   :  { %v9389_v37 = vpop.f32.mrb[12].mxu1 }
 0x110   :  { %v181_v38 = vpop.f32.mrb[13].mxu1 }
 0x111   :  { %374 = vmatmul.mubr.f32.gmra.mrb[28].mxu1 %v151_v32 }
 0x112   :  { %379 = vmatprep.mubr.f32.mxu1 %v16272_v24 }
 0x113   :  { %v9392_v39 = vpop.f32.mrb[14].mxu1 }
 0x114   :  { %v191_v40 = vpop.f32.mrb[15].mxu1 }
 0x115   :  { %380 = vmatmul.mubr.f32.gmra.mrb[30].mxu1 %v9380_v31 }
 0x116   :  { %385 = vmatprep.mubr.f32.mxu1 %v16272_v24 }
 0x119   :  { %386 = vmatmul.mubr.f32.gmra.mrb[32].mxu1 %v161_v34 }
 0x11a   :  { %391 = vmatprep.mubr.f32.mxu1 %v16272_v24 }
 0x11d   :  { %392 = vmatmul.mubr.f32.gmra.mrb[34].mxu1 %v9383_v33 }
 0x11e   :  { %397 = vmatprep.mubr.f32.mxu1 %v16272_v24 }
 0x121   :  { %398 = vmatmul.mubr.f32.gmra.mrb[36].mxu1 %v171_v36 }
 0x122   :  { %403 = vmatprep.mubr.f32.mxu1 %v16272_v24 }
 0x125   :  { %404 = vmatmul.mubr.f32.gmra.mrb[38].mxu1 %v9386_v35 }
 0x126   :  { %409 = vmatprep.mubr.f32.mxu1 %v16272_v24 }
 0x129   :  { %410 = vmatmul.mubr.f32.gmra.mrb[40].mxu1 %v181_v38 }
 0x12a   :  { %415 = vmatprep.mubr.f32.mxu1 %v16272_v24 }
 0x12d   :  { %416 = vmatmul.mubr.f32.gmra.mrb[42].mxu1 %v9389_v37 }
 0x12e   :  { %421 = vmatprep.mubr.f32.mxu1 %v16272_v24 }
 0x131   :  { %422 = vmatmul.mubr.f32.gmra.mrb[44].mxu1 %v191_v40 }
 0x132   :  { %427 = vmatprep.mubr.f32.mxu1 %v16272_v24 }
 0x135   :  { %428 = vmatmul.mubr.f32.gmra.mrb[46].mxu1 %v9392_v39 }
 0x1cc   :  { %v12868_v47 = vpop.f32.mrb[16].mxu1 }
 0x1cd   :  { %v12870_v48 = vpop.f32.mrb[17].mxu1 }
 0x1d0   :  { %v12878_v52 = vpop.f32.mrb[18].mxu1 }
 0x1d1   :  { %v434_v53 = vadd.f32 %v12878_v52, %v12868_v47  ;;  %v12882_v54 = vpop.f32.mrb[19].mxu1 }
 0x1d4   :  { %v12890_v58 = vpop.f32.mrb[20].mxu1 }
 0x1d5   :  { %v435_v59 = vadd.f32 %v434_v53, %v12890_v58  ;;  %v12893_v60 = vpop.f32.mrb[21].mxu1 }
 0x1d8   :  { %v12901_v0 = vpop.f32.mrb[22].mxu1 }
 0x1d9   :  { %v436_v1 = vadd.f32 %v435_v59, %v12901_v0  ;;  %v12904_v2 = vpop.f32.mrb[23].mxu1 }
 0x1dc   :  { %v12912_v6 = vpop.f32.mrb[24].mxu1 }
 0x1dd   :  { %v437_v7 = vadd.f32 %v436_v1, %v12912_v6  ;;  %v12915_v8 = vpop.f32.mrb[25].mxu1 }
 0x1e0   :  { %v12923_v12 = vpop.f32.mrb[26].mxu1 }
 0x1e1   :  { %v438_v13 = vadd.f32 %v437_v7, %v12923_v12  ;;  %v12926_v14 = vpop.f32.mrb[27].mxu1 }
 0x1e4   :  { %v12934_v18 = vpop.f32.mrb[28].mxu1 }
 0x1e5   :  { %v439_v19 = vadd.f32 %v438_v13, %v12934_v18  ;;  %v12937_v20 = vpop.f32.mrb[29].mxu1 }
 0x1e8   :  { %v12947_v26 = vpop.f32.mrb[30].mxu1 }
 0x1e9   :  { %v440_v27 = vadd.f32 %v439_v19, %v12947_v26  ;;  %v12950_v28 = vpop.f32.mrb[31].mxu1 }
 0x1ec   :  { %v12953_v29 = vpop.f32.mrb[32].mxu1 }
 0x1ed   :  { %v441_v30 = vadd.f32 %v440_v27, %v12953_v29  ;;  %v12956_v31 = vpop.f32.mrb[33].mxu1 }
 0x1ee   :  { %16283 = vst [vmem:[#allocation3_spill] sm:$0xff] %v12956_v31 }
 0x1f0   :  { %v12958_v32 = vpop.f32.mrb[34].mxu1 }
 0x1f1   :  { %v442_v33 = vadd.f32 %v441_v30, %v12958_v32  ;;  %v12961_v34 = vpop.f32.mrb[35].mxu1 }
 0x1f2   :  { %16284 = vst [vmem:[#allocation4_spill] sm:$0xff] %v12961_v34 }
 0x1f4   :  { %v12963_v35 = vpop.f32.mrb[36].mxu1 }
 0x1f5   :  { %v443_v36 = vadd.f32 %v442_v33, %v12963_v35  ;;  %v12966_v37 = vpop.f32.mrb[37].mxu1 }
 0x1f6   :  { %16285 = vst [vmem:[#allocation5_spill] sm:$0xff] %v12966_v37 }
 0x1f8   :  { %v12968_v38 = vpop.f32.mrb[38].mxu1 }
 0x1f9   :  { %v444_v39 = vadd.f32 %v443_v36, %v12968_v38  ;;  %v12971_v40 = vpop.f32.mrb[39].mxu1 }
 0x1fa   :  { %16286 = vst [vmem:[#allocation6_spill] sm:$0xff] %v12971_v40 }
 0x1fc   :  { %v12973_v41 = vpop.f32.mrb[40].mxu1 }
 0x1fd   :  { %v445_v42 = vadd.f32 %v444_v39, %v12973_v41  ;;  %v12976_v43 = vpop.f32.mrb[41].mxu1 }
 0x1fe   :  { %16287 = vst [vmem:[#allocation7_spill] sm:$0xff] %v12976_v43 }
 0x200   :  { %v12978_v44 = vpop.f32.mrb[42].mxu1 }
 0x201   :  { %v446_v45 = vadd.f32 %v445_v42, %v12978_v44  ;;  %v12981_v46 = vpop.f32.mrb[43].mxu1 }
 0x202   :  { %16288 = vst [vmem:[#allocation8_spill] sm:$0xff] %v12981_v46 }
 0x204   :  { %v12983_v49 = vpop.f32.mrb[44].mxu1 }
 0x205   :  { %v447_v50 = vadd.f32 %v446_v45, %v12983_v49  ;;  %v12986_v51 = vpop.f32.mrb[45].mxu1 }
 0x208   :  { %v12988_v53 = vpop.f32.mrb[46].mxu1 }
 0x209   :  { %v448_v55 = vadd.f32 %v447_v50, %v12988_v53  ;;  %v12991_v56 = vpop.f32.mrb[47].mxu1 }
 0x20a   :  { %16289 = vst [vmem:[#allocation9_spill] sm:$0xff] %v12991_v56 }
 0x20b   :  { %v449_v57 = vrot.slane %v448_v55, 4 }
 0x20d   :  { %v450_v59 = vadd.f32 %v449_v57, %v448_v55 }
 0x20f   :  { %v451_v61 = vrot.slane %v450_v59, 2 }
 0x211   :  { %v452_v62 = vadd.f32 %v451_v61, %v450_v59 }
 0x213   :  { %v453_v63 = vrot.slane %v452_v62, 1 }
 0x215   :  { %v454_v1 = vadd.f32 %v453_v63, %v452_v62 }
 0x217   :  { %v12993_v3 = vmul.f32 0.0078125, %v454_v1 }
 0x219   :  { %v457_v4 = vsub.f32 %v12868_v47, %v12993_v3  ;;  %v458_v5 = vsub.f32 %v12878_v52, %v12993_v3  ;;  %v459_v7 = vsub.f32 %v12890_v58, %v12993_v3  ;;  %v460_v9 = vsub.f32 %v12901_v0, %v12993_v3 }
 0x21a   :  { %v461_v10 = vsub.f32 %v12912_v6, %v12993_v3  ;;  %v462_v11 = vsub.f32 %v12923_v12, %v12993_v3  ;;  %v463_v13 = vsub.f32 %v12934_v18, %v12993_v3  ;;  %v464_v15 = vsub.f32 %v12947_v26, %v12993_v3 }
 0x21b   :  { %v465_v16 = vsub.f32 %v12953_v29, %v12993_v3  ;;  %v466_v17 = vsub.f32 %v12958_v32, %v12993_v3  ;;  %v467_v19 = vsub.f32 %v12963_v35, %v12993_v3  ;;  %v468_v21 = vsub.f32 %v12968_v38, %v12993_v3 }
 0x21c   :  { %v469_v22 = vsub.f32 %v12973_v41, %v12993_v3  ;;  %v470_v23 = vsub.f32 %v12978_v44, %v12993_v3  ;;  %v471_v27 = vsub.f32 %v12983_v49, %v12993_v3  ;;  %v472_v30 = vsub.f32 %v12988_v53, %v12993_v3 }
 0x21d   :  { %v473_v33 = vmul.f32 %v457_v4, %v457_v4  ;;  %v474_v36 = vmul.f32 %v458_v5, %v458_v5  ;;  %v475_v39 = vmul.f32 %v459_v7, %v459_v7  ;;  %v476_v45 = vmul.f32 %v460_v9, %v460_v9 }
 0x21e   :  { %v477_v55 = vmul.f32 %v461_v10, %v461_v10  ;;  %v478_v59 = vmul.f32 %v462_v11, %v462_v11  ;;  %v479_v62 = vmul.f32 %v463_v13, %v463_v13  ;;  %v480_v1 = vmul.f32 %v464_v15, %v464_v15 }
 0x21f   :  { %v489_v42 = vadd.f32 %v474_v36, %v473_v33  ;;  %v481_v56 = vmul.f32 %v465_v16, %v465_v16  ;;  %v482_v43 = vmul.f32 %v466_v17, %v466_v17  ;;  %v483_v37 = vmul.f32 %v467_v19, %v467_v19 }
 0x220   :  { %v484_v4 = vmul.f32 %v468_v21, %v468_v21  ;;  %v485_v7 = vmul.f32 %v469_v22, %v469_v22  ;;  %v486_v9 = vmul.f32 %v470_v23, %v470_v23  ;;  %v487_v10 = vmul.f32 %v471_v27, %v471_v27 }
 0x221   :  { %v490_v50 = vadd.f32 %v489_v42, %v475_v39  ;;  %v488_v11 = vmul.f32 %v472_v30, %v472_v30 }
 0x223   :  { %v491_v57 = vadd.f32 %v490_v50, %v476_v45 }
 0x225   :  { %v492_v61 = vadd.f32 %v491_v57, %v477_v55 }
 0x227   :  { %v493_v63 = vadd.f32 %v492_v61, %v478_v59  ;;  %v610_v61 = vld [vmem:[%s16268_s3 + $0x10] sm:$0xff] }
 0x229   :  { %v494_v24 = vadd.f32 %v493_v63, %v479_v62 }
 0x22b   :  { %v495_v46 = vadd.f32 %v494_v24, %v480_v1 }
 0x22d   :  { %v496_v40 = vadd.f32 %v495_v46, %v481_v56 }
 0x22f   :  { %v497_v34 = vadd.f32 %v496_v40, %v482_v43  ;;  %v519_v40 = vlaneseq }
 0x231   :  { %v498_v5 = vadd.f32 %v497_v34, %v483_v37  ;;  %v13027_v34 = vshrl.u32 %v519_v40, 7  ;;  %v240_v37 = vld [vmem:[%s16269_s5] sm:$0xff] }
 0x233   :  { %v499_v33 = vadd.f32 %v498_v5, %v484_v4  ;;  %v13033_v43 = vsub.s32 0, %v13027_v34  ;;  %v13038_v27 = vsub.s32 1, %v13027_v34 }
 0x235   :  { %v500_v36 = vadd.f32 %v499_v33, %v485_v7  ;;  %16290 = vst [vmem:[#allocation10_spill] sm:$0xff] %v13033_v43  ;;  %16291 = vst [vmem:[#allocation11_spill] sm:$0xff] %v13038_v27 }
 0x237   :  { %v501_v39 = vadd.f32 %v500_v36, %v486_v9 }
 0x239   :  { %v502_v42 = vadd.f32 %v501_v39, %v487_v10 }
 0x23b   :  { %v503_v13 = vadd.f32 %v502_v42, %v488_v11 }
 0x23d   :  { %v504_v45 = vrot.slane %v503_v13, 4 }
 0x23f   :  { %v505_v15 = vadd.f32 %v504_v45, %v503_v13 }
 0x241   :  { %v506_v50 = vrot.slane %v505_v15, 2 }
 0x243   :  { %v507_v16 = vadd.f32 %v506_v50, %v505_v15 }
 0x245   :  { %v508_v24 = vrot.slane %v507_v16, 1 }
 0x247   :  { %v509_v17 = vadd.f32 %v508_v24, %v507_v16 }
 0x249   :  { %v510_v46 = vmul.f32 0.0078125, %v509_v17 }
 0x24b   :  { %v511_v56 = vadd.f32 1e-05, %v510_v46 }
 0x24d   :  { %12546 = vrsqrt.f32 %v511_v56 }
 0x257   :  { %v12547_v19 = vpop.eup %12546 }
 0x258   :  { %v513_v21 = vmul.f32 %v12547_v19, %v240_v37 }
 0x25a   :  { %v514_v22 = vmul.f32 %v513_v21, %v12993_v3  ;;  %v522_v23 = vrot.slane %v513_v21, %v13033_v43 }
 0x25c   :  { %v516_v30 = vrot.slane %v514_v22, 7  ;;  %v538_v55 = vmul.f32 %v522_v23, %v12988_v53  ;;  %v523_v57 = vmul.f32 %v522_v23, %v12868_v47  ;;  %v524_v59 = vmul.f32 %v522_v23, %v12878_v52  ;;  %v611_v53 = vld [vmem:[%s16268_s3 + $0x18] sm:$0xff]  ;;  %v612_v47 = vld [vmem:[%s16268_s3 + $0x20] sm:$0xff]  ;;  %v613_v52 = vld [vmem:[%s16268_s3 + $0x28] sm:$0xff] }
 0x25d   :  { %v525_v62 = vmul.f32 %v522_v23, %v12890_v58  ;;  %v526_v3 = vmul.f32 %v522_v23, %v12901_v0  ;;  %v527_v63 = vmul.f32 %v522_v23, %v12912_v6  ;;  %v528_v1 = vmul.f32 %v522_v23, %v12923_v12 }
 0x25e   :  { %v518_v4 = vsub.f32 %v240_v37, %v516_v30  ;;  %v529_v58 = vmul.f32 %v522_v23, %v12934_v18  ;;  %v531_v0 = vmul.f32 %v522_v23, %v12953_v29  ;;  %v532_v6 = vmul.f32 %v522_v23, %v12958_v32 }
 0x25f   :  { %v533_v12 = vmul.f32 %v522_v23, %v12963_v35  ;;  %v534_v5 = vmul.f32 %v522_v23, %v12968_v38  ;;  %v535_v7 = vmul.f32 %v522_v23, %v12973_v41  ;;  %v536_v33 = vmul.f32 %v522_v23, %v12978_v44 }
 0x260   :  { %v542_v9 = vrot.slane %v518_v4, %v13038_v27  ;;  %v537_v36 = vmul.f32 %v522_v23, %v12983_v49  ;;  %v530_v10 = vmul.f32 %v522_v23, %v12947_v26  ;;  %v11173_v39 = vpack.c.bf16 %v611_v53, %v610_v61  ;;  %v616_v4 = vld [vmem:[%s16268_s3 + $0x40] sm:$0xff]  ;;  %v617_v53 = vld [vmem:[%s16268_s3 + $0x48] sm:$0xff] }
 0x261   :  { %v11177_v18 = vpack.c.bf16 %v613_v52, %v612_v47  ;;  %v632_v47 = vld [vmem:[#allocation2 + $0xa1] sm:$0xff]  ;;  %v11185_v52 = vpack.c.bf16 %v617_v53, %v616_v4 }
 0x262   :  { %v13069_v11 = vadd.f32 %v542_v9, %v538_v55  ;;  %v543_v29 = vadd.f32 %v542_v9, %v523_v57  ;;  %v544_v32 = vadd.f32 %v542_v9, %v524_v59  ;;  %v545_v42 = vadd.f32 %v542_v9, %v525_v62  ;;  %v614_v55 = vld [vmem:[%s16268_s3 + $0x30] sm:$0xff]  ;;  %v615_v57 = vld [vmem:[%s16268_s3 + $0x38] sm:$0xff] }
 0x263   :  { %v546_v35 = vadd.f32 %v542_v9, %v526_v3  ;;  %v547_v13 = vadd.f32 %v542_v9, %v527_v63  ;;  %v548_v38 = vadd.f32 %v542_v9, %v528_v1  ;;  %v549_v45 = vadd.f32 %v542_v9, %v529_v58  ;;  %v618_v58 = vld [vmem:[%s16268_s3 + $0x50] sm:$0xff] }
 0x264   :  { %v16274_v41 = vmax.f32 %v13069_v11, 0.0  ;;  %v13072_v44 = vmax.f32 %v543_v29, 0.0  ;;  %v13074_v15 = vmax.f32 %v544_v32, 0.0  ;;  %v13076_v49 = vmax.f32 %v545_v42, 0.0  ;;  %v7849_v29 = vld [vmem:[%s16268_s3 + $0x110] sm:$0xff]  ;;  %v7850_v32 = vld [vmem:[%s16268_s3 + $0x118] sm:$0xff] }
 0x265   :  { %v13078_v26 = vmax.f32 %v546_v35, 0.0  ;;  %v13080_v50 = vmax.f32 %v547_v13, 0.0  ;;  %v13082_v16 = vmax.f32 %v548_v38, 0.0  ;;  %v13084_v24 = vmax.f32 %v549_v45, 0.0  ;;  %v7851_v38 = vld [vmem:[%s16268_s3 + $0x120] sm:$0xff]  ;;  %v7852_v45 = vld [vmem:[%s16268_s3 + $0x128] sm:$0xff] }
 0x266   :  { %591 = vst [vmem:[#allocation2 + $0x121] sm:$0xff] %v16274_v41  ;;  %576 = vst [vmem:[#allocation2 + $0x11] sm:$0xff] %v13072_v44  ;;  %9426 = vmatmul.mubr.f32.vlgmr.msra.gmra.mrb[0].mxu0 %v13072_v44  ;;  %v551_v17 = vadd.f32 %v542_v9, %v531_v0  ;;  %v552_v46 = vadd.f32 %v542_v9, %v532_v6  ;;  %v553_v56 = vadd.f32 %v542_v9, %v533_v12  ;;  %v619_v0 = vld [vmem:[%s16268_s3 + $0x58] sm:$0xff]  ;;  %v620_v12 = vld [vmem:[%s16268_s3 + $0x60] sm:$0xff]  ;;  %v16292_v42 = vmov 0.0  }
 0x267   :  { %577 = vst [vmem:[#allocation2 + $0x21] sm:$0xff] %v13074_v15  ;;  %578 = vst [vmem:[#allocation2 + $0x31] sm:$0xff] %v13076_v49  ;;  %v554_v40 = vadd.f32 %v542_v9, %v534_v5  ;;  %11172 = vmatpush3.bf16.msra.mxu0 %v12945_v25  ;;  %9428 = vmatprep.mubr.f32.mxu0 %v13074_v15  ;;  %v555_v37 = vadd.f32 %v542_v9, %v535_v7  ;;  %v621_v5 = vld [vmem:[%s16268_s3 + $0x68] sm:$0xff]  ;;  %v7882_v41 = vld [vmem:[%s16268_s3 + $0x218] sm:$0xff] }
 0x268   :  { %579 = vst [vmem:[#allocation2 + $0x41] sm:$0xff] %v13078_v26  ;;  %580 = vst [vmem:[#allocation2 + $0x51] sm:$0xff] %v13080_v50  ;;  %v556_v19 = vadd.f32 %v542_v9, %v536_v33  ;;  %v557_v21 = vadd.f32 %v542_v9, %v537_v36  ;;  %11174 = vmatprep.subr.bf16.mxu0 %v11173_v39  ;;  %v13098_v22 = vmax.f32 %v551_v17, 0.0  ;;  %v13100_v23 = vmax.f32 %v552_v46, 0.0  ;;  %v622_v33 = vld [vmem:[%s16268_s3 + $0x70] sm:$0xff] }
 0x269   :  { %581 = vst [vmem:[#allocation2 + $0x61] sm:$0xff] %v13082_v16  ;;  %582 = vst [vmem:[#allocation2 + $0x71] sm:$0xff] %v13084_v24  ;;  %v13102_v30 = vmax.f32 %v553_v56, 0.0  ;;  %v13104_v25 = vmax.f32 %v554_v40, 0.0  ;;  %v13112_v59 = vmax.f32 %v555_v37, 0.0  ;;  %v550_v3 = vadd.f32 %v542_v9, %v530_v10  ;;  %v623_v9 = vld [vmem:[%s16268_s3 + $0x78] sm:$0xff] }
 0x26a   :  { %v13114_v61 = vmax.f32 %v556_v19, 0.0  ;;  %v13116_v62 = vmax.f32 %v557_v21, 0.0  ;;  %9429 = vmatmul.mubr.f32.gmra.mrb[2].mxu0 %v13076_v49  ;;  %584 = vst [vmem:[#allocation2 + $0xb1] sm:$0xff] %v13098_v22  ;;  %585 = vst [vmem:[#allocation2 + $0xc1] sm:$0xff] %v13100_v23  ;;  %v11181_v1 = vpack.c.bf16 %v615_v57, %v614_v55  ;;  %v11189_v6 = vpack.c.bf16 %v619_v0, %v618_v58  ;;  %v7847_v10 = vld [vmem:[%s16268_s3 + $0x100] sm:$0xff]  ;;  %v7853_v40 = vld [vmem:[%s16268_s3 + $0x130] sm:$0xff] }
 0x26b   :  { %586 = vst [vmem:[#allocation2 + $0xd1] sm:$0xff] %v13102_v30  ;;  %587 = vst [vmem:[#allocation2 + $0xe1] sm:$0xff] %v13104_v25  ;;  %11176 = vmatpush3.bf16.msra.mxu0 %v11173_v39  ;;  %9431 = vmatprep.mubr.f32.mxu0 %v13078_v26  ;;  %v13127_v63 = vmax.f32 %v550_v3, 0.0  ;;  %v11193_v7 = vpack.c.bf16 %v621_v5, %v620_v12  ;;  %v11197_v36 = vpack.c.bf16 %v623_v9, %v622_v33  ;;  %v7848_v39 = vld [vmem:[%s16268_s3 + $0x108] sm:$0xff]  ;;  %v7854_v37 = vld [vmem:[%s16268_s3 + $0x138] sm:$0xff] }
 0x26c   :  { %588 = vst [vmem:[#allocation2 + $0xf1] sm:$0xff] %v13112_v59  ;;  %589 = vst [vmem:[#allocation2 + $0x101] sm:$0xff] %v13114_v61  ;;  %11178 = vmatprep.subr.bf16.mxu0 %v11177_v18  ;;  %v11205_v35 = vpack.c.bf16 %v7850_v32, %v7849_v29  ;;  %v11209_v46 = vpack.c.bf16 %v7852_v45, %v7851_v38  ;;  %v11213_v21 = vpack.c.bf16 %v7854_v37, %v7853_v40  ;;  %v7855_v57 = vld [vmem:[%s16268_s3 + $0x140] sm:$0xff]  ;;  %v7856_v3 = vld [vmem:[%s16268_s3 + $0x148] sm:$0xff] }
 0x26d   :  { %590 = vst [vmem:[#allocation2 + $0x111] sm:$0xff] %v13116_v62  ;;  %583 = vst [vmem:[#allocation2 + $0x81] sm:$0xff] %v13127_v63  ;;  %v13177_v13 = vld [vmem:[#allocation2 + $0x10] sm:$0xff]  ;;  %v11217_v4 = vpack.c.bf16 %v7856_v3, %v7855_v57  ;;  %v7860_v12 = vld [vmem:[%s16268_s3 + $0x168] sm:$0xff] }
 0x26e   :  { %9432 = vmatmul.mubr.f32.gmra.mrb[4].mxu0 %v13080_v50  ;;  %v13186_v17 = vld [vmem:[#allocation2 + $0x20] sm:$0xff]  ;;  %v13189_v56 = vld [vmem:[#allocation2 + $0x30] sm:$0xff]  ;;  %v7864_v32 = vld [vmem:[%s16268_s3 + $0x188] sm:$0xff] }
 0x26f   :  { %11180 = vmatpush3.bf16.msra.mxu0 %v11177_v18  ;;  %9434 = vmatprep.mubr.f32.mxu0 %v13082_v16  ;;  %v11201_v18 = vpack.c.bf16 %v7848_v39, %v7847_v10  ;;  %v13198_v19 = vld [vmem:[#allocation2 + $0x40] sm:$0xff]  ;;  %v13201_v55 = vld [vmem:[#allocation2 + $0x50] sm:$0xff]  ;;  %v7866_v40 = vld [vmem:[%s16268_s3 + $0x198] sm:$0xff] }
 0x270   :  { %11182 = vmatprep.subr.bf16.mxu0 %v11181_v1  ;;  %v13213_v53 = vld [vmem:[#allocation2 + $0x70] sm:$0xff]  ;;  %v7863_v29 = vld [vmem:[%s16268_s3 + $0x180] sm:$0xff]  ;;  %v7868_v3 = vld [vmem:[%s16268_s3 + $0x1a8] sm:$0xff] }
 0x271   :  { %v13223_v0 = vld [vmem:[#allocation2 + $0xb0] sm:$0xff]  ;;  %v13232_v5 = vld [vmem:[#allocation2 + $0xc0] sm:$0xff]  ;;  %v11233_v38 = vpack.c.bf16 %v7864_v32, %v7863_v29 }
 0x272   :  { %9435 = vmatmul.mubr.f32.gmra.mrb[6].mxu0 %v13084_v24  ;;  %v13235_v33 = vld [vmem:[#allocation2 + $0xd0] sm:$0xff]  ;;  %v13244_v10 = vld [vmem:[#allocation2 + $0xe0] sm:$0xff] }
 0x273   :  { %11184 = vmatpush3.bf16.msra.mxu0 %v11181_v1  ;;  %9437 = vmatprep.mubr.f32.mxu0 %v632_v47  ;;  %v13210_v1 = vld [vmem:[#allocation2 + $0x60] sm:$0xff]  ;;  %v7857_v47 = vld [vmem:[%s16268_s3 + $0x150] sm:$0xff] }
 0x274   :  { %11186 = vmatprep.subr.bf16.mxu0 %v11185_v52  ;;  %v7861_v9 = vld [vmem:[%s16268_s3 + $0x170] sm:$0xff]  ;;  %v7867_v57 = vld [vmem:[%s16268_s3 + $0x1a0] sm:$0xff] }
 0x275   :  { %v13259_v45 = vld [vmem:[#allocation2 + $0x110] sm:$0xff]  ;;  %v13301_v29 = vld [vmem:[#allocation2 + $0x62] sm:$0xff] }
 0x276   :  { %9438 = vmatmul.mubr.f32.gmra.mrb[8].mxu0 %v13098_v22  ;;  %v955_v32 = vld [vmem:[#allocation2 + $0xa2] sm:$0xff] }
 0x277   :  { %11188 = vmatpush3.bf16.msra.mxu0 %v11185_v52  ;;  %9440 = vmatprep.mubr.f32.mxu0 %v13100_v23  ;;  %v7858_v52 = vld [vmem:[%s16268_s3 + $0x158] sm:$0xff] }
 0x278   :  { %11190 = vmatprep.subr.bf16.mxu0 %v11189_v6  ;;  %v11221_v58 = vpack.c.bf16 %v7858_v52, %v7857_v47  ;;  %v11241_v47 = vpack.c.bf16 %v7868_v3, %v7867_v57  ;;  %v13280_v52 = vld [vmem:[#allocation2 + $0x32] sm:$0xff]  ;;  %v7875_v3 = vld [vmem:[%s16268_s3 + $0x1e0] sm:$0xff] }
 0x279   :  { %v13313_v57 = vld [vmem:[#allocation2 + $0xb2] sm:$0xff] }
 0x27a   :  { %9441 = vmatmul.mubr.f32.gmra.mrb[10].mxu0 %v13102_v30 }
 0x27b   :  { %11192 = vmatpush3.bf16.msra.mxu0 %v11189_v6  ;;  %9443 = vmatprep.mubr.f32.mxu0 %v13104_v25  ;;  %v7859_v6 = vld [vmem:[%s16268_s3 + $0x160] sm:$0xff] }
 0x27c   :  { %11194 = vmatprep.subr.bf16.mxu0 %v11193_v7 }
 0x27e   :  { %9444 = vmatmul.mubr.f32.gmra.mrb[12].mxu0 %v13112_v59 }
 0x27f   :  { %11196 = vmatpush3.bf16.msra.mxu0 %v11193_v7  ;;  %9446 = vmatprep.mubr.f32.mxu0 %v13114_v61  ;;  %v11225_v7 = vpack.c.bf16 %v7860_v12, %v7859_v6  ;;  %v7870_v6 = vld [vmem:[%s16268_s3 + $0x1b8] sm:$0xff]  ;;  %v13289_v12 = vld [vmem:[#allocation2 + $0x42] sm:$0xff] }
 0x280   :  { %11198 = vmatprep.subr.bf16.mxu0 %v11197_v36 }
 0x282   :  { %9447 = vmatmul.mubr.f32.gmra.mrb[14].mxu0 %v13116_v62 }
 0x283   :  { %11200 = vmatpush3.bf16.msra.mxu0 %v11197_v36  ;;  %9481 = vmatprep.mubr.f32.mxu0 %v16292_v42  ;;  %v7862_v36 = vld [vmem:[%s16268_s3 + $0x178] sm:$0xff] }
 0x284   :  { %11202 = vmatprep.subr.bf16.mxu0 %v11201_v18  ;;  %v11229_v39 = vpack.c.bf16 %v7862_v36, %v7861_v9  ;;  %v13292_v9 = vld [vmem:[#allocation2 + $0x52] sm:$0xff]  ;;  %v7871_v36 = vld [vmem:[%s16268_s3 + $0x1c0] sm:$0xff] }
 0x286   :  { %9482 = vmatmul.mubr.f32.vlgmr.msra.gmra.mrb[0].mxu0 %v13177_v13 }
 0x287   :  { %11204 = vmatpush3.bf16.msra.mxu0 %v11201_v18  ;;  %9484 = vmatprep.mubr.f32.mxu0 %v13186_v17  ;;  %v13247_v18 = vld [vmem:[#allocation2 + $0xf0] sm:$0xff] }
 0x288   :  { %11206 = vmatprep.subr.bf16.mxu0 %v11205_v35 }
 0x28a   :  { %9485 = vmatmul.mubr.f32.gmra.mrb[2].mxu0 %v13189_v56 }
 0x28b   :  { %11208 = vmatpush3.bf16.msra.mxu0 %v11205_v35  ;;  %9487 = vmatprep.mubr.f32.mxu0 %v13198_v19  ;;  %v947_v35 = vld [vmem:[#allocation2 + $0x2] sm:$0xff] }
 0x28c   :  { %11210 = vmatprep.subr.bf16.mxu0 %v11209_v46 }
 0x28e   :  { %9488 = vmatmul.mubr.f32.gmra.mrb[4].mxu0 %v13201_v55 }
 0x28f   :  { %11212 = vmatpush3.bf16.msra.mxu0 %v11209_v46  ;;  %9490 = vmatprep.mubr.f32.mxu0 %v13210_v1  ;;  %v7865_v46 = vld [vmem:[%s16268_s3 + $0x190] sm:$0xff] }
 0x290   :  { %11214 = vmatprep.subr.bf16.mxu0 %v11213_v21  ;;  %v11237_v37 = vpack.c.bf16 %v7866_v40, %v7865_v46  ;;  %v7873_v46 = vld [vmem:[%s16268_s3 + $0x1d0] sm:$0xff]  ;;  %v7874_v40 = vld [vmem:[%s16268_s3 + $0x1d8] sm:$0xff] }
 0x292   :  { %9491 = vmatmul.mubr.f32.gmra.mrb[6].mxu0 %v13213_v53 }
 0x293   :  { %11216 = vmatpush3.bf16.msra.mxu0 %v11213_v21  ;;  %9493 = vmatprep.mubr.f32.mxu0 %v16292_v42  ;;  %v13256_v42 = vld [vmem:[#allocation2 + $0x100] sm:$0xff]  ;;  %v13268_v21 = vld [vmem:[#allocation2 + $0x12] sm:$0xff] }
 0x294   :  { %11218 = vmatprep.subr.bf16.mxu0 %v11217_v4 }
 0x296   :  { %9494 = vmatmul.mubr.f32.gmra.mrb[8].mxu0 %v13223_v0 }
 0x297   :  { %11220 = vmatpush3.bf16.msra.mxu0 %v11217_v4  ;;  %9496 = vmatprep.mubr.f32.mxu0 %v13232_v5  ;;  %v13277_v4 = vld [vmem:[#allocation2 + $0x22] sm:$0xff] }
 0x298   :  { %11222 = vmatprep.subr.bf16.mxu0 %v11221_v58 }
 0x29a   :  { %9497 = vmatmul.mubr.f32.gmra.mrb[10].mxu0 %v13235_v33 }
 0x29b   :  { %11224 = vmatpush3.bf16.msra.mxu0 %v11221_v58  ;;  %9499 = vmatprep.mubr.f32.mxu0 %v13244_v10  ;;  %v7869_v58 = vld [vmem:[%s16268_s3 + $0x1b0] sm:$0xff] }
 0x29c   :  { %11226 = vmatprep.subr.bf16.mxu0 %v11225_v7 }
 0x29e   :  { %9500 = vmatmul.mubr.f32.gmra.mrb[12].mxu0 %v13247_v18 }
 0x29f   :  { %11228 = vmatpush3.bf16.msra.mxu0 %v11225_v7  ;;  %9502 = vmatprep.mubr.f32.mxu0 %v13256_v42  ;;  %v11245_v7 = vpack.c.bf16 %v7870_v6, %v7869_v58  ;;  %v13322_v58 = vld [vmem:[#allocation2 + $0xc2] sm:$0xff] }
 0x2a0   :  { %11230 = vmatprep.subr.bf16.mxu0 %v11229_v39 }
 0x2a2   :  { %9503 = vmatmul.mubr.f32.gmra.mrb[14].mxu0 %v13259_v45 }
 0x2a3   :  { %11232 = vmatpush3.bf16.msra.mxu0 %v11229_v39  ;;  %9537 = vmatprep.mubr.f32.mxu0 %v947_v35  ;;  %v7872_v39 = vld [vmem:[%s16268_s3 + $0x1c8] sm:$0xff] }
 0x2a4   :  { %11234 = vmatprep.subr.bf16.mxu0 %v11233_v38  ;;  %v11249_v35 = vpack.c.bf16 %v7872_v39, %v7871_v36  ;;  %v7877_v36 = vld [vmem:[%s16268_s3 + $0x1f0] sm:$0xff]  ;;  %v7878_v39 = vld [vmem:[%s16268_s3 + $0x1f8] sm:$0xff] }
 0x2a6   :  { %9538 = vmatmul.mubr.f32.vlgmr.msra.gmra.mrb[0].mxu0 %v13268_v21 }
 0x2a7   :  { %11236 = vmatpush3.bf16.msra.mxu0 %v11233_v38  ;;  %9540 = vmatprep.mubr.f32.mxu0 %v13277_v4  ;;  %v13304_v38 = vld [vmem:[#allocation2 + $0x72] sm:$0xff] }
 0x2a8   :  { %11238 = vmatprep.subr.bf16.mxu0 %v11237_v37 }
 0x2aa   :  { %9541 = vmatmul.mubr.f32.gmra.mrb[2].mxu0 %v13280_v52 }
 0x2ab   :  { %11240 = vmatpush3.bf16.msra.mxu0 %v11237_v37  ;;  %9543 = vmatprep.mubr.f32.mxu0 %v13289_v12  ;;  %v11253_v37 = vpack.c.bf16 %v7874_v40, %v7873_v46  ;;  %v13337_v46 = vld [vmem:[#allocation2 + $0xf2] sm:$0xff]  ;;  %v7879_v40 = vld [vmem:[%s16268_s3 + $0x200] sm:$0xff] }
 0x2ac   :  { %11242 = vmatprep.subr.bf16.mxu0 %v11241_v47 }
 0x2ae   :  { %9544 = vmatmul.mubr.f32.gmra.mrb[4].mxu0 %v13292_v9 }
 0x2af   :  { %11244 = vmatpush3.bf16.msra.mxu0 %v11241_v47  ;;  %9546 = vmatprep.mubr.f32.mxu0 %v13301_v29  ;;  %v7876_v47 = vld [vmem:[%s16268_s3 + $0x1e8] sm:$0xff] }
 0x2b0   :  { %11246 = vmatprep.subr.bf16.mxu0 %v11245_v7  ;;  %v11257_v6 = vpack.c.bf16 %v7876_v47, %v7875_v3  ;;  %v7880_v3 = vld [vmem:[%s16268_s3 + $0x208] sm:$0xff] }
 0x2b1   :  { %v13346_v47 = vld [vmem:[#allocation2 + $0x102] sm:$0xff] }
 0x2b2   :  { %9547 = vmatmul.mubr.f32.gmra.mrb[6].mxu0 %v13304_v38 }
 0x2b3   :  { %11248 = vmatpush3.bf16.msra.mxu0 %v11245_v7  ;;  %9549 = vmatprep.mubr.f32.mxu0 %v955_v32  ;;  %v13325_v7 = vld [vmem:[#allocation2 + $0xd2] sm:$0xff]  ;;  %v13334_v32 = vld [vmem:[#allocation2 + $0xe2] sm:$0xff] }
 0x2b4   :  { %11250 = vmatprep.subr.bf16.mxu0 %v11249_v35 }
 0x2b6   :  { %9550 = vmatmul.mubr.f32.gmra.mrb[8].mxu0 %v13313_v57 }
 0x2b7   :  { %11252 = vmatpush3.bf16.msra.mxu0 %v11249_v35  ;;  %9552 = vmatprep.mubr.f32.mxu0 %v13322_v58  ;;  %v11261_v35 = vpack.c.bf16 %v7878_v39, %v7877_v36  ;;  %v13349_v36 = vld [vmem:[#allocation2 + $0x112] sm:$0xff] }
 0x2b8   :  { %11254 = vmatprep.subr.bf16.mxu0 %v11253_v37  ;;  %v7881_v39 = vld [vmem:[%s16268_s3 + $0x210] sm:$0xff] }
 0x2ba   :  { %9553 = vmatmul.mubr.f32.gmra.mrb[10].mxu0 %v13325_v7 }
 0x2bb   :  { %11256 = vmatpush3.bf16.msra.mxu0 %v11253_v37  ;;  %9555 = vmatprep.mubr.f32.mxu0 %v13334_v32  ;;  %v11265_v37 = vpack.c.bf16 %v7880_v3, %v7879_v40  ;;  %v7883_v40 = vld [vmem:[%s16268_s3 + $0x220] sm:$0xff]  ;;  %v7884_v3 = vld [vmem:[%s16268_s3 + $0x228] sm:$0xff] }
 0x2bc   :  { %11258 = vmatprep.subr.bf16.mxu0 %v11257_v6  ;;  %v11273_v27 = vpack.c.bf16 %v7884_v3, %v7883_v40  ;;  %v7889_v3 = vld [vmem:[%s16268_s3 + $0x250] sm:$0xff] }
 0x2be   :  { %9556 = vmatmul.mubr.f32.gmra.mrb[12].mxu0 %v13337_v46 }
 0x2bf   :  { %11260 = vmatpush3.bf16.msra.mxu0 %v11257_v6  ;;  %9558 = vmatprep.mubr.f32.mxu0 %v13346_v47  ;;  %v11269_v6 = vpack.c.bf16 %v7882_v41, %v7881_v39  ;;  %v7886_v41 = vld [vmem:[%s16268_s3 + $0x238] sm:$0xff]  ;;  %v7888_v39 = vld [vmem:[%s16268_s3 + $0x248] sm:$0xff] }
 0x2c0   :  { %11262 = vmatprep.subr.bf16.mxu0 %v11261_v35 }
 0x2c2   :  { %9559 = vmatmul.mubr.f32.gmra.mrb[14].mxu0 %v13349_v36 }
 0x2c3   :  { %11264 = vmatpush3.bf16.msra.mxu0 %v11261_v35  ;;  %9593 = vmatprep.mubr.f32.mxu0 %v13177_v13  ;;  %v7885_v13 = vld [vmem:[%s16268_s3 + $0x230] sm:$0xff] }
 0x2c4   :  { %11266 = vmatprep.subr.bf16.mxu0 %v11265_v37  ;;  %v11277_v35 = vpack.c.bf16 %v7886_v41, %v7885_v13  ;;  %v7890_v13 = vld [vmem:[%s16268_s3 + $0x258] sm:$0xff]  ;;  %v7891_v41 = vld [vmem:[%s16268_s3 + $0x260] sm:$0xff] }
 0x2c6   :  { %9594 = vmatmul.mubr.f32.vlgmr.msra.gmra.mrb[0].mxu0 %v13186_v17 }
 0x2c7   :  { %11268 = vmatpush3.bf16.msra.mxu0 %v11265_v37  ;;  %9596 = vmatprep.mubr.f32.mxu0 %v13189_v56  ;;  %v7887_v37 = vld [vmem:[%s16268_s3 + $0x240] sm:$0xff] }
 0x2c8   :  { %11270 = vmatprep.subr.bf16.mxu0 %v11269_v6  ;;  %v11281_v40 = vpack.c.bf16 %v7888_v39, %v7887_v37  ;;  %v7892_v37 = vld [vmem:[%s16268_s3 + $0x268] sm:$0xff] }
 0x2c9   :  { %v11289_v39 = vpack.c.bf16 %v7892_v37, %v7891_v41  ;;  %v7897_v37 = vld [vmem:[%s16268_s3 + $0x290] sm:$0xff] }
 0x2ca   :  { %9597 = vmatmul.mubr.f32.gmra.mrb[2].mxu0 %v13198_v19 }
 0x2cb   :  { %11272 = vmatpush3.bf16.msra.mxu0 %v11269_v6  ;;  %9599 = vmatprep.mubr.f32.mxu0 %v13201_v55  ;;  %v13383_v6 = vld [vmem:[#allocation2 + $0x80] sm:$0xff] }
 0x2cc   :  { %11274 = vmatprep.subr.bf16.mxu0 %v11273_v27 }
 0x2ce   :  { %9600 = vmatmul.mubr.f32.gmra.mrb[4].mxu0 %v13210_v1 }
 0x2cf   :  { %11276 = vmatpush3.bf16.msra.mxu0 %v11273_v27  ;;  %9602 = vmatprep.mubr.f32.mxu0 %v13213_v53  ;;  %v11285_v27 = vpack.c.bf16 %v7890_v13, %v7889_v3  ;;  %v7896_v13 = vld [vmem:[%s16268_s3 + $0x288] sm:$0xff] }
 0x2d0   :  { %11278 = vmatprep.subr.bf16.mxu0 %v11277_v35 }
 0x2d2   :  { %9603 = vmatmul.mubr.f32.gmra.mrb[6].mxu0 %v13383_v6 }
 0x2d3   :  { %11280 = vmatpush3.bf16.msra.mxu0 %v11277_v35  ;;  %9605 = vmatprep.mubr.f32.mxu0 %v13223_v0  ;;  %v7893_v0 = vld [vmem:[%s16268_s3 + $0x270] sm:$0xff]  ;;  %v7894_v35 = vld [vmem:[%s16268_s3 + $0x278] sm:$0xff] }
 0x2d4   :  { %11282 = vmatprep.subr.bf16.mxu0 %v11281_v40  ;;  %v11293_v3 = vpack.c.bf16 %v7894_v35, %v7893_v0  ;;  %v7898_v0 = vld [vmem:[%s16268_s3 + $0x298] sm:$0xff]  ;;  %v7899_v35 = vld [vmem:[%s16268_s3 + $0x2a0] sm:$0xff] }
 0x2d6   :  { %9606 = vmatmul.mubr.f32.gmra.mrb[8].mxu0 %v13232_v5 }
 0x2d7   :  { %11284 = vmatpush3.bf16.msra.mxu0 %v11281_v40  ;;  %9608 = vmatprep.mubr.f32.mxu0 %v13235_v33  ;;  %v7895_v40 = vld [vmem:[%s16268_s3 + $0x280] sm:$0xff] }
 0x2d8   :  { %11286 = vmatprep.subr.bf16.mxu0 %v11285_v27  ;;  %v11297_v41 = vpack.c.bf16 %v7896_v13, %v7895_v40  ;;  %v7900_v40 = vld [vmem:[%s16268_s3 + $0x2a8] sm:$0xff] }
 0x2d9   :  { %v11305_v13 = vpack.c.bf16 %v7900_v40, %v7899_v35  ;;  %v7910_v35 = vld [vmem:[%s16268_s3 + $0x2f8] sm:$0xff]  ;;  %v7912_v40 = vld [vmem:[%s16268_s3 + $0x308] sm:$0xff] }
 0x2da   :  { %9609 = vmatmul.mubr.f32.gmra.mrb[10].mxu0 %v13244_v10 }
 0x2db   :  { %11288 = vmatpush3.bf16.msra.mxu0 %v11285_v27  ;;  %9611 = vmatprep.mubr.f32.mxu0 %v13247_v18  ;;  %v13417_v27 = vld [vmem:[#allocation2 + $0x120] sm:$0xff] }
 0x2dc   :  { %11290 = vmatprep.subr.bf16.mxu0 %v11289_v39 }
 0x2de   :  { %9612 = vmatmul.mubr.f32.gmra.mrb[12].mxu0 %v13256_v42 }
 0x2df   :  { %11292 = vmatpush3.bf16.msra.mxu0 %v11289_v39  ;;  %9614 = vmatprep.mubr.f32.mxu0 %v13259_v45  ;;  %v11301_v39 = vpack.c.bf16 %v7898_v0, %v7897_v37  ;;  %v7906_v37 = vld [vmem:[%s16268_s3 + $0x2d8] sm:$0xff]  ;;  %v7908_v0 = vld [vmem:[%s16268_s3 + $0x2e8] sm:$0xff] }
 0x2e0   :  { %11294 = vmatprep.subr.bf16.mxu0 %v11293_v3 }
 0x2e2   :  { %9615 = vmatmul.mubr.f32.gmra.mrb[14].mxu0 %v13417_v27 }
 0x2e3   :  { %11296 = vmatpush3.bf16.msra.mxu0 %v11293_v3  ;;  %9649 = vmatprep.mubr.f32.mxu0 %v13072_v44  ;;  %v7901_v44 = vld [vmem:[%s16268_s3 + $0x2b0] sm:$0xff]  ;;  %v7902_v3 = vld [vmem:[%s16268_s3 + $0x2b8] sm:$0xff] }
 0x2e4   :  { %11298 = vmatprep.subr.bf16.mxu0 %v11297_v41 }
 0x2e6   :  { %9650 = vmatmul.mubr.f32.vlgmr.msra.gmra.mrb[0].mxu0 %v13074_v15  ;;  %v11309_v15 = vpack.c.bf16 %v7902_v3, %v7901_v44  ;;  %v7913_v44 = vld [vmem:[%s16268_s3 + $0x310] sm:$0xff]  ;;  %v7914_v3 = vld [vmem:[%s16268_s3 + $0x318] sm:$0xff] }
 0x2e7   :  { %11300 = vmatpush3.bf16.msra.mxu0 %v11297_v41  ;;  %9652 = vmatprep.mubr.f32.mxu0 %v13076_v49  ;;  %v7903_v49 = vld [vmem:[%s16268_s3 + $0x2c0] sm:$0xff]  ;;  %v7904_v41 = vld [vmem:[%s16268_s3 + $0x2c8] sm:$0xff] }
 0x2e8   :  { %11302 = vmatprep.subr.bf16.mxu0 %v11301_v39 }
 0x2ea   :  { %9653 = vmatmul.mubr.f32.gmra.mrb[2].mxu0 %v13078_v26  ;;  %v11313_v26 = vpack.c.bf16 %v7904_v41, %v7903_v49  ;;  %v11333_v49 = vpack.c.bf16 %v7914_v3, %v7913_v44  ;;  %v7915_v41 = vld [vmem:[%s16268_s3 + $0x320] sm:$0xff]  ;;  %v7926_v44 = vld [vmem:[%s16268_s3 + $0x378] sm:$0xff] }
 0x2eb   :  { %11304 = vmatpush3.bf16.msra.mxu0 %v11301_v39  ;;  %9655 = vmatprep.mubr.f32.mxu0 %v13080_v50  ;;  %v7905_v50 = vld [vmem:[%s16268_s3 + $0x2d0] sm:$0xff] }
 0x2ec   :  { %11306 = vmatprep.subr.bf16.mxu0 %v11305_v13 }
 0x2ee   :  { %9656 = vmatmul.mubr.f32.gmra.mrb[4].mxu0 %v13082_v16  ;;  %v11317_v16 = vpack.c.bf16 %v7906_v37, %v7905_v50  ;;  %v7918_v50 = vld [vmem:[%s16268_s3 + $0x338] sm:$0xff] }
 0x2ef   :  { %11308 = vmatpush3.bf16.msra.mxu0 %v11305_v13  ;;  %9658 = vmatprep.mubr.f32.mxu0 %v13084_v24  ;;  %v7907_v24 = vld [vmem:[%s16268_s3 + $0x2e0] sm:$0xff] }
 0x2f0   :  { %11310 = vmatprep.subr.bf16.mxu0 %v11309_v15  ;;  %v11321_v39 = vpack.c.bf16 %v7908_v0, %v7907_v24  ;;  %v7920_v24 = vld [vmem:[%s16268_s3 + $0x348] sm:$0xff] }
 0x2f2   :  { %9659 = vmatmul.mubr.f32.gmra.mrb[6].mxu0 %v13127_v63 }
 0x2f3   :  { %11312 = vmatpush3.bf16.msra.mxu0 %v11309_v15  ;;  %9661 = vmatprep.mubr.f32.mxu0 %v13098_v22  ;;  %v7909_v22 = vld [vmem:[%s16268_s3 + $0x2f0] sm:$0xff]  ;;  %v16293_v15 = vmax.f32 %v13069_v11, 0.0 }
 0x2f4   :  { %11314 = vmatprep.subr.bf16.mxu0 %v11313_v26 }
 0x2f6   :  { %9662 = vmatmul.mubr.f32.gmra.mrb[8].mxu0 %v13100_v23  ;;  %v11325_v23 = vpack.c.bf16 %v7910_v35, %v7909_v22  ;;  %v7921_v22 = vld [vmem:[%s16268_s3 + $0x350] sm:$0xff]  ;;  %v7922_v35 = vld [vmem:[%s16268_s3 + $0x358] sm:$0xff] }
 0x2f7   :  { %11316 = vmatpush3.bf16.msra.mxu0 %v11313_v26  ;;  %9664 = vmatprep.mubr.f32.mxu0 %v13102_v30  ;;  %v7911_v30 = vld [vmem:[%s16268_s3 + $0x300] sm:$0xff]  ;;  %v7916_v26 = vld [vmem:[%s16268_s3 + $0x328] sm:$0xff] }
 0x2f8   :  { %11318 = vmatprep.subr.bf16.mxu0 %v11317_v16  ;;  %v11329_v13 = vpack.c.bf16 %v7912_v40, %v7911_v30  ;;  %v11337_v11 = vpack.c.bf16 %v7916_v26, %v7915_v41  ;;  %v7923_v30 = vld [vmem:[%s16268_s3 + $0x360] sm:$0xff]  ;;  %v7924_v40 = vld [vmem:[%s16268_s3 + $0x368] sm:$0xff] }
 0x2f9   :  { %v13550_v26 = vld [vmem:[#allocation2 + $0x122] sm:$0xff] }
 0x2fa   :  { %9665 = vmatmul.mubr.f32.gmra.mrb[10].mxu0 %v13104_v25 }
 0x2fb   :  { %11320 = vmatpush3.bf16.msra.mxu0 %v11317_v16  ;;  %9667 = vmatprep.mubr.f32.mxu0 %v13112_v59  ;;  %v7919_v16 = vld [vmem:[%s16268_s3 + $0x340] sm:$0xff] }
 0x2fc   :  { %11322 = vmatprep.subr.bf16.mxu0 %v11321_v39  ;;  %v11345_v0 = vpack.c.bf16 %v7920_v24, %v7919_v16  ;;  %v7932_v16 = vld [vmem:[%s16268_s3 + $0x3a8] sm:$0xff] }
 0x2fe   :  { %9668 = vmatmul.mubr.f32.gmra.mrb[12].mxu0 %v13114_v61 }
 0x2ff   :  { %11324 = vmatpush3.bf16.msra.mxu0 %v11321_v39  ;;  %9670 = vmatprep.mubr.f32.mxu0 %v13116_v62  ;;  %v13516_v39 = vld [vmem:[#allocation2 + $0x82] sm:$0xff] }
 0x300   :  { %11326 = vmatprep.subr.bf16.mxu0 %v11325_v23 }
 0x302   :  { %9671 = vmatmul.mubr.f32.gmra.mrb[14].mxu0 %v16293_v15  ;;  %v7927_v15 = vld [vmem:[%s16268_s3 + $0x380] sm:$0xff] }
 0x303   :  { %11328 = vmatpush3.bf16.msra.mxu0 %v11325_v23  ;;  %9705 = vmatprep.mubr.f32.mxu0 %v13268_v21  ;;  %v7917_v21 = vld [vmem:[%s16268_s3 + $0x330] sm:$0xff]  ;;  %v11349_v23 = vpack.c.bf16 %v7922_v35, %v7921_v22  ;;  %v7936_v22 = vld [vmem:[%s16268_s3 + $0x3c8] sm:$0xff]  ;;  %v7938_v35 = vld [vmem:[%s16268_s3 + $0x3d8] sm:$0xff] }
 0x304   :  { %11330 = vmatprep.subr.bf16.mxu0 %v11329_v13  ;;  %v11341_v37 = vpack.c.bf16 %v7918_v50, %v7917_v21  ;;  %v7930_v21 = vld [vmem:[%s16268_s3 + $0x398] sm:$0xff] }
 0x306   :  { %9706 = vmatmul.mubr.f32.vlgmr.msra.gmra.mrb[0].mxu0 %v13277_v4 }
 0x307   :  { %11332 = vmatpush3.bf16.msra.mxu0 %v11329_v13  ;;  %9708 = vmatprep.mubr.f32.mxu0 %v13280_v52  ;;  %v11353_v13 = vpack.c.bf16 %v7924_v40, %v7923_v30  ;;  %v7940_v30 = vld [vmem:[%s16268_s3 + $0x3e8] sm:$0xff] }
 0x308   :  { %11334 = vmatprep.subr.bf16.mxu0 %v11333_v49 }
 0x30a   :  { %9709 = vmatmul.mubr.f32.gmra.mrb[2].mxu0 %v13289_v12 }
 0x30b   :  { %11336 = vmatpush3.bf16.msra.mxu0 %v11333_v49  ;;  %9711 = vmatprep.mubr.f32.mxu0 %v13292_v9  ;;  %v7928_v49 = vld [vmem:[%s16268_s3 + $0x388] sm:$0xff] }
 0x30c   :  { %11338 = vmatprep.subr.bf16.mxu0 %v11337_v11  ;;  %v11361_v41 = vpack.c.bf16 %v7928_v49, %v7927_v15  ;;  %v1919_v15 = vld [vmem:[#allocation2 + $0x31] sm:$0xff]  ;;  %v7948_v49 = vld [vmem:[%s16268_s3 + $0x428] sm:$0xff] }
 0x30e   :  { %9712 = vmatmul.mubr.f32.gmra.mrb[4].mxu0 %v13301_v29 }
 0x30f   :  { %11340 = vmatpush3.bf16.msra.mxu0 %v11337_v11  ;;  %9714 = vmatprep.mubr.f32.mxu0 %v13304_v38  ;;  %v7929_v11 = vld [vmem:[%s16268_s3 + $0x390] sm:$0xff] }
 0x310   :  { %11342 = vmatprep.subr.bf16.mxu0 %v11341_v37  ;;  %v11365_v50 = vpack.c.bf16 %v7930_v21, %v7929_v11  ;;  %v1921_v21 = vld [vmem:[#allocation2 + $0x51] sm:$0xff] }
 0x312   :  { %9715 = vmatmul.mubr.f32.gmra.mrb[6].mxu0 %v13516_v39 }
 0x313   :  { %11344 = vmatpush3.bf16.msra.mxu0 %v11341_v37  ;;  %9717 = vmatprep.mubr.f32.mxu0 %v13313_v57  ;;  %v7925_v57 = vld [vmem:[%s16268_s3 + $0x370] sm:$0xff]  ;;  %v7931_v37 = vld [vmem:[%s16268_s3 + $0x3a0] sm:$0xff] }
 0x314   :  { %11346 = vmatprep.subr.bf16.mxu0 %v11345_v0  ;;  %v11357_v3 = vpack.c.bf16 %v7926_v44, %v7925_v57  ;;  %v11369_v24 = vpack.c.bf16 %v7932_v16, %v7931_v37  ;;  %v7944_v57 = vld [vmem:[%s16268_s3 + $0x408] sm:$0xff]  ;;  %v7946_v44 = vld [vmem:[%s16268_s3 + $0x418] sm:$0xff] }
 0x315   :  { %v7950_v37 = vld [vmem:[%s16268_s3 + $0x438] sm:$0xff]  ;;  %v1922_v16 = vld [vmem:[#allocation2 + $0x61] sm:$0xff] }
 0x316   :  { %9718 = vmatmul.mubr.f32.gmra.mrb[8].mxu0 %v13322_v58 }
 0x317   :  { %11348 = vmatpush3.bf16.msra.mxu0 %v11345_v0  ;;  %9720 = vmatprep.mubr.f32.mxu0 %v13325_v7  ;;  %v7934_v0 = vld [vmem:[%s16268_s3 + $0x3b8] sm:$0xff] }
 0x318   :  { %11350 = vmatprep.subr.bf16.mxu0 %v11349_v23 }
 0x31a   :  { %9721 = vmatmul.mubr.f32.gmra.mrb[10].mxu0 %v13334_v32 }
 0x31b   :  { %11352 = vmatpush3.bf16.msra.mxu0 %v11349_v23  ;;  %9723 = vmatprep.mubr.f32.mxu0 %v13337_v46  ;;  %v13590_v23 = vld [vmem:[#allocation2] sm:$0xff] }
 0x31c   :  { %11354 = vmatprep.subr.bf16.mxu0 %v11353_v13 }
 0x31e   :  { %9724 = vmatmul.mubr.f32.gmra.mrb[12].mxu0 %v13346_v47 }
 0x31f   :  { %11356 = vmatpush3.bf16.msra.mxu0 %v11353_v13  ;;  %9726 = vmatprep.mubr.f32.mxu0 %v13349_v36  ;;  %v7942_v13 = vld [vmem:[%s16268_s3 + $0x3f8] sm:$0xff] }
 0x320   :  { %11358 = vmatprep.subr.bf16.mxu0 %v11357_v3 }
 0x322   :  { %9727 = vmatmul.mubr.f32.gmra.mrb[14].mxu0 %v13550_v26 }
 0x323   :  { %11360 = vmatpush3.bf16.msra.mxu0 %v11357_v3  ;;  %9761 = vmatprep.mubr.f32.mxu0 %v13186_v17  ;;  %v7933_v17 = vld [vmem:[%s16268_s3 + $0x3b0] sm:$0xff]  ;;  %v1918_v3 = vld [vmem:[#allocation2 + $0x21] sm:$0xff] }
 0x324   :  { %11362 = vmatprep.subr.bf16.mxu0 %v11361_v41 }
 0x326   :  { %9762 = vmatmul.mubr.f32.vlgmr.msra.gmra.mrb[0].mxu0 %v13189_v56  ;;  %v11373_v56 = vpack.c.bf16 %v7934_v0, %v7933_v17  ;;  %v1923_v17 = vld [vmem:[#allocation2 + $0x71] sm:$0xff]  ;;  %v7951_v0 = vld [vmem:[%s16268_s3 + $0x440] sm:$0xff] }
 0x327   :  { %11364 = vmatpush3.bf16.msra.mxu0 %v11361_v41  ;;  %9764 = vmatprep.mubr.f32.mxu0 %v13198_v19  ;;  %v7935_v19 = vld [vmem:[%s16268_s3 + $0x3c0] sm:$0xff] }
 0x328   :  { %11366 = vmatprep.subr.bf16.mxu0 %v11365_v50  ;;  %v1920_v41 = vld [vmem:[#allocation2 + $0x41] sm:$0xff] }
 0x32a   :  { %9765 = vmatmul.mubr.f32.gmra.mrb[2].mxu0 %v13201_v55  ;;  %v11377_v55 = vpack.c.bf16 %v7936_v22, %v7935_v19  ;;  %v1925_v19 = vld [vmem:[#allocation2 + $0x91] sm:$0xff] }
 0x32b   :  { %11368 = vmatpush3.bf16.msra.mxu0 %v11365_v50  ;;  %9767 = vmatprep.mubr.f32.mxu0 %v13210_v1  ;;  %v7937_v1 = vld [vmem:[%s16268_s3 + $0x3d0] sm:$0xff] }
 0x32c   :  { %11370 = vmatprep.subr.bf16.mxu0 %v11369_v24  ;;  %v7949_v50 = vld [vmem:[%s16268_s3 + $0x430] sm:$0xff] }
 0x32e   :  { %9768 = vmatmul.mubr.f32.gmra.mrb[4].mxu0 %v13213_v53  ;;  %v11381_v53 = vpack.c.bf16 %v7938_v35, %v7937_v1  ;;  %v7954_v1 = vld [vmem:[%s16268_s3 + $0x458] sm:$0xff]  ;;  %v1926_v35 = vld [vmem:[#allocation2 + $0xc1] sm:$0xff] }
 0x32f   :  { %11372 = vmatpush3.bf16.msra.mxu0 %v11369_v24  ;;  %9770 = vmatprep.mubr.f32.mxu0 %v13383_v6  ;;  %v7939_v6 = vld [vmem:[%s16268_s3 + $0x3e0] sm:$0xff]  ;;  %v11405_v24 = vpack.c.bf16 %v7950_v37, %v7949_v50 }
 0x330   :  { %11374 = vmatprep.subr.bf16.mxu0 %v11373_v56  ;;  %v11385_v40 = vpack.c.bf16 %v7940_v30, %v7939_v6  ;;  %v1927_v6 = vld [vmem:[#allocation2 + $0xd1] sm:$0xff]  ;;  %v7956_v30 = vld [vmem:[%s16268_s3 + $0x468] sm:$0xff] }
 0x332   :  { %9771 = vmatmul.mubr.f32.gmra.mrb[6].mxu0 %v13590_v23 }
 0x333   :  { %11376 = vmatpush3.bf16.msra.mxu0 %v11373_v56  ;;  %9773 = vmatprep.mubr.f32.mxu0 %v13232_v5  ;;  %v7941_v5 = vld [vmem:[%s16268_s3 + $0x3f0] sm:$0xff]  ;;  %v7952_v56 = vld [vmem:[%s16268_s3 + $0x448] sm:$0xff] }
 0x334   :  { %11378 = vmatprep.subr.bf16.mxu0 %v11377_v55  ;;  %v11409_v22 = vpack.c.bf16 %v7952_v56, %v7951_v0 }
 0x336   :  { %9774 = vmatmul.mubr.f32.gmra.mrb[8].mxu0 %v13235_v33  ;;  %v11389_v33 = vpack.c.bf16 %v7942_v13, %v7941_v5  ;;  %v7957_v5 = vld [vmem:[%s16268_s3 + $0x470] sm:$0xff]  ;;  %v7958_v13 = vld [vmem:[%s16268_s3 + $0x478] sm:$0xff] }
 0x337   :  { %11380 = vmatpush3.bf16.msra.mxu0 %v11377_v55  ;;  %9776 = vmatprep.mubr.f32.mxu0 %v13244_v10  ;;  %v7943_v10 = vld [vmem:[%s16268_s3 + $0x400] sm:$0xff]  ;;  %v7953_v55 = vld [vmem:[%s16268_s3 + $0x450] sm:$0xff] }
 0x338   :  { %11382 = vmatprep.subr.bf16.mxu0 %v11381_v53 }
 0x33a   :  { %9777 = vmatmul.mubr.f32.gmra.mrb[10].mxu0 %v13247_v18  ;;  %v11393_v18 = vpack.c.bf16 %v7944_v57, %v7943_v10  ;;  %v1933_v10 = vld [vmem:[#allocation2 + $0x131] sm:$0xff] }
 0x33b   :  { %11384 = vmatpush3.bf16.msra.mxu0 %v11381_v53  ;;  %9779 = vmatprep.mubr.f32.mxu0 %v13256_v42  ;;  %v7945_v42 = vld [vmem:[%s16268_s3 + $0x410] sm:$0xff]  ;;  %v11413_v53 = vpack.c.bf16 %v7954_v1, %v7953_v55 }
 0x33c   :  { %11386 = vmatprep.subr.bf16.mxu0 %v11385_v40 }
 0x33e   :  { %9780 = vmatmul.mubr.f32.gmra.mrb[12].mxu0 %v13259_v45  ;;  %v11397_v45 = vpack.c.bf16 %v7946_v44, %v7945_v42  ;;  %v2458_v44 = vld [vmem:[%s16270_s4 + $0x60] sm:$0xff] }
 0x33f   :  { %11388 = vmatpush3.bf16.msra.mxu0 %v11385_v40  ;;  %9782 = vmatprep.mubr.f32.mxu0 %v13417_v27  ;;  %v7947_v27 = vld [vmem:[%s16268_s3 + $0x420] sm:$0xff] }
 0x340   :  { %11390 = vmatprep.subr.bf16.mxu0 %v11389_v33  ;;  %v11401_v11 = vpack.c.bf16 %v7948_v49, %v7947_v27  ;;  %v2461_v27 = vld [vmem:[%s16270_s4 + $0x78] sm:$0xff] }
 0x342   :  { %9783 = vmatmul.mubr.f32.gmra.mrb[14].mxu0 %v13590_v23 }
 0x343   :  { %11392 = vmatpush3.bf16.msra.mxu0 %v11389_v33  ;;  %9817 = vmatprep.mubr.f32.mxu0 %v1918_v3  ;;  %v11421_v33 = vpack.c.bf16 %v7958_v13, %v7957_v5  ;;  %v2459_v3 = vld [vmem:[%s16270_s4 + $0x68] sm:$0xff] }
 0x344   :  { %11394 = vmatprep.subr.bf16.mxu0 %v11393_v18 }
 0x346   :  { %9818 = vmatmul.mubr.f32.vlgmr.msra.gmra.mrb[0].mxu0 %v1919_v15  ;;  %v2460_v15 = vld [vmem:[%s16270_s4 + $0x70] sm:$0xff] }
 0x347   :  { %11396 = vmatpush3.bf16.msra.mxu0 %v11393_v18  ;;  %9820 = vmatprep.mubr.f32.mxu0 %v1920_v41  ;;  %v2457_v18 = vld [vmem:[%s16270_s4 + $0x58] sm:$0xff] }
 0x348   :  { %11398 = vmatprep.subr.bf16.mxu0 %v11397_v45 }
 0x34a   :  { %9821 = vmatmul.mubr.f32.gmra.mrb[2].mxu0 %v1921_v21  ;;  %v11453_v21 = vpack.c.bf16 %v2461_v27, %v2460_v15 }
 0x34b   :  { %11400 = vmatpush3.bf16.msra.mxu0 %v11397_v45  ;;  %9823 = vmatprep.mubr.f32.mxu0 %v1922_v16  ;;  %v11449_v45 = vpack.c.bf16 %v2459_v3, %v2458_v44 }
 0x34c   :  { %11402 = vmatprep.subr.bf16.mxu0 %v11401_v11 }
 0x34e   :  { %9824 = vmatmul.mubr.f32.gmra.mrb[4].mxu0 %v1923_v17 }
 0x34f   :  { %11404 = vmatpush3.bf16.msra.mxu0 %v11401_v11  ;;  %9826 = vmatprep.mubr.f32.mxu0 %v13127_v63  ;;  %v7955_v63 = vld [vmem:[%s16268_s3 + $0x460] sm:$0xff] }
 0x350   :  { %11406 = vmatprep.subr.bf16.mxu0 %v11405_v24  ;;  %v11417_v40 = vpack.c.bf16 %v7956_v30, %v7955_v63 }
 0x352   :  { %9827 = vmatmul.mubr.f32.gmra.mrb[6].mxu0 %v1925_v19 }
 0x353   :  { %11408 = vmatpush3.bf16.msra.mxu0 %v11405_v24  ;;  %9829 = vmatprep.mubr.f32.mxu0 %v1926_v35 }
 0x354   :  { %11410 = vmatprep.subr.bf16.mxu0 %v11409_v22 }
 0x356   :  { %9830 = vmatmul.mubr.f32.gmra.mrb[8].mxu0 %v1927_v6 }
 0x357   :  { %11412 = vmatpush3.bf16.msra.mxu0 %v11409_v22  ;;  %9832 = vmatprep.mubr.f32.mxu0 %v13104_v25  ;;  %v1932_v25 = vld [vmem:[#allocation2 + $0x121] sm:$0xff] }
 0x358   :  { %11414 = vmatprep.subr.bf16.mxu0 %v11413_v53 }
 0x35a   :  { %9833 = vmatmul.mubr.f32.gmra.mrb[10].mxu0 %v13112_v59  ;;  %v2119_v59 = vld [vmem:[#allocation2 + $0x92] sm:$0xff] }
 0x35b   :  { %11416 = vmatpush3.bf16.msra.mxu0 %v11413_v53  ;;  %9835 = vmatprep.mubr.f32.mxu0 %v13114_v61  ;;  %v2127_v61 = vld [vmem:[#allocation2 + $0x132] sm:$0xff] }
 0x35c   :  { %11418 = vmatprep.subr.bf16.mxu0 %v11417_v40 }
 0x35e   :  { %9836 = vmatmul.mubr.f32.gmra.mrb[12].mxu0 %v13116_v62  ;;  %v2446_v62 = vld [vmem:[%s16270_s4] sm:$0xff] }
 0x35f   :  { %11420 = vmatpush3.bf16.msra.mxu0 %v11417_v40  ;;  %9838 = vmatprep.mubr.f32.mxu0 %v1932_v25 }
 0x360   :  { %11422 = vmatprep.subr.bf16.mxu0 %v11421_v33 }
 0x362   :  { %9839 = vmatmul.mubr.f32.gmra.mrb[14].mxu0 %v1933_v10 }
 0x363   :  { %11424 = vmatpush3.bf16.msra.mxu0 %v11421_v33  ;;  %9873 = vmatprep.mubr.f32.mxu0 %v13277_v4  ;;  %v2447_v4 = vld [vmem:[%s16270_s4 + $0x8] sm:$0xff] }
 0x366   :  { %9874 = vmatmul.mubr.f32.vlgmr.msra.gmra.mrb[0].mxu0 %v13280_v52  ;;  %v11425_v52 = vpack.c.bf16 %v2447_v4, %v2446_v62 }
 0x367   :  { %9876 = vmatprep.mubr.f32.mxu0 %v13289_v12  ;;  %v2448_v12 = vld [vmem:[%s16270_s4 + $0x10] sm:$0xff] }
 0x368   :  { %11426 = vmatprep.subr.bf16.mxu1 %v11425_v52 }
 0x369   :  { %11428 = vmatpush3.bf16.msra.mxu1 %v11425_v52 }
 0x36a   :  { %9877 = vmatmul.mubr.f32.gmra.mrb[2].mxu0 %v13292_v9  ;;  %v2449_v9 = vld [vmem:[%s16270_s4 + $0x18] sm:$0xff] }
 0x36b   :  { %9879 = vmatprep.mubr.f32.mxu0 %v13301_v29  ;;  %v11429_v29 = vpack.c.bf16 %v2449_v9, %v2448_v12 }
 0x36d   :  { %11430 = vmatprep.subr.bf16.mxu1 %v11429_v29 }
 0x36e   :  { %9880 = vmatmul.mubr.f32.gmra.mrb[4].mxu0 %v13304_v38  ;;  %11432 = vmatpush3.bf16.msra.mxu1 %v11429_v29  ;;  %v2450_v38 = vld [vmem:[%s16270_s4 + $0x20] sm:$0xff] }
 0x36f   :  { %9882 = vmatprep.mubr.f32.mxu0 %v13516_v39  ;;  %v2455_v39 = vld [vmem:[%s16270_s4 + $0x48] sm:$0xff] }
 0x372   :  { %9883 = vmatmul.mubr.f32.gmra.mrb[6].mxu0 %v2119_v59 }
 0x373   :  { %9885 = vmatprep.mubr.f32.mxu0 %v13322_v58  ;;  %v2451_v58 = vld [vmem:[%s16270_s4 + $0x28] sm:$0xff] }
 0x376   :  { %9886 = vmatmul.mubr.f32.gmra.mrb[8].mxu0 %v13325_v7  ;;  %v11433_v7 = vpack.c.bf16 %v2451_v58, %v2450_v38 }
 0x377   :  { %9888 = vmatprep.mubr.f32.mxu0 %v13334_v32  ;;  %v2452_v32 = vld [vmem:[%s16270_s4 + $0x30] sm:$0xff] }
 0x378   :  { %11434 = vmatprep.subr.bf16.mxu1 %v11433_v7 }
 0x379   :  { %11436 = vmatpush3.bf16.msra.mxu1 %v11433_v7 }
 0x37a   :  { %9889 = vmatmul.mubr.f32.gmra.mrb[10].mxu0 %v13337_v46  ;;  %v2453_v46 = vld [vmem:[%s16270_s4 + $0x38] sm:$0xff] }
 0x37b   :  { %9891 = vmatprep.mubr.f32.mxu0 %v13346_v47  ;;  %v11437_v47 = vpack.c.bf16 %v2453_v46, %v2452_v32 }
 0x37d   :  { %11438 = vmatprep.subr.bf16.mxu1 %v11437_v47 }
 0x37e   :  { %9892 = vmatmul.mubr.f32.gmra.mrb[12].mxu0 %v13349_v36  ;;  %11440 = vmatpush3.bf16.msra.mxu1 %v11437_v47  ;;  %v2454_v36 = vld [vmem:[%s16270_s4 + $0x40] sm:$0xff] }
 0x37f   :  { %9894 = vmatprep.mubr.f32.mxu0 %v13550_v26  ;;  %v2456_v26 = vld [vmem:[%s16270_s4 + $0x50] sm:$0xff]  ;;  %v11441_v57 = vpack.c.bf16 %v2455_v39, %v2454_v36 }
 0x380   :  { %v11445_v42 = vpack.c.bf16 %v2457_v18, %v2456_v26 }
 0x381   :  { %11442 = vmatprep.subr.bf16.mxu1 %v11441_v57 }
 0x382   :  { %9895 = vmatmul.mubr.f32.gmra.mrb[14].mxu0 %v2127_v61  ;;  %11444 = vmatpush3.bf16.msra.mxu1 %v11441_v57 }
 0x383   :  { %11446 = vmatprep.subr.bf16.mxu1 %v11445_v42 }
 0x386   :  { %11448 = vmatpush3.bf16.msra.mxu1 %v11445_v42 }
 0x387   :  { %11450 = vmatprep.subr.bf16.mxu1 %v11449_v45 }
 0x38a   :  { %11452 = vmatpush3.bf16.msra.mxu1 %v11449_v45 }
 0x38b   :  { %11454 = vmatprep.subr.bf16.mxu1 %v11453_v21 }
 0x38e   :  { %11456 = vmatpush3.bf16.msra.mxu1 %v11453_v21 }
 0x439   :  { %v13728_v49 = vpop.f32.mrb[0].mxu0 }
 0x43a   :  { %v13730_v41 = vpop.f32.mrb[1].mxu0 }
 0x43b   :  { %v2306_v11 = vadd.f32 %v13728_v49, %v13730_v41 }
 0x43d   :  { %v13734_v50 = vpop.f32.mrb[2].mxu0 }
 0x43e   :  { %v13736_v37 = vpop.f32.mrb[3].mxu0 }
 0x43f   :  { %v2307_v16 = vadd.f32 %v2306_v11, %v13736_v37 }
 0x441   :  { %v13739_v24 = vpop.f32.mrb[4].mxu0  ;;  %v2308_v17 = vadd.f32 %v13734_v50, %v2307_v16 }
 0x442   :  { %v13742_v0 = vpop.f32.mrb[5].mxu0 }
 0x443   :  { %v2309_v56 = vadd.f32 %v2308_v17, %v13742_v0 }
 0x445   :  { %v13745_v19 = vpop.f32.mrb[6].mxu0  ;;  %v2310_v22 = vadd.f32 %v13739_v24, %v2309_v56 }
 0x446   :  { %v13748_v55 = vpop.f32.mrb[7].mxu0 }
 0x447   :  { %v2311_v1 = vadd.f32 %v2310_v22, %v13748_v55 }
 0x449   :  { %v13751_v35 = vpop.f32.mrb[8].mxu0  ;;  %v2312_v53 = vadd.f32 %v13745_v19, %v2311_v1 }
 0x44a   :  { %v13754_v6 = vpop.f32.mrb[9].mxu0 }
 0x44b   :  { %v2313_v63 = vadd.f32 %v2312_v53, %v13754_v6 }
 0x44d   :  { %v13757_v30 = vpop.f32.mrb[10].mxu0  ;;  %v2314_v40 = vadd.f32 %v13751_v35, %v2313_v63 }
 0x44e   :  { %v13760_v5 = vpop.f32.mrb[11].mxu0 }
 0x44f   :  { %v2315_v13 = vadd.f32 %v2314_v40, %v13760_v5 }
 0x451   :  { %v13763_v33 = vpop.f32.mrb[12].mxu0  ;;  %v2316_v25 = vadd.f32 %v13757_v30, %v2315_v13 }
 0x452   :  { %v13766_v10 = vpop.f32.mrb[13].mxu0 }
 0x453   :  { %v2317_v59 = vadd.f32 %v2316_v25, %v13766_v10 }
 0x455   :  { %v13769_v61 = vpop.f32.mrb[14].mxu0  ;;  %v2318_v62 = vadd.f32 %v13763_v33, %v2317_v59 }
 0x456   :  { %v13772_v4 = vpop.f32.mrb[15].mxu0 }
 0x457   :  { %v2319_v52 = vadd.f32 %v2318_v62, %v13772_v4 }
 0x459   :  { %v2320_v12 = vadd.f32 %v13769_v61, %v2319_v52 }
 0x45b   :  { %v2321_v9 = vrot.slane %v2320_v12, 4 }
 0x45d   :  { %v2322_v29 = vadd.f32 %v2321_v9, %v2320_v12 }
 0x45f   :  { %v2323_v38 = vrot.slane %v2322_v29, 2 }
 0x461   :  { %v2324_v58 = vadd.f32 %v2323_v38, %v2322_v29 }
 0x463   :  { %v2325_v7 = vrot.slane %v2324_v58, 1 }
 0x465   :  { %v2326_v32 = vadd.f32 %v2325_v7, %v2324_v58 }
 0x467   :  { %v2327_v46 = vmul.f32 0.0078125, %v2326_v32 }
 0x469   :  { %v2328_v47 = vsub.f32 %v13730_v41, %v2327_v46  ;;  %v2329_v36 = vsub.f32 %v13728_v49, %v2327_v46  ;;  %v2330_v39 = vsub.f32 %v13736_v37, %v2327_v46  ;;  %v2331_v26 = vsub.f32 %v13734_v50, %v2327_v46 }
 0x46a   :  { %v2332_v57 = vsub.f32 %v13742_v0, %v2327_v46  ;;  %v2333_v18 = vsub.f32 %v13739_v24, %v2327_v46  ;;  %v2334_v42 = vsub.f32 %v13748_v55, %v2327_v46  ;;  %v2335_v44 = vsub.f32 %v13745_v19, %v2327_v46 }
 0x46b   :  { %v2336_v3 = vsub.f32 %v13754_v6, %v2327_v46  ;;  %v2337_v45 = vsub.f32 %v13751_v35, %v2327_v46  ;;  %v2338_v15 = vsub.f32 %v13760_v5, %v2327_v46  ;;  %v2339_v27 = vsub.f32 %v13757_v30, %v2327_v46 }
 0x46c   :  { %v2340_v11 = vsub.f32 %v13766_v10, %v2327_v46  ;;  %v2341_v21 = vsub.f32 %v13763_v33, %v2327_v46  ;;  %v2342_v16 = vsub.f32 %v13772_v4, %v2327_v46  ;;  %v2343_v17 = vsub.f32 %v13769_v61, %v2327_v46 }
 0x46d   :  { %v2344_v56 = vmul.f32 %v2328_v47, %v2328_v47  ;;  %v2345_v22 = vmul.f32 %v2329_v36, %v2329_v36  ;;  %v2346_v1 = vmul.f32 %v2330_v39, %v2330_v39  ;;  %v2347_v63 = vmul.f32 %v2331_v26, %v2331_v26 }
 0x46e   :  { %v2348_v13 = vmul.f32 %v2332_v57, %v2332_v57  ;;  %v2349_v59 = vmul.f32 %v2333_v18, %v2333_v18  ;;  %v2350_v52 = vmul.f32 %v2334_v42, %v2334_v42  ;;  %v2351_v9 = vmul.f32 %v2335_v44, %v2335_v44 }
 0x46f   :  { %v2360_v53 = vadd.f32 %v2345_v22, %v2344_v56  ;;  %v2352_v38 = vmul.f32 %v2336_v3, %v2336_v3  ;;  %v2353_v7 = vmul.f32 %v2337_v45, %v2337_v45  ;;  %v2354_v43 = vmul.f32 %v2338_v15, %v2338_v15 }
 0x470   :  { %v2355_v47 = vmul.f32 %v2339_v27, %v2339_v27  ;;  %v2356_v39 = vmul.f32 %v2340_v11, %v2340_v11  ;;  %v2357_v26 = vmul.f32 %v2341_v21, %v2341_v21  ;;  %v2358_v57 = vmul.f32 %v2342_v16, %v2342_v16  ;;  %v13798_v27 = vld [vmem:[%s16269_s5] sm:$0xff] }
 0x471   :  { %v2361_v40 = vadd.f32 %v2360_v53, %v2346_v1  ;;  %v2359_v18 = vmul.f32 %v2343_v17, %v2343_v17  ;;  %v13803_v17 = vsub.s32 3, %v13027_v34 }
 0x473   :  { %v2362_v25 = vadd.f32 %v2361_v40, %v2347_v63  ;;  %16295 = vst [vmem:[#allocation13_spill] sm:$0xff] %v13803_v17 }
 0x475   :  { %v2363_v62 = vadd.f32 %v2362_v25, %v2348_v13 }
 0x477   :  { %v2364_v12 = vadd.f32 %v2363_v62, %v2349_v59 }
 0x479   :  { %v2365_v29 = vadd.f32 %v2364_v12, %v2350_v52 }
 0x47b   :  { %v2366_v58 = vadd.f32 %v2365_v29, %v2351_v9 }
 0x47d   :  { %v2367_v32 = vadd.f32 %v2366_v58, %v2352_v38 }
 0x47f   :  { %v2368_v31 = vadd.f32 %v2367_v32, %v2353_v7 }
 0x481   :  { %v2369_v36 = vadd.f32 %v2368_v31, %v2354_v43  ;;  %v13793_v31 = vsub.s32 2, %v13027_v34 }
 0x483   :  { %v2370_v56 = vadd.f32 %v2369_v36, %v2355_v47  ;;  %16294 = vst [vmem:[#allocation12_spill] sm:$0xff] %v13793_v31 }
 0x485   :  { %v2371_v22 = vadd.f32 %v2370_v56, %v2356_v39 }
 0x487   :  { %v2372_v1 = vadd.f32 %v2371_v22, %v2357_v26 }
 0x489   :  { %v2373_v53 = vadd.f32 %v2372_v1, %v2358_v57 }
 0x48b   :  { %v2374_v42 = vadd.f32 %v2373_v53, %v2359_v18 }
 0x48d   :  { %v2375_v63 = vrot.slane %v2374_v42, 4 }
 0x48f   :  { %v2376_v44 = vadd.f32 %v2375_v63, %v2374_v42 }
 0x491   :  { %v2377_v40 = vrot.slane %v2376_v44, 2 }
 0x493   :  { %v2378_v3 = vadd.f32 %v2377_v40, %v2376_v44 }
 0x495   :  { %v2379_v13 = vrot.slane %v2378_v3, 1 }
 0x497   :  { %v2380_v45 = vadd.f32 %v2379_v13, %v2378_v3 }
 0x499   :  { %v2381_v25 = vmul.f32 0.0078125, %v2380_v45 }
 0x49b   :  { %v2382_v15 = vadd.f32 1e-05, %v2381_v25 }
 0x49d   :  { %12548 = vrsqrt.f32 %v2382_v15 }
 0x4a7   :  { %v12549_v43 = vpop.eup %12548 }
 0x4a8   :  { %v2384_v11 = vmul.f32 %v13798_v27, %v12549_v43 }
 0x4aa   :  { %v2385_v21 = vmul.f32 %v2384_v11, %v2327_v46  ;;  %v2393_v16 = vrot.slane %v2384_v11, %v13793_v31 }
 0x4ac   :  { %v2387_v59 = vrot.slane %v2385_v21, 7  ;;  %v2408_v62 = vmul.f32 %v2393_v16, %v13772_v4  ;;  %v2394_v52 = vmul.f32 %v2393_v16, %v13730_v41  ;;  %v2395_v12 = vmul.f32 %v13728_v49, %v2393_v16 }
 0x4ad   :  { %v2396_v9 = vmul.f32 %v2393_v16, %v13736_v37  ;;  %v2397_v29 = vmul.f32 %v13734_v50, %v2393_v16  ;;  %v2398_v38 = vmul.f32 %v2393_v16, %v13742_v0  ;;  %v2399_v46 = vmul.f32 %v13739_v24, %v2393_v16 }
 0x4ae   :  { %v2389_v58 = vsub.f32 %v13798_v27, %v2387_v59  ;;  %v2400_v7 = vmul.f32 %v2393_v16, %v13748_v55  ;;  %v2401_v32 = vmul.f32 %v13745_v19, %v2393_v16  ;;  %v2402_v4 = vmul.f32 %v2393_v16, %v13754_v6 }
 0x4af   :  { %v2403_v41 = vmul.f32 %v13751_v35, %v2393_v16  ;;  %v2404_v49 = vmul.f32 %v2393_v16, %v13760_v5  ;;  %v2405_v37 = vmul.f32 %v13757_v30, %v2393_v16  ;;  %v2406_v50 = vmul.f32 %v2393_v16, %v13766_v10 }
 0x4b0   :  { %v2413_v0 = vrot.slane %v2389_v58, %v13803_v17  ;;  %v2407_v24 = vmul.f32 %v13763_v33, %v2393_v16  ;;  %v2409_v47 = vmul.f32 %v13769_v61, %v2393_v16 }
 0x4b2   :  { %v2414_v36 = vadd.f32 %v2413_v0, %v2394_v52  ;;  %v2415_v55 = vadd.f32 %v2413_v0, %v2395_v12  ;;  %v2416_v39 = vadd.f32 %v2413_v0, %v2396_v9  ;;  %v2417_v19 = vadd.f32 %v2413_v0, %v2397_v29  ;;  %v7963_v52 = vld [vmem:[%s16267_s2 + $0x118] sm:$0xff]  ;;  %v7960_v9 = vld [vmem:[%s16267_s2 + $0x100] sm:$0xff]  ;;  %v7962_v29 = vld [vmem:[%s16267_s2 + $0x110] sm:$0xff] }
 0x4b3   :  { %v2418_v56 = vadd.f32 %v2413_v0, %v2398_v38  ;;  %v2419_v6 = vadd.f32 %v2413_v0, %v2399_v46  ;;  %v2420_v26 = vadd.f32 %v2413_v0, %v2400_v7  ;;  %v2421_v35 = vadd.f32 %v2413_v0, %v2401_v32  ;;  %v7967_v46 = vld [vmem:[%s16267_s2 + $0x138] sm:$0xff]  ;;  %v7964_v7 = vld [vmem:[%s16267_s2 + $0x120] sm:$0xff]  ;;  %v7966_v32 = vld [vmem:[%s16267_s2 + $0x130] sm:$0xff] }
 0x4b4   :  { %v2430_v22 = vmax.f32 %v2414_v36, 0.0  ;;  %v2431_v5 = vmax.f32 %v2415_v55, 0.0  ;;  %v2432_v57 = vmax.f32 %v2416_v39, 0.0  ;;  %v2422_v30 = vadd.f32 %v2413_v0, %v2402_v4  ;;  %v7975_v36 = vld [vmem:[%s16267_s2 + $0x178] sm:$0xff]  ;;  %v7972_v39 = vld [vmem:[%s16267_s2 + $0x160] sm:$0xff] }
 0x4b5   :  { %v2423_v10 = vadd.f32 %v2413_v0, %v2403_v41  ;;  %v2424_v1 = vadd.f32 %v2413_v0, %v2404_v49  ;;  %v2425_v18 = vadd.f32 %v2413_v0, %v2405_v37  ;;  %v2426_v33 = vadd.f32 %v2413_v0, %v2406_v50  ;;  %v7969_v41 = vld [vmem:[%s16267_s2 + $0x148] sm:$0xff]  ;;  %v7971_v49 = vld [vmem:[%s16267_s2 + $0x158] sm:$0xff]  ;;  %v7968_v50 = vld [vmem:[%s16267_s2 + $0x140] sm:$0xff] }
 0x4b6   :  { %9929 = vmatprep.mubr.f32.mxu1 %v2430_v22  ;;  %v2427_v53 = vadd.f32 %v2413_v0, %v2407_v24  ;;  %v2428_v61 = vadd.f32 %v2413_v0, %v2408_v62  ;;  %v2429_v42 = vadd.f32 %v2413_v0, %v2409_v47  ;;  %v2433_v63 = vmax.f32 %v2417_v19, 0.0  ;;  %v7961_v62 = vld [vmem:[%s16267_s2 + $0x108] sm:$0xff]  ;;  %v7970_v0 = vld [vmem:[%s16267_s2 + $0x150] sm:$0xff]  ;;  %v7976_v22 = vld [vmem:[%s16267_s2 + $0x180] sm:$0xff] }
 0x4b7   :  { %9930 = vmatmul.mubr.f32.vlgmr.msra.gmra.mrb[48].mxu1 %v2431_v5  ;;  %v2434_v44 = vmax.f32 %v2418_v56, 0.0  ;;  %v2435_v40 = vmax.f32 %v2419_v6, 0.0  ;;  %v2436_v3 = vmax.f32 %v2420_v26, 0.0  ;;  %v2437_v13 = vmax.f32 %v2421_v35, 0.0  ;;  %v7973_v47 = vld [vmem:[%s16267_s2 + $0x168] sm:$0xff]  ;;  %v7974_v19 = vld [vmem:[%s16267_s2 + $0x170] sm:$0xff] }
 0x4b8   :  { %9932 = vmatprep.mubr.f32.mxu1 %v2432_v57  ;;  %v2438_v45 = vmax.f32 %v2422_v30, 0.0  ;;  %v2439_v25 = vmax.f32 %v2423_v10, 0.0  ;;  %v2440_v15 = vmax.f32 %v2424_v1, 0.0  ;;  %v2441_v43 = vmax.f32 %v2425_v18, 0.0  ;;  %v7977_v6 = vld [vmem:[%s16267_s2 + $0x188] sm:$0xff]  ;;  %v7979_v26 = vld [vmem:[%s16267_s2 + $0x198] sm:$0xff] }
 0x4b9   :  { %v2442_v11 = vmax.f32 %v2426_v33, 0.0  ;;  %v2443_v21 = vmax.f32 %v2427_v53, 0.0  ;;  %v2444_v16 = vmax.f32 %v2428_v61, 0.0  ;;  %v2445_v59 = vmax.f32 %v2429_v42, 0.0  ;;  %v7978_v5 = vld [vmem:[%s16267_s2 + $0x190] sm:$0xff]  ;;  %v7981_v30 = vld [vmem:[%s16267_s2 + $0x1a8] sm:$0xff] }
 0x4ba   :  { %v11457_v12 = vpack.c.bf16 %v7963_v52, %v7961_v62  ;;  %v11459_v38 = vpack.c.bf16 %v7962_v29, %v7960_v9  ;;  %v11463_v4 = vpack.c.bf16 %v7966_v32, %v7964_v7  ;;  %v11465_v37 = vpack.c.bf16 %v7971_v49, %v7969_v41  ;;  %v7983_v10 = vld [vmem:[%s16267_s2 + $0x1b8] sm:$0xff]  ;;  %v7980_v18 = vld [vmem:[%s16267_s2 + $0x1a0] sm:$0xff]  ;;  %v7982_v33 = vld [vmem:[%s16267_s2 + $0x1b0] sm:$0xff] }
 0x4bb   :  { %9933 = vmatmul.mubr.f32.gmra.mrb[50].mxu1 %v2433_v63  ;;  %v11467_v24 = vpack.c.bf16 %v7970_v0, %v7968_v50  ;;  %v11469_v55 = vpack.c.bf16 %v7975_v36, %v7973_v47  ;;  %v11471_v56 = vpack.c.bf16 %v7974_v19, %v7972_v39  ;;  %v11473_v35 = vpack.c.bf16 %v7979_v26, %v7977_v6  ;;  %v7985_v53 = vld [vmem:[%s16267_s2 + $0x1c8] sm:$0xff]  ;;  %v7987_v42 = vld [vmem:[%s16267_s2 + $0x1d8] sm:$0xff]  ;;  %v7984_v63 = vld [vmem:[%s16267_s2 + $0x1c0] sm:$0xff] }
 0x4bc   :  { %9935 = vmatprep.mubr.f32.mxu1 %v2434_v44  ;;  %11458 = vmatprep.subr.bf16.mxu1 %v11457_v12  ;;  %v11475_v57 = vpack.c.bf16 %v7978_v5, %v7976_v22  ;;  %v11477_v1 = vpack.c.bf16 %v7983_v10, %v7981_v30  ;;  %v11479_v61 = vpack.c.bf16 %v7982_v33, %v7980_v18  ;;  %v7986_v44 = vld [vmem:[%s16267_s2 + $0x1d0] sm:$0xff] }
 0x4bd   :  { %11460 = vmatpush1.bf16.msra.mxu1 %v11459_v38 }
 0x4bf   :  { %9936 = vmatmul.mubr.f32.gmra.mrb[52].mxu1 %v2435_v40  ;;  %v11481_v40 = vpack.c.bf16 %v7987_v42, %v7985_v53 }
 0x4c0   :  { %9938 = vmatprep.mubr.f32.mxu1 %v2436_v3  ;;  %v7989_v3 = vld [vmem:[%s16267_s2 + $0x1e8] sm:$0xff] }
 0x4c3   :  { %9939 = vmatmul.mubr.f32.gmra.mrb[54].mxu1 %v2437_v13  ;;  %v7991_v13 = vld [vmem:[%s16267_s2 + $0x1f8] sm:$0xff] }
 0x4c4   :  { %9941 = vmatprep.mubr.f32.mxu1 %v2438_v45  ;;  %v11483_v45 = vpack.c.bf16 %v7986_v44, %v7984_v63 }
 0x4c7   :  { %9942 = vmatmul.mubr.f32.gmra.mrb[56].mxu1 %v2439_v25  ;;  %v11485_v25 = vpack.c.bf16 %v7991_v13, %v7989_v3 }
 0x4c8   :  { %9944 = vmatprep.mubr.f32.mxu1 %v2440_v15  ;;  %v7988_v15 = vld [vmem:[%s16267_s2 + $0x1e0] sm:$0xff] }
 0x4cb   :  { %9945 = vmatmul.mubr.f32.gmra.mrb[58].mxu1 %v2441_v43  ;;  %v7990_v43 = vld [vmem:[%s16267_s2 + $0x1f0] sm:$0xff] }
 0x4cc   :  { %9947 = vmatprep.mubr.f32.mxu1 %v2442_v11 }
 0x4cf   :  { %9948 = vmatmul.mubr.f32.gmra.mrb[60].mxu1 %v2443_v21 }
 0x4d0   :  { %9950 = vmatprep.mubr.f32.mxu1 %v2444_v16 }
 0x4d3   :  { %9951 = vmatmul.mubr.f32.gmra.mrb[62].mxu1 %v2445_v59  ;;  %v11487_v59 = vpack.c.bf16 %v7990_v43, %v7988_v15 }
 0x4d4   :  { %2862 = vmatprep.mubr.f32.mxu1 %v13590_v23  ;;  %v7965_v23 = vld [vmem:[%s16267_s2 + $0x128] sm:$0xff] }
 0x4d5   :  { %v11461_v58 = vpack.c.bf16 %v7967_v46, %v7965_v23 }
 0x4d7   :  { %11462 = vmatprep.subr.bf16.mxu1 %v11461_v58 }
 0x4d8   :  { %11464 = vmatpush1.bf16.msra.mxu1 %v11463_v4 }
 0x4d9   :  { %11466 = vmatprep.subr.bf16.mxu1 %v11465_v37 }
 0x4dc   :  { %11468 = vmatpush1.bf16.msra.mxu1 %v11467_v24 }
 0x4dd   :  { %11470 = vmatprep.subr.bf16.mxu1 %v11469_v55 }
 0x4e0   :  { %11472 = vmatpush1.bf16.msra.mxu1 %v11471_v56 }
 0x4e1   :  { %11474 = vmatprep.subr.bf16.mxu1 %v11473_v35 }
 0x4e4   :  { %11476 = vmatpush1.bf16.msra.mxu1 %v11475_v57 }
 0x4e5   :  { %11478 = vmatprep.subr.bf16.mxu1 %v11477_v1 }
 0x4e8   :  { %11480 = vmatpush1.bf16.msra.mxu1 %v11479_v61 }
 0x4e9   :  { %11482 = vmatprep.subr.bf16.mxu1 %v11481_v40 }
 0x4ec   :  { %11484 = vmatpush1.bf16.msra.mxu1 %v11483_v45 }
 0x4ed   :  { %11486 = vmatprep.subr.bf16.mxu1 %v11485_v25 }
 0x4f0   :  { %11488 = vmatpush1.bf16.msra.mxu1 %v11487_v59 }
 0x58a   :  { %v13920_v11 = vpop.f32.mrb[48].mxu1 }
 0x58b   :  { %v13922_v21 = vpop.f32.mrb[49].mxu1 }
 0x58c   :  { %v2607_v16 = vadd.f32 %v13920_v11, %v13922_v21 }
 0x58e   :  { %v13926_v62 = vpop.f32.mrb[50].mxu1 }
 0x58f   :  { %v13928_v52 = vpop.f32.mrb[51].mxu1 }
 0x590   :  { %v2608_v12 = vadd.f32 %v2607_v16, %v13928_v52 }
 0x592   :  { %v13931_v9 = vpop.f32.mrb[52].mxu1  ;;  %v2609_v29 = vadd.f32 %v13926_v62, %v2608_v12 }
 0x593   :  { %v13934_v38 = vpop.f32.mrb[53].mxu1 }
 0x594   :  { %v2610_v23 = vadd.f32 %v2609_v29, %v13934_v38 }
 0x596   :  { %v13937_v46 = vpop.f32.mrb[54].mxu1  ;;  %v2611_v58 = vadd.f32 %v13931_v9, %v2610_v23 }
 0x597   :  { %v13940_v7 = vpop.f32.mrb[55].mxu1 }
 0x598   :  { %v2612_v32 = vadd.f32 %v2611_v58, %v13940_v7 }
 0x59a   :  { %v13943_v4 = vpop.f32.mrb[56].mxu1  ;;  %v2613_v41 = vadd.f32 %v13937_v46, %v2612_v32 }
 0x59b   :  { %v13946_v49 = vpop.f32.mrb[57].mxu1 }
 0x59c   :  { %v2614_v37 = vadd.f32 %v2613_v41, %v13946_v49 }
 0x59e   :  { %v13949_v50 = vpop.f32.mrb[58].mxu1  ;;  %v2615_v0 = vadd.f32 %v13943_v4, %v2614_v37 }
 0x59f   :  { %v13952_v24 = vpop.f32.mrb[59].mxu1 }
 0x5a0   :  { %v2616_v47 = vadd.f32 %v2615_v0, %v13952_v24 }
 0x5a2   :  { %v13955_v36 = vpop.f32.mrb[60].mxu1  ;;  %v2617_v55 = vadd.f32 %v13949_v50, %v2616_v47 }
 0x5a3   :  { %v13958_v39 = vpop.f32.mrb[61].mxu1 }
 0x5a4   :  { %v2618_v19 = vadd.f32 %v2617_v55, %v13958_v39 }
 0x5a6   :  { %v13961_v56 = vpop.f32.mrb[62].mxu1  ;;  %v2619_v6 = vadd.f32 %v13955_v36, %v2618_v19 }
 0x5a7   :  { %v13964_v26 = vpop.f32.mrb[63].mxu1 }
 0x5a8   :  { %v2620_v35 = vadd.f32 %v2619_v6, %v13964_v26 }
 0x5aa   :  { %v2621_v22 = vadd.f32 %v13961_v56, %v2620_v35 }
 0x5ac   :  { %v2622_v5 = vrot.slane %v2621_v22, 4 }
 0x5ae   :  { %v2623_v57 = vadd.f32 %v2622_v5, %v2621_v22 }
 0x5b0   :  { %v2624_v30 = vrot.slane %v2623_v57, 2 }
 0x5b2   :  { %v2625_v10 = vadd.f32 %v2624_v30, %v2623_v57 }
 0x5b4   :  { %v2626_v1 = vrot.slane %v2625_v10, 1 }
 0x5b6   :  { %v2627_v18 = vadd.f32 %v2626_v1, %v2625_v10 }
 0x5b8   :  { %v2628_v33 = vmul.f32 0.0078125, %v2627_v18 }
 0x5ba   :  { %v2629_v53 = vsub.f32 %v13922_v21, %v2628_v33  ;;  %v2630_v61 = vsub.f32 %v13920_v11, %v2628_v33  ;;  %v2631_v42 = vsub.f32 %v13928_v52, %v2628_v33  ;;  %v2632_v63 = vsub.f32 %v13926_v62, %v2628_v33 }
 0x5bb   :  { %v2633_v44 = vsub.f32 %v13934_v38, %v2628_v33  ;;  %v2634_v40 = vsub.f32 %v13931_v9, %v2628_v33  ;;  %v2635_v3 = vsub.f32 %v13940_v7, %v2628_v33  ;;  %v2636_v13 = vsub.f32 %v13937_v46, %v2628_v33 }
 0x5bc   :  { %v2637_v45 = vsub.f32 %v13946_v49, %v2628_v33  ;;  %v2638_v25 = vsub.f32 %v13943_v4, %v2628_v33  ;;  %v2639_v15 = vsub.f32 %v13952_v24, %v2628_v33  ;;  %v2640_v43 = vsub.f32 %v13949_v50, %v2628_v33 }
 0x5bd   :  { %v2641_v16 = vsub.f32 %v13958_v39, %v2628_v33  ;;  %v2642_v59 = vsub.f32 %v13955_v36, %v2628_v33  ;;  %v2643_v12 = vsub.f32 %v13964_v26, %v2628_v33  ;;  %v2644_v29 = vsub.f32 %v13961_v56, %v2628_v33 }
 0x5be   :  { %v2645_v23 = vmul.f32 %v2629_v53, %v2629_v53  ;;  %v2646_v58 = vmul.f32 %v2630_v61, %v2630_v61  ;;  %v2647_v32 = vmul.f32 %v2631_v42, %v2631_v42  ;;  %v2648_v37 = vmul.f32 %v2632_v63, %v2632_v63 }
 0x5bf   :  { %v2649_v47 = vmul.f32 %v2633_v44, %v2633_v44  ;;  %v2650_v19 = vmul.f32 %v2634_v40, %v2634_v40  ;;  %v2651_v35 = vmul.f32 %v2635_v3, %v2635_v3  ;;  %v2652_v5 = vmul.f32 %v2636_v13, %v2636_v13 }
 0x5c0   :  { %v2661_v41 = vadd.f32 %v2646_v58, %v2645_v23  ;;  %v2653_v30 = vmul.f32 %v2637_v45, %v2637_v45  ;;  %v2654_v1 = vmul.f32 %v2638_v25, %v2638_v25  ;;  %v2655_v17 = vmul.f32 %v2639_v15, %v2639_v15 }
 0x5c1   :  { %v2656_v53 = vmul.f32 %v2640_v43, %v2640_v43  ;;  %v2657_v42 = vmul.f32 %v2641_v16, %v2641_v16  ;;  %v2658_v63 = vmul.f32 %v2642_v59, %v2642_v59  ;;  %v2659_v44 = vmul.f32 %v2643_v12, %v2643_v12 }
 0x5c2   :  { %v2662_v0 = vadd.f32 %v2661_v41, %v2647_v32  ;;  %v2660_v40 = vmul.f32 %v2644_v29, %v2644_v29  ;;  %v13990_v12 = vsub.s32 5, %v13027_v34 }
 0x5c4   :  { %v2663_v55 = vadd.f32 %v2662_v0, %v2648_v37 }
 0x5c6   :  { %v2664_v6 = vadd.f32 %v2663_v55, %v2649_v47 }
 0x5c8   :  { %v2665_v22 = vadd.f32 %v2664_v6, %v2650_v19 }
 0x5ca   :  { %v2666_v57 = vadd.f32 %v2665_v22, %v2651_v35 }
 0x5cc   :  { %v2667_v10 = vadd.f32 %v2666_v57, %v2652_v5 }
 0x5ce   :  { %v2668_v18 = vadd.f32 %v2667_v10, %v2653_v30 }
 0x5d0   :  { %v2669_v31 = vadd.f32 %v2668_v18, %v2654_v1 }
 0x5d2   :  { %v2670_v61 = vadd.f32 %v2669_v31, %v2655_v17  ;;  %v13985_v31 = vsub.s32 4, %v13027_v34 }
 0x5d4   :  { %v2671_v23 = vadd.f32 %v2670_v61, %v2656_v53 }
 0x5d6   :  { %v2672_v58 = vadd.f32 %v2671_v23, %v2657_v42 }
 0x5d8   :  { %v2673_v32 = vadd.f32 %v2672_v58, %v2658_v63 }
 0x5da   :  { %v2674_v41 = vadd.f32 %v2673_v32, %v2659_v44 }
 0x5dc   :  { %v2675_v3 = vadd.f32 %v2674_v41, %v2660_v40 }
 0x5de   :  { %v2676_v37 = vrot.slane %v2675_v3, 4 }
 0x5e0   :  { %v2677_v13 = vadd.f32 %v2676_v37, %v2675_v3 }
 0x5e2   :  { %v2678_v0 = vrot.slane %v2677_v13, 2 }
 0x5e4   :  { %v2679_v45 = vadd.f32 %v2678_v0, %v2677_v13  ;;  %v16298_v0 = vld [vmem:[#allocation5_spill] sm:$0xff] }
 0x5e6   :  { %v2680_v47 = vrot.slane %v2679_v45, 1 }
 0x5e8   :  { %v2681_v25 = vadd.f32 %v2680_v47, %v2679_v45  ;;  %v16299_v47 = vld [vmem:[#allocation6_spill] sm:$0xff] }
 0x5ea   :  { %v2682_v55 = vmul.f32 0.0078125, %v2681_v25 }
 0x5ec   :  { %v2683_v15 = vadd.f32 1e-05, %v2682_v55  ;;  %v16300_v55 = vld [vmem:[#allocation7_spill] sm:$0xff] }
 0x5ee   :  { %12550 = vrsqrt.f32 %v2683_v15 }
 0x5f8   :  { %v12551_v17 = vpop.eup %12550 }
 0x5f9   :  { %v2685_v43 = vmul.f32 %v13798_v27, %v12551_v17  ;;  %v16301_v17 = vld [vmem:[#allocation8_spill] sm:$0xff] }
 0x5fb   :  { %v2686_v16 = vmul.f32 %v2685_v43, %v2628_v33  ;;  %v2694_v59 = vrot.slane %v2685_v43, %v13985_v31 }
 0x5fd   :  { %v2688_v29 = vrot.slane %v2686_v16, 7  ;;  %v2709_v19 = vmul.f32 %v2694_v59, %v13964_v26  ;;  %v2695_v6 = vmul.f32 %v2694_v59, %v13922_v21  ;;  %v2696_v35 = vmul.f32 %v13920_v11, %v2694_v59  ;;  %v16302_v16 = vld [vmem:[#allocation9_spill] sm:$0xff] }
 0x5fe   :  { %v2697_v22 = vmul.f32 %v2694_v59, %v13928_v52  ;;  %v2698_v5 = vmul.f32 %v13926_v62, %v2694_v59  ;;  %v2699_v57 = vmul.f32 %v2694_v59, %v13934_v38  ;;  %v2700_v33 = vmul.f32 %v13931_v9, %v2694_v59 }
 0x5ff   :  { %v2690_v30 = vsub.f32 %v13798_v27, %v2688_v29  ;;  %v2701_v34 = vmul.f32 %v2694_v59, %v13940_v7  ;;  %v2702_v10 = vmul.f32 %v13937_v46, %v2694_v59  ;;  %v2703_v26 = vmul.f32 %v2694_v59, %v13946_v49 }
 0x600   :  { %v2704_v21 = vmul.f32 %v13943_v4, %v2694_v59  ;;  %v2705_v11 = vmul.f32 %v2694_v59, %v13952_v24  ;;  %v2706_v52 = vmul.f32 %v13949_v50, %v2694_v59  ;;  %v2707_v62 = vmul.f32 %v2694_v59, %v13958_v39 }
 0x601   :  { %v2714_v38 = vrot.slane %v2690_v30, %v13990_v12  ;;  %v2708_v9 = vmul.f32 %v13955_v36, %v2694_v59  ;;  %v2710_v27 = vmul.f32 %v13961_v56, %v2694_v59 }
 0x603   :  { %v2729_v1 = vadd.f32 %v2714_v38, %v2709_v19  ;;  %v2715_v7 = vadd.f32 %v2714_v38, %v2695_v6  ;;  %v2716_v18 = vadd.f32 %v2714_v38, %v2696_v35  ;;  %v2717_v46 = vadd.f32 %v2714_v38, %v2697_v22 }
 0x604   :  { %v2718_v53 = vadd.f32 %v2714_v38, %v2698_v5  ;;  %v2719_v49 = vadd.f32 %v2714_v38, %v2699_v57  ;;  %v2720_v61 = vadd.f32 %v2714_v38, %v2700_v33  ;;  %v2721_v4 = vadd.f32 %v2714_v38, %v2701_v34 }
 0x605   :  { %v2731_v24 = vadd.f32 %v2715_v7, %v12870_v48  ;;  %v2732_v50 = vadd.f32 %v2716_v18, %v12882_v54  ;;  %v2733_v39 = vadd.f32 %v2717_v46, %v12893_v60  ;;  %v2722_v42 = vadd.f32 %v2714_v38, %v2702_v10  ;;  %v14018_v54 = vld [vmem:[#allocation2] sm:$0xff] }
 0x606   :  { %v2734_v23 = vadd.f32 %v2718_v53, %v12904_v2  ;;  %v2735_v36 = vadd.f32 %v2719_v49, %v12915_v8  ;;  %v2736_v56 = vadd.f32 %v2720_v61, %v12926_v14  ;;  %v2737_v63 = vadd.f32 %v2721_v4, %v12937_v20  ;;  %v16296_v14 = vld [vmem:[#allocation3_spill] sm:$0xff]  ;;  %v16297_v20 = vld [vmem:[#allocation4_spill] sm:$0xff] }
 0x607   :  { %v2747_v58 = vmax.f32 %v2731_v24, 0.0  ;;  %v2738_v44 = vadd.f32 %v2722_v42, %v12950_v28  ;;  %v2748_v32 = vmax.f32 %v2732_v50, 0.0  ;;  %v2723_v40 = vadd.f32 %v2714_v38, %v2703_v26  ;;  %v8012_v49 = vld [vmem:[%s16268_s3 + $0x520] sm:$0xff]  ;;  %v8013_v61 = vld [vmem:[%s16268_s3 + $0x528] sm:$0xff]  ;;  %v8014_v42 = vld [vmem:[%s16268_s3 + $0x530] sm:$0xff] }
 0x608   :  { %v2724_v48 = vadd.f32 %v2714_v38, %v2704_v21  ;;  %v2725_v41 = vadd.f32 %v2714_v38, %v2705_v11  ;;  %v2726_v60 = vadd.f32 %v2714_v38, %v2706_v52  ;;  %v2727_v2 = vadd.f32 %v2714_v38, %v2707_v62  ;;  %v8008_v11 = vld [vmem:[%s16268_s3 + $0x500] sm:$0xff]  ;;  %v8009_v52 = vld [vmem:[%s16268_s3 + $0x508] sm:$0xff] }
 0x609   :  { %2863 = vmatmul.mubr.f32.vlgmr.msra.gmra.mrb[64].mxu1 %v2747_v58  ;;  %v2728_v3 = vadd.f32 %v2714_v38, %v2708_v9  ;;  %v2745_v8 = vadd.f32 %v2729_v1, %v12986_v51  ;;  %v2739_v37 = vadd.f32 %v2723_v40, %v16296_v14  ;;  %v2730_v45 = vadd.f32 %v2714_v38, %v2710_v27  ;;  %v8010_v27 = vld [vmem:[%s16268_s3 + $0x510] sm:$0xff]  ;;  %v8011_v1 = vld [vmem:[%s16268_s3 + $0x518] sm:$0xff] }
 0x60a   :  { %2868 = vmatprep.mubr.f32.mxu1 %v14018_v54  ;;  %v2740_v13 = vadd.f32 %v2724_v48, %v16297_v20  ;;  %v2741_v28 = vadd.f32 %v2725_v41, %v16298_v0  ;;  %v2742_v25 = vadd.f32 %v2726_v60, %v16299_v47  ;;  %v2743_v15 = vadd.f32 %v2727_v2, %v16300_v55  ;;  %v8018_v2 = vld [vmem:[%s16268_s3 + $0x550] sm:$0xff]  ;;  %v8021_v0 = vld [vmem:[%s16268_s3 + $0x568] sm:$0xff] }
 0x60b   :  { %v2744_v43 = vadd.f32 %v2728_v3, %v16301_v17  ;;  %v2746_v59 = vadd.f32 %v2730_v45, %v16302_v16  ;;  %v2749_v29 = vmax.f32 %v2733_v39, 0.0  ;;  %v2750_v51 = vmax.f32 %v2734_v23, 0.0  ;;  %v8015_v23 = vld [vmem:[%s16268_s3 + $0x538] sm:$0xff]  ;;  %v8022_v55 = vld [vmem:[%s16268_s3 + $0x570] sm:$0xff]  ;;  %v3148_v16 = vld [vmem:[#allocation2 + $0x1] sm:$0xff] }
 0x60c   :  { %v2751_v19 = vmax.f32 %v2735_v36, 0.0  ;;  %v2752_v6 = vmax.f32 %v2736_v56, 0.0  ;;  %v2753_v35 = vmax.f32 %v2737_v63, 0.0  ;;  %v2754_v22 = vmax.f32 %v2738_v44, 0.0  ;;  %v8016_v44 = vld [vmem:[%s16268_s3 + $0x540] sm:$0xff]  ;;  %v8019_v3 = vld [vmem:[%s16268_s3 + $0x558] sm:$0xff] }
 0x60d   :  { %2869 = vmatmul.mubr.f32.gmra.mrb[66].mxu1 %v2748_v32  ;;  %v2755_v5 = vmax.f32 %v2739_v37, 0.0  ;;  %v2756_v57 = vmax.f32 %v2740_v13, 0.0  ;;  %v2757_v33 = vmax.f32 %v2741_v28, 0.0  ;;  %v2758_v30 = vmax.f32 %v2742_v25, 0.0  ;;  %v8017_v32 = vld [vmem:[%s16268_s3 + $0x548] sm:$0xff]  ;;  %v8020_v13 = vld [vmem:[%s16268_s3 + $0x560] sm:$0xff] }
 0x60e   :  { %2874 = vmatprep.mubr.f32.mxu1 %v14018_v54  ;;  %v2759_v34 = vmax.f32 %v2743_v15, 0.0  ;;  %v2760_v10 = vmax.f32 %v2744_v43, 0.0  ;;  %v2761_v26 = vmax.f32 %v2745_v8, 0.0  ;;  %v2762_v21 = vmax.f32 %v2746_v59, 0.0  ;;  %v8023_v15 = vld [vmem:[%s16268_s3 + $0x578] sm:$0xff]  ;;  %v7992_v59 = vld [vmem:[%s16268_s3 + $0x480] sm:$0xff] }
 0x60f   :  { %v11489_v62 = vpack.c.bf16 %v8009_v52, %v8008_v11  ;;  %v11493_v7 = vpack.c.bf16 %v8011_v1, %v8010_v27  ;;  %v11497_v4 = vpack.c.bf16 %v8013_v61, %v8012_v49  ;;  %v11501_v36 = vpack.c.bf16 %v8015_v23, %v8014_v42 }
 0x610   :  { %v11505_v40 = vpack.c.bf16 %v8017_v32, %v8016_v44  ;;  %v11509_v8 = vpack.c.bf16 %v8019_v3, %v8018_v2  ;;  %v11513_v28 = vpack.c.bf16 %v8021_v0, %v8020_v13  ;;  %v11517_v17 = vpack.c.bf16 %v8023_v15, %v8022_v55 }
 0x611   :  { %2875 = vmatmul.mubr.f32.gmra.mrb[68].mxu1 %v2749_v29  ;;  %11490 = vmatprep.subr.bf16.mxu1 %v11489_v62  ;;  %v7993_v29 = vld [vmem:[%s16268_s3 + $0x488] sm:$0xff] }
 0x612   :  { %2880 = vmatprep.mubr.f32.mxu1 %v14018_v54  ;;  %11492 = vmatpush3.bf16.msra.mxu1 %v11489_v62 }
 0x613   :  { %11494 = vmatprep.subr.bf16.mxu1 %v11493_v7 }
 0x615   :  { %2881 = vmatmul.mubr.f32.gmra.mrb[70].mxu1 %v2750_v51 }
 0x616   :  { %2886 = vmatprep.mubr.f32.mxu1 %v14018_v54  ;;  %11496 = vmatpush3.bf16.msra.mxu1 %v11493_v7 }
 0x617   :  { %11498 = vmatprep.subr.bf16.mxu1 %v11497_v4 }
 0x619   :  { %2887 = vmatmul.mubr.f32.gmra.mrb[72].mxu1 %v2751_v19 }
 0x61a   :  { %2892 = vmatprep.mubr.f32.mxu1 %v14018_v54  ;;  %11500 = vmatpush3.bf16.msra.mxu1 %v11497_v4 }
 0x61b   :  { %11502 = vmatprep.subr.bf16.mxu1 %v11501_v36 }
 0x61d   :  { %2893 = vmatmul.mubr.f32.gmra.mrb[74].mxu1 %v2752_v6  ;;  %v14137_v6 = vpack.c.bf16 %v7993_v29, %v7992_v59 }
 0x61e   :  { %2898 = vmatprep.mubr.f32.mxu1 %v14018_v54  ;;  %11504 = vmatpush3.bf16.msra.mxu1 %v11501_v36 }
 0x61f   :  { %11506 = vmatprep.subr.bf16.mxu1 %v11505_v40 }
 0x621   :  { %2899 = vmatmul.mubr.f32.gmra.mrb[76].mxu1 %v2753_v35 }
 0x622   :  { %2904 = vmatprep.mubr.f32.mxu1 %v14018_v54  ;;  %11508 = vmatpush3.bf16.msra.mxu1 %v11505_v40 }
 0x623   :  { %11510 = vmatprep.subr.bf16.mxu1 %v11509_v8 }
 0x625   :  { %2905 = vmatmul.mubr.f32.gmra.mrb[78].mxu1 %v2754_v22 }
 0x626   :  { %2910 = vmatprep.mubr.f32.mxu1 %v14018_v54  ;;  %11512 = vmatpush3.bf16.msra.mxu1 %v11509_v8 }
 0x627   :  { %11514 = vmatprep.subr.bf16.mxu1 %v11513_v28 }
 0x629   :  { %2911 = vmatmul.mubr.f32.gmra.mrb[80].mxu1 %v2755_v5 }
 0x62a   :  { %2916 = vmatprep.mubr.f32.mxu1 %v14018_v54  ;;  %11516 = vmatpush3.bf16.msra.mxu1 %v11513_v28 }
 0x62b   :  { %11518 = vmatprep.subr.bf16.mxu1 %v11517_v17 }
 0x62d   :  { %2917 = vmatmul.mubr.f32.gmra.mrb[82].mxu1 %v2756_v57 }
 0x62e   :  { %2922 = vmatprep.mubr.f32.mxu1 %v14018_v54  ;;  %11520 = vmatpush3.bf16.msra.mxu1 %v11517_v17 }
 0x62f   :  { %11522 = vmatprep.subr.bf16.mxu1 %v14137_v6 }
 0x631   :  { %2923 = vmatmul.mubr.f32.gmra.mrb[84].mxu1 %v2757_v33 }
 0x632   :  { %2928 = vmatprep.mubr.f32.mxu1 %v14018_v54 }
 0x635   :  { %2929 = vmatmul.mubr.f32.gmra.mrb[86].mxu1 %v2758_v30 }
 0x636   :  { %2934 = vmatprep.mubr.f32.mxu1 %v14018_v54 }
 0x639   :  { %2935 = vmatmul.mubr.f32.gmra.mrb[88].mxu1 %v2759_v34 }
 0x63a   :  { %2940 = vmatprep.mubr.f32.mxu1 %v14018_v54 }
 0x63d   :  { %2941 = vmatmul.mubr.f32.gmra.mrb[90].mxu1 %v2760_v10 }
 0x63e   :  { %2946 = vmatprep.mubr.f32.mxu1 %v14018_v54 }
 0x641   :  { %2947 = vmatmul.mubr.f32.gmra.mrb[92].mxu1 %v2761_v26 }
 0x642   :  { %2952 = vmatprep.mubr.f32.mxu1 %v14018_v54 }
 0x645   :  { %2953 = vmatmul.mubr.f32.gmra.mrb[94].mxu1 %v2762_v21 }
 0x646   :  { %9985 = vmatprep.mubr.f32.mxu1 %v3148_v16 }
 0x6dc   :  { %v14049_v38 = vpop.f32.mrb[64].mxu1 }
 0x6dd   :  { %v14051_v9 = vpop.f32.mrb[65].mxu1 }
 0x6e0   :  { %v14059_v18 = vpop.f32.mrb[66].mxu1 }
 0x6e1   :  { %v2959_v46 = vadd.f32 %v14059_v18, %v14049_v38  ;;  %v14063_v53 = vpop.f32.mrb[67].mxu1 }
 0x6e4   :  { %v14071_v24 = vpop.f32.mrb[68].mxu1 }
 0x6e5   :  { %v2960_v50 = vadd.f32 %v2959_v46, %v14071_v24  ;;  %v14074_v39 = vpop.f32.mrb[69].mxu1 }
 0x6e8   :  { %v14082_v56 = vpop.f32.mrb[70].mxu1 }
 0x6e9   :  { %v2961_v63 = vadd.f32 %v2960_v50, %v14082_v56  ;;  %v14085_v58 = vpop.f32.mrb[71].mxu1 }
 0x6ec   :  { %v14093_v48 = vpop.f32.mrb[72].mxu1 }
 0x6ed   :  { %v2962_v41 = vadd.f32 %v2961_v63, %v14093_v48  ;;  %v14096_v60 = vpop.f32.mrb[73].mxu1 }
 0x6f0   :  { %v14104_v14 = vpop.f32.mrb[74].mxu1 }
 0x6f1   :  { %v2963_v37 = vadd.f32 %v2962_v41, %v14104_v14  ;;  %v14107_v20 = vpop.f32.mrb[75].mxu1 }
 0x6f4   :  { %v14115_v45 = vpop.f32.mrb[76].mxu1 }
 0x6f5   :  { %v2964_v47 = vadd.f32 %v2963_v37, %v14115_v45  ;;  %v14118_v25 = vpop.f32.mrb[77].mxu1 }
 0x6f8   :  { %v14126_v43 = vpop.f32.mrb[78].mxu1 }
 0x6f9   :  { %v2965_v51 = vadd.f32 %v2964_v47, %v14126_v43  ;;  %v14135_v19 = vpop.f32.mrb[79].mxu1 }
 0x6fa   :  { %16303 = vst [vmem:[#allocation3_spill] sm:$0xff] %v14135_v19 }
 0x6fc   :  { %v14140_v35 = vpop.f32.mrb[80].mxu1 }
 0x6fd   :  { %v2966_v22 = vadd.f32 %v2965_v51, %v14140_v35  ;;  %v14143_v5 = vpop.f32.mrb[81].mxu1 }
 0x6fe   :  { %16304 = vst [vmem:[#allocation4_spill] sm:$0xff] %v14143_v5 }
 0x700   :  { %v14145_v57 = vpop.f32.mrb[82].mxu1 }
 0x701   :  { %v2967_v33 = vadd.f32 %v2966_v22, %v14145_v57  ;;  %v14148_v30 = vpop.f32.mrb[83].mxu1 }
 0x702   :  { %16305 = vst [vmem:[#allocation5_spill] sm:$0xff] %v14148_v30 }
 0x704   :  { %v14150_v34 = vpop.f32.mrb[84].mxu1 }
 0x705   :  { %v2968_v10 = vadd.f32 %v2967_v33, %v14150_v34  ;;  %v14153_v26 = vpop.f32.mrb[85].mxu1 }
 0x706   :  { %16306 = vst [vmem:[#allocation6_spill] sm:$0xff] %v14153_v26 }
 0x708   :  { %v14155_v21 = vpop.f32.mrb[86].mxu1 }
 0x709   :  { %v2969_v11 = vadd.f32 %v2968_v10, %v14155_v21  ;;  %v14158_v52 = vpop.f32.mrb[87].mxu1 }
 0x70a   :  { %16307 = vst [vmem:[#allocation7_spill] sm:$0xff] %v14158_v52 }
 0x70c   :  { %v14160_v62 = vpop.f32.mrb[88].mxu1 }
 0x70d   :  { %v2970_v27 = vadd.f32 %v2969_v11, %v14160_v62  ;;  %v14163_v1 = vpop.f32.mrb[89].mxu1 }
 0x70e   :  { %16308 = vst [vmem:[#allocation8_spill] sm:$0xff] %v14163_v1 }
 0x710   :  { %v14165_v7 = vpop.f32.mrb[90].mxu1 }
 0x711   :  { %v2971_v46 = vadd.f32 %v2970_v27, %v14165_v7  ;;  %v14168_v49 = vpop.f32.mrb[91].mxu1 }
 0x712   :  { %16309 = vst [vmem:[#allocation9_spill] sm:$0xff] %v14168_v49 }
 0x714   :  { %v14170_v61 = vpop.f32.mrb[92].mxu1 }
 0x715   :  { %v2972_v4 = vadd.f32 %v2971_v46, %v14170_v61  ;;  %v14173_v50 = vpop.f32.mrb[93].mxu1 }
 0x716   :  { %16310 = vst [vmem:[#allocation14_spill] sm:$0xff] %v14173_v50 }
 0x718   :  { %v14175_v42 = vpop.f32.mrb[94].mxu1 }
 0x719   :  { %v2973_v23 = vadd.f32 %v2972_v4, %v14175_v42  ;;  %v14178_v36 = vpop.f32.mrb[95].mxu1 }
 0x71a   :  { %16311 = vst [vmem:[#allocation15_spill] sm:$0xff] %v14178_v36 }
 0x71b   :  { %v2974_v63 = vrot.slane %v2973_v23, 4 }
 0x71d   :  { %v2975_v44 = vadd.f32 %v2974_v63, %v2973_v23 }
 0x71f   :  { %v2976_v32 = vrot.slane %v2975_v44, 2 }
 0x721   :  { %v2977_v40 = vadd.f32 %v2976_v32, %v2975_v44 }
 0x723   :  { %v2978_v41 = vrot.slane %v2977_v40, 1 }
 0x725   :  { %v2979_v2 = vadd.f32 %v2978_v41, %v2977_v40 }
 0x727   :  { %v2980_v3 = vmul.f32 0.0078125, %v2979_v2 }
 0x729   :  { %v2981_v8 = vsub.f32 %v14049_v38, %v2980_v3  ;;  %v2982_v37 = vsub.f32 %v14059_v18, %v2980_v3  ;;  %v2983_v13 = vsub.f32 %v14071_v24, %v2980_v3  ;;  %v2984_v0 = vsub.f32 %v14082_v56, %v2980_v3 }
 0x72a   :  { %v2985_v28 = vsub.f32 %v14093_v48, %v2980_v3  ;;  %v2986_v47 = vsub.f32 %v14104_v14, %v2980_v3  ;;  %v2987_v55 = vsub.f32 %v14115_v45, %v2980_v3  ;;  %v2988_v15 = vsub.f32 %v14126_v43, %v2980_v3 }
 0x72b   :  { %v2989_v17 = vsub.f32 %v14140_v35, %v2980_v3  ;;  %v2990_v16 = vsub.f32 %v14145_v57, %v2980_v3  ;;  %v2991_v59 = vsub.f32 %v14150_v34, %v2980_v3  ;;  %v2992_v29 = vsub.f32 %v14155_v21, %v2980_v3 }
 0x72c   :  { %v2993_v51 = vsub.f32 %v14160_v62, %v2980_v3  ;;  %v2994_v22 = vsub.f32 %v14165_v7, %v2980_v3  ;;  %v2995_v33 = vsub.f32 %v14170_v61, %v2980_v3  ;;  %v2996_v10 = vsub.f32 %v14175_v42, %v2980_v3 }
 0x72d   :  { %v2997_v11 = vmul.f32 %v2981_v8, %v2981_v8  ;;  %v2998_v27 = vmul.f32 %v2982_v37, %v2982_v37  ;;  %v2999_v46 = vmul.f32 %v2983_v13, %v2983_v13  ;;  %v3000_v23 = vmul.f32 %v2984_v0, %v2984_v0 }
 0x72e   :  { %v3001_v44 = vmul.f32 %v2985_v28, %v2985_v28  ;;  %v3002_v40 = vmul.f32 %v2986_v47, %v2986_v47  ;;  %v3003_v2 = vmul.f32 %v2987_v55, %v2987_v55  ;;  %v3004_v49 = vmul.f32 %v2988_v15, %v2988_v15 }
 0x72f   :  { %v3013_v4 = vadd.f32 %v2998_v27, %v2997_v11  ;;  %v3005_v52 = vmul.f32 %v2989_v17, %v2989_v17  ;;  %v3006_v30 = vmul.f32 %v2990_v16, %v2990_v16  ;;  %v3007_v50 = vmul.f32 %v2991_v59, %v2991_v59  ;;  %v16312_v16 = vld [vmem:[#allocation10_spill] sm:$0xff] }
 0x730   :  { %v3008_v8 = vmul.f32 %v2992_v29, %v2992_v29  ;;  %v3009_v13 = vmul.f32 %v2993_v51, %v2993_v51  ;;  %v3010_v0 = vmul.f32 %v2994_v22, %v2994_v22  ;;  %v3011_v28 = vmul.f32 %v2995_v33, %v2995_v33 }
 0x731   :  { %v3014_v63 = vadd.f32 %v3013_v4, %v2999_v46  ;;  %v3012_v47 = vmul.f32 %v2996_v10, %v2996_v10  ;;  %v7994_v10 = vld [vmem:[%s16268_s3 + $0x490] sm:$0xff] }
 0x733   :  { %v3015_v32 = vadd.f32 %v3014_v63, %v3000_v23 }
 0x735   :  { %v3016_v41 = vadd.f32 %v3015_v32, %v3001_v44 }
 0x737   :  { %v3017_v36 = vadd.f32 %v3016_v41, %v3002_v40 }
 0x739   :  { %v3018_v1 = vadd.f32 %v3017_v36, %v3003_v2 }
 0x73b   :  { %v3019_v26 = vadd.f32 %v3018_v1, %v3004_v49 }
 0x73d   :  { %v3020_v5 = vadd.f32 %v3019_v26, %v3005_v52 }
 0x73f   :  { %v3021_v19 = vadd.f32 %v3020_v5, %v3006_v30 }
 0x741   :  { %v3022_v37 = vadd.f32 %v3021_v19, %v3007_v50  ;;  %v7959_v19 = vld [vmem:[%s16269_s5 + $0x8] sm:$0xff] }
 0x743   :  { %v3023_v11 = vadd.f32 %v3022_v37, %v3008_v8  ;;  %v16313_v37 = vld [vmem:[#allocation11_spill] sm:$0xff] }
 0x745   :  { %v3024_v27 = vadd.f32 %v3023_v11, %v3009_v13 }
 0x747   :  { %v3025_v46 = vadd.f32 %v3024_v27, %v3010_v0 }
 0x749   :  { %v3026_v4 = vadd.f32 %v3025_v46, %v3011_v28 }
 0x74b   :  { %v3027_v55 = vadd.f32 %v3026_v4, %v3012_v47 }
 0x74d   :  { %v3028_v23 = vrot.slane %v3027_v55, 4 }
 0x74f   :  { %v3029_v15 = vadd.f32 %v3028_v23, %v3027_v55 }
 0x751   :  { %v3030_v36 = vrot.slane %v3029_v15, 2 }
 0x753   :  { %v3031_v17 = vadd.f32 %v3030_v36, %v3029_v15 }
 0x755   :  { %v3032_v1 = vrot.slane %v3031_v17, 1 }
 0x757   :  { %v3033_v49 = vadd.f32 %v3032_v1, %v3031_v17 }
 0x759   :  { %v3034_v26 = vmul.f32 0.0078125, %v3033_v49 }
 0x75b   :  { %v3035_v52 = vadd.f32 1e-05, %v3034_v26 }
 0x75d   :  { %12552 = vrsqrt.f32 %v3035_v52 }
 0x767   :  { %v12553_v5 = vpop.eup %12552 }
 0x768   :  { %v3037_v30 = vmul.f32 %v12553_v5, %v7959_v19 }
 0x76a   :  { %v3038_v50 = vmul.f32 %v3037_v30, %v2980_v3  ;;  %v3046_v59 = vrot.slane %v3037_v30, %v16312_v16 }
 0x76c   :  { %v3040_v29 = vrot.slane %v3038_v50, 7  ;;  %v3062_v51 = vmul.f32 %v3046_v59, %v14175_v42  ;;  %v3047_v22 = vmul.f32 %v3046_v59, %v14049_v38  ;;  %v3048_v33 = vmul.f32 %v3046_v59, %v14059_v18  ;;  %v7995_v42 = vld [vmem:[%s16268_s3 + $0x498] sm:$0xff]  ;;  %v7996_v38 = vld [vmem:[%s16268_s3 + $0x4a0] sm:$0xff]  ;;  %v7997_v18 = vld [vmem:[%s16268_s3 + $0x4a8] sm:$0xff] }
 0x76d   :  { %v3049_v63 = vmul.f32 %v3046_v59, %v14071_v24  ;;  %v3050_v44 = vmul.f32 %v3046_v59, %v14082_v56  ;;  %v3051_v32 = vmul.f32 %v3046_v59, %v14093_v48  ;;  %v3052_v3 = vmul.f32 %v3046_v59, %v14104_v14 }
 0x76e   :  { %v3042_v40 = vsub.f32 %v7959_v19, %v3040_v29  ;;  %v3053_v24 = vmul.f32 %v3046_v59, %v14115_v45  ;;  %v3055_v56 = vmul.f32 %v3046_v59, %v14140_v35  ;;  %v3056_v48 = vmul.f32 %v3046_v59, %v14145_v57  ;;  %v7998_v29 = vld [vmem:[%s16268_s3 + $0x4b0] sm:$0xff] }
 0x76f   :  { %v3057_v14 = vmul.f32 %v3046_v59, %v14150_v34  ;;  %v3058_v41 = vmul.f32 %v3046_v59, %v14155_v21  ;;  %v3059_v2 = vmul.f32 %v3046_v59, %v14160_v62  ;;  %v3060_v8 = vmul.f32 %v3046_v59, %v14165_v7 }
 0x770   :  { %v3066_v13 = vrot.slane %v3042_v40, %v16313_v37  ;;  %v3061_v11 = vmul.f32 %v3046_v59, %v14170_v61  ;;  %v3054_v0 = vmul.f32 %v3046_v59, %v14126_v43  ;;  %v11525_v27 = vpack.c.bf16 %v7995_v42, %v7994_v10  ;;  %v8001_v40 = vld [vmem:[%s16268_s3 + $0x4c8] sm:$0xff] }
 0x771   :  { %v11529_v45 = vpack.c.bf16 %v7997_v18, %v7996_v38  ;;  %v3156_v42 = vld [vmem:[#allocation2 + $0xa1] sm:$0xff]  ;;  %v8002_v18 = vld [vmem:[%s16268_s3 + $0x4d0] sm:$0xff] }
 0x772   :  { %v14229_v28 = vadd.f32 %v3066_v13, %v3062_v51  ;;  %v3067_v35 = vadd.f32 %v3066_v13, %v3047_v22  ;;  %v3068_v57 = vadd.f32 %v3066_v13, %v3048_v33  ;;  %v3069_v46 = vadd.f32 %v3066_v13, %v3049_v63  ;;  %v7999_v51 = vld [vmem:[%s16268_s3 + $0x4b8] sm:$0xff] }
 0x773   :  { %v3070_v34 = vadd.f32 %v3066_v13, %v3050_v44  ;;  %v3071_v47 = vadd.f32 %v3066_v13, %v3051_v32  ;;  %v3072_v21 = vadd.f32 %v3066_v13, %v3052_v3  ;;  %v3073_v4 = vadd.f32 %v3066_v13, %v3053_v24  ;;  %v8000_v3 = vld [vmem:[%s16268_s3 + $0x4c0] sm:$0xff]  ;;  %v8003_v24 = vld [vmem:[%s16268_s3 + $0x4d8] sm:$0xff] }
 0x774   :  { %v3098_v62 = vmax.f32 %v14229_v28, 0.0  ;;  %v14232_v7 = vmax.f32 %v3067_v35, 0.0  ;;  %v14234_v55 = vmax.f32 %v3068_v57, 0.0  ;;  %v14236_v61 = vmax.f32 %v3069_v46, 0.0  ;;  %v8027_v35 = vld [vmem:[%s16268_s3 + $0x598] sm:$0xff] }
 0x775   :  { %v14238_v43 = vmax.f32 %v3070_v34, 0.0  ;;  %v14240_v23 = vmax.f32 %v3071_v47, 0.0  ;;  %v14242_v15 = vmax.f32 %v3072_v21, 0.0  ;;  %v14244_v36 = vmax.f32 %v3073_v4, 0.0  ;;  %v8028_v34 = vld [vmem:[%s16268_s3 + $0x5a0] sm:$0xff]  ;;  %v8029_v47 = vld [vmem:[%s16268_s3 + $0x5a8] sm:$0xff] }
 0x776   :  { %3114 = vst [vmem:[#allocation2 + $0x121] sm:$0xff] %v3098_v62  ;;  %3099 = vst [vmem:[#allocation2 + $0x11] sm:$0xff] %v14232_v7  ;;  %9986 = vmatmul.mubr.f32.vlgmr.msra.gmra.mrb[96].mxu1 %v14232_v7  ;;  %v3075_v17 = vadd.f32 %v3066_v13, %v3055_v56  ;;  %v3076_v1 = vadd.f32 %v3066_v13, %v3056_v48  ;;  %v3077_v49 = vadd.f32 %v3066_v13, %v3057_v14  ;;  %v8004_v48 = vld [vmem:[%s16268_s3 + $0x4e0] sm:$0xff]  ;;  %v8005_v14 = vld [vmem:[%s16268_s3 + $0x4e8] sm:$0xff] }
 0x777   :  { %3100 = vst [vmem:[#allocation2 + $0x21] sm:$0xff] %v14234_v55  ;;  %3101 = vst [vmem:[#allocation2 + $0x31] sm:$0xff] %v14236_v61  ;;  %v3078_v26 = vadd.f32 %v3066_v13, %v3058_v41  ;;  %11524 = vmatpush3.bf16.msra.mxu1 %v14137_v6  ;;  %9988 = vmatprep.mubr.f32.mxu1 %v14234_v55  ;;  %v3079_v52 = vadd.f32 %v3066_v13, %v3059_v2  ;;  %v8006_v2 = vld [vmem:[%s16268_s3 + $0x4f0] sm:$0xff] }
 0x778   :  { %3102 = vst [vmem:[#allocation2 + $0x41] sm:$0xff] %v14238_v43  ;;  %3103 = vst [vmem:[#allocation2 + $0x51] sm:$0xff] %v14240_v23  ;;  %v3080_v19 = vadd.f32 %v3066_v13, %v3060_v8  ;;  %v3081_v5 = vadd.f32 %v3066_v13, %v3061_v11  ;;  %11526 = vmatprep.subr.bf16.mxu1 %v11525_v27  ;;  %v14258_v30 = vmax.f32 %v3075_v17, 0.0  ;;  %v14260_v50 = vmax.f32 %v3076_v1, 0.0  ;;  %v8007_v8 = vld [vmem:[%s16268_s3 + $0x4f8] sm:$0xff]  ;;  %v8024_v11 = vld [vmem:[%s16268_s3 + $0x580] sm:$0xff] }
 0x779   :  { %3104 = vst [vmem:[#allocation2 + $0x61] sm:$0xff] %v14242_v15  ;;  %3105 = vst [vmem:[#allocation2 + $0x71] sm:$0xff] %v14244_v36  ;;  %v14262_v59 = vmax.f32 %v3077_v49, 0.0  ;;  %v14264_v6 = vmax.f32 %v3078_v26, 0.0  ;;  %v14272_v22 = vmax.f32 %v3079_v52, 0.0  ;;  %v3074_v63 = vadd.f32 %v3066_v13, %v3054_v0  ;;  %v8025_v0 = vld [vmem:[%s16268_s3 + $0x588] sm:$0xff] }
 0x77a   :  { %v14274_v33 = vmax.f32 %v3080_v19, 0.0  ;;  %v14276_v10 = vmax.f32 %v3081_v5, 0.0  ;;  %9989 = vmatmul.mubr.f32.gmra.mrb[98].mxu1 %v14236_v61  ;;  %3107 = vst [vmem:[#allocation2 + $0xb1] sm:$0xff] %v14258_v30  ;;  %3108 = vst [vmem:[#allocation2 + $0xc1] sm:$0xff] %v14260_v50  ;;  %v11533_v32 = vpack.c.bf16 %v7999_v51, %v7998_v29  ;;  %v11537_v38 = vpack.c.bf16 %v8001_v40, %v8000_v3  ;;  %v8030_v1 = vld [vmem:[%s16268_s3 + $0x5b0] sm:$0xff]  ;;  %v8031_v49 = vld [vmem:[%s16268_s3 + $0x5b8] sm:$0xff] }
 0x77b   :  { %3109 = vst [vmem:[#allocation2 + $0xd1] sm:$0xff] %v14262_v59  ;;  %3110 = vst [vmem:[#allocation2 + $0xe1] sm:$0xff] %v14264_v6  ;;  %11528 = vmatpush3.bf16.msra.mxu1 %v11525_v27  ;;  %9991 = vmatprep.mubr.f32.mxu1 %v14238_v43  ;;  %v14287_v44 = vmax.f32 %v3074_v63, 0.0  ;;  %v11541_v56 = vpack.c.bf16 %v8003_v24, %v8002_v18  ;;  %v11545_v41 = vpack.c.bf16 %v8005_v14, %v8004_v48  ;;  %v8032_v5 = vld [vmem:[%s16268_s3 + $0x5c0] sm:$0xff]  ;;  %v8033_v29 = vld [vmem:[%s16268_s3 + $0x5c8] sm:$0xff] }
 0x77c   :  { %3111 = vst [vmem:[#allocation2 + $0xf1] sm:$0xff] %v14272_v22  ;;  %3112 = vst [vmem:[#allocation2 + $0x101] sm:$0xff] %v14274_v33  ;;  %11530 = vmatprep.subr.bf16.mxu1 %v11529_v45  ;;  %v11549_v13 = vpack.c.bf16 %v8007_v8, %v8006_v2  ;;  %v11553_v27 = vpack.c.bf16 %v8025_v0, %v8024_v11  ;;  %v11561_v4 = vpack.c.bf16 %v8029_v47, %v8028_v34  ;;  %v8034_v3 = vld [vmem:[%s16268_s3 + $0x5d0] sm:$0xff]  ;;  %v8035_v40 = vld [vmem:[%s16268_s3 + $0x5d8] sm:$0xff] }
 0x77d   :  { %3113 = vst [vmem:[#allocation2 + $0x111] sm:$0xff] %v14276_v10  ;;  %3106 = vst [vmem:[#allocation2 + $0x81] sm:$0xff] %v14287_v44  ;;  %v14337_v46 = vld [vmem:[#allocation2 + $0x10] sm:$0xff]  ;;  %v11565_v52 = vpack.c.bf16 %v8031_v49, %v8030_v1  ;;  %v11569_v63 = vpack.c.bf16 %v8033_v29, %v8032_v5  ;;  %v8036_v18 = vld [vmem:[%s16268_s3 + $0x5e0] sm:$0xff] }
 0x77e   :  { %9992 = vmatmul.mubr.f32.gmra.mrb[100].mxu1 %v14240_v23  ;;  %v14346_v21 = vld [vmem:[#allocation2 + $0x20] sm:$0xff]  ;;  %v14349_v17 = vld [vmem:[#allocation2 + $0x30] sm:$0xff]  ;;  %v8037_v24 = vld [vmem:[%s16268_s3 + $0x5e8] sm:$0xff] }
 0x77f   :  { %11532 = vmatpush3.bf16.msra.mxu1 %v11529_v45  ;;  %9994 = vmatprep.mubr.f32.mxu1 %v14242_v15  ;;  %v8026_v45 = vld [vmem:[%s16268_s3 + $0x590] sm:$0xff]  ;;  %v14358_v26 = vld [vmem:[#allocation2 + $0x40] sm:$0xff]  ;;  %v8041_v0 = vld [vmem:[%s16268_s3 + $0x608] sm:$0xff] }
 0x780   :  { %11534 = vmatprep.subr.bf16.mxu1 %v11533_v32  ;;  %v11557_v57 = vpack.c.bf16 %v8027_v35, %v8026_v45  ;;  %v14361_v19 = vld [vmem:[#allocation2 + $0x50] sm:$0xff]  ;;  %v14370_v51 = vld [vmem:[#allocation2 + $0x60] sm:$0xff]  ;;  %v8043_v47 = vld [vmem:[%s16268_s3 + $0x618] sm:$0xff] }
 0x781   :  { %v8038_v14 = vld [vmem:[%s16268_s3 + $0x5f0] sm:$0xff]  ;;  %v8040_v11 = vld [vmem:[%s16268_s3 + $0x600] sm:$0xff] }
 0x782   :  { %9995 = vmatmul.mubr.f32.gmra.mrb[102].mxu1 %v14244_v36  ;;  %v14395_v48 = vld [vmem:[#allocation2 + $0xd0] sm:$0xff]  ;;  %v14404_v2 = vld [vmem:[#allocation2 + $0xe0] sm:$0xff]  ;;  %v11585_v35 = vpack.c.bf16 %v8041_v0, %v8040_v11 }
 0x783   :  { %11536 = vmatpush3.bf16.msra.mxu1 %v11533_v32  ;;  %9997 = vmatprep.mubr.f32.mxu1 %v3156_v42  ;;  %v14373_v32 = vld [vmem:[#allocation2 + $0x70] sm:$0xff]  ;;  %v11573_v42 = vpack.c.bf16 %v8035_v40, %v8034_v3  ;;  %v3471_v45 = vld [vmem:[#allocation2 + $0x2] sm:$0xff]  ;;  %v8047_v40 = vld [vmem:[%s16268_s3 + $0x638] sm:$0xff] }
 0x784   :  { %11538 = vmatprep.subr.bf16.mxu1 %v11537_v38  ;;  %v8042_v34 = vld [vmem:[%s16268_s3 + $0x610] sm:$0xff]  ;;  %v8044_v49 = vld [vmem:[%s16268_s3 + $0x620] sm:$0xff] }
 0x785   :  { %v14428_v1 = vld [vmem:[#allocation2 + $0x12] sm:$0xff]  ;;  %v14437_v5 = vld [vmem:[#allocation2 + $0x22] sm:$0xff] }
 0x786   :  { %9998 = vmatmul.mubr.f32.gmra.mrb[104].mxu1 %v14258_v30  ;;  %v8046_v3 = vld [vmem:[%s16268_s3 + $0x630] sm:$0xff] }
 0x787   :  { %11540 = vmatpush3.bf16.msra.mxu1 %v11537_v38  ;;  %10000 = vmatprep.mubr.f32.mxu1 %v14260_v50  ;;  %v14383_v38 = vld [vmem:[#allocation2 + $0xb0] sm:$0xff] }
 0x788   :  { %11542 = vmatprep.subr.bf16.mxu1 %v11541_v56  ;;  %v14464_v0 = vld [vmem:[#allocation2 + $0x72] sm:$0xff] }
 0x78a   :  { %10001 = vmatmul.mubr.f32.gmra.mrb[106].mxu1 %v14262_v59 }
 0x78b   :  { %11544 = vmatpush3.bf16.msra.mxu1 %v11541_v56  ;;  %10003 = vmatprep.mubr.f32.mxu1 %v14264_v6  ;;  %v14392_v56 = vld [vmem:[#allocation2 + $0xc0] sm:$0xff] }
 0x78c   :  { %11546 = vmatprep.subr.bf16.mxu1 %v11545_v41 }
 0x78e   :  { %10004 = vmatmul.mubr.f32.gmra.mrb[108].mxu1 %v14272_v22 }
 0x78f   :  { %11548 = vmatpush3.bf16.msra.mxu1 %v11545_v41  ;;  %10006 = vmatprep.mubr.f32.mxu1 %v14274_v33  ;;  %v8039_v41 = vld [vmem:[%s16268_s3 + $0x5f8] sm:$0xff] }
 0x790   :  { %11550 = vmatprep.subr.bf16.mxu1 %v11549_v13  ;;  %v11581_v8 = vpack.c.bf16 %v8039_v41, %v8038_v14  ;;  %v8049_v14 = vld [vmem:[%s16268_s3 + $0x648] sm:$0xff] }
 0x791   :  { %v14461_v41 = vld [vmem:[#allocation2 + $0x62] sm:$0xff] }
 0x792   :  { %10007 = vmatmul.mubr.f32.gmra.mrb[110].mxu1 %v14276_v10 }
 0x793   :  { %11552 = vmatpush3.bf16.msra.mxu1 %v11549_v13  ;;  %10041 = vmatprep.mubr.f32.mxu1 %v14018_v54  ;;  %v14407_v13 = vld [vmem:[#allocation2 + $0xf0] sm:$0xff] }
 0x794   :  { %11554 = vmatprep.subr.bf16.mxu1 %v11553_v27 }
 0x796   :  { %10042 = vmatmul.mubr.f32.vlgmr.msra.gmra.mrb[96].mxu1 %v14337_v46 }
 0x797   :  { %11556 = vmatpush3.bf16.msra.mxu1 %v11553_v27  ;;  %10044 = vmatprep.mubr.f32.mxu1 %v14346_v21  ;;  %v14416_v27 = vld [vmem:[#allocation2 + $0x100] sm:$0xff] }
 0x798   :  { %11558 = vmatprep.subr.bf16.mxu1 %v11557_v57 }
 0x79a   :  { %10045 = vmatmul.mubr.f32.gmra.mrb[98].mxu1 %v14349_v17 }
 0x79b   :  { %11560 = vmatpush3.bf16.msra.mxu1 %v11557_v57  ;;  %10047 = vmatprep.mubr.f32.mxu1 %v14358_v26  ;;  %v14419_v57 = vld [vmem:[#allocation2 + $0x110] sm:$0xff] }
 0x79c   :  { %11562 = vmatprep.subr.bf16.mxu1 %v11561_v4 }
 0x79e   :  { %10048 = vmatmul.mubr.f32.gmra.mrb[100].mxu1 %v14361_v19 }
 0x79f   :  { %11564 = vmatpush3.bf16.msra.mxu1 %v11561_v4  ;;  %10050 = vmatprep.mubr.f32.mxu1 %v14370_v51  ;;  %v11589_v4 = vpack.c.bf16 %v8043_v47, %v8042_v34  ;;  %v14473_v47 = vld [vmem:[#allocation2 + $0xb2] sm:$0xff] }
 0x7a0   :  { %11566 = vmatprep.subr.bf16.mxu1 %v11565_v52 }
 0x7a2   :  { %10051 = vmatmul.mubr.f32.gmra.mrb[102].mxu1 %v14373_v32 }
 0x7a3   :  { %11568 = vmatpush3.bf16.msra.mxu1 %v11565_v52  ;;  %10053 = vmatprep.mubr.f32.mxu1 %v14018_v54  ;;  %v11577_v54 = vpack.c.bf16 %v8037_v24, %v8036_v18  ;;  %v8045_v52 = vld [vmem:[%s16268_s3 + $0x628] sm:$0xff]  ;;  %v11597_v18 = vpack.c.bf16 %v8047_v40, %v8046_v3  ;;  %v14452_v24 = vld [vmem:[#allocation2 + $0x52] sm:$0xff] }
 0x7a4   :  { %11570 = vmatprep.subr.bf16.mxu1 %v11569_v63  ;;  %v11593_v29 = vpack.c.bf16 %v8045_v52, %v8044_v49  ;;  %v8053_v49 = vld [vmem:[%s16268_s3 + $0x668] sm:$0xff]  ;;  %v14485_v3 = vld [vmem:[#allocation2 + $0xd2] sm:$0xff] }
 0x7a5   :  { %v14482_v52 = vld [vmem:[#allocation2 + $0xc2] sm:$0xff]  ;;  %v8054_v40 = vld [vmem:[%s16268_s3 + $0x670] sm:$0xff] }
 0x7a6   :  { %10054 = vmatmul.mubr.f32.gmra.mrb[104].mxu1 %v14383_v38 }
 0x7a7   :  { %11572 = vmatpush3.bf16.msra.mxu1 %v11569_v63  ;;  %10056 = vmatprep.mubr.f32.mxu1 %v14392_v56  ;;  %v14440_v63 = vld [vmem:[#allocation2 + $0x32] sm:$0xff] }
 0x7a8   :  { %11574 = vmatprep.subr.bf16.mxu1 %v11573_v42 }
 0x7aa   :  { %10057 = vmatmul.mubr.f32.gmra.mrb[106].mxu1 %v14395_v48 }
 0x7ab   :  { %11576 = vmatpush3.bf16.msra.mxu1 %v11573_v42  ;;  %10059 = vmatprep.mubr.f32.mxu1 %v14404_v2  ;;  %v14449_v42 = vld [vmem:[#allocation2 + $0x42] sm:$0xff] }
 0x7ac   :  { %11578 = vmatprep.subr.bf16.mxu1 %v11577_v54 }
 0x7ae   :  { %10060 = vmatmul.mubr.f32.gmra.mrb[108].mxu1 %v14407_v13 }
 0x7af   :  { %11580 = vmatpush3.bf16.msra.mxu1 %v11577_v54  ;;  %10062 = vmatprep.mubr.f32.mxu1 %v14416_v27  ;;  %v8048_v54 = vld [vmem:[%s16268_s3 + $0x640] sm:$0xff] }
 0x7b0   :  { %11582 = vmatprep.subr.bf16.mxu1 %v11581_v8  ;;  %v11601_v11 = vpack.c.bf16 %v8049_v14, %v8048_v54  ;;  %v14494_v54 = vld [vmem:[#allocation2 + $0xe2] sm:$0xff] }
 0x7b2   :  { %10063 = vmatmul.mubr.f32.gmra.mrb[110].mxu1 %v14419_v57 }
 0x7b3   :  { %11584 = vmatpush3.bf16.msra.mxu1 %v11581_v8  ;;  %10097 = vmatprep.mubr.f32.mxu1 %v3471_v45  ;;  %v3479_v8 = vld [vmem:[#allocation2 + $0xa2] sm:$0xff]  ;;  %v8050_v45 = vld [vmem:[%s16268_s3 + $0x650] sm:$0xff] }
 0x7b4   :  { %11586 = vmatprep.subr.bf16.mxu1 %v11585_v35 }
 0x7b6   :  { %10098 = vmatmul.mubr.f32.vlgmr.msra.gmra.mrb[96].mxu1 %v14428_v1 }
 0x7b7   :  { %11588 = vmatpush3.bf16.msra.mxu1 %v11585_v35  ;;  %10100 = vmatprep.mubr.f32.mxu1 %v14437_v5  ;;  %v8051_v35 = vld [vmem:[%s16268_s3 + $0x658] sm:$0xff] }
 0x7b8   :  { %11590 = vmatprep.subr.bf16.mxu1 %v11589_v4  ;;  %v11605_v34 = vpack.c.bf16 %v8051_v35, %v8050_v45  ;;  %v8057_v45 = vld [vmem:[%s16268_s3 + $0x688] sm:$0xff] }
 0x7b9   :  { %v14506_v35 = vld [vmem:[#allocation2 + $0x102] sm:$0xff] }
 0x7ba   :  { %10101 = vmatmul.mubr.f32.gmra.mrb[98].mxu1 %v14440_v63 }
 0x7bb   :  { %11592 = vmatpush3.bf16.msra.mxu1 %v11589_v4  ;;  %10103 = vmatprep.mubr.f32.mxu1 %v14449_v42  ;;  %v8052_v4 = vld [vmem:[%s16268_s3 + $0x660] sm:$0xff] }
 0x7bc   :  { %11594 = vmatprep.subr.bf16.mxu1 %v11593_v29 }
 0x7be   :  { %10104 = vmatmul.mubr.f32.gmra.mrb[100].mxu1 %v14452_v24 }
 0x7bf   :  { %11596 = vmatpush3.bf16.msra.mxu1 %v11593_v29  ;;  %10106 = vmatprep.mubr.f32.mxu1 %v14461_v41  ;;  %v11609_v29 = vpack.c.bf16 %v8053_v49, %v8052_v4  ;;  %v14509_v4 = vld [vmem:[#allocation2 + $0x112] sm:$0xff] }
 0x7c0   :  { %11598 = vmatprep.subr.bf16.mxu1 %v11597_v18  ;;  %v8058_v49 = vld [vmem:[%s16268_s3 + $0x690] sm:$0xff] }
 0x7c2   :  { %10107 = vmatmul.mubr.f32.gmra.mrb[102].mxu1 %v14464_v0 }
 0x7c3   :  { %11600 = vmatpush3.bf16.msra.mxu1 %v11597_v18  ;;  %10109 = vmatprep.mubr.f32.mxu1 %v3479_v8  ;;  %v8055_v18 = vld [vmem:[%s16268_s3 + $0x678] sm:$0xff] }
 0x7c4   :  { %11602 = vmatprep.subr.bf16.mxu1 %v11601_v11  ;;  %v11613_v14 = vpack.c.bf16 %v8055_v18, %v8054_v40  ;;  %v14497_v8 = vld [vmem:[#allocation2 + $0xf2] sm:$0xff]  ;;  %v8060_v18 = vld [vmem:[%s16268_s3 + $0x6a0] sm:$0xff] }
 0x7c5   :  { %v8059_v40 = vld [vmem:[%s16268_s3 + $0x698] sm:$0xff] }
 0x7c6   :  { %10110 = vmatmul.mubr.f32.gmra.mrb[104].mxu1 %v14473_v47 }
 0x7c7   :  { %11604 = vmatpush3.bf16.msra.mxu1 %v11601_v11  ;;  %10112 = vmatprep.mubr.f32.mxu1 %v14482_v52  ;;  %v8056_v11 = vld [vmem:[%s16268_s3 + $0x680] sm:$0xff] }
 0x7c8   :  { %11606 = vmatprep.subr.bf16.mxu1 %v11605_v34 }
 0x7ca   :  { %10113 = vmatmul.mubr.f32.gmra.mrb[106].mxu1 %v14485_v3 }
 0x7cb   :  { %11608 = vmatpush3.bf16.msra.mxu1 %v11605_v34  ;;  %10115 = vmatprep.mubr.f32.mxu1 %v14494_v54  ;;  %v11617_v34 = vpack.c.bf16 %v8057_v45, %v8056_v11  ;;  %v8061_v11 = vld [vmem:[%s16268_s3 + $0x6a8] sm:$0xff] }
 0x7cc   :  { %11610 = vmatprep.subr.bf16.mxu1 %v11609_v29  ;;  %v11625_v45 = vpack.c.bf16 %v8061_v11, %v8060_v18  ;;  %v8066_v11 = vld [vmem:[%s16268_s3 + $0x6d0] sm:$0xff] }
 0x7ce   :  { %10116 = vmatmul.mubr.f32.gmra.mrb[108].mxu1 %v14497_v8 }
 0x7cf   :  { %11612 = vmatpush3.bf16.msra.mxu1 %v11609_v29  ;;  %10118 = vmatprep.mubr.f32.mxu1 %v14506_v35  ;;  %v11621_v29 = vpack.c.bf16 %v8059_v40, %v8058_v49  ;;  %v8065_v40 = vld [vmem:[%s16268_s3 + $0x6c8] sm:$0xff] }
 0x7d0   :  { %11614 = vmatprep.subr.bf16.mxu1 %v11613_v14 }
 0x7d2   :  { %10119 = vmatmul.mubr.f32.gmra.mrb[110].mxu1 %v14509_v4 }
 0x7d3   :  { %11616 = vmatpush3.bf16.msra.mxu1 %v11613_v14  ;;  %10153 = vmatprep.mubr.f32.mxu1 %v14337_v46  ;;  %v8062_v46 = vld [vmem:[%s16268_s3 + $0x6b0] sm:$0xff]  ;;  %v8063_v14 = vld [vmem:[%s16268_s3 + $0x6b8] sm:$0xff] }
 0x7d4   :  { %11618 = vmatprep.subr.bf16.mxu1 %v11617_v34  ;;  %v11629_v49 = vpack.c.bf16 %v8063_v14, %v8062_v46  ;;  %v8067_v46 = vld [vmem:[%s16268_s3 + $0x6d8] sm:$0xff]  ;;  %v8068_v14 = vld [vmem:[%s16268_s3 + $0x6e0] sm:$0xff] }
 0x7d6   :  { %10154 = vmatmul.mubr.f32.vlgmr.msra.gmra.mrb[96].mxu1 %v14346_v21 }
 0x7d7   :  { %11620 = vmatpush3.bf16.msra.mxu1 %v11617_v34  ;;  %10156 = vmatprep.mubr.f32.mxu1 %v14349_v17  ;;  %v8064_v34 = vld [vmem:[%s16268_s3 + $0x6c0] sm:$0xff] }
 0x7d8   :  { %11622 = vmatprep.subr.bf16.mxu1 %v11621_v29  ;;  %v11633_v18 = vpack.c.bf16 %v8065_v40, %v8064_v34  ;;  %v8069_v34 = vld [vmem:[%s16268_s3 + $0x6e8] sm:$0xff] }
 0x7d9   :  { %v11641_v40 = vpack.c.bf16 %v8069_v34, %v8068_v14  ;;  %v8074_v34 = vld [vmem:[%s16268_s3 + $0x710] sm:$0xff] }
 0x7da   :  { %10157 = vmatmul.mubr.f32.gmra.mrb[98].mxu1 %v14358_v26 }
 0x7db   :  { %11624 = vmatpush3.bf16.msra.mxu1 %v11621_v29  ;;  %10159 = vmatprep.mubr.f32.mxu1 %v14361_v19  ;;  %v14543_v29 = vld [vmem:[#allocation2 + $0x80] sm:$0xff] }
 0x7dc   :  { %11626 = vmatprep.subr.bf16.mxu1 %v11625_v45 }
 0x7de   :  { %10160 = vmatmul.mubr.f32.gmra.mrb[100].mxu1 %v14370_v51 }
 0x7df   :  { %11628 = vmatpush3.bf16.msra.mxu1 %v11625_v45  ;;  %10162 = vmatprep.mubr.f32.mxu1 %v14373_v32  ;;  %v11637_v45 = vpack.c.bf16 %v8067_v46, %v8066_v11  ;;  %v8073_v46 = vld [vmem:[%s16268_s3 + $0x708] sm:$0xff] }
 0x7e0   :  { %11630 = vmatprep.subr.bf16.mxu1 %v11629_v49 }
 0x7e2   :  { %10163 = vmatmul.mubr.f32.gmra.mrb[102].mxu1 %v14543_v29 }
 0x7e3   :  { %11632 = vmatpush3.bf16.msra.mxu1 %v11629_v49  ;;  %10165 = vmatprep.mubr.f32.mxu1 %v14383_v38  ;;  %v8070_v38 = vld [vmem:[%s16268_s3 + $0x6f0] sm:$0xff]  ;;  %v8071_v49 = vld [vmem:[%s16268_s3 + $0x6f8] sm:$0xff] }
 0x7e4   :  { %11634 = vmatprep.subr.bf16.mxu1 %v11633_v18  ;;  %v11645_v11 = vpack.c.bf16 %v8071_v49, %v8070_v38  ;;  %v8075_v38 = vld [vmem:[%s16268_s3 + $0x718] sm:$0xff]  ;;  %v8076_v49 = vld [vmem:[%s16268_s3 + $0x720] sm:$0xff] }
 0x7e6   :  { %10166 = vmatmul.mubr.f32.gmra.mrb[104].mxu1 %v14392_v56 }
 0x7e7   :  { %11636 = vmatpush3.bf16.msra.mxu1 %v11633_v18  ;;  %10168 = vmatprep.mubr.f32.mxu1 %v14395_v48  ;;  %v8072_v18 = vld [vmem:[%s16268_s3 + $0x700] sm:$0xff] }
 0x7e8   :  { %11638 = vmatprep.subr.bf16.mxu1 %v11637_v45  ;;  %v11649_v14 = vpack.c.bf16 %v8073_v46, %v8072_v18  ;;  %v8077_v18 = vld [vmem:[%s16268_s3 + $0x728] sm:$0xff] }
 0x7e9   :  { %v11657_v46 = vpack.c.bf16 %v8077_v18, %v8076_v49  ;;  %v8087_v49 = vld [vmem:[%s16268_s3 + $0x778] sm:$0xff]  ;;  %v8089_v18 = vld [vmem:[%s16268_s3 + $0x788] sm:$0xff] }
 0x7ea   :  { %10169 = vmatmul.mubr.f32.gmra.mrb[106].mxu1 %v14404_v2 }
 0x7eb   :  { %11640 = vmatpush3.bf16.msra.mxu1 %v11637_v45  ;;  %10171 = vmatprep.mubr.f32.mxu1 %v14407_v13  ;;  %v14577_v45 = vld [vmem:[#allocation2 + $0x120] sm:$0xff] }
 0x7ec   :  { %11642 = vmatprep.subr.bf16.mxu1 %v11641_v40 }
 0x7ee   :  { %10172 = vmatmul.mubr.f32.gmra.mrb[108].mxu1 %v14416_v27 }
 0x7ef   :  { %11644 = vmatpush3.bf16.msra.mxu1 %v11641_v40  ;;  %10174 = vmatprep.mubr.f32.mxu1 %v14419_v57  ;;  %v11653_v40 = vpack.c.bf16 %v8075_v38, %v8074_v34  ;;  %v8083_v34 = vld [vmem:[%s16268_s3 + $0x758] sm:$0xff]  ;;  %v8085_v38 = vld [vmem:[%s16268_s3 + $0x768] sm:$0xff] }
 0x7f0   :  { %11646 = vmatprep.subr.bf16.mxu1 %v11645_v11 }
 0x7f2   :  { %10175 = vmatmul.mubr.f32.gmra.mrb[110].mxu1 %v14577_v45 }
 0x7f3   :  { %11648 = vmatpush3.bf16.msra.mxu1 %v11645_v11  ;;  %10209 = vmatprep.mubr.f32.mxu1 %v14232_v7  ;;  %v8078_v7 = vld [vmem:[%s16268_s3 + $0x730] sm:$0xff]  ;;  %v8079_v11 = vld [vmem:[%s16268_s3 + $0x738] sm:$0xff] }
 0x7f4   :  { %11650 = vmatprep.subr.bf16.mxu1 %v11649_v14 }
 0x7f6   :  { %10210 = vmatmul.mubr.f32.vlgmr.msra.gmra.mrb[96].mxu1 %v14234_v55  ;;  %v11661_v55 = vpack.c.bf16 %v8079_v11, %v8078_v7  ;;  %v8090_v7 = vld [vmem:[%s16268_s3 + $0x790] sm:$0xff]  ;;  %v8091_v11 = vld [vmem:[%s16268_s3 + $0x798] sm:$0xff] }
 0x7f7   :  { %11652 = vmatpush3.bf16.msra.mxu1 %v11649_v14  ;;  %10212 = vmatprep.mubr.f32.mxu1 %v14236_v61  ;;  %v8080_v61 = vld [vmem:[%s16268_s3 + $0x740] sm:$0xff]  ;;  %v8081_v14 = vld [vmem:[%s16268_s3 + $0x748] sm:$0xff] }
 0x7f8   :  { %11654 = vmatprep.subr.bf16.mxu1 %v11653_v40 }
 0x7fa   :  { %10213 = vmatmul.mubr.f32.gmra.mrb[98].mxu1 %v14238_v43  ;;  %v11665_v43 = vpack.c.bf16 %v8081_v14, %v8080_v61  ;;  %v8092_v61 = vld [vmem:[%s16268_s3 + $0x7a0] sm:$0xff]  ;;  %v8093_v14 = vld [vmem:[%s16268_s3 + $0x7a8] sm:$0xff] }
 0x7fb   :  { %11656 = vmatpush3.bf16.msra.mxu1 %v11653_v40  ;;  %10215 = vmatprep.mubr.f32.mxu1 %v14240_v23  ;;  %v8082_v23 = vld [vmem:[%s16268_s3 + $0x750] sm:$0xff]  ;;  %v11689_v28 = vpack.c.bf16 %v8093_v14, %v8092_v61  ;;  %v14710_v61 = vld [vmem:[#allocation2 + $0x122] sm:$0xff] }
 0x7fc   :  { %11658 = vmatprep.subr.bf16.mxu1 %v11657_v46  ;;  %v8106_v14 = vld [vmem:[%s16268_s3 + $0x810] sm:$0xff] }
 0x7fe   :  { %10216 = vmatmul.mubr.f32.gmra.mrb[100].mxu1 %v14242_v15  ;;  %v11669_v15 = vpack.c.bf16 %v8083_v34, %v8082_v23  ;;  %v8096_v23 = vld [vmem:[%s16268_s3 + $0x7c0] sm:$0xff]  ;;  %v8097_v34 = vld [vmem:[%s16268_s3 + $0x7c8] sm:$0xff] }
 0x7ff   :  { %11660 = vmatpush3.bf16.msra.mxu1 %v11657_v46  ;;  %10218 = vmatprep.mubr.f32.mxu1 %v14244_v36  ;;  %v8084_v36 = vld [vmem:[%s16268_s3 + $0x760] sm:$0xff] }
 0x800   :  { %11662 = vmatprep.subr.bf16.mxu1 %v11661_v55  ;;  %v11673_v40 = vpack.c.bf16 %v8085_v38, %v8084_v36  ;;  %v14676_v36 = vld [vmem:[#allocation2 + $0x82] sm:$0xff]  ;;  %v8098_v38 = vld [vmem:[%s16268_s3 + $0x7d0] sm:$0xff] }
 0x802   :  { %10219 = vmatmul.mubr.f32.gmra.mrb[102].mxu1 %v14287_v44 }
 0x803   :  { %11664 = vmatpush3.bf16.msra.mxu1 %v11661_v55  ;;  %10221 = vmatprep.mubr.f32.mxu1 %v14258_v30  ;;  %v8086_v30 = vld [vmem:[%s16268_s3 + $0x770] sm:$0xff]  ;;  %v11685_v55 = vpack.c.bf16 %v8091_v11, %v8090_v7  ;;  %v8104_v7 = vld [vmem:[%s16268_s3 + $0x800] sm:$0xff]  ;;  %v8105_v11 = vld [vmem:[%s16268_s3 + $0x808] sm:$0xff] }
 0x804   :  { %11666 = vmatprep.subr.bf16.mxu1 %v11665_v43 }
 0x806   :  { %10222 = vmatmul.mubr.f32.gmra.mrb[104].mxu1 %v14260_v50  ;;  %v11677_v50 = vpack.c.bf16 %v8087_v49, %v8086_v30  ;;  %v8100_v49 = vld [vmem:[%s16268_s3 + $0x7e0] sm:$0xff] }
 0x807   :  { %11668 = vmatpush3.bf16.msra.mxu1 %v11665_v43  ;;  %10224 = vmatprep.mubr.f32.mxu1 %v14262_v59  ;;  %v8088_v59 = vld [vmem:[%s16268_s3 + $0x780] sm:$0xff] }
 0x808   :  { %11670 = vmatprep.subr.bf16.mxu1 %v11669_v15  ;;  %v11681_v46 = vpack.c.bf16 %v8089_v18, %v8088_v59  ;;  %v8103_v18 = vld [vmem:[%s16268_s3 + $0x7f8] sm:$0xff] }
 0x80a   :  { %10225 = vmatmul.mubr.f32.gmra.mrb[106].mxu1 %v14264_v6 }
 0x80b   :  { %11672 = vmatpush3.bf16.msra.mxu1 %v11669_v15  ;;  %10227 = vmatprep.mubr.f32.mxu1 %v14272_v22  ;;  %v11697_v15 = vpack.c.bf16 %v8097_v34, %v8096_v23  ;;  %v8111_v34 = vld [vmem:[%s16268_s3 + $0x838] sm:$0xff] }
 0x80c   :  { %11674 = vmatprep.subr.bf16.mxu1 %v11673_v40 }
 0x80e   :  { %10228 = vmatmul.mubr.f32.gmra.mrb[108].mxu1 %v14274_v33 }
 0x80f   :  { %11676 = vmatpush3.bf16.msra.mxu1 %v11673_v40  ;;  %10230 = vmatprep.mubr.f32.mxu1 %v14276_v10  ;;  %v8099_v40 = vld [vmem:[%s16268_s3 + $0x7d8] sm:$0xff] }
 0x810   :  { %11678 = vmatprep.subr.bf16.mxu1 %v11677_v50  ;;  %v11701_v30 = vpack.c.bf16 %v8099_v40, %v8098_v38  ;;  %v8115_v38 = vld [vmem:[%s16268_s3 + $0x858] sm:$0xff]  ;;  %v14750_v40 = vld [vmem:[#allocation2] sm:$0xff] }
 0x812   :  { %10231 = vmatmul.mubr.f32.gmra.mrb[110].mxu1 %v3098_v62  ;;  %v8094_v62 = vld [vmem:[%s16268_s3 + $0x7b0] sm:$0xff] }
 0x813   :  { %11680 = vmatpush3.bf16.msra.mxu1 %v11677_v50  ;;  %10265 = vmatprep.mubr.f32.mxu1 %v14428_v1  ;;  %v8095_v1 = vld [vmem:[%s16268_s3 + $0x7b8] sm:$0xff]  ;;  %v8101_v50 = vld [vmem:[%s16268_s3 + $0x7e8] sm:$0xff] }
 0x814   :  { %11682 = vmatprep.subr.bf16.mxu1 %v11681_v46  ;;  %v11693_v43 = vpack.c.bf16 %v8095_v1, %v8094_v62  ;;  %v11705_v59 = vpack.c.bf16 %v8101_v50, %v8100_v49  ;;  %v8108_v1 = vld [vmem:[%s16268_s3 + $0x820] sm:$0xff]  ;;  %v8119_v50 = vld [vmem:[%s16268_s3 + $0x878] sm:$0xff] }
 0x816   :  { %10266 = vmatmul.mubr.f32.vlgmr.msra.gmra.mrb[96].mxu1 %v14437_v5 }
 0x817   :  { %11684 = vmatpush3.bf16.msra.mxu1 %v11681_v46  ;;  %10268 = vmatprep.mubr.f32.mxu1 %v14440_v63 }
 0x818   :  { %11686 = vmatprep.subr.bf16.mxu1 %v11685_v55 }
 0x81a   :  { %10269 = vmatmul.mubr.f32.gmra.mrb[98].mxu1 %v14449_v42 }
 0x81b   :  { %11688 = vmatpush3.bf16.msra.mxu1 %v11685_v55  ;;  %10271 = vmatprep.mubr.f32.mxu1 %v14452_v24  ;;  %v11713_v55 = vpack.c.bf16 %v8105_v11, %v8104_v7  ;;  %v8125_v7 = vld [vmem:[%s16268_s3 + $0x8a8] sm:$0xff] }
 0x81c   :  { %11690 = vmatprep.subr.bf16.mxu1 %v11689_v28  ;;  %v4443_v11 = vld [vmem:[#allocation2 + $0x41] sm:$0xff] }
 0x81e   :  { %10272 = vmatmul.mubr.f32.gmra.mrb[100].mxu1 %v14461_v41 }
 0x81f   :  { %11692 = vmatpush3.bf16.msra.mxu1 %v11689_v28  ;;  %10274 = vmatprep.mubr.f32.mxu1 %v14464_v0  ;;  %v8107_v28 = vld [vmem:[%s16268_s3 + $0x818] sm:$0xff] }
 0x820   :  { %11694 = vmatprep.subr.bf16.mxu1 %v11693_v43  ;;  %v11717_v62 = vpack.c.bf16 %v8107_v28, %v8106_v14  ;;  %v4444_v14 = vld [vmem:[#allocation2 + $0x51] sm:$0xff] }
 0x821   :  { %v8126_v28 = vld [vmem:[%s16268_s3 + $0x8b0] sm:$0xff] }
 0x822   :  { %10275 = vmatmul.mubr.f32.gmra.mrb[102].mxu1 %v14676_v36 }
 0x823   :  { %11696 = vmatpush3.bf16.msra.mxu1 %v11693_v43  ;;  %10277 = vmatprep.mubr.f32.mxu1 %v14473_v47  ;;  %v8102_v47 = vld [vmem:[%s16268_s3 + $0x7f0] sm:$0xff]  ;;  %v8109_v43 = vld [vmem:[%s16268_s3 + $0x828] sm:$0xff] }
 0x824   :  { %11698 = vmatprep.subr.bf16.mxu1 %v11697_v15  ;;  %v11709_v46 = vpack.c.bf16 %v8103_v18, %v8102_v47  ;;  %v11721_v23 = vpack.c.bf16 %v8109_v43, %v8108_v1  ;;  %v8123_v47 = vld [vmem:[%s16268_s3 + $0x898] sm:$0xff]  ;;  %v4441_v18 = vld [vmem:[#allocation2 + $0x21] sm:$0xff] }
 0x825   :  { %v4445_v1 = vld [vmem:[#allocation2 + $0x61] sm:$0xff] }
 0x826   :  { %10278 = vmatmul.mubr.f32.gmra.mrb[104].mxu1 %v14482_v52 }
 0x827   :  { %11700 = vmatpush3.bf16.msra.mxu1 %v11697_v15  ;;  %10280 = vmatprep.mubr.f32.mxu1 %v14485_v3  ;;  %v8113_v15 = vld [vmem:[%s16268_s3 + $0x848] sm:$0xff] }
 0x828   :  { %11702 = vmatprep.subr.bf16.mxu1 %v11701_v30 }
 0x82a   :  { %10281 = vmatmul.mubr.f32.gmra.mrb[106].mxu1 %v14494_v54 }
 0x82b   :  { %11704 = vmatpush3.bf16.msra.mxu1 %v11701_v30  ;;  %10283 = vmatprep.mubr.f32.mxu1 %v14497_v8  ;;  %v8117_v30 = vld [vmem:[%s16268_s3 + $0x868] sm:$0xff] }
 0x82c   :  { %11706 = vmatprep.subr.bf16.mxu1 %v11705_v59 }
 0x82e   :  { %10284 = vmatmul.mubr.f32.gmra.mrb[108].mxu1 %v14506_v35 }
 0x82f   :  { %11708 = vmatpush3.bf16.msra.mxu1 %v11705_v59  ;;  %10286 = vmatprep.mubr.f32.mxu1 %v14509_v4  ;;  %v8121_v59 = vld [vmem:[%s16268_s3 + $0x888] sm:$0xff] }
 0x830   :  { %11710 = vmatprep.subr.bf16.mxu1 %v11709_v46 }
 0x832   :  { %10287 = vmatmul.mubr.f32.gmra.mrb[110].mxu1 %v14710_v61 }
 0x833   :  { %11712 = vmatpush3.bf16.msra.mxu1 %v11709_v46  ;;  %10321 = vmatprep.mubr.f32.mxu1 %v14346_v21  ;;  %v8110_v21 = vld [vmem:[%s16268_s3 + $0x830] sm:$0xff] }
 0x834   :  { %11714 = vmatprep.subr.bf16.mxu1 %v11713_v55  ;;  %v4442_v46 = vld [vmem:[#allocation2 + $0x31] sm:$0xff] }
 0x836   :  { %10322 = vmatmul.mubr.f32.vlgmr.msra.gmra.mrb[96].mxu1 %v14349_v17  ;;  %v11725_v17 = vpack.c.bf16 %v8111_v34, %v8110_v21  ;;  %v8128_v21 = vld [vmem:[%s16268_s3 + $0x8c0] sm:$0xff]  ;;  %v8129_v34 = vld [vmem:[%s16268_s3 + $0x8c8] sm:$0xff] }
 0x837   :  { %11716 = vmatpush3.bf16.msra.mxu1 %v11713_v55  ;;  %10324 = vmatprep.mubr.f32.mxu1 %v14358_v26  ;;  %v8112_v26 = vld [vmem:[%s16268_s3 + $0x840] sm:$0xff] }
 0x838   :  { %11718 = vmatprep.subr.bf16.mxu1 %v11717_v62 }
 0x83a   :  { %10325 = vmatmul.mubr.f32.gmra.mrb[98].mxu1 %v14361_v19  ;;  %v11729_v19 = vpack.c.bf16 %v8113_v15, %v8112_v26  ;;  %v11761_v26 = vpack.c.bf16 %v8129_v34, %v8128_v21  ;;  %v8130_v15 = vld [vmem:[%s16268_s3 + $0x8d0] sm:$0xff] }
 0x83b   :  { %11720 = vmatpush3.bf16.msra.mxu1 %v11717_v62  ;;  %10327 = vmatprep.mubr.f32.mxu1 %v14370_v51  ;;  %v8114_v51 = vld [vmem:[%s16268_s3 + $0x850] sm:$0xff]  ;;  %v8127_v62 = vld [vmem:[%s16268_s3 + $0x8b8] sm:$0xff] }
 0x83c   :  { %11722 = vmatprep.subr.bf16.mxu1 %v11721_v23  ;;  %v11757_v43 = vpack.c.bf16 %v8127_v62, %v8126_v28 }
 0x83e   :  { %10328 = vmatmul.mubr.f32.gmra.mrb[100].mxu1 %v14373_v32  ;;  %v11733_v32 = vpack.c.bf16 %v8115_v38, %v8114_v51  ;;  %v4449_v51 = vld [vmem:[#allocation2 + $0xc1] sm:$0xff] }
 0x83f   :  { %11724 = vmatpush3.bf16.msra.mxu1 %v11721_v23  ;;  %10330 = vmatprep.mubr.f32.mxu1 %v14543_v29  ;;  %v8116_v29 = vld [vmem:[%s16268_s3 + $0x860] sm:$0xff]  ;;  %v4446_v23 = vld [vmem:[#allocation2 + $0x71] sm:$0xff] }
 0x840   :  { %11726 = vmatprep.subr.bf16.mxu1 %v11725_v17  ;;  %v11737_v49 = vpack.c.bf16 %v8117_v30, %v8116_v29  ;;  %v8133_v29 = vld [vmem:[%s16268_s3 + $0x8e8] sm:$0xff] }
 0x842   :  { %10331 = vmatmul.mubr.f32.gmra.mrb[102].mxu1 %v14750_v40 }
 0x843   :  { %11728 = vmatpush3.bf16.msra.mxu1 %v11725_v17  ;;  %10333 = vmatprep.mubr.f32.mxu1 %v14392_v56  ;;  %v8118_v56 = vld [vmem:[%s16268_s3 + $0x870] sm:$0xff] }
 0x844   :  { %11730 = vmatprep.subr.bf16.mxu1 %v11729_v19  ;;  %v4448_v17 = vld [vmem:[#allocation2 + $0x91] sm:$0xff] }
 0x846   :  { %10334 = vmatmul.mubr.f32.gmra.mrb[104].mxu1 %v14395_v48  ;;  %v11741_v48 = vpack.c.bf16 %v8119_v50, %v8118_v56  ;;  %v8135_v56 = vld [vmem:[%s16268_s3 + $0x8f8] sm:$0xff] }
 0x847   :  { %11732 = vmatpush3.bf16.msra.mxu1 %v11729_v19  ;;  %10336 = vmatprep.mubr.f32.mxu1 %v14404_v2  ;;  %v8120_v2 = vld [vmem:[%s16268_s3 + $0x880] sm:$0xff]  ;;  %v8131_v19 = vld [vmem:[%s16268_s3 + $0x8d8] sm:$0xff] }
 0x848   :  { %11734 = vmatprep.subr.bf16.mxu1 %v11733_v32  ;;  %v11765_v38 = vpack.c.bf16 %v8131_v19, %v8130_v15 }
 0x84a   :  { %10337 = vmatmul.mubr.f32.gmra.mrb[106].mxu1 %v14407_v13  ;;  %v11745_v13 = vpack.c.bf16 %v8121_v59, %v8120_v2  ;;  %v8147_v2 = vld [vmem:[%s16270_s4 + $0xd8] sm:$0xff] }
 0x84b   :  { %11736 = vmatpush3.bf16.msra.mxu1 %v11733_v32  ;;  %10339 = vmatprep.mubr.f32.mxu1 %v14416_v27  ;;  %v8122_v27 = vld [vmem:[%s16268_s3 + $0x890] sm:$0xff] }
 0x84c   :  { %11738 = vmatprep.subr.bf16.mxu1 %v11737_v49  ;;  %v4450_v32 = vld [vmem:[#allocation2 + $0xd1] sm:$0xff] }
 0x84e   :  { %10340 = vmatmul.mubr.f32.gmra.mrb[108].mxu1 %v14419_v57  ;;  %v11749_v57 = vpack.c.bf16 %v8123_v47, %v8122_v27  ;;  %v8149_v27 = vld [vmem:[%s16270_s4 + $0xe8] sm:$0xff] }
 0x84f   :  { %11740 = vmatpush3.bf16.msra.mxu1 %v11737_v49  ;;  %10342 = vmatprep.mubr.f32.mxu1 %v14577_v45  ;;  %v8124_v45 = vld [vmem:[%s16268_s3 + $0x8a0] sm:$0xff]  ;;  %v8134_v49 = vld [vmem:[%s16268_s3 + $0x8f0] sm:$0xff] }
 0x850   :  { %11742 = vmatprep.subr.bf16.mxu1 %v11741_v48  ;;  %v11753_v55 = vpack.c.bf16 %v8125_v7, %v8124_v45  ;;  %v11773_v50 = vpack.c.bf16 %v8135_v56, %v8134_v49 }
 0x852   :  { %10343 = vmatmul.mubr.f32.gmra.mrb[110].mxu1 %v14750_v40 }
 0x853   :  { %11744 = vmatpush3.bf16.msra.mxu1 %v11741_v48  ;;  %10377 = vmatprep.mubr.f32.mxu1 %v4441_v18  ;;  %v4456_v48 = vld [vmem:[#allocation2 + $0x131] sm:$0xff] }
 0x854   :  { %11746 = vmatprep.subr.bf16.mxu1 %v11745_v13  ;;  %v8150_v18 = vld [vmem:[%s16270_s4 + $0xf0] sm:$0xff] }
 0x856   :  { %10378 = vmatmul.mubr.f32.vlgmr.msra.gmra.mrb[96].mxu1 %v4442_v46 }
 0x857   :  { %11748 = vmatpush3.bf16.msra.mxu1 %v11745_v13  ;;  %10380 = vmatprep.mubr.f32.mxu1 %v4443_v11  ;;  %v8148_v13 = vld [vmem:[%s16270_s4 + $0xe0] sm:$0xff] }
 0x858   :  { %11750 = vmatprep.subr.bf16.mxu1 %v11749_v57  ;;  %v11801_v47 = vpack.c.bf16 %v8149_v27, %v8148_v13 }
 0x85a   :  { %10381 = vmatmul.mubr.f32.gmra.mrb[98].mxu1 %v4444_v14 }
 0x85b   :  { %11752 = vmatpush3.bf16.msra.mxu1 %v11749_v57  ;;  %10383 = vmatprep.mubr.f32.mxu1 %v4445_v1  ;;  %v8151_v57 = vld [vmem:[%s16270_s4 + $0xf8] sm:$0xff] }
 0x85c   :  { %11754 = vmatprep.subr.bf16.mxu1 %v11753_v55  ;;  %v11805_v11 = vpack.c.bf16 %v8151_v57, %v8150_v18 }
 0x85e   :  { %10384 = vmatmul.mubr.f32.gmra.mrb[100].mxu1 %v4446_v23 }
 0x85f   :  { %11756 = vmatpush3.bf16.msra.mxu1 %v11753_v55  ;;  %10386 = vmatprep.mubr.f32.mxu1 %v14287_v44  ;;  %v8132_v44 = vld [vmem:[%s16268_s3 + $0x8e0] sm:$0xff] }
 0x860   :  { %11758 = vmatprep.subr.bf16.mxu1 %v11757_v43  ;;  %v11769_v30 = vpack.c.bf16 %v8133_v29, %v8132_v44 }
 0x862   :  { %10387 = vmatmul.mubr.f32.gmra.mrb[102].mxu1 %v4448_v17 }
 0x863   :  { %11760 = vmatpush3.bf16.msra.mxu1 %v11757_v43  ;;  %10389 = vmatprep.mubr.f32.mxu1 %v4449_v51 }
 0x864   :  { %11762 = vmatprep.subr.bf16.mxu1 %v11761_v26 }
 0x866   :  { %10390 = vmatmul.mubr.f32.gmra.mrb[104].mxu1 %v4450_v32 }
 0x867   :  { %11764 = vmatpush3.bf16.msra.mxu1 %v11761_v26  ;;  %10392 = vmatprep.mubr.f32.mxu1 %v14264_v6  ;;  %v4455_v6 = vld [vmem:[#allocation2 + $0x121] sm:$0xff] }
 0x868   :  { %11766 = vmatprep.subr.bf16.mxu1 %v11765_v38 }
 0x86a   :  { %10393 = vmatmul.mubr.f32.gmra.mrb[106].mxu1 %v14272_v22  ;;  %v4642_v22 = vld [vmem:[#allocation2 + $0x92] sm:$0xff] }
 0x86b   :  { %11768 = vmatpush3.bf16.msra.mxu1 %v11765_v38  ;;  %10395 = vmatprep.mubr.f32.mxu1 %v14274_v33  ;;  %v4650_v33 = vld [vmem:[#allocation2 + $0x132] sm:$0xff] }
 0x86c   :  { %11770 = vmatprep.subr.bf16.mxu1 %v11769_v30 }
 0x86e   :  { %10396 = vmatmul.mubr.f32.gmra.mrb[108].mxu1 %v14276_v10  ;;  %v8136_v10 = vld [vmem:[%s16270_s4 + $0x80] sm:$0xff] }
 0x86f   :  { %11772 = vmatpush3.bf16.msra.mxu1 %v11769_v30  ;;  %10398 = vmatprep.mubr.f32.mxu1 %v4455_v6 }
 0x870   :  { %11774 = vmatprep.subr.bf16.mxu1 %v11773_v50 }
 0x872   :  { %10399 = vmatmul.mubr.f32.gmra.mrb[110].mxu1 %v4456_v48 }
 0x873   :  { %11776 = vmatpush3.bf16.msra.mxu1 %v11773_v50  ;;  %10433 = vmatprep.mubr.f32.mxu1 %v14437_v5  ;;  %v8137_v5 = vld [vmem:[%s16270_s4 + $0x88] sm:$0xff] }
 0x876   :  { %10434 = vmatmul.mubr.f32.vlgmr.msra.gmra.mrb[96].mxu1 %v14440_v63  ;;  %v11777_v63 = vpack.c.bf16 %v8137_v5, %v8136_v10 }
 0x877   :  { %10436 = vmatprep.mubr.f32.mxu1 %v14449_v42  ;;  %v8138_v42 = vld [vmem:[%s16270_s4 + $0x90] sm:$0xff] }
 0x878   :  { %11778 = vmatprep.subr.bf16.mxu0 %v11777_v63 }
 0x879   :  { %11780 = vmatpush3.bf16.msra.mxu0 %v11777_v63 }
 0x87a   :  { %10437 = vmatmul.mubr.f32.gmra.mrb[98].mxu1 %v14452_v24  ;;  %v8139_v24 = vld [vmem:[%s16270_s4 + $0x98] sm:$0xff] }
 0x87b   :  { %10439 = vmatprep.mubr.f32.mxu1 %v14461_v41  ;;  %v11781_v41 = vpack.c.bf16 %v8139_v24, %v8138_v42 }
 0x87d   :  { %11782 = vmatprep.subr.bf16.mxu0 %v11781_v41 }
 0x87e   :  { %10440 = vmatmul.mubr.f32.gmra.mrb[100].mxu1 %v14464_v0  ;;  %11784 = vmatpush3.bf16.msra.mxu0 %v11781_v41  ;;  %v8140_v0 = vld [vmem:[%s16270_s4 + $0xa0] sm:$0xff] }
 0x87f   :  { %10442 = vmatprep.mubr.f32.mxu1 %v14676_v36  ;;  %v8145_v36 = vld [vmem:[%s16270_s4 + $0xc8] sm:$0xff] }
 0x882   :  { %10443 = vmatmul.mubr.f32.gmra.mrb[102].mxu1 %v4642_v22 }
 0x883   :  { %10445 = vmatprep.mubr.f32.mxu1 %v14482_v52  ;;  %v8141_v52 = vld [vmem:[%s16270_s4 + $0xa8] sm:$0xff] }
 0x886   :  { %10446 = vmatmul.mubr.f32.gmra.mrb[104].mxu1 %v14485_v3  ;;  %v11785_v3 = vpack.c.bf16 %v8141_v52, %v8140_v0 }
 0x887   :  { %10448 = vmatprep.mubr.f32.mxu1 %v14494_v54  ;;  %v8142_v54 = vld [vmem:[%s16270_s4 + $0xb0] sm:$0xff] }
 0x888   :  { %11786 = vmatprep.subr.bf16.mxu0 %v11785_v3 }
 0x889   :  { %11788 = vmatpush3.bf16.msra.mxu0 %v11785_v3 }
 0x88a   :  { %10449 = vmatmul.mubr.f32.gmra.mrb[106].mxu1 %v14497_v8  ;;  %v8143_v8 = vld [vmem:[%s16270_s4 + $0xb8] sm:$0xff] }
 0x88b   :  { %10451 = vmatprep.mubr.f32.mxu1 %v14506_v35  ;;  %v11789_v35 = vpack.c.bf16 %v8143_v8, %v8142_v54 }
 0x88d   :  { %11790 = vmatprep.subr.bf16.mxu0 %v11789_v35 }
 0x88e   :  { %10452 = vmatmul.mubr.f32.gmra.mrb[108].mxu1 %v14509_v4  ;;  %11792 = vmatpush3.bf16.msra.mxu0 %v11789_v35  ;;  %v8144_v4 = vld [vmem:[%s16270_s4 + $0xc0] sm:$0xff] }
 0x88f   :  { %10454 = vmatprep.mubr.f32.mxu1 %v14710_v61  ;;  %v8146_v61 = vld [vmem:[%s16270_s4 + $0xd0] sm:$0xff] }
 0x890   :  { %v11797_v59 = vpack.c.bf16 %v8147_v2, %v8146_v61 }
 0x892   :  { %10455 = vmatmul.mubr.f32.gmra.mrb[110].mxu1 %v4650_v33 }
 0x893   :  { %5386 = vmatprep.mubr.f32.mxu1 %v14750_v40  ;;  %v11793_v40 = vpack.c.bf16 %v8145_v36, %v8144_v4 }
 0x895   :  { %11794 = vmatprep.subr.bf16.mxu0 %v11793_v40 }
 0x896   :  { %11796 = vmatpush3.bf16.msra.mxu0 %v11793_v40 }
 0x897   :  { %11798 = vmatprep.subr.bf16.mxu0 %v11797_v59 }
 0x89a   :  { %11800 = vmatpush3.bf16.msra.mxu0 %v11797_v59 }
 0x89b   :  { %11802 = vmatprep.subr.bf16.mxu0 %v11801_v47 }
 0x89e   :  { %11804 = vmatpush3.bf16.msra.mxu0 %v11801_v47 }
 0x89f   :  { %11806 = vmatprep.subr.bf16.mxu0 %v11805_v11 }
 0x8a2   :  { %11808 = vmatpush3.bf16.msra.mxu0 %v11805_v11 }
 0x949   :  { %v14889_v46 = vpop.f32.mrb[96].mxu1 }
 0x94a   :  { %v14891_v45 = vpop.f32.mrb[97].mxu1 }
 0x94b   :  { %v4829_v7 = vadd.f32 %v14889_v46, %v14891_v45 }
 0x94d   :  { %v14895_v55 = vpop.f32.mrb[98].mxu1 }
 0x94e   :  { %v14897_v14 = vpop.f32.mrb[99].mxu1 }
 0x94f   :  { %v4830_v28 = vadd.f32 %v4829_v7, %v14897_v14 }
 0x951   :  { %v14900_v62 = vpop.f32.mrb[100].mxu1  ;;  %v4831_v1 = vadd.f32 %v14895_v55, %v4830_v28 }
 0x952   :  { %v14903_v43 = vpop.f32.mrb[101].mxu1 }
 0x953   :  { %v4832_v23 = vadd.f32 %v4831_v1, %v14903_v43 }
 0x955   :  { %v14906_v21 = vpop.f32.mrb[102].mxu1  ;;  %v4833_v34 = vadd.f32 %v14900_v62, %v4832_v23 }
 0x956   :  { %v14909_v17 = vpop.f32.mrb[103].mxu1 }
 0x957   :  { %v4834_v26 = vadd.f32 %v4833_v34, %v14909_v17 }
 0x959   :  { %v14912_v15 = vpop.f32.mrb[104].mxu1  ;;  %v4835_v19 = vadd.f32 %v14906_v21, %v4834_v26 }
 0x95a   :  { %v14915_v51 = vpop.f32.mrb[105].mxu1 }
 0x95b   :  { %v4836_v38 = vadd.f32 %v4835_v19, %v14915_v51 }
 0x95d   :  { %v14918_v32 = vpop.f32.mrb[106].mxu1  ;;  %v4837_v44 = vadd.f32 %v14912_v15, %v4836_v38 }
 0x95e   :  { %v14921_v29 = vpop.f32.mrb[107].mxu1 }
 0x95f   :  { %v4838_v30 = vadd.f32 %v4837_v44, %v14921_v29 }
 0x961   :  { %v14924_v49 = vpop.f32.mrb[108].mxu1  ;;  %v4839_v56 = vadd.f32 %v14918_v32, %v4838_v30 }
 0x962   :  { %v14927_v50 = vpop.f32.mrb[109].mxu1 }
 0x963   :  { %v4840_v6 = vadd.f32 %v4839_v56, %v14927_v50 }
 0x965   :  { %v14930_v48 = vpop.f32.mrb[110].mxu1  ;;  %v4841_v22 = vadd.f32 %v14924_v49, %v4840_v6 }
 0x966   :  { %v14933_v33 = vpop.f32.mrb[111].mxu1 }
 0x967   :  { %v4842_v10 = vadd.f32 %v4841_v22, %v14933_v33 }
 0x969   :  { %v4843_v5 = vadd.f32 %v14930_v48, %v4842_v10 }
 0x96b   :  { %v4844_v63 = vrot.slane %v4843_v5, 4 }
 0x96d   :  { %v4845_v42 = vadd.f32 %v4844_v63, %v4843_v5 }
 0x96f   :  { %v4846_v24 = vrot.slane %v4845_v42, 2 }
 0x971   :  { %v4847_v41 = vadd.f32 %v4846_v24, %v4845_v42 }
 0x973   :  { %v4848_v0 = vrot.slane %v4847_v41, 1 }
 0x975   :  { %v4849_v52 = vadd.f32 %v4848_v0, %v4847_v41 }
 0x977   :  { %v4850_v3 = vmul.f32 0.0078125, %v4849_v52 }
 0x979   :  { %v4851_v54 = vsub.f32 %v14891_v45, %v4850_v3  ;;  %v4852_v8 = vsub.f32 %v14889_v46, %v4850_v3  ;;  %v4853_v35 = vsub.f32 %v14897_v14, %v4850_v3  ;;  %v4854_v4 = vsub.f32 %v14895_v55, %v4850_v3 }
 0x97a   :  { %v4855_v36 = vsub.f32 %v14903_v43, %v4850_v3  ;;  %v4856_v61 = vsub.f32 %v14900_v62, %v4850_v3  ;;  %v4857_v40 = vsub.f32 %v14909_v17, %v4850_v3  ;;  %v4858_v2 = vsub.f32 %v14906_v21, %v4850_v3 }
 0x97b   :  { %v4859_v59 = vsub.f32 %v14915_v51, %v4850_v3  ;;  %v4860_v13 = vsub.f32 %v14912_v15, %v4850_v3  ;;  %v4861_v27 = vsub.f32 %v14921_v29, %v4850_v3  ;;  %v4862_v47 = vsub.f32 %v14918_v32, %v4850_v3 }
 0x97c   :  { %v4863_v18 = vsub.f32 %v14927_v50, %v4850_v3  ;;  %v4864_v57 = vsub.f32 %v14924_v49, %v4850_v3  ;;  %v4865_v7 = vsub.f32 %v14933_v33, %v4850_v3  ;;  %v4866_v11 = vsub.f32 %v14930_v48, %v4850_v3 }
 0x97d   :  { %v4867_v28 = vmul.f32 %v4851_v54, %v4851_v54  ;;  %v4868_v1 = vmul.f32 %v4852_v8, %v4852_v8  ;;  %v4869_v23 = vmul.f32 %v4853_v35, %v4853_v35  ;;  %v4870_v26 = vmul.f32 %v4854_v4, %v4854_v4 }
 0x97e   :  { %v4871_v38 = vmul.f32 %v4855_v36, %v4855_v36  ;;  %v4872_v30 = vmul.f32 %v4856_v61, %v4856_v61  ;;  %v4873_v6 = vmul.f32 %v4857_v40, %v4857_v40  ;;  %v4874_v10 = vmul.f32 %v4858_v2, %v4858_v2 }
 0x97f   :  { %v4883_v34 = vadd.f32 %v4868_v1, %v4867_v28  ;;  %v4875_v63 = vmul.f32 %v4859_v59, %v4859_v59  ;;  %v4876_v24 = vmul.f32 %v4860_v13, %v4860_v13  ;;  %v4877_v0 = vmul.f32 %v4861_v27, %v4861_v27 }
 0x980   :  { %v4878_v54 = vmul.f32 %v4862_v47, %v4862_v47  ;;  %v4879_v35 = vmul.f32 %v4863_v18, %v4863_v18  ;;  %v4880_v4 = vmul.f32 %v4864_v57, %v4864_v57  ;;  %v4881_v36 = vmul.f32 %v4865_v7, %v4865_v7  ;;  %v14956_v18 = vld [vmem:[%s16269_s5 + $0x8] sm:$0xff] }
 0x981   :  { %v4884_v19 = vadd.f32 %v4883_v34, %v4869_v23  ;;  %v4882_v61 = vmul.f32 %v4866_v11, %v4866_v11  ;;  %v16314_v11 = vld [vmem:[#allocation12_spill] sm:$0xff] }
 0x983   :  { %v4885_v44 = vadd.f32 %v4884_v19, %v4870_v26 }
 0x985   :  { %v4886_v56 = vadd.f32 %v4885_v44, %v4871_v38 }
 0x987   :  { %v4887_v22 = vadd.f32 %v4886_v56, %v4872_v30 }
 0x989   :  { %v4888_v5 = vadd.f32 %v4887_v22, %v4873_v6 }
 0x98b   :  { %v4889_v42 = vadd.f32 %v4888_v5, %v4874_v10 }
 0x98d   :  { %v4890_v41 = vadd.f32 %v4889_v42, %v4875_v63 }
 0x98f   :  { %v4891_v52 = vadd.f32 %v4890_v41, %v4876_v24 }
 0x991   :  { %v4892_v8 = vadd.f32 %v4891_v52, %v4877_v0  ;;  %v16315_v52 = vld [vmem:[#allocation13_spill] sm:$0xff] }
 0x993   :  { %v4893_v28 = vadd.f32 %v4892_v8, %v4878_v54 }
 0x995   :  { %v4894_v1 = vadd.f32 %v4893_v28, %v4879_v35 }
 0x997   :  { %v4895_v23 = vadd.f32 %v4894_v1, %v4880_v4 }
 0x999   :  { %v4896_v34 = vadd.f32 %v4895_v23, %v4881_v36 }
 0x99b   :  { %v4897_v40 = vadd.f32 %v4896_v34, %v4882_v61 }
 0x99d   :  { %v4898_v26 = vrot.slane %v4897_v40, 4 }
 0x99f   :  { %v4899_v2 = vadd.f32 %v4898_v26, %v4897_v40 }
 0x9a1   :  { %v4900_v19 = vrot.slane %v4899_v2, 2 }
 0x9a3   :  { %v4901_v59 = vadd.f32 %v4900_v19, %v4899_v2 }
 0x9a5   :  { %v4902_v38 = vrot.slane %v4901_v59, 1 }
 0x9a7   :  { %v4903_v13 = vadd.f32 %v4902_v38, %v4901_v59 }
 0x9a9   :  { %v4904_v44 = vmul.f32 0.0078125, %v4903_v13 }
 0x9ab   :  { %v4905_v27 = vadd.f32 1e-05, %v4904_v44 }
 0x9ad   :  { %12554 = vrsqrt.f32 %v4905_v27 }
 0x9b7   :  { %v12555_v47 = vpop.eup %12554 }
 0x9b8   :  { %v4907_v57 = vmul.f32 %v14956_v18, %v12555_v47 }
 0x9ba   :  { %v4908_v7 = vmul.f32 %v4907_v57, %v4850_v3  ;;  %v4916_v30 = vrot.slane %v4907_v57, %v16314_v11 }
 0x9bc   :  { %v4910_v56 = vrot.slane %v4908_v7, 7  ;;  %v4931_v6 = vmul.f32 %v4916_v30, %v14933_v33  ;;  %v4917_v22 = vmul.f32 %v4916_v30, %v14891_v45  ;;  %v4918_v10 = vmul.f32 %v14889_v46, %v4916_v30 }
 0x9bd   :  { %v4919_v5 = vmul.f32 %v4916_v30, %v14897_v14  ;;  %v4920_v63 = vmul.f32 %v14895_v55, %v4916_v30  ;;  %v4921_v42 = vmul.f32 %v4916_v30, %v14903_v43  ;;  %v4922_v24 = vmul.f32 %v14900_v62, %v4916_v30 }
 0x9be   :  { %v4912_v41 = vsub.f32 %v14956_v18, %v4910_v56  ;;  %v4923_v3 = vmul.f32 %v4916_v30, %v14909_v17  ;;  %v4924_v0 = vmul.f32 %v14906_v21, %v4916_v30  ;;  %v4925_v33 = vmul.f32 %v4916_v30, %v14915_v51 }
 0x9bf   :  { %v4926_v45 = vmul.f32 %v14912_v15, %v4916_v30  ;;  %v4927_v46 = vmul.f32 %v4916_v30, %v14921_v29  ;;  %v4928_v14 = vmul.f32 %v14918_v32, %v4916_v30  ;;  %v4929_v55 = vmul.f32 %v4916_v30, %v14927_v50 }
 0x9c0   :  { %v4936_v43 = vrot.slane %v4912_v41, %v16315_v52  ;;  %v4930_v62 = vmul.f32 %v14924_v49, %v4916_v30  ;;  %v4932_v54 = vmul.f32 %v14930_v48, %v4916_v30  ;;  %v8160_v41 = vld [vmem:[%s16267_s2 + $0x238] sm:$0xff] }
 0x9c2   :  { %v4937_v8 = vadd.f32 %v4936_v43, %v4917_v22  ;;  %v4938_v17 = vadd.f32 %v4936_v43, %v4918_v10  ;;  %v4939_v35 = vadd.f32 %v4936_v43, %v4919_v5  ;;  %v4940_v21 = vadd.f32 %v4936_v43, %v4920_v63  ;;  %v8156_v22 = vld [vmem:[%s16267_s2 + $0x218] sm:$0xff]  ;;  %v8153_v5 = vld [vmem:[%s16267_s2 + $0x200] sm:$0xff]  ;;  %v8155_v63 = vld [vmem:[%s16267_s2 + $0x210] sm:$0xff] }
 0x9c3   :  { %v4941_v28 = vadd.f32 %v4936_v43, %v4921_v42  ;;  %v4942_v51 = vadd.f32 %v4936_v43, %v4922_v24  ;;  %v4943_v4 = vadd.f32 %v4936_v43, %v4923_v3  ;;  %v4944_v15 = vadd.f32 %v4936_v43, %v4924_v0  ;;  %v8158_v24 = vld [vmem:[%s16267_s2 + $0x228] sm:$0xff]  ;;  %v8157_v0 = vld [vmem:[%s16267_s2 + $0x220] sm:$0xff] }
 0x9c4   :  { %v4953_v1 = vmax.f32 %v4937_v8, 0.0  ;;  %v4954_v29 = vmax.f32 %v4938_v17, 0.0  ;;  %v4955_v36 = vmax.f32 %v4939_v35, 0.0  ;;  %v4945_v32 = vadd.f32 %v4936_v43, %v4925_v33  ;;  %v8159_v33 = vld [vmem:[%s16267_s2 + $0x230] sm:$0xff]  ;;  %v8166_v8 = vld [vmem:[%s16267_s2 + $0x268] sm:$0xff]  ;;  %v8168_v17 = vld [vmem:[%s16267_s2 + $0x278] sm:$0xff] }
 0x9c5   :  { %v4946_v50 = vadd.f32 %v4936_v43, %v4926_v45  ;;  %v4947_v23 = vadd.f32 %v4936_v43, %v4927_v46  ;;  %v4948_v61 = vadd.f32 %v4936_v43, %v4928_v14  ;;  %v4949_v49 = vadd.f32 %v4936_v43, %v4929_v55  ;;  %v8162_v46 = vld [vmem:[%s16267_s2 + $0x248] sm:$0xff]  ;;  %v8164_v14 = vld [vmem:[%s16267_s2 + $0x258] sm:$0xff] }
 0x9c6   :  { %10489 = vmatprep.mubr.f32.mxu0 %v4953_v1  ;;  %v4950_v34 = vadd.f32 %v4936_v43, %v4930_v62  ;;  %v4951_v48 = vadd.f32 %v4936_v43, %v4931_v6  ;;  %v4952_v40 = vadd.f32 %v4936_v43, %v4932_v54  ;;  %v4956_v26 = vmax.f32 %v4940_v21, 0.0  ;;  %v8154_v6 = vld [vmem:[%s16267_s2 + $0x208] sm:$0xff]  ;;  %v8161_v43 = vld [vmem:[%s16267_s2 + $0x240] sm:$0xff]  ;;  %v8163_v62 = vld [vmem:[%s16267_s2 + $0x250] sm:$0xff] }
 0x9c7   :  { %10490 = vmatmul.mubr.f32.vlgmr.msra.gmra.mrb[16].mxu0 %v4954_v29  ;;  %v4957_v2 = vmax.f32 %v4941_v28, 0.0  ;;  %v4958_v19 = vmax.f32 %v4942_v51, 0.0  ;;  %v4959_v59 = vmax.f32 %v4943_v4, 0.0  ;;  %v4960_v38 = vmax.f32 %v4944_v15, 0.0  ;;  %v8165_v21 = vld [vmem:[%s16267_s2 + $0x260] sm:$0xff]  ;;  %v8167_v28 = vld [vmem:[%s16267_s2 + $0x270] sm:$0xff] }
 0x9c8   :  { %10492 = vmatprep.mubr.f32.mxu0 %v4955_v36  ;;  %v4961_v13 = vmax.f32 %v4945_v32, 0.0  ;;  %v4962_v44 = vmax.f32 %v4946_v50, 0.0  ;;  %v4963_v27 = vmax.f32 %v4947_v23, 0.0  ;;  %v4964_v47 = vmax.f32 %v4948_v61, 0.0  ;;  %v8170_v4 = vld [vmem:[%s16267_s2 + $0x288] sm:$0xff]  ;;  %v8172_v15 = vld [vmem:[%s16267_s2 + $0x298] sm:$0xff] }
 0x9c9   :  { %v4965_v57 = vmax.f32 %v4949_v49, 0.0  ;;  %v4966_v7 = vmax.f32 %v4950_v34, 0.0  ;;  %v4967_v30 = vmax.f32 %v4951_v48, 0.0  ;;  %v4968_v56 = vmax.f32 %v4952_v40, 0.0  ;;  %v8169_v29 = vld [vmem:[%s16267_s2 + $0x280] sm:$0xff]  ;;  %v8171_v36 = vld [vmem:[%s16267_s2 + $0x290] sm:$0xff] }
 0x9ca   :  { %v11809_v10 = vpack.c.bf16 %v8156_v22, %v8154_v6  ;;  %v11811_v42 = vpack.c.bf16 %v8155_v63, %v8153_v5  ;;  %v11813_v3 = vpack.c.bf16 %v8160_v41, %v8158_v24  ;;  %v11815_v45 = vpack.c.bf16 %v8159_v33, %v8157_v0  ;;  %v8174_v50 = vld [vmem:[%s16267_s2 + $0x2a8] sm:$0xff]  ;;  %v8176_v23 = vld [vmem:[%s16267_s2 + $0x2b8] sm:$0xff]  ;;  %v8173_v49 = vld [vmem:[%s16267_s2 + $0x2a0] sm:$0xff] }
 0x9cb   :  { %10493 = vmatmul.mubr.f32.gmra.mrb[18].mxu0 %v4956_v26  ;;  %v11817_v55 = vpack.c.bf16 %v8164_v14, %v8162_v46  ;;  %v11819_v54 = vpack.c.bf16 %v8163_v62, %v8161_v43  ;;  %v11821_v35 = vpack.c.bf16 %v8168_v17, %v8166_v8  ;;  %v11823_v51 = vpack.c.bf16 %v8167_v28, %v8165_v21  ;;  %v8175_v34 = vld [vmem:[%s16267_s2 + $0x2b0] sm:$0xff]  ;;  %v8178_v48 = vld [vmem:[%s16267_s2 + $0x2c8] sm:$0xff]  ;;  %v8180_v26 = vld [vmem:[%s16267_s2 + $0x2d8] sm:$0xff] }
 0x9cc   :  { %10495 = vmatprep.mubr.f32.mxu0 %v4957_v2  ;;  %11810 = vmatprep.subr.bf16.mxu1 %v11809_v10  ;;  %v11825_v1 = vpack.c.bf16 %v8172_v15, %v8170_v4  ;;  %v11827_v32 = vpack.c.bf16 %v8171_v36, %v8169_v29  ;;  %v11829_v61 = vpack.c.bf16 %v8176_v23, %v8174_v50  ;;  %v8177_v2 = vld [vmem:[%s16267_s2 + $0x2c0] sm:$0xff] }
 0x9cd   :  { %11812 = vmatpush1.bf16.msra.mxu1 %v11811_v42  ;;  %v11831_v40 = vpack.c.bf16 %v8175_v34, %v8173_v49 }
 0x9ce   :  { %11814 = vmatprep.subr.bf16.mxu1 %v11813_v3 }
 0x9cf   :  { %10496 = vmatmul.mubr.f32.gmra.mrb[20].mxu0 %v4958_v19  ;;  %v8179_v19 = vld [vmem:[%s16267_s2 + $0x2d0] sm:$0xff] }
 0x9d0   :  { %10498 = vmatprep.mubr.f32.mxu0 %v4959_v59  ;;  %v11833_v59 = vpack.c.bf16 %v8180_v26, %v8178_v48 }
 0x9d1   :  { %11816 = vmatpush1.bf16.msra.mxu1 %v11815_v45 }
 0x9d2   :  { %11818 = vmatprep.subr.bf16.mxu1 %v11817_v55 }
 0x9d3   :  { %10499 = vmatmul.mubr.f32.gmra.mrb[22].mxu0 %v4960_v38  ;;  %v8182_v38 = vld [vmem:[%s16267_s2 + $0x2e8] sm:$0xff] }
 0x9d4   :  { %10501 = vmatprep.mubr.f32.mxu0 %v4961_v13  ;;  %v8184_v13 = vld [vmem:[%s16267_s2 + $0x2f8] sm:$0xff] }
 0x9d5   :  { %11820 = vmatpush1.bf16.msra.mxu1 %v11819_v54 }
 0x9d6   :  { %11822 = vmatprep.subr.bf16.mxu1 %v11821_v35 }
 0x9d7   :  { %10502 = vmatmul.mubr.f32.gmra.mrb[24].mxu0 %v4962_v44  ;;  %v11835_v44 = vpack.c.bf16 %v8179_v19, %v8177_v2 }
 0x9d8   :  { %10504 = vmatprep.mubr.f32.mxu0 %v4963_v27  ;;  %v11837_v27 = vpack.c.bf16 %v8184_v13, %v8182_v38 }
 0x9d9   :  { %11824 = vmatpush1.bf16.msra.mxu1 %v11823_v51 }
 0x9da   :  { %11826 = vmatprep.subr.bf16.mxu1 %v11825_v1 }
 0x9db   :  { %10505 = vmatmul.mubr.f32.gmra.mrb[26].mxu0 %v4964_v47  ;;  %v8181_v47 = vld [vmem:[%s16267_s2 + $0x2e0] sm:$0xff] }
 0x9dc   :  { %10507 = vmatprep.mubr.f32.mxu0 %v4965_v57  ;;  %v8183_v57 = vld [vmem:[%s16267_s2 + $0x2f0] sm:$0xff] }
 0x9dd   :  { %11828 = vmatpush1.bf16.msra.mxu1 %v11827_v32  ;;  %v11839_v6 = vpack.c.bf16 %v8183_v57, %v8181_v47 }
 0x9de   :  { %11830 = vmatprep.subr.bf16.mxu1 %v11829_v61 }
 0x9df   :  { %10508 = vmatmul.mubr.f32.gmra.mrb[28].mxu0 %v4966_v7 }
 0x9e0   :  { %10510 = vmatprep.mubr.f32.mxu0 %v4967_v30 }
 0x9e1   :  { %11832 = vmatpush1.bf16.msra.mxu1 %v11831_v40 }
 0x9e2   :  { %11834 = vmatprep.subr.bf16.mxu1 %v11833_v59 }
 0x9e3   :  { %10511 = vmatmul.mubr.f32.gmra.mrb[30].mxu0 %v4968_v56 }
 0x9e5   :  { %11836 = vmatpush1.bf16.msra.mxu1 %v11835_v44 }
 0x9e6   :  { %11838 = vmatprep.subr.bf16.mxu1 %v11837_v27 }
 0x9e9   :  { %11840 = vmatpush1.bf16.msra.mxu1 %v11839_v6 }
 0xa9a   :  { %v15074_v7 = vpop.f32.mrb[16].mxu0 }
 0xa9b   :  { %v15076_v30 = vpop.f32.mrb[17].mxu0 }
 0xa9c   :  { %v5131_v56 = vadd.f32 %v15074_v7, %v15076_v30 }
 0xa9e   :  { %v15080_v22 = vpop.f32.mrb[18].mxu0 }
 0xa9f   :  { %v15082_v10 = vpop.f32.mrb[19].mxu0 }
 0xaa0   :  { %v5132_v5 = vadd.f32 %v5131_v56, %v15082_v10 }
 0xaa2   :  { %v15085_v63 = vpop.f32.mrb[20].mxu0  ;;  %v5133_v42 = vadd.f32 %v15080_v22, %v5132_v5 }
 0xaa3   :  { %v15088_v24 = vpop.f32.mrb[21].mxu0 }
 0xaa4   :  { %v5134_v41 = vadd.f32 %v5133_v42, %v15088_v24 }
 0xaa6   :  { %v15091_v3 = vpop.f32.mrb[22].mxu0  ;;  %v5135_v0 = vadd.f32 %v15085_v63, %v5134_v41 }
 0xaa7   :  { %v15094_v33 = vpop.f32.mrb[23].mxu0 }
 0xaa8   :  { %v5136_v45 = vadd.f32 %v5135_v0, %v15094_v33 }
 0xaaa   :  { %v15097_v46 = vpop.f32.mrb[24].mxu0  ;;  %v5137_v14 = vadd.f32 %v15091_v3, %v5136_v45 }
 0xaab   :  { %v15100_v55 = vpop.f32.mrb[25].mxu0 }
 0xaac   :  { %v5138_v43 = vadd.f32 %v5137_v14, %v15100_v55 }
 0xaae   :  { %v15103_v62 = vpop.f32.mrb[26].mxu0  ;;  %v5139_v54 = vadd.f32 %v15097_v46, %v5138_v43 }
 0xaaf   :  { %v15106_v8 = vpop.f32.mrb[27].mxu0 }
 0xab0   :  { %v5140_v17 = vadd.f32 %v5139_v54, %v15106_v8 }
 0xab2   :  { %v15109_v35 = vpop.f32.mrb[28].mxu0  ;;  %v5141_v21 = vadd.f32 %v15103_v62, %v5140_v17 }
 0xab3   :  { %v15112_v28 = vpop.f32.mrb[29].mxu0 }
 0xab4   :  { %v5142_v51 = vadd.f32 %v5141_v21, %v15112_v28 }
 0xab6   :  { %v15115_v4 = vpop.f32.mrb[30].mxu0  ;;  %v5143_v15 = vadd.f32 %v15109_v35, %v5142_v51 }
 0xab7   :  { %v15118_v1 = vpop.f32.mrb[31].mxu0 }
 0xab8   :  { %v5144_v29 = vadd.f32 %v5143_v15, %v15118_v1 }
 0xaba   :  { %v5145_v36 = vadd.f32 %v15115_v4, %v5144_v29 }
 0xabc   :  { %v5146_v32 = vrot.slane %v5145_v36, 4 }
 0xabe   :  { %v5147_v50 = vadd.f32 %v5146_v32, %v5145_v36 }
 0xac0   :  { %v5148_v23 = vrot.slane %v5147_v50, 2 }
 0xac2   :  { %v5149_v61 = vadd.f32 %v5148_v23, %v5147_v50 }
 0xac4   :  { %v5150_v49 = vrot.slane %v5149_v61, 1 }
 0xac6   :  { %v5151_v34 = vadd.f32 %v5150_v49, %v5149_v61 }
 0xac8   :  { %v5152_v48 = vmul.f32 0.0078125, %v5151_v34 }
 0xaca   :  { %v5153_v40 = vsub.f32 %v15076_v30, %v5152_v48  ;;  %v5154_v26 = vsub.f32 %v15074_v7, %v5152_v48  ;;  %v5155_v2 = vsub.f32 %v15082_v10, %v5152_v48  ;;  %v5156_v19 = vsub.f32 %v15080_v22, %v5152_v48 }
 0xacb   :  { %v5157_v59 = vsub.f32 %v15088_v24, %v5152_v48  ;;  %v5158_v38 = vsub.f32 %v15085_v63, %v5152_v48  ;;  %v5159_v13 = vsub.f32 %v15094_v33, %v5152_v48  ;;  %v5160_v44 = vsub.f32 %v15091_v3, %v5152_v48 }
 0xacc   :  { %v5161_v27 = vsub.f32 %v15100_v55, %v5152_v48  ;;  %v5162_v47 = vsub.f32 %v15097_v46, %v5152_v48  ;;  %v5163_v57 = vsub.f32 %v15106_v8, %v5152_v48  ;;  %v5164_v56 = vsub.f32 %v15103_v62, %v5152_v48 }
 0xacd   :  { %v5165_v6 = vsub.f32 %v15112_v28, %v5152_v48  ;;  %v5166_v5 = vsub.f32 %v15109_v35, %v5152_v48  ;;  %v5167_v42 = vsub.f32 %v15118_v1, %v5152_v48  ;;  %v5168_v41 = vsub.f32 %v15115_v4, %v5152_v48 }
 0xace   :  { %v5169_v0 = vmul.f32 %v5153_v40, %v5153_v40  ;;  %v5170_v45 = vmul.f32 %v5154_v26, %v5154_v26  ;;  %v5171_v14 = vmul.f32 %v5155_v2, %v5155_v2  ;;  %v5172_v54 = vmul.f32 %v5156_v19, %v5156_v19 }
 0xacf   :  { %v5173_v21 = vmul.f32 %v5157_v59, %v5157_v59  ;;  %v5174_v15 = vmul.f32 %v5158_v38, %v5158_v38  ;;  %v5175_v36 = vmul.f32 %v5159_v13, %v5159_v13  ;;  %v5176_v50 = vmul.f32 %v5160_v44, %v5160_v44 }
 0xad0   :  { %v5185_v43 = vadd.f32 %v5170_v45, %v5169_v0  ;;  %v5177_v61 = vmul.f32 %v5161_v27, %v5161_v27  ;;  %v5178_v34 = vmul.f32 %v5162_v47, %v5162_v47  ;;  %v5179_v11 = vmul.f32 %v5163_v57, %v5163_v57 }
 0xad1   :  { %v5180_v40 = vmul.f32 %v5164_v56, %v5164_v56  ;;  %v5181_v2 = vmul.f32 %v5165_v6, %v5165_v6  ;;  %v5182_v19 = vmul.f32 %v5166_v5, %v5166_v5  ;;  %v5183_v59 = vmul.f32 %v5167_v42, %v5167_v42 }
 0xad2   :  { %v5186_v17 = vadd.f32 %v5185_v43, %v5171_v14  ;;  %v5184_v38 = vmul.f32 %v5168_v41, %v5168_v41 }
 0xad4   :  { %v5187_v51 = vadd.f32 %v5186_v17, %v5172_v54 }
 0xad6   :  { %v5188_v29 = vadd.f32 %v5187_v51, %v5173_v21 }
 0xad8   :  { %v5189_v32 = vadd.f32 %v5188_v29, %v5174_v15 }
 0xada   :  { %v5190_v23 = vadd.f32 %v5189_v32, %v5175_v36 }
 0xadc   :  { %v5191_v49 = vadd.f32 %v5190_v23, %v5176_v50 }
 0xade   :  { %v5192_v52 = vadd.f32 %v5191_v49, %v5177_v61 }
 0xae0   :  { %v5193_v37 = vadd.f32 %v5192_v52, %v5178_v34 }
 0xae2   :  { %v5194_v26 = vadd.f32 %v5193_v37, %v5179_v11 }
 0xae4   :  { %v5195_v0 = vadd.f32 %v5194_v26, %v5180_v40 }
 0xae6   :  { %v5196_v45 = vadd.f32 %v5195_v0, %v5181_v2 }
 0xae8   :  { %v5197_v14 = vadd.f32 %v5196_v45, %v5182_v19  ;;  %v16316_v45 = vld [vmem:[#allocation3_spill] sm:$0xff] }
 0xaea   :  { %v5198_v43 = vadd.f32 %v5197_v14, %v5183_v59 }
 0xaec   :  { %v5199_v13 = vadd.f32 %v5198_v43, %v5184_v38 }
 0xaee   :  { %v5200_v54 = vrot.slane %v5199_v13, 4 }
 0xaf0   :  { %v5201_v44 = vadd.f32 %v5200_v54, %v5199_v13 }
 0xaf2   :  { %v5202_v17 = vrot.slane %v5201_v44, 2 }
 0xaf4   :  { %v5203_v27 = vadd.f32 %v5202_v17, %v5201_v44 }
 0xaf6   :  { %v5204_v21 = vrot.slane %v5203_v27, 1 }
 0xaf8   :  { %v5205_v47 = vadd.f32 %v5204_v21, %v5203_v27  ;;  %v16320_v27 = vld [vmem:[#allocation6_spill] sm:$0xff] }
 0xafa   :  { %v5206_v51 = vmul.f32 0.0078125, %v5205_v47 }
 0xafc   :  { %v5207_v57 = vadd.f32 1e-05, %v5206_v51  ;;  %v16321_v51 = vld [vmem:[#allocation7_spill] sm:$0xff] }
 0xafe   :  { %12556 = vrsqrt.f32 %v5207_v57 }
 0xb08   :  { %v12557_v52 = vpop.eup %12556 }
 0xb09   :  { %v5209_v37 = vmul.f32 %v14956_v18, %v12557_v52  ;;  %v16322_v52 = vld [vmem:[#allocation8_spill] sm:$0xff] }
 0xb0b   :  { %v5210_v11 = vmul.f32 %v5209_v37, %v5152_v48  ;;  %v5218_v56 = vrot.slane %v5209_v37, %v13985_v31 }
 0xb0d   :  { %v5212_v6 = vrot.slane %v5210_v11, 7  ;;  %v5233_v5 = vmul.f32 %v5218_v56, %v15118_v1  ;;  %v5219_v42 = vmul.f32 %v5218_v56, %v15076_v30  ;;  %v5220_v41 = vmul.f32 %v15074_v7, %v5218_v56  ;;  %v16323_v11 = vld [vmem:[#allocation9_spill] sm:$0xff] }
 0xb0e   :  { %v5221_v15 = vmul.f32 %v5218_v56, %v15082_v10  ;;  %v5222_v29 = vmul.f32 %v15080_v22, %v5218_v56  ;;  %v5223_v36 = vmul.f32 %v5218_v56, %v15088_v24  ;;  %v5224_v32 = vmul.f32 %v15085_v63, %v5218_v56 }
 0xb0f   :  { %v5214_v50 = vsub.f32 %v14956_v18, %v5212_v6  ;;  %v5225_v48 = vmul.f32 %v5218_v56, %v15094_v33  ;;  %v5226_v23 = vmul.f32 %v15091_v3, %v5218_v56  ;;  %v5227_v1 = vmul.f32 %v5218_v56, %v15100_v55  ;;  %v16324_v6 = vld [vmem:[#allocation15_spill] sm:$0xff] }
 0xb10   :  { %v5228_v30 = vmul.f32 %v15097_v46, %v5218_v56  ;;  %v5229_v7 = vmul.f32 %v5218_v56, %v15106_v8  ;;  %v5230_v10 = vmul.f32 %v15103_v62, %v5218_v56  ;;  %v5231_v22 = vmul.f32 %v5218_v56, %v15112_v28 }
 0xb11   :  { %v5238_v24 = vrot.slane %v5214_v50, %v13990_v12  ;;  %v5232_v63 = vmul.f32 %v15109_v35, %v5218_v56  ;;  %v5234_v18 = vmul.f32 %v15115_v4, %v5218_v56 }
 0xb13   :  { %v5253_v61 = vadd.f32 %v5238_v24, %v5233_v5  ;;  %v5239_v33 = vadd.f32 %v5238_v24, %v5219_v42  ;;  %v5240_v49 = vadd.f32 %v5238_v24, %v5220_v41  ;;  %v5241_v3 = vadd.f32 %v5238_v24, %v5221_v15 }
 0xb14   :  { %v5242_v34 = vadd.f32 %v5238_v24, %v5222_v29  ;;  %v5243_v55 = vadd.f32 %v5238_v24, %v5223_v36  ;;  %v5244_v40 = vadd.f32 %v5238_v24, %v5224_v32  ;;  %v5245_v46 = vadd.f32 %v5238_v24, %v5225_v48 }
 0xb15   :  { %v5255_v8 = vadd.f32 %v5239_v33, %v14051_v9  ;;  %v5256_v62 = vadd.f32 %v5240_v49, %v14063_v53  ;;  %v5257_v28 = vadd.f32 %v5241_v3, %v14074_v39  ;;  %v5246_v26 = vadd.f32 %v5238_v24, %v5226_v23  ;;  %v15166_v53 = vld [vmem:[#allocation2] sm:$0xff]  ;;  %v8203_v49 = vld [vmem:[%s16268_s3 + $0x990] sm:$0xff]  ;;  %v8204_v3 = vld [vmem:[%s16268_s3 + $0x998] sm:$0xff] }
 0xb16   :  { %v5258_v2 = vadd.f32 %v5242_v34, %v14085_v58  ;;  %v5259_v35 = vadd.f32 %v5243_v55, %v14096_v60  ;;  %v5260_v4 = vadd.f32 %v5244_v40, %v14107_v20  ;;  %v5261_v0 = vadd.f32 %v5245_v46, %v14118_v25  ;;  %v16317_v60 = vld [vmem:[#allocation14_spill] sm:$0xff]  ;;  %v16318_v20 = vld [vmem:[#allocation4_spill] sm:$0xff]  ;;  %v16319_v25 = vld [vmem:[#allocation5_spill] sm:$0xff] }
 0xb17   :  { %v5271_v19 = vmax.f32 %v5255_v8, 0.0  ;;  %v5262_v59 = vadd.f32 %v5246_v26, %v16316_v45  ;;  %v5272_v14 = vmax.f32 %v5256_v62, 0.0  ;;  %v5247_v38 = vadd.f32 %v5238_v24, %v5227_v1  ;;  %v8205_v8 = vld [vmem:[%s16268_s3 + $0x9a0] sm:$0xff]  ;;  %v8206_v62 = vld [vmem:[%s16268_s3 + $0x9a8] sm:$0xff] }
 0xb18   :  { %v5248_v9 = vadd.f32 %v5238_v24, %v5228_v30  ;;  %v5249_v43 = vadd.f32 %v5238_v24, %v5229_v7  ;;  %v5250_v39 = vadd.f32 %v5238_v24, %v5230_v10  ;;  %v5251_v58 = vadd.f32 %v5238_v24, %v5231_v22 }
 0xb19   :  { %5387 = vmatmul.mubr.f32.vlgmr.msra.gmra.mrb[112].mxu1 %v5271_v19  ;;  %v5252_v13 = vadd.f32 %v5238_v24, %v5232_v63  ;;  %v5269_v54 = vadd.f32 %v5253_v61, %v16317_v60  ;;  %v5263_v44 = vadd.f32 %v5247_v38, %v16318_v20  ;;  %v5254_v47 = vadd.f32 %v5238_v24, %v5234_v18  ;;  %v8201_v24 = vld [vmem:[%s16268_s3 + $0x980] sm:$0xff]  ;;  %v8202_v63 = vld [vmem:[%s16268_s3 + $0x988] sm:$0xff]  ;;  %v8211_v60 = vld [vmem:[%s16268_s3 + $0x9d0] sm:$0xff] }
 0xb1a   :  { %5392 = vmatprep.mubr.f32.mxu1 %v15166_v53  ;;  %v5264_v17 = vadd.f32 %v5248_v9, %v16319_v25  ;;  %v5265_v21 = vadd.f32 %v5249_v43, %v16320_v27  ;;  %v5266_v57 = vadd.f32 %v5250_v39, %v16321_v51  ;;  %v5267_v37 = vadd.f32 %v5251_v58, %v16322_v52  ;;  %v8209_v38 = vld [vmem:[%s16268_s3 + $0x9c0] sm:$0xff]  ;;  %v8210_v9 = vld [vmem:[%s16268_s3 + $0x9c8] sm:$0xff] }
 0xb1b   :  { %v5268_v56 = vadd.f32 %v5252_v13, %v16323_v11  ;;  %v5270_v5 = vadd.f32 %v5254_v47, %v16324_v6  ;;  %v5273_v42 = vmax.f32 %v5257_v28, 0.0  ;;  %v5274_v41 = vmax.f32 %v5258_v2, 0.0  ;;  %v8213_v27 = vld [vmem:[%s16268_s3 + $0x9e0] sm:$0xff]  ;;  %v8216_v11 = vld [vmem:[%s16268_s3 + $0x9f8] sm:$0xff] }
 0xb1c   :  { %v5275_v15 = vmax.f32 %v5259_v35, 0.0  ;;  %v5276_v29 = vmax.f32 %v5260_v4, 0.0  ;;  %v5277_v36 = vmax.f32 %v5261_v0, 0.0  ;;  %v5278_v32 = vmax.f32 %v5262_v59, 0.0  ;;  %v8207_v4 = vld [vmem:[%s16268_s3 + $0x9b0] sm:$0xff]  ;;  %v8208_v0 = vld [vmem:[%s16268_s3 + $0x9b8] sm:$0xff] }
 0xb1d   :  { %5393 = vmatmul.mubr.f32.gmra.mrb[114].mxu1 %v5272_v14  ;;  %v5279_v50 = vmax.f32 %v5263_v44, 0.0  ;;  %v5280_v48 = vmax.f32 %v5264_v17, 0.0  ;;  %v5281_v23 = vmax.f32 %v5265_v21, 0.0  ;;  %v5282_v1 = vmax.f32 %v5266_v57, 0.0  ;;  %v8214_v21 = vld [vmem:[%s16268_s3 + $0x9e8] sm:$0xff] }
 0xb1e   :  { %5398 = vmatprep.mubr.f32.mxu1 %v15166_v53  ;;  %v5283_v30 = vmax.f32 %v5267_v37, 0.0  ;;  %v5284_v7 = vmax.f32 %v5268_v56, 0.0  ;;  %v5285_v10 = vmax.f32 %v5269_v54, 0.0  ;;  %v5286_v22 = vmax.f32 %v5270_v5, 0.0  ;;  %v8212_v54 = vld [vmem:[%s16268_s3 + $0x9d8] sm:$0xff]  ;;  %v8215_v37 = vld [vmem:[%s16268_s3 + $0x9f0] sm:$0xff] }
 0xb1f   :  { %v11841_v18 = vpack.c.bf16 %v8202_v63, %v8201_v24  ;;  %v11845_v34 = vpack.c.bf16 %v8204_v3, %v8203_v49  ;;  %v11849_v28 = vpack.c.bf16 %v8206_v62, %v8205_v8  ;;  %v11853_v19 = vpack.c.bf16 %v8208_v0, %v8207_v4 }
 0xb20   :  { %v11857_v43 = vpack.c.bf16 %v8210_v9, %v8209_v38  ;;  %v11861_v20 = vpack.c.bf16 %v8212_v54, %v8211_v60  ;;  %v11865_v47 = vpack.c.bf16 %v8214_v21, %v8213_v27  ;;  %v11869_v56 = vpack.c.bf16 %v8216_v11, %v8215_v37 }
 0xb21   :  { %5399 = vmatmul.mubr.f32.gmra.mrb[116].mxu1 %v5273_v42  ;;  %11842 = vmatprep.subr.bf16.mxu0 %v11841_v18 }
 0xb22   :  { %5404 = vmatprep.mubr.f32.mxu1 %v15166_v53  ;;  %11844 = vmatpush3.bf16.msra.mxu0 %v11841_v18 }
 0xb23   :  { %11846 = vmatprep.subr.bf16.mxu0 %v11845_v34 }
 0xb25   :  { %5405 = vmatmul.mubr.f32.gmra.mrb[118].mxu1 %v5274_v41  ;;  %v8185_v41 = vld [vmem:[%s16268_s3 + $0x900] sm:$0xff] }
 0xb26   :  { %5410 = vmatprep.mubr.f32.mxu1 %v15166_v53  ;;  %11848 = vmatpush3.bf16.msra.mxu0 %v11845_v34 }
 0xb27   :  { %11850 = vmatprep.subr.bf16.mxu0 %v11849_v28 }
 0xb29   :  { %5411 = vmatmul.mubr.f32.gmra.mrb[120].mxu1 %v5275_v15  ;;  %v8186_v15 = vld [vmem:[%s16268_s3 + $0x908] sm:$0xff] }
 0xb2a   :  { %5416 = vmatprep.mubr.f32.mxu1 %v15166_v53  ;;  %11852 = vmatpush3.bf16.msra.mxu0 %v11849_v28 }
 0xb2b   :  { %11854 = vmatprep.subr.bf16.mxu0 %v11853_v19 }
 0xb2d   :  { %5417 = vmatmul.mubr.f32.gmra.mrb[122].mxu1 %v5276_v29  ;;  %v5672_v29 = vld [vmem:[#allocation2 + $0x1] sm:$0xff] }
 0xb2e   :  { %5422 = vmatprep.mubr.f32.mxu1 %v15166_v53  ;;  %11856 = vmatpush3.bf16.msra.mxu0 %v11853_v19 }
 0xb2f   :  { %11858 = vmatprep.subr.bf16.mxu0 %v11857_v43  ;;  %10545 = vmatprep.mubr.f32.mxu0 %v5672_v29 }
 0xb31   :  { %5423 = vmatmul.mubr.f32.gmra.mrb[124].mxu1 %v5277_v36  ;;  %v15285_v36 = vpack.c.bf16 %v8186_v15, %v8185_v41 }
 0xb32   :  { %5428 = vmatprep.mubr.f32.mxu1 %v15166_v53  ;;  %11860 = vmatpush3.bf16.msra.mxu0 %v11857_v43 }
 0xb33   :  { %11862 = vmatprep.subr.bf16.mxu0 %v11861_v20 }
 0xb35   :  { %5429 = vmatmul.mubr.f32.gmra.mrb[126].mxu1 %v5278_v32 }
 0xb36   :  { %5434 = vmatprep.mubr.f32.mxu1 %v15166_v53  ;;  %11864 = vmatpush3.bf16.msra.mxu0 %v11861_v20 }
 0xb37   :  { %11866 = vmatprep.subr.bf16.mxu0 %v11865_v47 }
 0xb39   :  { %5435 = vmatmul.mubr.f32.gmra.mrb[128].mxu1 %v5279_v50 }
 0xb3a   :  { %5440 = vmatprep.mubr.f32.mxu1 %v15166_v53  ;;  %11868 = vmatpush3.bf16.msra.mxu0 %v11865_v47 }
 0xb3b   :  { %11870 = vmatprep.subr.bf16.mxu0 %v11869_v56 }
 0xb3d   :  { %5441 = vmatmul.mubr.f32.gmra.mrb[130].mxu1 %v5280_v48 }
 0xb3e   :  { %5446 = vmatprep.mubr.f32.mxu1 %v15166_v53  ;;  %11872 = vmatpush3.bf16.msra.mxu0 %v11869_v56 }
 0xb3f   :  { %11874 = vmatprep.subr.bf16.mxu0 %v15285_v36 }
 0xb41   :  { %5447 = vmatmul.mubr.f32.gmra.mrb[132].mxu1 %v5281_v23 }
 0xb42   :  { %5452 = vmatprep.mubr.f32.mxu1 %v15166_v53 }
 0xb45   :  { %5453 = vmatmul.mubr.f32.gmra.mrb[134].mxu1 %v5282_v1 }
 0xb46   :  { %5458 = vmatprep.mubr.f32.mxu1 %v15166_v53 }
 0xb49   :  { %5459 = vmatmul.mubr.f32.gmra.mrb[136].mxu1 %v5283_v30 }
 0xb4a   :  { %5464 = vmatprep.mubr.f32.mxu1 %v15166_v53 }
 0xb4d   :  { %5465 = vmatmul.mubr.f32.gmra.mrb[138].mxu1 %v5284_v7 }
 0xb4e   :  { %5470 = vmatprep.mubr.f32.mxu1 %v15166_v53 }
 0xb51   :  { %5471 = vmatmul.mubr.f32.gmra.mrb[140].mxu1 %v5285_v10 }
 0xb52   :  { %5476 = vmatprep.mubr.f32.mxu1 %v15166_v53 }
 0xb55   :  { %5477 = vmatmul.mubr.f32.gmra.mrb[142].mxu1 %v5286_v22 }
 0xbec   :  { %v15197_v61 = vpop.f32.mrb[112].mxu1 }
 0xbed   :  { %v15199_v33 = vpop.f32.mrb[113].mxu1 }
 0xbf0   :  { %v15207_v55 = vpop.f32.mrb[114].mxu1 }
 0xbf1   :  { %v5483_v40 = vadd.f32 %v15207_v55, %v15197_v61  ;;  %v15211_v46 = vpop.f32.mrb[115].mxu1 }
 0xbf4   :  { %v15219_v26 = vpop.f32.mrb[116].mxu1 }
 0xbf5   :  { %v5484_v2 = vadd.f32 %v5483_v40, %v15219_v26  ;;  %v15222_v35 = vpop.f32.mrb[117].mxu1 }
 0xbf8   :  { %v15230_v45 = vpop.f32.mrb[118].mxu1 }
 0xbf9   :  { %v5485_v59 = vadd.f32 %v5484_v2, %v15230_v45  ;;  %v15233_v14 = vpop.f32.mrb[119].mxu1 }
 0xbfc   :  { %v15241_v39 = vpop.f32.mrb[120].mxu1 }
 0xbfd   :  { %v5486_v58 = vadd.f32 %v5485_v59, %v15241_v39  ;;  %v15244_v13 = vpop.f32.mrb[121].mxu1 }
 0xc00   :  { %v15252_v44 = vpop.f32.mrb[122].mxu1 }
 0xc01   :  { %v5487_v25 = vadd.f32 %v5486_v58, %v15252_v44  ;;  %v15255_v17 = vpop.f32.mrb[123].mxu1 }
 0xc04   :  { %v15263_v51 = vpop.f32.mrb[124].mxu1 }
 0xc05   :  { %v5488_v57 = vadd.f32 %v5487_v25, %v15263_v51  ;;  %v15266_v52 = vpop.f32.mrb[125].mxu1 }
 0xc06   :  { %16325 = vst [vmem:[#allocation10_spill] sm:$0xff] %v15266_v52 }
 0xc08   :  { %v15274_v6 = vpop.f32.mrb[126].mxu1 }
 0xc09   :  { %v5489_v5 = vadd.f32 %v5488_v57, %v15274_v6  ;;  %v15277_v42 = vpop.f32.mrb[127].mxu1 }
 0xc0a   :  { %16326 = vst [vmem:[#allocation3_spill] sm:$0xff] %v15277_v42 }
 0xc0c   :  { %v15287_v32 = vpop.f32.mrb[128].mxu1 }
 0xc0d   :  { %v5490_v50 = vadd.f32 %v5489_v5, %v15287_v32  ;;  %v15291_v48 = vpop.f32.mrb[129].mxu1 }
 0xc0e   :  { %16327 = vst [vmem:[#allocation14_spill] sm:$0xff] %v15291_v48 }
 0xc10   :  { %v15293_v23 = vpop.f32.mrb[130].mxu1 }
 0xc11   :  { %v5491_v1 = vadd.f32 %v5490_v50, %v15293_v23  ;;  %v15296_v30 = vpop.f32.mrb[131].mxu1 }
 0xc12   :  { %16328 = vst [vmem:[#allocation4_spill] sm:$0xff] %v15296_v30 }
 0xc14   :  { %v15298_v7 = vpop.f32.mrb[132].mxu1 }
 0xc15   :  { %v5492_v10 = vadd.f32 %v5491_v1, %v15298_v7  ;;  %v15301_v22 = vpop.f32.mrb[133].mxu1 }
 0xc16   :  { %16329 = vst [vmem:[#allocation5_spill] sm:$0xff] %v15301_v22 }
 0xc18   :  { %v15303_v24 = vpop.f32.mrb[134].mxu1 }
 0xc19   :  { %v5493_v63 = vadd.f32 %v5492_v10, %v15303_v24  ;;  %v15306_v18 = vpop.f32.mrb[135].mxu1 }
 0xc1a   :  { %16330 = vst [vmem:[#allocation6_spill] sm:$0xff] %v15306_v18 }
 0xc1c   :  { %v15308_v49 = vpop.f32.mrb[136].mxu1 }
 0xc1d   :  { %v5494_v3 = vadd.f32 %v5493_v63, %v15308_v49  ;;  %v15311_v34 = vpop.f32.mrb[137].mxu1 }
 0xc1e   :  { %16331 = vst [vmem:[#allocation7_spill] sm:$0xff] %v15311_v34 }
 0xc20   :  { %v15313_v40 = vpop.f32.mrb[138].mxu1 }
 0xc21   :  { %v5495_v8 = vadd.f32 %v5494_v3, %v15313_v40  ;;  %v15316_v62 = vpop.f32.mrb[139].mxu1 }
 0xc22   :  { %16332 = vst [vmem:[#allocation8_spill] sm:$0xff] %v15316_v62 }
 0xc24   :  { %v15318_v28 = vpop.f32.mrb[140].mxu1 }
 0xc25   :  { %v5496_v2 = vadd.f32 %v5495_v8, %v15318_v28  ;;  %v15321_v4 = vpop.f32.mrb[141].mxu1 }
 0xc26   :  { %16333 = vst [vmem:[#allocation9_spill] sm:$0xff] %v15321_v4 }
 0xc28   :  { %v15323_v0 = vpop.f32.mrb[142].mxu1 }
 0xc29   :  { %v5497_v19 = vadd.f32 %v5496_v2, %v15323_v0  ;;  %v15326_v59 = vpop.f32.mrb[143].mxu1 }
 0xc2a   :  { %16334 = vst [vmem:[#allocation15_spill] sm:$0xff] %v15326_v59 }
 0xc2b   :  { %v5498_v38 = vrot.slane %v5497_v19, 4 }
 0xc2d   :  { %v5499_v9 = vadd.f32 %v5498_v38, %v5497_v19 }
 0xc2f   :  { %v5500_v43 = vrot.slane %v5499_v9, 2 }
 0xc31   :  { %v5501_v58 = vadd.f32 %v5500_v43, %v5499_v9 }
 0xc33   :  { %v5502_v60 = vrot.slane %v5501_v58, 1 }
 0xc35   :  { %v5503_v54 = vadd.f32 %v5502_v60, %v5501_v58 }
 0xc37   :  { %v5504_v20 = vmul.f32 0.0078125, %v5503_v54 }
 0xc39   :  { %v5505_v25 = vsub.f32 %v15197_v61, %v5504_v20  ;;  %v5506_v27 = vsub.f32 %v15207_v55, %v5504_v20  ;;  %v5507_v21 = vsub.f32 %v15219_v26, %v5504_v20  ;;  %v5508_v47 = vsub.f32 %v15230_v45, %v5504_v20 }
 0xc3a   :  { %v5509_v57 = vsub.f32 %v15241_v39, %v5504_v20  ;;  %v5510_v37 = vsub.f32 %v15252_v44, %v5504_v20  ;;  %v5511_v11 = vsub.f32 %v15263_v51, %v5504_v20  ;;  %v5512_v56 = vsub.f32 %v15274_v6, %v5504_v20 }
 0xc3b   :  { %v5513_v5 = vsub.f32 %v15287_v32, %v5504_v20  ;;  %v5514_v41 = vsub.f32 %v15293_v23, %v5504_v20  ;;  %v5515_v15 = vsub.f32 %v15298_v7, %v5504_v20  ;;  %v5516_v29 = vsub.f32 %v15303_v24, %v5504_v20 }
 0xc3c   :  { %v5517_v50 = vsub.f32 %v15308_v49, %v5504_v20  ;;  %v5518_v1 = vsub.f32 %v15313_v40, %v5504_v20  ;;  %v5519_v10 = vsub.f32 %v15318_v28, %v5504_v20  ;;  %v5520_v63 = vsub.f32 %v15323_v0, %v5504_v20 }
 0xc3d   :  { %v5521_v3 = vmul.f32 %v5505_v25, %v5505_v25  ;;  %v5522_v8 = vmul.f32 %v5506_v27, %v5506_v27  ;;  %v5523_v2 = vmul.f32 %v5507_v21, %v5507_v21  ;;  %v5524_v38 = vmul.f32 %v5508_v47, %v5508_v47 }
 0xc3e   :  { %v5525_v43 = vmul.f32 %v5509_v57, %v5509_v57  ;;  %v5526_v60 = vmul.f32 %v5510_v37, %v5510_v37  ;;  %v5527_v59 = vmul.f32 %v5511_v11, %v5511_v11  ;;  %v5528_v62 = vmul.f32 %v5512_v56, %v5512_v56 }
 0xc3f   :  { %v5537_v19 = vadd.f32 %v5522_v8, %v5521_v3  ;;  %v5529_v18 = vmul.f32 %v5513_v5, %v5513_v5  ;;  %v5530_v30 = vmul.f32 %v5514_v41, %v5514_v41  ;;  %v5531_v42 = vmul.f32 %v5515_v15, %v5515_v15 }
 0xc40   :  { %v5532_v25 = vmul.f32 %v5516_v29, %v5516_v29  ;;  %v5533_v21 = vmul.f32 %v5517_v50, %v5517_v50  ;;  %v5534_v47 = vmul.f32 %v5518_v1, %v5518_v1  ;;  %v5535_v57 = vmul.f32 %v5519_v10, %v5519_v10 }
 0xc41   :  { %v5538_v9 = vadd.f32 %v5537_v19, %v5523_v2  ;;  %v5536_v37 = vmul.f32 %v5520_v63, %v5520_v63 }
 0xc43   :  { %v5539_v58 = vadd.f32 %v5538_v9, %v5524_v38 }
 0xc45   :  { %v5540_v54 = vadd.f32 %v5539_v58, %v5525_v43 }
 0xc47   :  { %v5541_v4 = vadd.f32 %v5540_v54, %v5526_v60 }
 0xc49   :  { %v5542_v34 = vadd.f32 %v5541_v4, %v5527_v59 }
 0xc4b   :  { %v5543_v22 = vadd.f32 %v5542_v34, %v5528_v62 }
 0xc4d   :  { %v5544_v48 = vadd.f32 %v5543_v22, %v5529_v18 }
 0xc4f   :  { %v5545_v52 = vadd.f32 %v5544_v48, %v5530_v30 }
 0xc51   :  { %v5546_v27 = vadd.f32 %v5545_v52, %v5531_v42  ;;  %v8152_v52 = vld [vmem:[%s16269_s5 + $0x10] sm:$0xff] }
 0xc53   :  { %v5547_v3 = vadd.f32 %v5546_v27, %v5532_v25 }
 0xc55   :  { %v5548_v8 = vadd.f32 %v5547_v3, %v5533_v21 }
 0xc57   :  { %v5549_v2 = vadd.f32 %v5548_v8, %v5534_v47 }
 0xc59   :  { %v5550_v19 = vadd.f32 %v5549_v2, %v5535_v57 }
 0xc5b   :  { %v5551_v11 = vadd.f32 %v5550_v19, %v5536_v37 }
 0xc5d   :  { %v5552_v38 = vrot.slane %v5551_v11, 4 }
 0xc5f   :  { %v5553_v56 = vadd.f32 %v5552_v38, %v5551_v11 }
 0xc61   :  { %v5554_v4 = vrot.slane %v5553_v56, 2 }
 0xc63   :  { %v5555_v59 = vadd.f32 %v5554_v4, %v5553_v56 }
 0xc65   :  { %v5556_v34 = vrot.slane %v5555_v59, 1 }
 0xc67   :  { %v5557_v62 = vadd.f32 %v5556_v34, %v5555_v59  ;;  %v8187_v59 = vld [vmem:[%s16268_s3 + $0x910] sm:$0xff]  ;;  %v8188_v34 = vld [vmem:[%s16268_s3 + $0x918] sm:$0xff] }
 0xc69   :  { %v5558_v22 = vmul.f32 0.0078125, %v5557_v62 }
 0xc6b   :  { %v5559_v18 = vadd.f32 1e-05, %v5558_v22 }
 0xc6d   :  { %12558 = vrsqrt.f32 %v5559_v18 }
 0xc77   :  { %v12559_v42 = vpop.eup %12558 }
 0xc78   :  { %v5561_v48 = vmul.f32 %v12559_v42, %v8152_v52 }
 0xc7a   :  { %v5562_v30 = vmul.f32 %v5561_v48, %v5504_v20  ;;  %v5570_v5 = vrot.slane %v5561_v48, %v16312_v16 }
 0xc7c   :  { %v5564_v41 = vrot.slane %v5562_v30, 7  ;;  %v5572_v15 = vmul.f32 %v5570_v5, %v15207_v55  ;;  %v5573_v29 = vmul.f32 %v5570_v5, %v15219_v26  ;;  %v5574_v50 = vmul.f32 %v5570_v5, %v15230_v45 }
 0xc7d   :  { %v5575_v1 = vmul.f32 %v5570_v5, %v15241_v39  ;;  %v5576_v10 = vmul.f32 %v5570_v5, %v15252_v44  ;;  %v5577_v63 = vmul.f32 %v5570_v5, %v15263_v51  ;;  %v5580_v9 = vmul.f32 %v5570_v5, %v15293_v23  ;;  %v16335_v44 = vld [vmem:[#allocation11_spill] sm:$0xff] }
 0xc7e   :  { %v5566_v43 = vsub.f32 %v8152_v52, %v5564_v41  ;;  %v5581_v20 = vmul.f32 %v5570_v5, %v15298_v7  ;;  %v5582_v16 = vmul.f32 %v5570_v5, %v15303_v24  ;;  %v5583_v58 = vmul.f32 %v5570_v5, %v15308_v49  ;;  %v8189_v41 = vld [vmem:[%s16268_s3 + $0x920] sm:$0xff] }
 0xc7f   :  { %v5584_v55 = vmul.f32 %v5570_v5, %v15313_v40  ;;  %v5585_v26 = vmul.f32 %v5570_v5, %v15318_v28  ;;  %v5586_v45 = vmul.f32 %v5570_v5, %v15323_v0  ;;  %v5571_v39 = vmul.f32 %v5570_v5, %v15197_v61 }
 0xc80   :  { %v5590_v60 = vrot.slane %v5566_v43, %v16335_v44  ;;  %v5579_v51 = vmul.f32 %v5570_v5, %v15287_v32  ;;  %v5578_v23 = vmul.f32 %v5570_v5, %v15274_v6  ;;  %v11877_v30 = vpack.c.bf16 %v8188_v34, %v8187_v59  ;;  %v5680_v43 = vld [vmem:[#allocation2 + $0xa1] sm:$0xff]  ;;  %v8199_v44 = vld [vmem:[%s16268_s3 + $0x970] sm:$0xff]  ;;  %v8224_v59 = vld [vmem:[%s16268_s3 + $0xa38] sm:$0xff] }
 0xc82   :  { %v5592_v54 = vadd.f32 %v5590_v60, %v5572_v15  ;;  %v5593_v7 = vadd.f32 %v5590_v60, %v5573_v29  ;;  %v5594_v25 = vadd.f32 %v5590_v60, %v5574_v50  ;;  %v5595_v24 = vadd.f32 %v5590_v60, %v5575_v1  ;;  %v8190_v15 = vld [vmem:[%s16268_s3 + $0x928] sm:$0xff]  ;;  %v8191_v1 = vld [vmem:[%s16268_s3 + $0x930] sm:$0xff] }
 0xc83   :  { %v5596_v27 = vadd.f32 %v5590_v60, %v5576_v10  ;;  %v5597_v49 = vadd.f32 %v5590_v60, %v5577_v63  ;;  %v5600_v21 = vadd.f32 %v5590_v60, %v5580_v9  ;;  %v5601_v40 = vadd.f32 %v5590_v60, %v5581_v20  ;;  %v8192_v10 = vld [vmem:[%s16268_s3 + $0x938] sm:$0xff]  ;;  %v8193_v63 = vld [vmem:[%s16268_s3 + $0x940] sm:$0xff]  ;;  %v8194_v9 = vld [vmem:[%s16268_s3 + $0x948] sm:$0xff] }
 0xc84   :  { %v5602_v3 = vadd.f32 %v5590_v60, %v5582_v16  ;;  %v5603_v28 = vadd.f32 %v5590_v60, %v5583_v58  ;;  %v5604_v47 = vadd.f32 %v5590_v60, %v5584_v55  ;;  %v5605_v0 = vadd.f32 %v5590_v60, %v5585_v26  ;;  %v8195_v16 = vld [vmem:[%s16268_s3 + $0x950] sm:$0xff]  ;;  %v8196_v58 = vld [vmem:[%s16268_s3 + $0x958] sm:$0xff]  ;;  %v8197_v26 = vld [vmem:[%s16268_s3 + $0x960] sm:$0xff] }
 0xc85   :  { %v15365_v8 = vadd.f32 %v5590_v60, %v5586_v45  ;;  %v15367_v61 = vmax.f32 %v5592_v54, 0.0  ;;  %v15369_v57 = vmax.f32 %v5593_v7, 0.0  ;;  %v15371_v32 = vmax.f32 %v5594_v25, 0.0  ;;  %v8198_v45 = vld [vmem:[%s16268_s3 + $0x968] sm:$0xff]  ;;  %v8219_v25 = vld [vmem:[%s16268_s3 + $0xa10] sm:$0xff] }
 0xc86   :  { %v15373_v6 = vmax.f32 %v5595_v24, 0.0  ;;  %v15375_v2 = vmax.f32 %v5596_v27, 0.0  ;;  %v15377_v37 = vmax.f32 %v5597_v49, 0.0  ;;  %v15379_v19 = vmax.f32 %v5600_v21, 0.0  ;;  %v8218_v54 = vld [vmem:[%s16268_s3 + $0xa08] sm:$0xff]  ;;  %v8220_v24 = vld [vmem:[%s16268_s3 + $0xa18] sm:$0xff] }
 0xc87   :  { %v15381_v11 = vmax.f32 %v5601_v40, 0.0  ;;  %v15383_v38 = vmax.f32 %v5602_v3, 0.0  ;;  %v15385_v56 = vmax.f32 %v5603_v28, 0.0  ;;  %v15387_v4 = vmax.f32 %v5604_v47, 0.0  ;;  %5624 = vst [vmem:[#allocation2 + $0x21] sm:$0xff] %v15367_v61  ;;  %5625 = vst [vmem:[#allocation2 + $0x31] sm:$0xff] %v15369_v57 }
 0xc88   :  { %5626 = vst [vmem:[#allocation2 + $0x41] sm:$0xff] %v15371_v32  ;;  %v15398_v62 = vmax.f32 %v5605_v0, 0.0  ;;  %v5622_v22 = vmax.f32 %v15365_v8, 0.0  ;;  %5627 = vst [vmem:[#allocation2 + $0x51] sm:$0xff] %v15373_v6  ;;  %v5591_v18 = vadd.f32 %v5590_v60, %v5571_v39  ;;  %v5599_v52 = vadd.f32 %v5590_v60, %v5579_v51  ;;  %v8221_v21 = vld [vmem:[%s16268_s3 + $0xa20] sm:$0xff]  ;;  %v8222_v40 = vld [vmem:[%s16268_s3 + $0xa28] sm:$0xff] }
 0xc89   :  { %5628 = vst [vmem:[#allocation2 + $0x61] sm:$0xff] %v15375_v2  ;;  %5629 = vst [vmem:[#allocation2 + $0x71] sm:$0xff] %v15377_v37  ;;  %v5598_v42 = vadd.f32 %v5590_v60, %v5578_v23  ;;  %v11881_v50 = vpack.c.bf16 %v8190_v15, %v8189_v41  ;;  %v11889_v20 = vpack.c.bf16 %v8194_v9, %v8193_v63  ;;  %v8200_v60 = vld [vmem:[%s16268_s3 + $0x978] sm:$0xff]  ;;  %v8217_v23 = vld [vmem:[%s16268_s3 + $0xa00] sm:$0xff] }
 0xc8a   :  { %5632 = vst [vmem:[#allocation2 + $0xc1] sm:$0xff] %v15379_v19  ;;  %5633 = vst [vmem:[#allocation2 + $0xd1] sm:$0xff] %v15381_v11  ;;  %v15412_v48 = vmax.f32 %v5591_v18, 0.0  ;;  %v15414_v5 = vmax.f32 %v5599_v52, 0.0  ;;  %v11893_v55 = vpack.c.bf16 %v8196_v58, %v8195_v16  ;;  %v11897_v39 = vpack.c.bf16 %v8198_v45, %v8197_v26  ;;  %v8223_v0 = vld [vmem:[%s16268_s3 + $0xa30] sm:$0xff]  ;;  %v8229_v9 = vld [vmem:[%s16268_s3 + $0xa60] sm:$0xff] }
 0xc8b   :  { %5634 = vst [vmem:[#allocation2 + $0xe1] sm:$0xff] %v15383_v38  ;;  %5635 = vst [vmem:[#allocation2 + $0xf1] sm:$0xff] %v15385_v56  ;;  %v15422_v29 = vmax.f32 %v5598_v42, 0.0  ;;  %v11901_v51 = vpack.c.bf16 %v8200_v60, %v8199_v44  ;;  %v11905_v7 = vpack.c.bf16 %v8218_v54, %v8217_v23  ;;  %v11909_v27 = vpack.c.bf16 %v8220_v24, %v8219_v25  ;;  %v8225_v42 = vld [vmem:[%s16268_s3 + $0xa40] sm:$0xff]  ;;  %v8231_v58 = vld [vmem:[%s16268_s3 + $0xa70] sm:$0xff] }
 0xc8c   :  { %5636 = vst [vmem:[#allocation2 + $0x101] sm:$0xff] %v15387_v4  ;;  %5637 = vst [vmem:[#allocation2 + $0x111] sm:$0xff] %v15398_v62  ;;  %10546 = vmatmul.mubr.f32.vlgmr.msra.gmra.mrb[32].mxu0 %v15412_v48  ;;  %v11913_v28 = vpack.c.bf16 %v8222_v40, %v8221_v21  ;;  %v11917_v18 = vpack.c.bf16 %v8224_v59, %v8223_v0  ;;  %v8233_v44 = vld [vmem:[%s16268_s3 + $0xa80] sm:$0xff]  ;;  %v8234_v60 = vld [vmem:[%s16268_s3 + $0xa88] sm:$0xff] }
 0xc8d   :  { %5638 = vst [vmem:[#allocation2 + $0x121] sm:$0xff] %v5622_v22  ;;  %5623 = vst [vmem:[#allocation2 + $0x11] sm:$0xff] %v15412_v48  ;;  %11876 = vmatpush3.bf16.msra.mxu0 %v15285_v36  ;;  %10548 = vmatprep.mubr.f32.mxu0 %v15367_v61  ;;  %v11885_v36 = vpack.c.bf16 %v8192_v10, %v8191_v1  ;;  %v8227_v1 = vld [vmem:[%s16268_s3 + $0xa50] sm:$0xff]  ;;  %v8228_v10 = vld [vmem:[%s16268_s3 + $0xa58] sm:$0xff]  ;;  %v11937_v54 = vpack.c.bf16 %v8234_v60, %v8233_v44 }
 0xc8e   :  { %5631 = vst [vmem:[#allocation2 + $0xb1] sm:$0xff] %v15414_v5  ;;  %5630 = vst [vmem:[#allocation2 + $0x81] sm:$0xff] %v15422_v29  ;;  %11878 = vmatprep.subr.bf16.mxu0 %v11877_v30  ;;  %v15494_v3 = vld [vmem:[#allocation2 + $0x20] sm:$0xff]  ;;  %v15497_v47 = vld [vmem:[#allocation2 + $0x30] sm:$0xff] }
 0xc8f   :  { %v15506_v34 = vld [vmem:[#allocation2 + $0x40] sm:$0xff]  ;;  %v15509_v52 = vld [vmem:[#allocation2 + $0x50] sm:$0xff]  ;;  %v8236_v24 = vld [vmem:[%s16268_s3 + $0xa98] sm:$0xff] }
 0xc90   :  { %10549 = vmatmul.mubr.f32.gmra.mrb[34].mxu0 %v15369_v57  ;;  %v15518_v41 = vld [vmem:[#allocation2 + $0x60] sm:$0xff]  ;;  %v8235_v25 = vld [vmem:[%s16268_s3 + $0xa90] sm:$0xff]  ;;  %v8244_v44 = vld [vmem:[%s16268_s3 + $0xad8] sm:$0xff] }
 0xc91   :  { %11880 = vmatpush3.bf16.msra.mxu0 %v11877_v30  ;;  %10551 = vmatprep.mubr.f32.mxu0 %v15371_v32  ;;  %v8226_v30 = vld [vmem:[%s16268_s3 + $0xa48] sm:$0xff]  ;;  %v15543_v16 = vld [vmem:[#allocation2 + $0xd0] sm:$0xff]  ;;  %v8237_v40 = vld [vmem:[%s16268_s3 + $0xaa0] sm:$0xff] }
 0xc92   :  { %11882 = vmatprep.subr.bf16.mxu0 %v11881_v50  ;;  %v11921_v15 = vpack.c.bf16 %v8226_v30, %v8225_v42  ;;  %v15552_v26 = vld [vmem:[#allocation2 + $0xe0] sm:$0xff]  ;;  %v8239_v42 = vld [vmem:[%s16268_s3 + $0xab0] sm:$0xff]  ;;  %v8240_v30 = vld [vmem:[%s16268_s3 + $0xab8] sm:$0xff] }
 0xc93   :  { %v5995_v23 = vld [vmem:[#allocation2 + $0x2] sm:$0xff] }
 0xc94   :  { %10552 = vmatmul.mubr.f32.gmra.mrb[36].mxu0 %v15373_v6  ;;  %v15485_v49 = vld [vmem:[#allocation2 + $0x10] sm:$0xff]  ;;  %v15585_v0 = vld [vmem:[#allocation2 + $0x22] sm:$0xff] }
 0xc95   :  { %11884 = vmatpush3.bf16.msra.mxu0 %v11881_v50  ;;  %10554 = vmatprep.mubr.f32.mxu0 %v15375_v2  ;;  %v15521_v50 = vld [vmem:[#allocation2 + $0x70] sm:$0xff] }
 0xc96   :  { %11886 = vmatprep.subr.bf16.mxu0 %v11885_v36  ;;  %v15531_v63 = vld [vmem:[#allocation2 + $0xb0] sm:$0xff] }
 0xc97   :  { %v15576_v21 = vld [vmem:[#allocation2 + $0x12] sm:$0xff] }
 0xc98   :  { %10555 = vmatmul.mubr.f32.gmra.mrb[38].mxu0 %v15377_v37 }
 0xc99   :  { %11888 = vmatpush3.bf16.msra.mxu0 %v11885_v36  ;;  %10557 = vmatprep.mubr.f32.mxu0 %v5680_v43  ;;  %v11925_v36 = vpack.c.bf16 %v8228_v10, %v8227_v1  ;;  %v8230_v43 = vld [vmem:[%s16268_s3 + $0xa68] sm:$0xff]  ;;  %v11949_v1 = vpack.c.bf16 %v8240_v30, %v8239_v42  ;;  %v15600_v10 = vld [vmem:[#allocation2 + $0x52] sm:$0xff] }
 0xc9a   :  { %11890 = vmatprep.subr.bf16.mxu0 %v11889_v20  ;;  %v15642_v42 = vld [vmem:[#allocation2 + $0xe2] sm:$0xff] }
 0xc9c   :  { %10558 = vmatmul.mubr.f32.gmra.mrb[40].mxu0 %v15414_v5 }
 0xc9d   :  { %11892 = vmatpush3.bf16.msra.mxu0 %v11889_v20  ;;  %10560 = vmatprep.mubr.f32.mxu0 %v15379_v19  ;;  %v15540_v20 = vld [vmem:[#allocation2 + $0xc0] sm:$0xff] }
 0xc9e   :  { %11894 = vmatprep.subr.bf16.mxu0 %v11893_v55 }
 0xca0   :  { %10561 = vmatmul.mubr.f32.gmra.mrb[42].mxu0 %v15381_v11 }
 0xca1   :  { %11896 = vmatpush3.bf16.msra.mxu0 %v11893_v55  ;;  %10563 = vmatprep.mubr.f32.mxu0 %v15383_v38  ;;  %v8232_v55 = vld [vmem:[%s16268_s3 + $0xa78] sm:$0xff] }
 0xca2   :  { %11898 = vmatprep.subr.bf16.mxu0 %v11897_v39  ;;  %v11933_v45 = vpack.c.bf16 %v8232_v55, %v8231_v58  ;;  %v15612_v55 = vld [vmem:[#allocation2 + $0x72] sm:$0xff] }
 0xca4   :  { %10564 = vmatmul.mubr.f32.gmra.mrb[44].mxu0 %v15385_v56 }
 0xca5   :  { %11900 = vmatpush3.bf16.msra.mxu0 %v11897_v39  ;;  %10566 = vmatprep.mubr.f32.mxu0 %v15387_v4  ;;  %v15555_v39 = vld [vmem:[#allocation2 + $0xf0] sm:$0xff] }
 0xca6   :  { %11902 = vmatprep.subr.bf16.mxu0 %v11901_v51 }
 0xca8   :  { %10567 = vmatmul.mubr.f32.gmra.mrb[46].mxu0 %v15398_v62 }
 0xca9   :  { %11904 = vmatpush3.bf16.msra.mxu0 %v11901_v51  ;;  %10601 = vmatprep.mubr.f32.mxu0 %v15166_v53  ;;  %v15564_v51 = vld [vmem:[#allocation2 + $0x100] sm:$0xff] }
 0xcaa   :  { %11906 = vmatprep.subr.bf16.mxu0 %v11905_v7 }
 0xcac   :  { %10602 = vmatmul.mubr.f32.vlgmr.msra.gmra.mrb[32].mxu0 %v15485_v49 }
 0xcad   :  { %11908 = vmatpush3.bf16.msra.mxu0 %v11905_v7  ;;  %10604 = vmatprep.mubr.f32.mxu0 %v15494_v3  ;;  %v15567_v7 = vld [vmem:[#allocation2 + $0x110] sm:$0xff] }
 0xcae   :  { %11910 = vmatprep.subr.bf16.mxu0 %v11909_v27 }
 0xcb0   :  { %10605 = vmatmul.mubr.f32.gmra.mrb[34].mxu0 %v15497_v47 }
 0xcb1   :  { %11912 = vmatpush3.bf16.msra.mxu0 %v11909_v27  ;;  %10607 = vmatprep.mubr.f32.mxu0 %v15506_v34  ;;  %v11941_v27 = vpack.c.bf16 %v8236_v24, %v8235_v25  ;;  %v8246_v25 = vld [vmem:[%s16268_s3 + $0xae8] sm:$0xff] }
 0xcb2   :  { %11914 = vmatprep.subr.bf16.mxu0 %v11913_v28  ;;  %v15630_v24 = vld [vmem:[#allocation2 + $0xc2] sm:$0xff] }
 0xcb4   :  { %10608 = vmatmul.mubr.f32.gmra.mrb[36].mxu0 %v15509_v52 }
 0xcb5   :  { %11916 = vmatpush3.bf16.msra.mxu0 %v11913_v28  ;;  %10610 = vmatprep.mubr.f32.mxu0 %v15518_v41  ;;  %v8238_v28 = vld [vmem:[%s16268_s3 + $0xaa8] sm:$0xff] }
 0xcb6   :  { %11918 = vmatprep.subr.bf16.mxu0 %v11917_v18  ;;  %v11945_v59 = vpack.c.bf16 %v8238_v28, %v8237_v40  ;;  %v15633_v40 = vld [vmem:[#allocation2 + $0xd2] sm:$0xff] }
 0xcb7   :  { %v8247_v28 = vld [vmem:[%s16268_s3 + $0xaf0] sm:$0xff] }
 0xcb8   :  { %10611 = vmatmul.mubr.f32.gmra.mrb[38].mxu0 %v15521_v50 }
 0xcb9   :  { %11920 = vmatpush3.bf16.msra.mxu0 %v11917_v18  ;;  %10613 = vmatprep.mubr.f32.mxu0 %v15166_v53  ;;  %v11929_v53 = vpack.c.bf16 %v8230_v43, %v8229_v9  ;;  %v15588_v18 = vld [vmem:[#allocation2 + $0x32] sm:$0xff]  ;;  %v8242_v9 = vld [vmem:[%s16268_s3 + $0xac8] sm:$0xff] }
 0xcba   :  { %11922 = vmatprep.subr.bf16.mxu0 %v11921_v15  ;;  %v15609_v43 = vld [vmem:[#allocation2 + $0x62] sm:$0xff] }
 0xcbc   :  { %10614 = vmatmul.mubr.f32.gmra.mrb[40].mxu0 %v15531_v63 }
 0xcbd   :  { %11924 = vmatpush3.bf16.msra.mxu0 %v11921_v15  ;;  %10616 = vmatprep.mubr.f32.mxu0 %v15540_v20  ;;  %v15597_v15 = vld [vmem:[#allocation2 + $0x42] sm:$0xff] }
 0xcbe   :  { %11926 = vmatprep.subr.bf16.mxu0 %v11925_v36 }
 0xcc0   :  { %10617 = vmatmul.mubr.f32.gmra.mrb[42].mxu0 %v15543_v16 }
 0xcc1   :  { %11928 = vmatpush3.bf16.msra.mxu0 %v11925_v36  ;;  %10619 = vmatprep.mubr.f32.mxu0 %v15552_v26  ;;  %v8241_v36 = vld [vmem:[%s16268_s3 + $0xac0] sm:$0xff] }
 0xcc2   :  { %11930 = vmatprep.subr.bf16.mxu0 %v11929_v53  ;;  %v11953_v58 = vpack.c.bf16 %v8242_v9, %v8241_v36  ;;  %v8249_v36 = vld [vmem:[%s16268_s3 + $0xb00] sm:$0xff]  ;;  %v8250_v9 = vld [vmem:[%s16268_s3 + $0xb08] sm:$0xff] }
 0xcc4   :  { %10620 = vmatmul.mubr.f32.gmra.mrb[44].mxu0 %v15555_v39 }
 0xcc5   :  { %11932 = vmatpush3.bf16.msra.mxu0 %v11929_v53  ;;  %10622 = vmatprep.mubr.f32.mxu0 %v15564_v51  ;;  %v6003_v53 = vld [vmem:[#allocation2 + $0xa2] sm:$0xff] }
 0xcc6   :  { %11934 = vmatprep.subr.bf16.mxu0 %v11933_v45 }
 0xcc8   :  { %10623 = vmatmul.mubr.f32.gmra.mrb[46].mxu0 %v15567_v7 }
 0xcc9   :  { %11936 = vmatpush3.bf16.msra.mxu0 %v11933_v45  ;;  %10657 = vmatprep.mubr.f32.mxu0 %v5995_v23  ;;  %v8243_v45 = vld [vmem:[%s16268_s3 + $0xad0] sm:$0xff] }
 0xcca   :  { %11938 = vmatprep.subr.bf16.mxu0 %v11937_v54  ;;  %v11957_v60 = vpack.c.bf16 %v8244_v44, %v8243_v45  ;;  %v15621_v23 = vld [vmem:[#allocation2 + $0xb2] sm:$0xff] }
 0xccb   :  { %v15657_v45 = vld [vmem:[#allocation2 + $0x112] sm:$0xff] }
 0xccc   :  { %10658 = vmatmul.mubr.f32.vlgmr.msra.gmra.mrb[32].mxu0 %v15576_v21  ;;  %v8251_v44 = vld [vmem:[%s16268_s3 + $0xb10] sm:$0xff] }
 0xccd   :  { %11940 = vmatpush3.bf16.msra.mxu0 %v11937_v54  ;;  %10660 = vmatprep.mubr.f32.mxu0 %v15585_v0  ;;  %v8245_v54 = vld [vmem:[%s16268_s3 + $0xae0] sm:$0xff] }
 0xcce   :  { %11942 = vmatprep.subr.bf16.mxu0 %v11941_v27 }
 0xcd0   :  { %10661 = vmatmul.mubr.f32.gmra.mrb[34].mxu0 %v15588_v18 }
 0xcd1   :  { %11944 = vmatpush3.bf16.msra.mxu0 %v11941_v27  ;;  %10663 = vmatprep.mubr.f32.mxu0 %v15597_v15  ;;  %v11961_v27 = vpack.c.bf16 %v8246_v25, %v8245_v54  ;;  %v8253_v25 = vld [vmem:[%s16268_s3 + $0xb20] sm:$0xff] }
 0xcd2   :  { %11946 = vmatprep.subr.bf16.mxu0 %v11945_v59 }
 0xcd4   :  { %10664 = vmatmul.mubr.f32.gmra.mrb[36].mxu0 %v15600_v10 }
 0xcd5   :  { %11948 = vmatpush3.bf16.msra.mxu0 %v11945_v59  ;;  %10666 = vmatprep.mubr.f32.mxu0 %v15609_v43  ;;  %v8248_v59 = vld [vmem:[%s16268_s3 + $0xaf8] sm:$0xff] }
 0xcd6   :  { %11950 = vmatprep.subr.bf16.mxu0 %v11949_v1  ;;  %v11965_v30 = vpack.c.bf16 %v8248_v59, %v8247_v28  ;;  %v8256_v59 = vld [vmem:[%s16268_s3 + $0xb38] sm:$0xff] }
 0xcd8   :  { %10667 = vmatmul.mubr.f32.gmra.mrb[38].mxu0 %v15612_v55 }
 0xcd9   :  { %11952 = vmatpush3.bf16.msra.mxu0 %v11949_v1  ;;  %10669 = vmatprep.mubr.f32.mxu0 %v6003_v53  ;;  %v15645_v1 = vld [vmem:[#allocation2 + $0xf2] sm:$0xff]  ;;  %v15654_v53 = vld [vmem:[#allocation2 + $0x102] sm:$0xff] }
 0xcda   :  { %11954 = vmatprep.subr.bf16.mxu0 %v11953_v58 }
 0xcdc   :  { %10670 = vmatmul.mubr.f32.gmra.mrb[40].mxu0 %v15621_v23 }
 0xcdd   :  { %11956 = vmatpush3.bf16.msra.mxu0 %v11953_v58  ;;  %10672 = vmatprep.mubr.f32.mxu0 %v15630_v24  ;;  %v11969_v58 = vpack.c.bf16 %v8250_v9, %v8249_v36  ;;  %v8257_v36 = vld [vmem:[%s16268_s3 + $0xb40] sm:$0xff]  ;;  %v8258_v9 = vld [vmem:[%s16268_s3 + $0xb48] sm:$0xff] }
 0xcde   :  { %11958 = vmatprep.subr.bf16.mxu0 %v11957_v60 }
 0xce0   :  { %10673 = vmatmul.mubr.f32.gmra.mrb[42].mxu0 %v15633_v40 }
 0xce1   :  { %11960 = vmatpush3.bf16.msra.mxu0 %v11957_v60  ;;  %10675 = vmatprep.mubr.f32.mxu0 %v15642_v42  ;;  %v8252_v60 = vld [vmem:[%s16268_s3 + $0xb18] sm:$0xff] }
 0xce2   :  { %11962 = vmatprep.subr.bf16.mxu0 %v11961_v27  ;;  %v11973_v54 = vpack.c.bf16 %v8252_v60, %v8251_v44  ;;  %v15691_v44 = vld [vmem:[#allocation2 + $0x80] sm:$0xff]  ;;  %v8259_v60 = vld [vmem:[%s16268_s3 + $0xb50] sm:$0xff] }
 0xce4   :  { %10676 = vmatmul.mubr.f32.gmra.mrb[44].mxu0 %v15645_v1 }
 0xce5   :  { %11964 = vmatpush3.bf16.msra.mxu0 %v11961_v27  ;;  %10678 = vmatprep.mubr.f32.mxu0 %v15654_v53  ;;  %v8254_v27 = vld [vmem:[%s16268_s3 + $0xb28] sm:$0xff] }
 0xce6   :  { %11966 = vmatprep.subr.bf16.mxu0 %v11965_v30  ;;  %v11977_v28 = vpack.c.bf16 %v8254_v27, %v8253_v25  ;;  %v8261_v27 = vld [vmem:[%s16268_s3 + $0xb60] sm:$0xff] }
 0xce8   :  { %10679 = vmatmul.mubr.f32.gmra.mrb[46].mxu0 %v15657_v45 }
 0xce9   :  { %11968 = vmatpush3.bf16.msra.mxu0 %v11965_v30  ;;  %10713 = vmatprep.mubr.f32.mxu0 %v15485_v49  ;;  %v8255_v49 = vld [vmem:[%s16268_s3 + $0xb30] sm:$0xff] }
 0xcea   :  { %11970 = vmatprep.subr.bf16.mxu0 %v11969_v58  ;;  %v11981_v30 = vpack.c.bf16 %v8256_v59, %v8255_v49  ;;  %v8264_v59 = vld [vmem:[%s16268_s3 + $0xb78] sm:$0xff] }
 0xcec   :  { %10714 = vmatmul.mubr.f32.vlgmr.msra.gmra.mrb[32].mxu0 %v15494_v3 }
 0xced   :  { %11972 = vmatpush3.bf16.msra.mxu0 %v11969_v58  ;;  %10716 = vmatprep.mubr.f32.mxu0 %v15497_v47  ;;  %v11985_v58 = vpack.c.bf16 %v8258_v9, %v8257_v36  ;;  %v8265_v36 = vld [vmem:[%s16268_s3 + $0xb80] sm:$0xff]  ;;  %v8266_v9 = vld [vmem:[%s16268_s3 + $0xb88] sm:$0xff] }
 0xcee   :  { %11974 = vmatprep.subr.bf16.mxu0 %v11973_v54 }
 0xcf0   :  { %10717 = vmatmul.mubr.f32.gmra.mrb[34].mxu0 %v15506_v34 }
 0xcf1   :  { %11976 = vmatpush3.bf16.msra.mxu0 %v11973_v54  ;;  %10719 = vmatprep.mubr.f32.mxu0 %v15509_v52  ;;  %v8260_v54 = vld [vmem:[%s16268_s3 + $0xb58] sm:$0xff] }
 0xcf2   :  { %11978 = vmatprep.subr.bf16.mxu0 %v11977_v28  ;;  %v11989_v25 = vpack.c.bf16 %v8260_v54, %v8259_v60  ;;  %v15725_v60 = vld [vmem:[#allocation2 + $0x120] sm:$0xff]  ;;  %v8267_v54 = vld [vmem:[%s16268_s3 + $0xb90] sm:$0xff] }
 0xcf4   :  { %10720 = vmatmul.mubr.f32.gmra.mrb[36].mxu0 %v15518_v41 }
 0xcf5   :  { %11980 = vmatpush3.bf16.msra.mxu0 %v11977_v28  ;;  %10722 = vmatprep.mubr.f32.mxu0 %v15521_v50  ;;  %v8262_v28 = vld [vmem:[%s16268_s3 + $0xb68] sm:$0xff] }
 0xcf6   :  { %11982 = vmatprep.subr.bf16.mxu0 %v11981_v30  ;;  %v11993_v49 = vpack.c.bf16 %v8262_v28, %v8261_v27  ;;  %v8269_v28 = vld [vmem:[%s16268_s3 + $0xba0] sm:$0xff] }
 0xcf8   :  { %10723 = vmatmul.mubr.f32.gmra.mrb[38].mxu0 %v15691_v44 }
 0xcf9   :  { %11984 = vmatpush3.bf16.msra.mxu0 %v11981_v30  ;;  %10725 = vmatprep.mubr.f32.mxu0 %v15531_v63  ;;  %v8263_v63 = vld [vmem:[%s16268_s3 + $0xb70] sm:$0xff] }
 0xcfa   :  { %11986 = vmatprep.subr.bf16.mxu0 %v11985_v58  ;;  %v11997_v30 = vpack.c.bf16 %v8264_v59, %v8263_v63  ;;  %v8272_v59 = vld [vmem:[%s16268_s3 + $0xbb8] sm:$0xff] }
 0xcfc   :  { %10726 = vmatmul.mubr.f32.gmra.mrb[40].mxu0 %v15540_v20 }
 0xcfd   :  { %11988 = vmatpush3.bf16.msra.mxu0 %v11985_v58  ;;  %10728 = vmatprep.mubr.f32.mxu0 %v15543_v16  ;;  %v12001_v58 = vpack.c.bf16 %v8266_v9, %v8265_v36  ;;  %v8276_v36 = vld [vmem:[%s16268_s3 + $0xbd8] sm:$0xff]  ;;  %v8278_v9 = vld [vmem:[%s16268_s3 + $0xbe8] sm:$0xff] }
 0xcfe   :  { %11990 = vmatprep.subr.bf16.mxu0 %v11989_v25 }
 0xd00   :  { %10729 = vmatmul.mubr.f32.gmra.mrb[42].mxu0 %v15552_v26 }
 0xd01   :  { %11992 = vmatpush3.bf16.msra.mxu0 %v11989_v25  ;;  %10731 = vmatprep.mubr.f32.mxu0 %v15555_v39  ;;  %v8268_v25 = vld [vmem:[%s16268_s3 + $0xb98] sm:$0xff] }
 0xd02   :  { %11994 = vmatprep.subr.bf16.mxu0 %v11993_v49  ;;  %v12005_v27 = vpack.c.bf16 %v8268_v25, %v8267_v54  ;;  %v8280_v54 = vld [vmem:[%s16268_s3 + $0xbf8] sm:$0xff]  ;;  %v8282_v25 = vld [vmem:[%s16268_s3 + $0xc08] sm:$0xff] }
 0xd04   :  { %10732 = vmatmul.mubr.f32.gmra.mrb[44].mxu0 %v15564_v51 }
 0xd05   :  { %11996 = vmatpush3.bf16.msra.mxu0 %v11993_v49  ;;  %10734 = vmatprep.mubr.f32.mxu0 %v15567_v7  ;;  %v8270_v49 = vld [vmem:[%s16268_s3 + $0xba8] sm:$0xff] }
 0xd06   :  { %11998 = vmatprep.subr.bf16.mxu0 %v11997_v30  ;;  %v12009_v63 = vpack.c.bf16 %v8270_v49, %v8269_v28  ;;  %v8286_v28 = vld [vmem:[%s16268_s3 + $0xc28] sm:$0xff] }
 0xd08   :  { %10735 = vmatmul.mubr.f32.gmra.mrb[46].mxu0 %v15725_v60 }
 0xd09   :  { %12000 = vmatpush3.bf16.msra.mxu0 %v11997_v30  ;;  %10769 = vmatprep.mubr.f32.mxu0 %v15412_v48  ;;  %v8271_v48 = vld [vmem:[%s16268_s3 + $0xbb0] sm:$0xff]  ;;  %v8274_v30 = vld [vmem:[%s16268_s3 + $0xbc8] sm:$0xff] }
 0xd0a   :  { %12002 = vmatprep.subr.bf16.mxu0 %v12001_v58 }
 0xd0c   :  { %10770 = vmatmul.mubr.f32.vlgmr.msra.gmra.mrb[32].mxu0 %v15367_v61  ;;  %v12013_v61 = vpack.c.bf16 %v8272_v59, %v8271_v48  ;;  %v8290_v48 = vld [vmem:[%s16268_s3 + $0xc48] sm:$0xff] }
 0xd0d   :  { %12004 = vmatpush3.bf16.msra.mxu0 %v12001_v58  ;;  %10772 = vmatprep.mubr.f32.mxu0 %v15369_v57  ;;  %v8273_v57 = vld [vmem:[%s16268_s3 + $0xbc0] sm:$0xff] }
 0xd0e   :  { %12006 = vmatprep.subr.bf16.mxu0 %v12005_v27 }
 0xd10   :  { %10773 = vmatmul.mubr.f32.gmra.mrb[34].mxu0 %v15371_v32  ;;  %v12017_v32 = vpack.c.bf16 %v8274_v30, %v8273_v57  ;;  %v8291_v57 = vld [vmem:[%s16268_s3 + $0xc50] sm:$0xff]  ;;  %v8292_v30 = vld [vmem:[%s16268_s3 + $0xc58] sm:$0xff] }
 0xd11   :  { %12008 = vmatpush3.bf16.msra.mxu0 %v12005_v27  ;;  %10775 = vmatprep.mubr.f32.mxu0 %v15373_v6  ;;  %v8275_v6 = vld [vmem:[%s16268_s3 + $0xbd0] sm:$0xff]  ;;  %v8284_v27 = vld [vmem:[%s16268_s3 + $0xc18] sm:$0xff] }
 0xd12   :  { %12010 = vmatprep.subr.bf16.mxu0 %v12009_v63 }
 0xd14   :  { %10776 = vmatmul.mubr.f32.gmra.mrb[36].mxu0 %v15375_v2  ;;  %v12021_v2 = vpack.c.bf16 %v8276_v36, %v8275_v6  ;;  %v8293_v6 = vld [vmem:[%s16268_s3 + $0xc60] sm:$0xff]  ;;  %v8294_v36 = vld [vmem:[%s16268_s3 + $0xc68] sm:$0xff] }
 0xd15   :  { %12012 = vmatpush3.bf16.msra.mxu0 %v12009_v63  ;;  %10778 = vmatprep.mubr.f32.mxu0 %v15377_v37  ;;  %v8277_v37 = vld [vmem:[%s16268_s3 + $0xbe0] sm:$0xff] }
 0xd16   :  { %12014 = vmatprep.subr.bf16.mxu0 %v12013_v61  ;;  %v12025_v58 = vpack.c.bf16 %v8278_v9, %v8277_v37  ;;  %v8289_v63 = vld [vmem:[%s16268_s3 + $0xc40] sm:$0xff]  ;;  %v8296_v37 = vld [vmem:[%s16268_s3 + $0xc78] sm:$0xff] }
 0xd17   :  { %v12049_v59 = vpack.c.bf16 %v8290_v48, %v8289_v63  ;;  %v8312_v63 = vld [vmem:[%s16268_s3 + $0xcf8] sm:$0xff]  ;;  %v8314_v48 = vld [vmem:[%s16268_s3 + $0xd08] sm:$0xff] }
 0xd18   :  { %10779 = vmatmul.mubr.f32.gmra.mrb[38].mxu0 %v15422_v29 }
 0xd19   :  { %12016 = vmatpush3.bf16.msra.mxu0 %v12013_v61  ;;  %10781 = vmatprep.mubr.f32.mxu0 %v15414_v5  ;;  %v8279_v5 = vld [vmem:[%s16268_s3 + $0xbf0] sm:$0xff]  ;;  %v15824_v61 = vld [vmem:[#allocation2 + $0x82] sm:$0xff] }
 0xd1a   :  { %12018 = vmatprep.subr.bf16.mxu0 %v12017_v32 }
 0xd1c   :  { %10782 = vmatmul.mubr.f32.gmra.mrb[40].mxu0 %v15379_v19  ;;  %v12029_v19 = vpack.c.bf16 %v8280_v54, %v8279_v5  ;;  %v8298_v5 = vld [vmem:[%s16268_s3 + $0xc88] sm:$0xff] }
 0xd1d   :  { %12020 = vmatpush3.bf16.msra.mxu0 %v12017_v32  ;;  %10784 = vmatprep.mubr.f32.mxu0 %v15381_v11  ;;  %v8281_v11 = vld [vmem:[%s16268_s3 + $0xc00] sm:$0xff]  ;;  %v12053_v32 = vpack.c.bf16 %v8292_v30, %v8291_v57 }
 0xd1e   :  { %12022 = vmatprep.subr.bf16.mxu0 %v12021_v2  ;;  %v6965_v57 = vld [vmem:[#allocation2 + $0x21] sm:$0xff] }
 0xd20   :  { %10785 = vmatmul.mubr.f32.gmra.mrb[42].mxu0 %v15383_v38  ;;  %v12033_v38 = vpack.c.bf16 %v8282_v25, %v8281_v11  ;;  %v8299_v11 = vld [vmem:[%s16268_s3 + $0xc90] sm:$0xff]  ;;  %v8300_v25 = vld [vmem:[%s16268_s3 + $0xc98] sm:$0xff] }
 0xd21   :  { %12024 = vmatpush3.bf16.msra.mxu0 %v12021_v2  ;;  %10787 = vmatprep.mubr.f32.mxu0 %v15385_v56  ;;  %v8283_v56 = vld [vmem:[%s16268_s3 + $0xc10] sm:$0xff]  ;;  %v12057_v2 = vpack.c.bf16 %v8294_v36, %v8293_v6  ;;  %v6967_v6 = vld [vmem:[#allocation2 + $0x41] sm:$0xff] }
 0xd22   :  { %12026 = vmatprep.subr.bf16.mxu0 %v12025_v58 }
 0xd24   :  { %10788 = vmatmul.mubr.f32.gmra.mrb[44].mxu0 %v15387_v4  ;;  %v12037_v4 = vpack.c.bf16 %v8284_v27, %v8283_v56  ;;  %v8301_v56 = vld [vmem:[%s16268_s3 + $0xca0] sm:$0xff]  ;;  %v8302_v27 = vld [vmem:[%s16268_s3 + $0xca8] sm:$0xff] }
 0xd25   :  { %12028 = vmatpush3.bf16.msra.mxu0 %v12025_v58  ;;  %10790 = vmatprep.mubr.f32.mxu0 %v15398_v62  ;;  %v8285_v62 = vld [vmem:[%s16268_s3 + $0xc20] sm:$0xff] }
 0xd26   :  { %12030 = vmatprep.subr.bf16.mxu0 %v12029_v19  ;;  %v12041_v8 = vpack.c.bf16 %v8286_v28, %v8285_v62  ;;  %v8297_v58 = vld [vmem:[%s16268_s3 + $0xc80] sm:$0xff]  ;;  %v8304_v62 = vld [vmem:[%s16268_s3 + $0xcb8] sm:$0xff]  ;;  %v8306_v28 = vld [vmem:[%s16268_s3 + $0xcc8] sm:$0xff] }
 0xd27   :  { %v12065_v54 = vpack.c.bf16 %v8298_v5, %v8297_v58  ;;  %v6970_v5 = vld [vmem:[#allocation2 + $0x71] sm:$0xff] }
 0xd28   :  { %10791 = vmatmul.mubr.f32.gmra.mrb[46].mxu0 %v5622_v22  ;;  %v8287_v22 = vld [vmem:[%s16268_s3 + $0xc30] sm:$0xff] }
 0xd29   :  { %12032 = vmatpush3.bf16.msra.mxu0 %v12029_v19  ;;  %10825 = vmatprep.mubr.f32.mxu0 %v15576_v21  ;;  %v8288_v21 = vld [vmem:[%s16268_s3 + $0xc38] sm:$0xff]  ;;  %v15858_v19 = vld [vmem:[#allocation2 + $0x122] sm:$0xff] }
 0xd2a   :  { %12034 = vmatprep.subr.bf16.mxu0 %v12033_v38  ;;  %v12045_v49 = vpack.c.bf16 %v8288_v21, %v8287_v22  ;;  %v12570_v22 = vld [vmem:[#allocation2] sm:$0xff]  ;;  %v8310_v21 = vld [vmem:[%s16268_s3 + $0xce8] sm:$0xff] }
 0xd2c   :  { %10826 = vmatmul.mubr.f32.vlgmr.msra.gmra.mrb[32].mxu0 %v15585_v0 }
 0xd2d   :  { %12036 = vmatpush3.bf16.msra.mxu0 %v12033_v38  ;;  %10828 = vmatprep.mubr.f32.mxu0 %v15588_v18  ;;  %v12069_v38 = vpack.c.bf16 %v8300_v25, %v8299_v11  ;;  %v8322_v11 = vld [vmem:[%s16268_s3 + $0xd48] sm:$0xff]  ;;  %v6972_v25 = vld [vmem:[#allocation2 + $0x91] sm:$0xff] }
 0xd2e   :  { %12038 = vmatprep.subr.bf16.mxu0 %v12037_v4 }
 0xd30   :  { %10829 = vmatmul.mubr.f32.gmra.mrb[34].mxu0 %v15597_v15 }
 0xd31   :  { %12040 = vmatpush3.bf16.msra.mxu0 %v12037_v4  ;;  %10831 = vmatprep.mubr.f32.mxu0 %v15600_v10  ;;  %v12073_v4 = vpack.c.bf16 %v8302_v27, %v8301_v56  ;;  %v8323_v56 = vld [vmem:[%s16268_s3 + $0xd50] sm:$0xff]  ;;  %v8324_v27 = vld [vmem:[%s16268_s3 + $0xd58] sm:$0xff] }
 0xd32   :  { %12042 = vmatprep.subr.bf16.mxu0 %v12041_v8 }
 0xd34   :  { %10832 = vmatmul.mubr.f32.gmra.mrb[36].mxu0 %v15609_v43 }
 0xd35   :  { %12044 = vmatpush3.bf16.msra.mxu0 %v12041_v8  ;;  %10834 = vmatprep.mubr.f32.mxu0 %v15612_v55  ;;  %v8308_v8 = vld [vmem:[%s16268_s3 + $0xcd8] sm:$0xff] }
 0xd36   :  { %12046 = vmatprep.subr.bf16.mxu0 %v12045_v49 }
 0xd38   :  { %10835 = vmatmul.mubr.f32.gmra.mrb[38].mxu0 %v15824_v61 }
 0xd39   :  { %12048 = vmatpush3.bf16.msra.mxu0 %v12045_v49  ;;  %10837 = vmatprep.mubr.f32.mxu0 %v15621_v23  ;;  %v8295_v23 = vld [vmem:[%s16268_s3 + $0xc70] sm:$0xff] }
 0xd3a   :  { %12050 = vmatprep.subr.bf16.mxu0 %v12049_v59  ;;  %v12061_v9 = vpack.c.bf16 %v8296_v37, %v8295_v23  ;;  %v8319_v23 = vld [vmem:[%s16268_s3 + $0xd30] sm:$0xff]  ;;  %v8320_v37 = vld [vmem:[%s16268_s3 + $0xd38] sm:$0xff] }
 0xd3b   :  { %v12109_v58 = vpack.c.bf16 %v8320_v37, %v8319_v23 }
 0xd3c   :  { %10838 = vmatmul.mubr.f32.gmra.mrb[40].mxu0 %v15630_v24 }
 0xd3d   :  { %12052 = vmatpush3.bf16.msra.mxu0 %v12049_v59  ;;  %10840 = vmatprep.mubr.f32.mxu0 %v15633_v40  ;;  %v8316_v59 = vld [vmem:[%s16268_s3 + $0xd18] sm:$0xff] }
 0xd3e   :  { %12054 = vmatprep.subr.bf16.mxu0 %v12053_v32 }
 0xd40   :  { %10841 = vmatmul.mubr.f32.gmra.mrb[42].mxu0 %v15642_v42 }
 0xd41   :  { %12056 = vmatpush3.bf16.msra.mxu0 %v12053_v32  ;;  %10843 = vmatprep.mubr.f32.mxu0 %v15645_v1  ;;  %v8318_v32 = vld [vmem:[%s16268_s3 + $0xd28] sm:$0xff] }
 0xd42   :  { %12058 = vmatprep.subr.bf16.mxu0 %v12057_v2 }
 0xd44   :  { %10844 = vmatmul.mubr.f32.gmra.mrb[44].mxu0 %v15654_v53 }
 0xd45   :  { %12060 = vmatpush3.bf16.msra.mxu0 %v12057_v2  ;;  %10846 = vmatprep.mubr.f32.mxu0 %v15657_v45  ;;  %v6968_v2 = vld [vmem:[#allocation2 + $0x51] sm:$0xff] }
 0xd46   :  { %12062 = vmatprep.subr.bf16.mxu0 %v12061_v9 }
 0xd48   :  { %10847 = vmatmul.mubr.f32.gmra.mrb[46].mxu0 %v15858_v19 }
 0xd49   :  { %12064 = vmatpush3.bf16.msra.mxu0 %v12061_v9  ;;  %10881 = vmatprep.mubr.f32.mxu0 %v15494_v3  ;;  %v8303_v3 = vld [vmem:[%s16268_s3 + $0xcb0] sm:$0xff]  ;;  %v6969_v9 = vld [vmem:[#allocation2 + $0x61] sm:$0xff] }
 0xd4a   :  { %12066 = vmatprep.subr.bf16.mxu0 %v12065_v54 }
 0xd4c   :  { %10882 = vmatmul.mubr.f32.vlgmr.msra.gmra.mrb[32].mxu0 %v15497_v47  ;;  %v12077_v47 = vpack.c.bf16 %v8304_v62, %v8303_v3  ;;  %v12117_v3 = vpack.c.bf16 %v8324_v27, %v8323_v56  ;;  %v6974_v62 = vld [vmem:[#allocation2 + $0xd1] sm:$0xff] }
 0xd4d   :  { %12068 = vmatpush3.bf16.msra.mxu0 %v12065_v54  ;;  %10884 = vmatprep.mubr.f32.mxu0 %v15506_v34  ;;  %v8305_v34 = vld [vmem:[%s16268_s3 + $0xcc0] sm:$0xff] }
 0xd4e   :  { %12070 = vmatprep.subr.bf16.mxu0 %v12069_v38  ;;  %v8321_v54 = vld [vmem:[%s16268_s3 + $0xd40] sm:$0xff] }
 0xd50   :  { %10885 = vmatmul.mubr.f32.gmra.mrb[34].mxu0 %v15509_v52  ;;  %v12081_v52 = vpack.c.bf16 %v8306_v28, %v8305_v34  ;;  %v6975_v34 = vld [vmem:[#allocation2 + $0xe1] sm:$0xff] }
 0xd51   :  { %12072 = vmatpush3.bf16.msra.mxu0 %v12069_v38  ;;  %10887 = vmatprep.mubr.f32.mxu0 %v15518_v41  ;;  %v8307_v41 = vld [vmem:[%s16268_s3 + $0xcd0] sm:$0xff]  ;;  %v12113_v38 = vpack.c.bf16 %v8322_v11, %v8321_v54 }
 0xd52   :  { %12074 = vmatprep.subr.bf16.mxu0 %v12073_v4 }
 0xd54   :  { %10888 = vmatmul.mubr.f32.gmra.mrb[36].mxu0 %v15521_v50  ;;  %v12085_v50 = vpack.c.bf16 %v8308_v8, %v8307_v41  ;;  %v8327_v41 = vld [vmem:[%s16268_s3 + $0xd70] sm:$0xff]  ;;  %v8328_v8 = vld [vmem:[%s16268_s3 + $0xd78] sm:$0xff] }
 0xd55   :  { %12076 = vmatpush3.bf16.msra.mxu0 %v12073_v4  ;;  %10890 = vmatprep.mubr.f32.mxu0 %v15691_v44  ;;  %v8309_v44 = vld [vmem:[%s16268_s3 + $0xce0] sm:$0xff] }
 0xd56   :  { %12078 = vmatprep.subr.bf16.mxu0 %v12077_v47  ;;  %v12089_v49 = vpack.c.bf16 %v8310_v21, %v8309_v44  ;;  %v6973_v4 = vld [vmem:[#allocation2 + $0xc1] sm:$0xff]  ;;  %v6978_v44 = vld [vmem:[#allocation2 + $0x111] sm:$0xff] }
 0xd57   :  { %v6979_v21 = vld [vmem:[#allocation2 + $0x121] sm:$0xff] }
 0xd58   :  { %10891 = vmatmul.mubr.f32.gmra.mrb[38].mxu0 %v12570_v22 }
 0xd59   :  { %12080 = vmatpush3.bf16.msra.mxu0 %v12077_v47  ;;  %10893 = vmatprep.mubr.f32.mxu0 %v15540_v20  ;;  %v8311_v20 = vld [vmem:[%s16268_s3 + $0xcf0] sm:$0xff]  ;;  %v8326_v47 = vld [vmem:[%s16268_s3 + $0xd68] sm:$0xff] }
 0xd5a   :  { %12082 = vmatprep.subr.bf16.mxu0 %v12081_v52 }
 0xd5c   :  { %10894 = vmatmul.mubr.f32.gmra.mrb[40].mxu0 %v15543_v16  ;;  %v12093_v16 = vpack.c.bf16 %v8312_v63, %v8311_v20  ;;  %v7166_v20 = vld [vmem:[#allocation2 + $0x92] sm:$0xff]  ;;  %v8338_v63 = vld [vmem:[%s16270_s4 + $0x148] sm:$0xff] }
 0xd5d   :  { %12084 = vmatpush3.bf16.msra.mxu0 %v12081_v52  ;;  %10896 = vmatprep.mubr.f32.mxu0 %v15552_v26  ;;  %v8313_v26 = vld [vmem:[%s16268_s3 + $0xd00] sm:$0xff]  ;;  %v6976_v52 = vld [vmem:[#allocation2 + $0xf1] sm:$0xff] }
 0xd5e   :  { %12086 = vmatprep.subr.bf16.mxu0 %v12085_v50 }
 0xd60   :  { %10897 = vmatmul.mubr.f32.gmra.mrb[42].mxu0 %v15555_v39  ;;  %v12097_v39 = vpack.c.bf16 %v8314_v48, %v8313_v26  ;;  %v8339_v26 = vld [vmem:[%s16270_s4 + $0x150] sm:$0xff]  ;;  %v8340_v48 = vld [vmem:[%s16270_s4 + $0x158] sm:$0xff] }
 0xd61   :  { %12088 = vmatpush3.bf16.msra.mxu0 %v12085_v50  ;;  %10899 = vmatprep.mubr.f32.mxu0 %v15564_v51  ;;  %v8315_v51 = vld [vmem:[%s16268_s3 + $0xd10] sm:$0xff]  ;;  %v12125_v50 = vpack.c.bf16 %v8328_v8, %v8327_v41 }
 0xd62   :  { %12090 = vmatprep.subr.bf16.mxu0 %v12089_v49  ;;  %v12101_v30 = vpack.c.bf16 %v8316_v59, %v8315_v51  ;;  %v8341_v51 = vld [vmem:[%s16270_s4 + $0x160] sm:$0xff]  ;;  %v8342_v59 = vld [vmem:[%s16270_s4 + $0x168] sm:$0xff] }
 0xd64   :  { %10900 = vmatmul.mubr.f32.gmra.mrb[44].mxu0 %v15567_v7  ;;  %v6966_v7 = vld [vmem:[#allocation2 + $0x31] sm:$0xff] }
 0xd65   :  { %12092 = vmatpush3.bf16.msra.mxu0 %v12089_v49  ;;  %10902 = vmatprep.mubr.f32.mxu0 %v15725_v60  ;;  %v8317_v60 = vld [vmem:[%s16268_s3 + $0xd20] sm:$0xff]  ;;  %v6980_v49 = vld [vmem:[#allocation2 + $0x131] sm:$0xff] }
 0xd66   :  { %12094 = vmatprep.subr.bf16.mxu0 %v12093_v16  ;;  %v12105_v36 = vpack.c.bf16 %v8318_v32, %v8317_v60 }
 0xd68   :  { %10903 = vmatmul.mubr.f32.gmra.mrb[46].mxu0 %v12570_v22  ;;  %v6977_v22 = vld [vmem:[#allocation2 + $0x101] sm:$0xff] }
 0xd69   :  { %12096 = vmatpush3.bf16.msra.mxu0 %v12093_v16  ;;  %10937 = vmatprep.mubr.f32.mxu0 %v6965_v57  ;;  %v8343_v57 = vld [vmem:[%s16270_s4 + $0x170] sm:$0xff] }
 0xd6a   :  { %12098 = vmatprep.subr.bf16.mxu0 %v12097_v39 }
 0xd6c   :  { %10938 = vmatmul.mubr.f32.vlgmr.msra.gmra.mrb[32].mxu0 %v6966_v7  ;;  %v8344_v7 = vld [vmem:[%s16270_s4 + $0x178] sm:$0xff] }
 0xd6d   :  { %12100 = vmatpush3.bf16.msra.mxu0 %v12097_v39  ;;  %10940 = vmatprep.mubr.f32.mxu0 %v6967_v6  ;;  %v12149_v39 = vpack.c.bf16 %v8340_v48, %v8339_v26  ;;  %v12157_v60 = vpack.c.bf16 %v8344_v7, %v8343_v57 }
 0xd6e   :  { %12102 = vmatprep.subr.bf16.mxu0 %v12101_v30 }
 0xd70   :  { %10941 = vmatmul.mubr.f32.gmra.mrb[34].mxu0 %v6968_v2 }
 0xd71   :  { %12104 = vmatpush3.bf16.msra.mxu0 %v12101_v30  ;;  %10943 = vmatprep.mubr.f32.mxu0 %v6969_v9  ;;  %v12153_v30 = vpack.c.bf16 %v8342_v59, %v8341_v51 }
 0xd72   :  { %12106 = vmatprep.subr.bf16.mxu0 %v12105_v36 }
 0xd74   :  { %10944 = vmatmul.mubr.f32.gmra.mrb[36].mxu0 %v6970_v5 }
 0xd75   :  { %12108 = vmatpush3.bf16.msra.mxu0 %v12105_v36  ;;  %10946 = vmatprep.mubr.f32.mxu0 %v15422_v29  ;;  %v8325_v29 = vld [vmem:[%s16268_s3 + $0xd60] sm:$0xff] }
 0xd76   :  { %12110 = vmatprep.subr.bf16.mxu0 %v12109_v58  ;;  %v12121_v28 = vpack.c.bf16 %v8326_v47, %v8325_v29 }
 0xd78   :  { %10947 = vmatmul.mubr.f32.gmra.mrb[38].mxu0 %v6972_v25 }
 0xd79   :  { %12112 = vmatpush3.bf16.msra.mxu0 %v12109_v58  ;;  %10949 = vmatprep.mubr.f32.mxu0 %v6973_v4 }
 0xd7a   :  { %12114 = vmatprep.subr.bf16.mxu0 %v12113_v38 }
 0xd7c   :  { %10950 = vmatmul.mubr.f32.gmra.mrb[40].mxu0 %v6974_v62 }
 0xd7d   :  { %12116 = vmatpush3.bf16.msra.mxu0 %v12113_v38  ;;  %10952 = vmatprep.mubr.f32.mxu0 %v6975_v34 }
 0xd7e   :  { %12118 = vmatprep.subr.bf16.mxu0 %v12117_v3 }
 0xd80   :  { %10953 = vmatmul.mubr.f32.gmra.mrb[42].mxu0 %v6976_v52 }
 0xd81   :  { %12120 = vmatpush3.bf16.msra.mxu0 %v12117_v3  ;;  %10955 = vmatprep.mubr.f32.mxu0 %v6977_v22 }
 0xd82   :  { %12122 = vmatprep.subr.bf16.mxu0 %v12121_v28 }
 0xd84   :  { %10956 = vmatmul.mubr.f32.gmra.mrb[44].mxu0 %v6978_v44 }
 0xd85   :  { %12124 = vmatpush3.bf16.msra.mxu0 %v12121_v28  ;;  %10958 = vmatprep.mubr.f32.mxu0 %v6979_v21 }
 0xd86   :  { %12126 = vmatprep.subr.bf16.mxu0 %v12125_v50 }
 0xd88   :  { %10959 = vmatmul.mubr.f32.gmra.mrb[46].mxu0 %v6980_v49 }
 0xd89   :  { %12128 = vmatpush3.bf16.msra.mxu0 %v12125_v50  ;;  %10993 = vmatprep.mubr.f32.mxu0 %v15585_v0  ;;  %v7174_v0 = vld [vmem:[#allocation2 + $0x132] sm:$0xff] }
 0xd8c   :  { %10994 = vmatmul.mubr.f32.vlgmr.msra.gmra.mrb[32].mxu0 %v15588_v18  ;;  %v8329_v18 = vld [vmem:[%s16270_s4 + $0x100] sm:$0xff] }
 0xd8d   :  { %10996 = vmatprep.mubr.f32.mxu0 %v15597_v15  ;;  %v8330_v15 = vld [vmem:[%s16270_s4 + $0x108] sm:$0xff] }
 0xd90   :  { %10997 = vmatmul.mubr.f32.gmra.mrb[34].mxu0 %v15600_v10  ;;  %v12129_v10 = vpack.c.bf16 %v8330_v15, %v8329_v18 }
 0xd91   :  { %10999 = vmatprep.mubr.f32.mxu0 %v15609_v43  ;;  %v8331_v43 = vld [vmem:[%s16270_s4 + $0x110] sm:$0xff] }
 0xd92   :  { %12130 = vmatprep.subr.bf16.mxu1 %v12129_v10 }
 0xd93   :  { %12132 = vmatpush3.bf16.msra.mxu1 %v12129_v10 }
 0xd94   :  { %11000 = vmatmul.mubr.f32.gmra.mrb[36].mxu0 %v15612_v55  ;;  %v8332_v55 = vld [vmem:[%s16270_s4 + $0x118] sm:$0xff] }
 0xd95   :  { %11002 = vmatprep.mubr.f32.mxu0 %v15824_v61 }
 0xd98   :  { %11003 = vmatmul.mubr.f32.gmra.mrb[38].mxu0 %v7166_v20 }
 0xd99   :  { %11005 = vmatprep.mubr.f32.mxu0 %v15630_v24  ;;  %v12133_v24 = vpack.c.bf16 %v8332_v55, %v8331_v43 }
 0xd9b   :  { %12134 = vmatprep.subr.bf16.mxu1 %v12133_v24 }
 0xd9c   :  { %11006 = vmatmul.mubr.f32.gmra.mrb[40].mxu0 %v15633_v40  ;;  %12136 = vmatpush3.bf16.msra.mxu1 %v12133_v24  ;;  %v8333_v40 = vld [vmem:[%s16270_s4 + $0x120] sm:$0xff] }
 0xd9d   :  { %11008 = vmatprep.mubr.f32.mxu0 %v15642_v42  ;;  %v8334_v42 = vld [vmem:[%s16270_s4 + $0x128] sm:$0xff] }
 0xda0   :  { %11009 = vmatmul.mubr.f32.gmra.mrb[42].mxu0 %v15645_v1  ;;  %v12137_v1 = vpack.c.bf16 %v8334_v42, %v8333_v40 }
 0xda1   :  { %11011 = vmatprep.mubr.f32.mxu0 %v15654_v53  ;;  %v8335_v53 = vld [vmem:[%s16270_s4 + $0x130] sm:$0xff] }
 0xda2   :  { %12138 = vmatprep.subr.bf16.mxu1 %v12137_v1 }
 0xda3   :  { %12140 = vmatpush3.bf16.msra.mxu1 %v12137_v1 }
 0xda4   :  { %11012 = vmatmul.mubr.f32.gmra.mrb[44].mxu0 %v15657_v45  ;;  %v8336_v45 = vld [vmem:[%s16270_s4 + $0x138] sm:$0xff] }
 0xda5   :  { %11014 = vmatprep.mubr.f32.mxu0 %v15858_v19  ;;  %v12141_v61 = vpack.c.bf16 %v8336_v45, %v8335_v53  ;;  %v8337_v19 = vld [vmem:[%s16270_s4 + $0x140] sm:$0xff] }
 0xda6   :  { %v12145_v16 = vpack.c.bf16 %v8338_v63, %v8337_v19 }
 0xda7   :  { %12142 = vmatprep.subr.bf16.mxu1 %v12141_v61 }
 0xda8   :  { %11015 = vmatmul.mubr.f32.gmra.mrb[46].mxu0 %v7174_v0  ;;  %12144 = vmatpush3.bf16.msra.mxu1 %v12141_v61 }
 0xda9   :  { %12146 = vmatprep.subr.bf16.mxu1 %v12145_v16 }
 0xdac   :  { %12148 = vmatpush3.bf16.msra.mxu1 %v12145_v16 }
 0xdad   :  { %12150 = vmatprep.subr.bf16.mxu1 %v12149_v39 }
 0xdb0   :  { %12152 = vmatpush3.bf16.msra.mxu1 %v12149_v39 }
 0xdb1   :  { %12154 = vmatprep.subr.bf16.mxu1 %v12153_v30 }
 0xdb4   :  { %12156 = vmatpush3.bf16.msra.mxu1 %v12153_v30 }
 0xdb5   :  { %12158 = vmatprep.subr.bf16.mxu1 %v12157_v60 }
 0xdb8   :  { %12160 = vmatpush3.bf16.msra.mxu1 %v12157_v60 }
 0xe5f   :  { %v16028_v32 = vpop.f32.mrb[32].mxu0 }
 0xe60   :  { %v16030_v6 = vpop.f32.mrb[33].mxu0 }
 0xe61   :  { %v7353_v36 = vadd.f32 %v16028_v32, %v16030_v6 }
 0xe63   :  { %v16034_v2 = vpop.f32.mrb[34].mxu0 }
 0xe64   :  { %v16036_v23 = vpop.f32.mrb[35].mxu0 }
 0xe65   :  { %v7354_v37 = vadd.f32 %v7353_v36, %v16036_v23 }
 0xe67   :  { %v16039_v9 = vpop.f32.mrb[36].mxu0  ;;  %v7355_v58 = vadd.f32 %v16034_v2, %v7354_v37 }
 0xe68   :  { %v16042_v5 = vpop.f32.mrb[37].mxu0 }
 0xe69   :  { %v7356_v54 = vadd.f32 %v7355_v58, %v16042_v5 }
 0xe6b   :  { %v16045_v11 = vpop.f32.mrb[38].mxu0  ;;  %v7357_v25 = vadd.f32 %v16039_v9, %v7356_v54 }
 0xe6c   :  { %v16048_v38 = vpop.f32.mrb[39].mxu0 }
 0xe6d   :  { %v7358_v56 = vadd.f32 %v7357_v25, %v16048_v38 }
 0xe6f   :  { %v16051_v27 = vpop.f32.mrb[40].mxu0  ;;  %v7359_v4 = vadd.f32 %v16045_v11, %v7358_v56 }
 0xe70   :  { %v16054_v3 = vpop.f32.mrb[41].mxu0 }
 0xe71   :  { %v7360_v62 = vadd.f32 %v7359_v4, %v16054_v3 }
 0xe73   :  { %v16057_v29 = vpop.f32.mrb[42].mxu0  ;;  %v7361_v47 = vadd.f32 %v16051_v27, %v7360_v62 }
 0xe74   :  { %v16060_v34 = vpop.f32.mrb[43].mxu0 }
 0xe75   :  { %v7362_v28 = vadd.f32 %v7361_v47, %v16060_v34 }
 0xe77   :  { %v16063_v52 = vpop.f32.mrb[44].mxu0  ;;  %v7363_v41 = vadd.f32 %v16057_v29, %v7362_v28 }
 0xe78   :  { %v16066_v8 = vpop.f32.mrb[45].mxu0 }
 0xe79   :  { %v7364_v22 = vadd.f32 %v7363_v41, %v16066_v8 }
 0xe7b   :  { %v16069_v50 = vpop.f32.mrb[46].mxu0  ;;  %v7365_v44 = vadd.f32 %v16063_v52, %v7364_v22 }
 0xe7c   :  { %v16072_v21 = vpop.f32.mrb[47].mxu0 }
 0xe7d   :  { %v7366_v49 = vadd.f32 %v7365_v44, %v16072_v21 }
 0xe7f   :  { %v7367_v20 = vadd.f32 %v16069_v50, %v7366_v49 }
 0xe81   :  { %v7368_v0 = vrot.slane %v7367_v20, 4 }
 0xe83   :  { %v7369_v18 = vadd.f32 %v7368_v0, %v7367_v20 }
 0xe85   :  { %v7370_v15 = vrot.slane %v7369_v18, 2 }
 0xe87   :  { %v7371_v10 = vadd.f32 %v7370_v15, %v7369_v18 }
 0xe89   :  { %v7372_v43 = vrot.slane %v7371_v10, 1 }
 0xe8b   :  { %v7373_v55 = vadd.f32 %v7372_v43, %v7371_v10 }
 0xe8d   :  { %v7374_v24 = vmul.f32 0.0078125, %v7373_v55 }
 0xe8f   :  { %v7375_v40 = vsub.f32 %v16030_v6, %v7374_v24  ;;  %v7376_v42 = vsub.f32 %v16028_v32, %v7374_v24  ;;  %v7377_v1 = vsub.f32 %v16036_v23, %v7374_v24  ;;  %v7378_v53 = vsub.f32 %v16034_v2, %v7374_v24 }
 0xe90   :  { %v7379_v45 = vsub.f32 %v16042_v5, %v7374_v24  ;;  %v7380_v61 = vsub.f32 %v16039_v9, %v7374_v24  ;;  %v7381_v19 = vsub.f32 %v16048_v38, %v7374_v24  ;;  %v7382_v63 = vsub.f32 %v16045_v11, %v7374_v24 }
 0xe91   :  { %v7383_v16 = vsub.f32 %v16054_v3, %v7374_v24  ;;  %v7384_v26 = vsub.f32 %v16051_v27, %v7374_v24  ;;  %v7385_v48 = vsub.f32 %v16060_v34, %v7374_v24  ;;  %v7386_v39 = vsub.f32 %v16057_v29, %v7374_v24 }
 0xe92   :  { %v7387_v51 = vsub.f32 %v16066_v8, %v7374_v24  ;;  %v7388_v59 = vsub.f32 %v16063_v52, %v7374_v24  ;;  %v7389_v57 = vsub.f32 %v16072_v21, %v7374_v24  ;;  %v7390_v30 = vsub.f32 %v16069_v50, %v7374_v24 }
 0xe93   :  { %v7391_v7 = vmul.f32 %v7375_v40, %v7375_v40  ;;  %v7392_v60 = vmul.f32 %v7376_v42, %v7376_v42  ;;  %v7393_v36 = vmul.f32 %v7377_v1, %v7377_v1  ;;  %v7394_v58 = vmul.f32 %v7378_v53, %v7378_v53 }
 0xe94   :  { %v7395_v25 = vmul.f32 %v7379_v45, %v7379_v45  ;;  %v7396_v4 = vmul.f32 %v7380_v61, %v7380_v61  ;;  %v7397_v47 = vmul.f32 %v7381_v19, %v7381_v19  ;;  %v7398_v41 = vmul.f32 %v7382_v63, %v7382_v63 }
 0xe95   :  { %v7407_v37 = vadd.f32 %v7392_v60, %v7391_v7  ;;  %v7399_v44 = vmul.f32 %v7383_v16, %v7383_v16  ;;  %v7400_v20 = vmul.f32 %v7384_v26, %v7384_v26  ;;  %v7401_v18 = vmul.f32 %v7385_v48, %v7385_v48 }
 0xe96   :  { %v7402_v10 = vmul.f32 %v7386_v39, %v7386_v39  ;;  %v7403_v55 = vmul.f32 %v7387_v51, %v7387_v51  ;;  %v7404_v42 = vmul.f32 %v7388_v59, %v7388_v59  ;;  %v7405_v53 = vmul.f32 %v7389_v57, %v7389_v57  ;;  %v16095_v51 = vld [vmem:[%s16269_s5 + $0x10] sm:$0xff] }
 0xe97   :  { %v7408_v54 = vadd.f32 %v7407_v37, %v7393_v36  ;;  %v7406_v61 = vmul.f32 %v7390_v30, %v7390_v30  ;;  %v16336_v30 = vld [vmem:[#allocation12_spill] sm:$0xff] }
 0xe99   :  { %v7409_v56 = vadd.f32 %v7408_v54, %v7394_v58 }
 0xe9b   :  { %v7410_v62 = vadd.f32 %v7409_v56, %v7395_v25 }
 0xe9d   :  { %v7411_v28 = vadd.f32 %v7410_v62, %v7396_v4 }
 0xe9f   :  { %v7412_v22 = vadd.f32 %v7411_v28, %v7397_v47 }
 0xea1   :  { %v7413_v49 = vadd.f32 %v7412_v22, %v7398_v41 }
 0xea3   :  { %v7414_v0 = vadd.f32 %v7413_v49, %v7399_v44 }
 0xea5   :  { %v7415_v15 = vadd.f32 %v7414_v0, %v7400_v20  ;;  %v16337_v20 = vld [vmem:[#allocation13_spill] sm:$0xff] }
 0xea7   :  { %v7416_v43 = vadd.f32 %v7415_v15, %v7401_v18 }
 0xea9   :  { %v7417_v40 = vadd.f32 %v7416_v43, %v7402_v10 }
 0xeab   :  { %v7418_v1 = vadd.f32 %v7417_v40, %v7403_v55 }
 0xead   :  { %v7419_v45 = vadd.f32 %v7418_v1, %v7404_v42 }
 0xeaf   :  { %v7420_v7 = vadd.f32 %v7419_v45, %v7405_v53 }
 0xeb1   :  { %v7421_v19 = vadd.f32 %v7420_v7, %v7406_v61 }
 0xeb3   :  { %v7422_v60 = vrot.slane %v7421_v19, 4 }
 0xeb5   :  { %v7423_v63 = vadd.f32 %v7422_v60, %v7421_v19 }
 0xeb7   :  { %v7424_v36 = vrot.slane %v7423_v63, 2 }
 0xeb9   :  { %v7425_v16 = vadd.f32 %v7424_v36, %v7423_v63 }
 0xebb   :  { %v7426_v37 = vrot.slane %v7425_v16, 1 }
 0xebd   :  { %v7427_v26 = vadd.f32 %v7426_v37, %v7425_v16 }
 0xebf   :  { %v7428_v58 = vmul.f32 0.0078125, %v7427_v26 }
 0xec1   :  { %v7429_v48 = vadd.f32 1e-05, %v7428_v58 }
 0xec3   :  { %12560 = vrsqrt.f32 %v7429_v48 }
 0xecd   :  { %v12561_v39 = vpop.eup %12560 }
 0xece   :  { %v7431_v59 = vmul.f32 %v16095_v51, %v12561_v39 }
 0xed0   :  { %v7432_v57 = vmul.f32 %v7431_v59, %v7374_v24  ;;  %v7440_v54 = vrot.slane %v7431_v59, %v16336_v30 }
 0xed2   :  { %v7434_v25 = vrot.slane %v7432_v57, 7  ;;  %v7455_v56 = vmul.f32 %v7440_v54, %v16072_v21  ;;  %v7441_v4 = vmul.f32 %v7440_v54, %v16030_v6  ;;  %v7442_v62 = vmul.f32 %v16028_v32, %v7440_v54 }
 0xed3   :  { %v7443_v47 = vmul.f32 %v7440_v54, %v16036_v23  ;;  %v7444_v28 = vmul.f32 %v16034_v2, %v7440_v54  ;;  %v7445_v41 = vmul.f32 %v7440_v54, %v16042_v5  ;;  %v7446_v22 = vmul.f32 %v16039_v9, %v7440_v54 }
 0xed4   :  { %v7436_v44 = vsub.f32 %v16095_v51, %v7434_v25  ;;  %v7447_v24 = vmul.f32 %v7440_v54, %v16048_v38  ;;  %v7448_v49 = vmul.f32 %v16045_v11, %v7440_v54  ;;  %v7449_v21 = vmul.f32 %v7440_v54, %v16054_v3 }
 0xed5   :  { %v7450_v6 = vmul.f32 %v16051_v27, %v7440_v54  ;;  %v7451_v32 = vmul.f32 %v7440_v54, %v16060_v34  ;;  %v7452_v23 = vmul.f32 %v16057_v29, %v7440_v54  ;;  %v7453_v2 = vmul.f32 %v7440_v54, %v16066_v8 }
 0xed6   :  { %v7460_v5 = vrot.slane %v7436_v44, %v16337_v20  ;;  %v7454_v9 = vmul.f32 %v16063_v52, %v7440_v54  ;;  %v7456_v0 = vmul.f32 %v16069_v50, %v7440_v54 }
 0xed8   :  { %v7475_v18 = vadd.f32 %v7460_v5, %v7455_v56  ;;  %v7461_v38 = vadd.f32 %v7460_v5, %v7441_v4  ;;  %v7462_v15 = vadd.f32 %v7460_v5, %v7442_v62  ;;  %v7463_v11 = vadd.f32 %v7460_v5, %v7443_v47 }
 0xed9   :  { %v7464_v10 = vadd.f32 %v7460_v5, %v7444_v28  ;;  %v7465_v3 = vadd.f32 %v7460_v5, %v7445_v41  ;;  %v7466_v43 = vadd.f32 %v7460_v5, %v7446_v22  ;;  %v7467_v27 = vadd.f32 %v7460_v5, %v7447_v24 }
 0xeda   :  { %v7477_v55 = vmax.f32 %v7461_v38, 0.0  ;;  %v7478_v34 = vmax.f32 %v7462_v15, 0.0  ;;  %v7468_v40 = vadd.f32 %v7460_v5, %v7448_v49  ;;  %v7479_v29 = vmax.f32 %v7463_v11, 0.0 }
 0xedb   :  { %v7469_v8 = vadd.f32 %v7460_v5, %v7449_v21  ;;  %v7470_v42 = vadd.f32 %v7460_v5, %v7450_v6  ;;  %v7471_v1 = vadd.f32 %v7460_v5, %v7451_v32  ;;  %v7472_v52 = vadd.f32 %v7460_v5, %v7452_v23 }
 0xedc   :  { %11049 = vmatprep.mubr.f32.mxu1 %v7477_v55  ;;  %v7473_v53 = vadd.f32 %v7460_v5, %v7453_v2  ;;  %v7474_v50 = vadd.f32 %v7460_v5, %v7454_v9  ;;  %v7476_v45 = vadd.f32 %v7460_v5, %v7456_v0  ;;  %v7480_v61 = vmax.f32 %v7464_v10, 0.0 }
 0xedd   :  { %11050 = vmatmul.mubr.f32.vlgmr.msra.gmra.mrb[144].mxu1 %v7478_v34  ;;  %v7481_v7 = vmax.f32 %v7465_v3, 0.0  ;;  %v7482_v19 = vmax.f32 %v7466_v43, 0.0  ;;  %v7483_v60 = vmax.f32 %v7467_v27, 0.0  ;;  %v7484_v63 = vmax.f32 %v7468_v40, 0.0 }
 0xede   :  { %11052 = vmatprep.mubr.f32.mxu1 %v7479_v29  ;;  %v7485_v36 = vmax.f32 %v7469_v8, 0.0  ;;  %v7486_v16 = vmax.f32 %v7470_v42, 0.0  ;;  %v7487_v37 = vmax.f32 %v7471_v1, 0.0  ;;  %v7488_v26 = vmax.f32 %v7472_v52, 0.0 }
 0xedf   :  { %v7489_v58 = vmax.f32 %v7473_v53, 0.0  ;;  %v7490_v48 = vmax.f32 %v7474_v50, 0.0  ;;  %v7491_v39 = vmax.f32 %v7475_v18, 0.0  ;;  %v7492_v59 = vmax.f32 %v7476_v45, 0.0 }
 0xee1   :  { %11053 = vmatmul.mubr.f32.gmra.mrb[146].mxu1 %v7480_v61 }
 0xee2   :  { %11055 = vmatprep.mubr.f32.mxu1 %v7481_v7 }
 0xee5   :  { %11056 = vmatmul.mubr.f32.gmra.mrb[148].mxu1 %v7482_v19 }
 0xee6   :  { %11058 = vmatprep.mubr.f32.mxu1 %v7483_v60 }
 0xee9   :  { %11059 = vmatmul.mubr.f32.gmra.mrb[150].mxu1 %v7484_v63 }
 0xeea   :  { %11061 = vmatprep.mubr.f32.mxu1 %v7485_v36 }
 0xeed   :  { %11062 = vmatmul.mubr.f32.gmra.mrb[152].mxu1 %v7486_v16 }
 0xeee   :  { %11064 = vmatprep.mubr.f32.mxu1 %v7487_v37 }
 0xef1   :  { %11065 = vmatmul.mubr.f32.gmra.mrb[154].mxu1 %v7488_v26 }
 0xef2   :  { %11067 = vmatprep.mubr.f32.mxu1 %v7489_v58 }
 0xef5   :  { %11068 = vmatmul.mubr.f32.gmra.mrb[156].mxu1 %v7490_v48 }
 0xef6   :  { %11070 = vmatprep.mubr.f32.mxu1 %v7491_v39 }
 0xef9   :  { %11071 = vmatmul.mubr.f32.gmra.mrb[158].mxu1 %v7492_v59 }
 0xfb0   :  { %v16117_v57 = vpop.f32.mrb[144].mxu1 }
 0xfb1   :  { %v16119_v30 = vpop.f32.mrb[145].mxu1 }
 0xfb2   :  { %v7655_v54 = vadd.f32 %v16117_v57, %v16119_v30 }
 0xfb4   :  { %v16123_v25 = vpop.f32.mrb[146].mxu1 }
 0xfb5   :  { %v16125_v56 = vpop.f32.mrb[147].mxu1 }
 0xfb6   :  { %v7656_v4 = vadd.f32 %v7655_v54, %v16125_v56 }
 0xfb8   :  { %v16128_v62 = vpop.f32.mrb[148].mxu1  ;;  %v7657_v47 = vadd.f32 %v16123_v25, %v7656_v4 }
 0xfb9   :  { %v16131_v28 = vpop.f32.mrb[149].mxu1 }
 0xfba   :  { %v7658_v41 = vadd.f32 %v7657_v47, %v16131_v28 }
 0xfbc   :  { %v16134_v22 = vpop.f32.mrb[150].mxu1  ;;  %v7659_v44 = vadd.f32 %v16128_v62, %v7658_v41 }
 0xfbd   :  { %v16137_v24 = vpop.f32.mrb[151].mxu1 }
 0xfbe   :  { %v7660_v49 = vadd.f32 %v7659_v44, %v16137_v24 }
 0xfc0   :  { %v16140_v21 = vpop.f32.mrb[152].mxu1  ;;  %v7661_v6 = vadd.f32 %v16134_v22, %v7660_v49 }
 0xfc1   :  { %v16143_v32 = vpop.f32.mrb[153].mxu1 }
 0xfc2   :  { %v7662_v23 = vadd.f32 %v7661_v6, %v16143_v32 }
 0xfc4   :  { %v16146_v2 = vpop.f32.mrb[154].mxu1  ;;  %v7663_v20 = vadd.f32 %v16140_v21, %v7662_v23 }
 0xfc5   :  { %v16149_v5 = vpop.f32.mrb[155].mxu1 }
 0xfc6   :  { %v7664_v9 = vadd.f32 %v7663_v20, %v16149_v5 }
 0xfc8   :  { %v16152_v0 = vpop.f32.mrb[156].mxu1  ;;  %v7665_v18 = vadd.f32 %v16146_v2, %v7664_v9 }
 0xfc9   :  { %v16155_v38 = vpop.f32.mrb[157].mxu1 }
 0xfca   :  { %v7666_v15 = vadd.f32 %v7665_v18, %v16155_v38 }
 0xfcc   :  { %v16158_v11 = vpop.f32.mrb[158].mxu1  ;;  %v7667_v10 = vadd.f32 %v16152_v0, %v7666_v15 }
 0xfcd   :  { %v16161_v3 = vpop.f32.mrb[159].mxu1 }
 0xfce   :  { %v7668_v43 = vadd.f32 %v7667_v10, %v16161_v3 }
 0xfd0   :  { %v7669_v27 = vadd.f32 %v16158_v11, %v7668_v43 }
 0xfd2   :  { %v7670_v55 = vrot.slane %v7669_v27, 4 }
 0xfd4   :  { %v7671_v34 = vadd.f32 %v7670_v55, %v7669_v27 }
 0xfd6   :  { %v7672_v40 = vrot.slane %v7671_v34, 2 }
 0xfd8   :  { %v7673_v29 = vadd.f32 %v7672_v40, %v7671_v34 }
 0xfda   :  { %v7674_v8 = vrot.slane %v7673_v29, 1 }
 0xfdc   :  { %v7675_v42 = vadd.f32 %v7674_v8, %v7673_v29 }
 0xfde   :  { %v7676_v1 = vmul.f32 0.0078125, %v7675_v42 }
 0xfe0   :  { %v7677_v52 = vsub.f32 %v16119_v30, %v7676_v1  ;;  %v7678_v53 = vsub.f32 %v16117_v57, %v7676_v1  ;;  %v7679_v50 = vsub.f32 %v16125_v56, %v7676_v1  ;;  %v7680_v45 = vsub.f32 %v16123_v25, %v7676_v1 }
 0xfe1   :  { %v7681_v61 = vsub.f32 %v16131_v28, %v7676_v1  ;;  %v7682_v7 = vsub.f32 %v16128_v62, %v7676_v1  ;;  %v7683_v19 = vsub.f32 %v16137_v24, %v7676_v1  ;;  %v7684_v60 = vsub.f32 %v16134_v22, %v7676_v1 }
 0xfe2   :  { %v7685_v63 = vsub.f32 %v16143_v32, %v7676_v1  ;;  %v7686_v36 = vsub.f32 %v16140_v21, %v7676_v1  ;;  %v7687_v16 = vsub.f32 %v16149_v5, %v7676_v1  ;;  %v7688_v37 = vsub.f32 %v16146_v2, %v7676_v1 }
 0xfe3   :  { %v7689_v26 = vsub.f32 %v16155_v38, %v7676_v1  ;;  %v7690_v58 = vsub.f32 %v16152_v0, %v7676_v1  ;;  %v7691_v48 = vsub.f32 %v16161_v3, %v7676_v1  ;;  %v7692_v39 = vsub.f32 %v16158_v11, %v7676_v1 }
 0xfe4   :  { %v7693_v59 = vmul.f32 %v7677_v52, %v7677_v52  ;;  %v7694_v54 = vmul.f32 %v7678_v53, %v7678_v53  ;;  %v7695_v4 = vmul.f32 %v7679_v50, %v7679_v50  ;;  %v7696_v41 = vmul.f32 %v7680_v45, %v7680_v45 }
 0xfe5   :  { %v7697_v49 = vmul.f32 %v7681_v61, %v7681_v61  ;;  %v7698_v23 = vmul.f32 %v7682_v7, %v7682_v7  ;;  %v7699_v9 = vmul.f32 %v7683_v19, %v7683_v19  ;;  %v7700_v15 = vmul.f32 %v7684_v60, %v7684_v60 }
 0xfe6   :  { %v7709_v47 = vadd.f32 %v7694_v54, %v7693_v59  ;;  %v7701_v43 = vmul.f32 %v7685_v63, %v7685_v63  ;;  %v7702_v55 = vmul.f32 %v7686_v36, %v7686_v36  ;;  %v7703_v40 = vmul.f32 %v7687_v16, %v7687_v16 }
 0xfe7   :  { %v7704_v8 = vmul.f32 %v7688_v37, %v7688_v37  ;;  %v7705_v52 = vmul.f32 %v7689_v26, %v7689_v26  ;;  %v7706_v50 = vmul.f32 %v7690_v58, %v7690_v58  ;;  %v7707_v61 = vmul.f32 %v7691_v48, %v7691_v48 }
 0xfe8   :  { %v7710_v44 = vadd.f32 %v7709_v47, %v7695_v4  ;;  %v7708_v7 = vmul.f32 %v7692_v39, %v7692_v39 }
 0xfea   :  { %v7711_v6 = vadd.f32 %v7710_v44, %v7696_v41 }
 0xfec   :  { %v7712_v20 = vadd.f32 %v7711_v6, %v7697_v49 }
 0xfee   :  { %v7713_v18 = vadd.f32 %v7712_v20, %v7698_v23 }
 0xff0   :  { %v7714_v10 = vadd.f32 %v7713_v18, %v7699_v9 }
 0xff2   :  { %v7715_v27 = vadd.f32 %v7714_v10, %v7700_v15 }
 0xff4   :  { %v7716_v34 = vadd.f32 %v7715_v27, %v7701_v43 }
 0xff6   :  { %v7717_v29 = vadd.f32 %v7716_v34, %v7702_v55 }
 0xff8   :  { %v7718_v42 = vadd.f32 %v7717_v29, %v7703_v40 }
 0xffa   :  { %v7719_v53 = vadd.f32 %v7718_v42, %v7704_v8 }
 0xffc   :  { %v7720_v45 = vadd.f32 %v7719_v53, %v7705_v52 }
 0xffe   :  { %v7721_v59 = vadd.f32 %v7720_v45, %v7706_v50 }
0x1000   :  { %v7722_v54 = vadd.f32 %v7721_v59, %v7707_v61  ;;  %v16338_v61 = vld [vmem:[#allocation10_spill] sm:$0xff] }
0x1002   :  { %v7723_v19 = vadd.f32 %v7722_v54, %v7708_v7  ;;  %v16339_v7 = vld [vmem:[#allocation3_spill] sm:$0xff] }
0x1004   :  { %v7724_v4 = vrot.slane %v7723_v19, 4 }
0x1006   :  { %v7725_v60 = vadd.f32 %v7724_v4, %v7723_v19  ;;  %v16340_v19 = vld [vmem:[#allocation14_spill] sm:$0xff] }
0x1008   :  { %v7726_v47 = vrot.slane %v7725_v60, 2 }
0x100a   :  { %v7727_v63 = vadd.f32 %v7726_v47, %v7725_v60  ;;  %v16341_v60 = vld [vmem:[#allocation4_spill] sm:$0xff] }
0x100c   :  { %v7728_v41 = vrot.slane %v7727_v63, 1 }
0x100e   :  { %v7729_v36 = vadd.f32 %v7728_v41, %v7727_v63  ;;  %v16342_v63 = vld [vmem:[#allocation5_spill] sm:$0xff]  ;;  %v16343_v41 = vld [vmem:[#allocation6_spill] sm:$0xff] }
0x1010   :  { %v7730_v44 = vmul.f32 0.0078125, %v7729_v36  ;;  %v16344_v36 = vld [vmem:[#allocation7_spill] sm:$0xff] }
0x1012   :  { %v7731_v16 = vadd.f32 1e-05, %v7730_v44  ;;  %v16345_v44 = vld [vmem:[#allocation8_spill] sm:$0xff] }
0x1014   :  { %12562 = vrsqrt.f32 %v7731_v16  ;;  %v16346_v16 = vld [vmem:[#allocation9_spill] sm:$0xff] }
0x101e   :  { %v12563_v37 = vpop.eup %12562 }
0x101f   :  { %v7733_v26 = vmul.f32 %v16095_v51, %v12563_v37  ;;  %v16347_v37 = vld [vmem:[#allocation15_spill] sm:$0xff] }
0x1021   :  { %v7734_v49 = vmul.f32 %v7733_v26, %v7676_v1  ;;  %v7742_v58 = vrot.slane %v7733_v26, %v13985_v31 }
0x1023   :  { %v7736_v48 = vrot.slane %v7734_v49, 7  ;;  %v7743_v39 = vmul.f32 %v7742_v58, %v16119_v30  ;;  %v7744_v6 = vmul.f32 %v16117_v57, %v7742_v58  ;;  %v7745_v23 = vmul.f32 %v7742_v58, %v16125_v56 }
0x1024   :  { %v7746_v20 = vmul.f32 %v16123_v25, %v7742_v58  ;;  %v7747_v9 = vmul.f32 %v7742_v58, %v16131_v28  ;;  %v7748_v18 = vmul.f32 %v16128_v62, %v7742_v58  ;;  %v7749_v15 = vmul.f32 %v7742_v58, %v16137_v24 }
0x1025   :  { %v7738_v10 = vsub.f32 %v16095_v51, %v7736_v48  ;;  %v7750_v1 = vmul.f32 %v16134_v22, %v7742_v58  ;;  %v7751_v31 = vmul.f32 %v7742_v58, %v16143_v32  ;;  %v7752_v30 = vmul.f32 %v16140_v21, %v7742_v58 }
0x1026   :  { %v7753_v57 = vmul.f32 %v7742_v58, %v16149_v5  ;;  %v7754_v56 = vmul.f32 %v16146_v2, %v7742_v58  ;;  %v7755_v25 = vmul.f32 %v7742_v58, %v16155_v38  ;;  %v7756_v28 = vmul.f32 %v16152_v0, %v7742_v58 }
0x1027   :  { %v7757_v62 = vmul.f32 %v7742_v58, %v16161_v3  ;;  %v7758_v24 = vmul.f32 %v16158_v11, %v7742_v58  ;;  %v7762_v51 = vrot.slane %v7738_v10, %v13990_v12 }
0x1029   :  { %v7763_v43 = vadd.f32 %v7762_v51, %v7743_v39  ;;  %v7764_v22 = vadd.f32 %v7762_v51, %v7744_v6  ;;  %v7765_v27 = vadd.f32 %v7762_v51, %v7745_v23  ;;  %v7766_v32 = vadd.f32 %v7762_v51, %v7746_v20 }
0x102a   :  { %v7767_v55 = vadd.f32 %v7762_v51, %v7747_v9  ;;  %v7768_v21 = vadd.f32 %v7762_v51, %v7748_v18  ;;  %v7769_v34 = vadd.f32 %v7762_v51, %v7749_v15  ;;  %v7770_v5 = vadd.f32 %v7762_v51, %v7750_v1 }
0x102b   :  { %v7771_v40 = vadd.f32 %v7762_v51, %v7751_v31  ;;  %v7772_v2 = vadd.f32 %v7762_v51, %v7752_v30  ;;  %v7773_v29 = vadd.f32 %v7762_v51, %v7753_v57  ;;  %v7774_v38 = vadd.f32 %v7762_v51, %v7754_v56 }
0x102c   :  { %v7775_v8 = vadd.f32 %v7762_v51, %v7755_v25  ;;  %v7776_v0 = vadd.f32 %v7762_v51, %v7756_v28  ;;  %v7777_v42 = vadd.f32 %v7762_v51, %v7757_v62  ;;  %v7778_v3 = vadd.f32 %v7762_v51, %v7758_v24 }
0x102d   :  { %v7779_v11 = vadd.f32 %v7763_v43, %v15199_v33  ;;  %v7780_v12 = vadd.f32 %v7764_v22, %v15211_v46  ;;  %v7781_v52 = vadd.f32 %v7765_v27, %v15222_v35  ;;  %v7782_v53 = vadd.f32 %v7766_v32, %v15233_v14 }
0x102e   :  { %v7783_v50 = vadd.f32 %v7767_v55, %v15244_v13  ;;  %v7784_v45 = vadd.f32 %v7768_v21, %v15255_v17  ;;  %v7785_v59 = vadd.f32 %v7769_v34, %v16338_v61  ;;  %v7786_v54 = vadd.f32 %v7770_v5, %v16339_v7 }
0x102f   :  { %v7787_v4 = vadd.f32 %v7771_v40, %v16340_v19  ;;  %v7788_v47 = vadd.f32 %v7772_v2, %v16341_v60  ;;  %v7789_v33 = vadd.f32 %v7773_v29, %v16342_v63  ;;  %v7790_v46 = vadd.f32 %v7774_v38, %v16343_v41 }
0x1030   :  { %v7791_v35 = vadd.f32 %v7775_v8, %v16344_v36  ;;  %v7792_v14 = vadd.f32 %v7776_v0, %v16345_v44  ;;  %v7793_v13 = vadd.f32 %v7777_v42, %v16346_v16  ;;  %v7794_v17 = vadd.f32 %v7778_v3, %v16347_v37 }
0x1031   :  { %v7795_v26 = vmax.f32 %v7779_v11, 0.0  ;;  %v7796_v49 = vmax.f32 %v7780_v12, 0.0  ;;  %v7797_v58 = vmax.f32 %v7781_v52, 0.0  ;;  %v7798_v48 = vmax.f32 %v7782_v53, 0.0 }
0x1032   :  { %v7799_v39 = vmax.f32 %v7783_v50, 0.0  ;;  %v7800_v6 = vmax.f32 %v7784_v45, 0.0  ;;  %v7801_v23 = vmax.f32 %v7785_v59, 0.0  ;;  %v7802_v20 = vmax.f32 %v7786_v54, 0.0 }
0x1033   :  { %v7803_v9 = vmax.f32 %v7787_v4, 0.0  ;;  %v7804_v18 = vmax.f32 %v7788_v47, 0.0  ;;  %v7805_v15 = vmax.f32 %v7789_v33, 0.0  ;;  %v7806_v10 = vmax.f32 %v7790_v46, 0.0  ;;  %7811 = vst [vmem:[%s16271_s6] sm:$0xff] %v7795_v26  ;;  %7812 = vst [vmem:[%s16271_s6 + $0x8] sm:$0xff] %v7796_v49 }
0x1034   :  { %7813 = vst [vmem:[%s16271_s6 + $0x10] sm:$0xff] %v7797_v58  ;;  %7814 = vst [vmem:[%s16271_s6 + $0x18] sm:$0xff] %v7798_v48  ;;  %v7807_v1 = vmax.f32 %v7791_v35, 0.0  ;;  %v7808_v31 = vmax.f32 %v7792_v14, 0.0  ;;  %v7809_v30 = vmax.f32 %v7793_v13, 0.0  ;;  %v7810_v57 = vmax.f32 %v7794_v17, 0.0 }
0x1035   :  { %7815 = vst [vmem:[%s16271_s6 + $0x20] sm:$0xff] %v7799_v39  ;;  %7816 = vst [vmem:[%s16271_s6 + $0x28] sm:$0xff] %v7800_v6 }
0x1036   :  { %7817 = vst [vmem:[%s16271_s6 + $0x30] sm:$0xff] %v7801_v23  ;;  %7818 = vst [vmem:[%s16271_s6 + $0x38] sm:$0xff] %v7802_v20 }
0x1037   :  { %7819 = vst [vmem:[%s16271_s6 + $0x40] sm:$0xff] %v7803_v9  ;;  %7820 = vst [vmem:[%s16271_s6 + $0x48] sm:$0xff] %v7804_v18 }
0x1038   :  { %7821 = vst [vmem:[%s16271_s6 + $0x50] sm:$0xff] %v7805_v15  ;;  %7822 = vst [vmem:[%s16271_s6 + $0x58] sm:$0xff] %v7806_v10 }
0x1039   :  { %7823 = vst [vmem:[%s16271_s6 + $0x60] sm:$0xff] %v7807_v1  ;;  %7824 = vst [vmem:[%s16271_s6 + $0x68] sm:$0xff] %v7808_v31 }
0x103a   :  { %7825 = vst [vmem:[%s16271_s6 + $0x70] sm:$0xff] %v7809_v30  ;;  %7826 = vst [vmem:[%s16271_s6 + $0x78] sm:$0xff] %v7810_v57 }

</bundles_post_ra>
